<compile_context>
chip_gen: v5e
topology: v5e:2x2
jax: 0.10.0
libtpu: 0.0.40
codegen_flags: <defaults>
</compile_context>

<pallas_src>
import functools
import math

import jax
import jax.numpy as jnp
from jax.experimental import pallas as pl
from jax.experimental.pallas import tpu as pltpu


# ----------------------------- Pallas kernel ---------------------------------
def _spatial_mixer_kernel(
    x_ref,        # (Bt, S, C)
    wqkv_ref,     # (C, 3C)   in_proj_weight, pre-transposed, q-scale folded in
    bqkv_ref,     # (1, 3C)   in_proj_bias, q-scale folded in
    wo_ref,       # (C, C)    out_proj.weight, pre-transposed
    bo_ref,       # (1, C)    out_proj.bias
    ln1_w_ref,    # (1, C)    norm.weight
    ln1_b_ref,    # (1, C)    norm.bias
    w1_ref,       # (C, 2C)   ffn[0].weight, pre-transposed
    b1_ref,       # (1, 2C)   ffn[0].bias
    w2_ref,       # (2C, C)   ffn[3].weight, pre-transposed
    b2_ref,       # (1, C)    ffn[3].bias
    ln2_w_ref,    # (1, C)    norm_channel.weight
    ln2_b_ref,    # (1, C)    norm_channel.bias
    out_ref,      # (Bt, S, C)
    *,
    num_heads: int,
    eps: float,
):
    Bt, S, C = x_ref.shape
    D = C // num_heads

    x2 = x_ref[...].astype(jnp.float32).reshape(Bt * S, C)   # (M, C), M = Bt*S

    # ---- fused QKV projection: one (M, C) x (C, 3C) MXU matmul -------------
    qkv = jnp.dot(x2, wqkv_ref[...], preferred_element_type=jnp.float32) + bqkv_ref[...]
    qkv3 = qkv.reshape(Bt, S, 3 * C)                          # leading-dim split (free)

    # ---- multi-head self attention ------------------------------------------
    # Static head loop, but every matmul is batched over the Bt batch elements.
    # (q is already scaled by 1/sqrt(D) via the folded weights.)
    head_outs = []
    for h in range(num_heads):
        qh = qkv3[:, :, h * D:(h + 1) * D]                    # (Bt, S, D)
        kh = qkv3[:, :, C + h * D:C + (h + 1) * D]            # (Bt, S, D)
        vh = qkv3[:, :, 2 * C + h * D:2 * C + (h + 1) * D]    # (Bt, S, D)

        s = jnp.einsum("bqd,bkd->bqk", qh, kh,
                       preferred_element_type=jnp.float32)    # (Bt, S, S)
        m = jnp.max(s, axis=-1, keepdims=True)
        e = jnp.exp(s - m)
        denom = jnp.sum(e, axis=-1, keepdims=True)
        p = e * pl.reciprocal(denom, approx=True)             # EUP reciprocal
        head_outs.append(
            jnp.einsum("bqk,bkd->bqd", p, vh,
                       preferred_element_type=jnp.float32))   # (Bt, S, D)
    attn = jnp.concatenate(head_outs, axis=-1).reshape(Bt * S, C)

    src2 = jnp.dot(attn, wo_ref[...], preferred_element_type=jnp.float32) + bo_ref[...]

    # ---- residual + LayerNorm (self.norm) -----------------------------------
    src = x2 + src2
    mu = jnp.mean(src, axis=-1, keepdims=True)
    var = jnp.mean(jnp.square(src - mu), axis=-1, keepdims=True)
    src_n = (src - mu) * jax.lax.rsqrt(var + eps) * ln1_w_ref[...] + ln1_b_ref[...]

    # ---- FFN + residual -------------------------------------------------------
    h1 = jnp.maximum(
        jnp.dot(src_n, w1_ref[...], preferred_element_type=jnp.float32) + b1_ref[...],
        0.0)                                                   # (M, 2C)
    y = src_n + jnp.dot(h1, w2_ref[...], preferred_element_type=jnp.float32) + b2_ref[...]

    # ---- LayerNorm (self.norm_channel) ----------------------------------------
    mu2 = jnp.mean(y, axis=-1, keepdims=True)
    var2 = jnp.mean(jnp.square(y - mu2), axis=-1, keepdims=True)
    y_n = (y - mu2) * jax.lax.rsqrt(var2 + eps) * ln2_w_ref[...] + ln2_b_ref[...]

    out_ref[...] = y_n.reshape(Bt, S, C).astype(out_ref.dtype)


# ------------------------------- wrapper --------------------------------------
def _replicated_spec(arr):
    zeros = (0,) * arr.ndim
    return pl.BlockSpec(arr.shape, lambda b: zeros)


def prepare_params(p, *, num_heads):
    """Host-side, one-time weight prep: transpose for (x @ W) layout and fold the
    1/sqrt(head_dim) attention scale into the q part of the QKV projection."""
    C = p["wo"].shape[0]
    D = C // num_heads
    scale = 1.0 / math.sqrt(D)
    q_scale = jnp.concatenate(
        [jnp.full((C,), scale, jnp.float32), jnp.ones((2 * C,), jnp.float32)])
    f32 = lambda a: a.astype(jnp.float32)
    return {
        "wqkv_t": f32(p["wqkv"]).T * q_scale[None, :],   # (C, 3C)
        "bqkv":   f32(p["bqkv"]).reshape(1, 3 * C) * q_scale[None, :],
        "wo_t":   f32(p["wo"]).T,                        # (C, C)
        "bo":     f32(p["bo"]).reshape(1, C),
        "ln1_w":  f32(p["ln1_w"]).reshape(1, C),
        "ln1_b":  f32(p["ln1_b"]).reshape(1, C),
        "w1_t":   f32(p["w1"]).T,                        # (C, 2C)
        "b1":     f32(p["b1"]).reshape(1, 2 * C),
        "w2_t":   f32(p["w2"]).T,                        # (2C, C)
        "b2":     f32(p["b2"]).reshape(1, C),
        "ln2_w":  f32(p["ln2_w"]).reshape(1, C),
        "ln2_b":  f32(p["ln2_b"]).reshape(1, C),
    }


def spatial_mixer_block(x, prepared, *, num_heads=8, eps=1e-5, block_b=8):
    """x: (B, S, C) float32. prepared: output of prepare_params(). Returns (B, S, C)."""
    B, S, C = x.shape
    block_b = math.gcd(block_b, B)   # ensure the batch-block divides B

    kernel = functools.partial(_spatial_mixer_kernel, num_heads=num_heads, eps=eps)

    weight_order = ["wqkv_t", "bqkv", "wo_t", "bo", "ln1_w", "ln1_b",
                    "w1_t", "b1", "w2_t", "b2", "ln2_w", "ln2_b"]
    weights = [prepared[k] for k in weight_order]

    return pl.pallas_call(
        kernel,
        out_shape=jax.ShapeDtypeStruct((B, S, C), x.dtype),
        grid_spec=pltpu.PrefetchScalarGridSpec(
            num_scalar_prefetch=0,
            grid=(B // block_b,),
            in_specs=[pl.BlockSpec((block_b, S, C), lambda b: (b, 0, 0))]
                     + [_replicated_spec(w) for w in weights],
            out_specs=pl.BlockSpec((block_b, S, C), lambda b: (b, 0, 0)),
        ),
        compiler_params=pltpu.CompilerParams(dimension_semantics=("parallel",)),
    )(x, *weights)


# --------------------------- pure-JAX reference --------------------------------
def spatial_mixer_ref(x, p, num_heads=8, eps=1e-5):
    B, S, C = x.shape
    D = C // num_heads
    qkv = jnp.einsum("bsc,dc->bsd", x, p["wqkv"]) + p["bqkv"]          # (B,S,3C)
    q, k, v = jnp.split(qkv, 3, axis=-1)
    qh = q.reshape(B, S, num_heads, D).transpose(0, 2, 1, 3)
    kh = k.reshape(B, S, num_heads, D).transpose(0, 2, 1, 3)
    vh = v.reshape(B, S, num_heads, D).transpose(0, 2, 1, 3)
    scores = jnp.einsum("bhqd,bhkd->bhqk", qh, kh) / math.sqrt(D)
    attn = jax.nn.softmax(scores, axis=-1)
    out = jnp.einsum("bhqk,bhkd->bhqd", attn, vh).transpose(0, 2, 1, 3).reshape(B, S, C)
    src2 = jnp.einsum("bsc,dc->bsd", out, p["wo"]) + p["bo"]
    src = x + src2

    def ln(z, w, b):
        mu = z.mean(-1, keepdims=True)
        var = ((z - mu) ** 2).mean(-1, keepdims=True)
        return (z - mu) * jax.lax.rsqrt(var + eps) * w + b

    src_n = ln(src, p["ln1_w"], p["ln1_b"])
    h1 = jax.nn.relu(jnp.einsum("bsc,dc->bsd", src_n, p["w1"]) + p["b1"])
    ffn = jnp.einsum("bsd,cd->bsc", h1, p["w2"]) + p["b2"]
    y = src_n + ffn
    return ln(y, p["ln2_w"], p["ln2_b"])


# ----------------------------------- main --------------------------------------
if __name__ == "__main__":
    B, S, C = 16, 16, 32          # batch, tokens (grid_size**2-ish), channels
    H = 8                         # num heads in nn.MultiheadAttention(channels, 8)

    key = jax.random.PRNGKey(0)
    keys = jax.random.split(key, 16)

    def w(k, shape, scale=0.1):
        return (scale * jax.random.normal(k, shape)).astype(jnp.float32)

    params = {
        "wqkv": w(keys[0], (3 * C, C)),
        "bqkv": w(keys[1], (3 * C,)),
        "wo":   w(keys[2], (C, C)),
        "bo":   w(keys[3], (C,)),
        "ln1_w": (1.0 + w(keys[4], (C,))),
        "ln1_b": w(keys[5], (C,)),
        "w1":   w(keys[6], (2 * C, C)),
        "b1":   w(keys[7], (2 * C,)),
        "w2":   w(keys[8], (C, 2 * C)),
        "b2":   w(keys[9], (C,)),
        "ln2_w": (1.0 + w(keys[10], (C,))),
        "ln2_b": w(keys[11], (C,)),
    }

    x = jax.random.normal(keys[12], (B, S, C), dtype=jnp.float32)

    prepared = prepare_params(params, num_heads=H)
    out = spatial_mixer_block(x, prepared, num_heads=H, block_b=8)
    out = jax.block_until_ready(out)

    ref = spatial_mixer_ref(x, params, num_heads=H)
    assert out.shape == (B, S, C)
    assert jnp.allclose(out, ref, atol=1e-3, rtol=1e-3), "mismatch vs. JAX reference"

    print("KERNEL_OK")
</pallas_src>

<mosaic_0001>
module attributes {stable_mosaic.version = 11 : i64} {
  func.func @_spatial_mixer_kernel(%arg0: i32, %arg1: memref<8x16x32xf32, #tpu.memory_space<vmem>>, %arg2: memref<32x96xf32, #tpu.memory_space<vmem>>, %arg3: memref<1x96xf32, #tpu.memory_space<vmem>>, %arg4: memref<32x32xf32, #tpu.memory_space<vmem>>, %arg5: memref<1x32xf32, #tpu.memory_space<vmem>>, %arg6: memref<1x32xf32, #tpu.memory_space<vmem>>, %arg7: memref<1x32xf32, #tpu.memory_space<vmem>>, %arg8: memref<32x64xf32, #tpu.memory_space<vmem>>, %arg9: memref<1x64xf32, #tpu.memory_space<vmem>>, %arg10: memref<64x32xf32, #tpu.memory_space<vmem>>, %arg11: memref<1x32xf32, #tpu.memory_space<vmem>>, %arg12: memref<1x32xf32, #tpu.memory_space<vmem>>, %arg13: memref<1x32xf32, #tpu.memory_space<vmem>>, %arg14: memref<8x16x32xf32, #tpu.memory_space<vmem>>) attributes {dimension_semantics = [#tpu.dimension_semantics<parallel>], iteration_bounds = array<i64: 2>, scalar_prefetch = 0 : i64, scratch_operands = 0 : i64, tpu.core_type = #tpu.core_type<tc>, window_params = [{transform_indices = @transform_0, window_bounds = array<i64: 8, 16, 32>}, {pipeline_mode = #tpu.pipeline_mode<synchronous>, transform_indices = @transform_1, window_bounds = array<i64: 32, 96>}, {pipeline_mode = #tpu.pipeline_mode<synchronous>, transform_indices = @transform_2, window_bounds = array<i64: 1, 96>}, {pipeline_mode = #tpu.pipeline_mode<synchronous>, transform_indices = @transform_3, window_bounds = array<i64: 32, 32>}, {pipeline_mode = #tpu.pipeline_mode<synchronous>, transform_indices = @transform_4, window_bounds = array<i64: 1, 32>}, {pipeline_mode = #tpu.pipeline_mode<synchronous>, transform_indices = @transform_5, window_bounds = array<i64: 1, 32>}, {pipeline_mode = #tpu.pipeline_mode<synchronous>, transform_indices = @transform_6, window_bounds = array<i64: 1, 32>}, {pipeline_mode = #tpu.pipeline_mode<synchronous>, transform_indices = @transform_7, window_bounds = array<i64: 32, 64>}, {pipeline_mode = #tpu.pipeline_mode<synchronous>, transform_indices = @transform_8, window_bounds = array<i64: 1, 64>}, {pipeline_mode = #tpu.pipeline_mode<synchronous>, transform_indices = @transform_9, window_bounds = array<i64: 64, 32>}, {pipeline_mode = #tpu.pipeline_mode<synchronous>, transform_indices = @transform_10, window_bounds = array<i64: 1, 32>}, {pipeline_mode = #tpu.pipeline_mode<synchronous>, transform_indices = @transform_11, window_bounds = array<i64: 1, 32>}, {pipeline_mode = #tpu.pipeline_mode<synchronous>, transform_indices = @transform_12, window_bounds = array<i64: 1, 32>}, {transform_indices = @transform_13, window_bounds = array<i64: 8, 16, 32>}]} {
    %c0 = arith.constant 0 : index
    %c0_0 = arith.constant 0 : index
    %c0_1 = arith.constant 0 : index
    %0 = vector.load %arg1[%c0, %c0_0, %c0_1] : memref<8x16x32xf32, #tpu.memory_space<vmem>>, vector<8x16x32xf32>
    %1 = vector.shape_cast %0 : vector<8x16x32xf32> to vector<128x32xf32>
    %c0_2 = arith.constant 0 : index
    %c0_3 = arith.constant 0 : index
    %2 = vector.load %arg2[%c0_2, %c0_3] : memref<32x96xf32, #tpu.memory_space<vmem>>, vector<32x96xf32>
    %cst = arith.constant dense<0.000000e+00> : vector<128x96xf32>
    %3 = tpu.matmul %1, %2, %cst {dimension_numbers = #tpu.dot_dimension_numbers<[1], [0], [0], [1], [0, 0, 1, 1], [], []>} : vector<128x32xf32>, vector<32x96xf32>, vector<128x96xf32> -> vector<128x96xf32>
    %c0_4 = arith.constant 0 : index
    %c0_5 = arith.constant 0 : index
    %4 = vector.load %arg3[%c0_4, %c0_5] : memref<1x96xf32, #tpu.memory_space<vmem>>, vector<1x96xf32>
    %5 = vector.broadcast %4 : vector<1x96xf32> to vector<128x96xf32>
    %6 = arith.addf %3, %5 : vector<128x96xf32>
    %7 = vector.shape_cast %6 : vector<128x96xf32> to vector<8x16x96xf32>
    %8 = vector.extract_strided_slice %7 {offsets = [0, 0, 0], sizes = [8, 16, 4], strides = [1, 1, 1]} : vector<8x16x96xf32> to vector<8x16x4xf32>
    %9 = vector.extract_strided_slice %7 {offsets = [0, 0, 32], sizes = [8, 16, 4], strides = [1, 1, 1]} : vector<8x16x96xf32> to vector<8x16x4xf32>
    %10 = vector.extract_strided_slice %7 {offsets = [0, 0, 64], sizes = [8, 16, 4], strides = [1, 1, 1]} : vector<8x16x96xf32> to vector<8x16x4xf32>
    "tpu.trace_start"() <{level = 10 : i32, message = "bqd,bkd->bqk"}> : () -> ()
    %cst_6 = arith.constant dense<0.000000e+00> : vector<8x16x16xf32>
    %11 = tpu.matmul %8, %9, %cst_6 {dimension_numbers = #tpu.dot_dimension_numbers<[2], [2], [1], [1], [0, 0, 0, 1, 1, 1], [0], [0]>} : vector<8x16x4xf32>, vector<8x16x4xf32>, vector<8x16x16xf32> -> vector<8x16x16xf32>
    "tpu.trace_stop"() : () -> ()
    %cst_7 = arith.constant dense<0xFF800000> : vector<8x16xf32>
    %12 = vector.multi_reduction <maximumf>, %11, %cst_7 [2] : vector<8x16x16xf32> to vector<8x16xf32>
    %13 = vector.shape_cast %12 : vector<8x16xf32> to vector<8x16x1xf32>
    %14 = vector.broadcast %13 : vector<8x16x1xf32> to vector<8x16x16xf32>
    %15 = arith.subf %11, %14 : vector<8x16x16xf32>
    %16 = math.exp %15 : vector<8x16x16xf32>
    %cst_8 = arith.constant dense<0.000000e+00> : vector<8x16xf32>
    %17 = vector.multi_reduction <add>, %16, %cst_8 [2] : vector<8x16x16xf32> to vector<8x16xf32>
    %18 = vector.shape_cast %17 : vector<8x16xf32> to vector<8x16x1xf32>
    %19 = tpu.reciprocal %18 {approx = true} : vector<8x16x1xf32> -> vector<8x16x1xf32>
    %20 = vector.broadcast %19 : vector<8x16x1xf32> to vector<8x16x16xf32>
    %21 = arith.mulf %16, %20 : vector<8x16x16xf32>
    "tpu.trace_start"() <{level = 10 : i32, message = "bqk,bkd->bqd"}> : () -> ()
    %cst_9 = arith.constant dense<0.000000e+00> : vector<8x16x4xf32>
    %22 = tpu.matmul %21, %10, %cst_9 {dimension_numbers = #tpu.dot_dimension_numbers<[2], [1], [1], [2], [0, 0, 0, 1, 1, 2], [0], [0]>} : vector<8x16x16xf32>, vector<8x16x4xf32>, vector<8x16x4xf32> -> vector<8x16x4xf32>
    "tpu.trace_stop"() : () -> ()
    %23 = vector.extract_strided_slice %7 {offsets = [0, 0, 4], sizes = [8, 16, 4], strides = [1, 1, 1]} : vector<8x16x96xf32> to vector<8x16x4xf32>
    %24 = vector.extract_strided_slice %7 {offsets = [0, 0, 36], sizes = [8, 16, 4], strides = [1, 1, 1]} : vector<8x16x96xf32> to vector<8x16x4xf32>
    %25 = vector.extract_strided_slice %7 {offsets = [0, 0, 68], sizes = [8, 16, 4], strides = [1, 1, 1]} : vector<8x16x96xf32> to vector<8x16x4xf32>
    "tpu.trace_start"() <{level = 10 : i32, message = "bqd,bkd->bqk"}> : () -> ()
    %cst_10 = arith.constant dense<0.000000e+00> : vector<8x16x16xf32>
    %26 = tpu.matmul %23, %24, %cst_10 {dimension_numbers = #tpu.dot_dimension_numbers<[2], [2], [1], [1], [0, 0, 0, 1, 1, 1], [0], [0]>} : vector<8x16x4xf32>, vector<8x16x4xf32>, vector<8x16x16xf32> -> vector<8x16x16xf32>
    "tpu.trace_stop"() : () -> ()
    %cst_11 = arith.constant dense<0xFF800000> : vector<8x16xf32>
    %27 = vector.multi_reduction <maximumf>, %26, %cst_11 [2] : vector<8x16x16xf32> to vector<8x16xf32>
    %28 = vector.shape_cast %27 : vector<8x16xf32> to vector<8x16x1xf32>
    %29 = vector.broadcast %28 : vector<8x16x1xf32> to vector<8x16x16xf32>
    %30 = arith.subf %26, %29 : vector<8x16x16xf32>
    %31 = math.exp %30 : vector<8x16x16xf32>
    %cst_12 = arith.constant dense<0.000000e+00> : vector<8x16xf32>
    %32 = vector.multi_reduction <add>, %31, %cst_12 [2] : vector<8x16x16xf32> to vector<8x16xf32>
    %33 = vector.shape_cast %32 : vector<8x16xf32> to vector<8x16x1xf32>
    %34 = tpu.reciprocal %33 {approx = true} : vector<8x16x1xf32> -> vector<8x16x1xf32>
    %35 = vector.broadcast %34 : vector<8x16x1xf32> to vector<8x16x16xf32>
    %36 = arith.mulf %31, %35 : vector<8x16x16xf32>
    "tpu.trace_start"() <{level = 10 : i32, message = "bqk,bkd->bqd"}> : () -> ()
    %cst_13 = arith.constant dense<0.000000e+00> : vector<8x16x4xf32>
    %37 = tpu.matmul %36, %25, %cst_13 {dimension_numbers = #tpu.dot_dimension_numbers<[2], [1], [1], [2], [0, 0, 0, 1, 1, 2], [0], [0]>} : vector<8x16x16xf32>, vector<8x16x4xf32>, vector<8x16x4xf32> -> vector<8x16x4xf32>
    "tpu.trace_stop"() : () -> ()
    %38 = vector.extract_strided_slice %7 {offsets = [0, 0, 8], sizes = [8, 16, 4], strides = [1, 1, 1]} : vector<8x16x96xf32> to vector<8x16x4xf32>
    %39 = vector.extract_strided_slice %7 {offsets = [0, 0, 40], sizes = [8, 16, 4], strides = [1, 1, 1]} : vector<8x16x96xf32> to vector<8x16x4xf32>
    %40 = vector.extract_strided_slice %7 {offsets = [0, 0, 72], sizes = [8, 16, 4], strides = [1, 1, 1]} : vector<8x16x96xf32> to vector<8x16x4xf32>
    "tpu.trace_start"() <{level = 10 : i32, message = "bqd,bkd->bqk"}> : () -> ()
    %cst_14 = arith.constant dense<0.000000e+00> : vector<8x16x16xf32>
    %41 = tpu.matmul %38, %39, %cst_14 {dimension_numbers = #tpu.dot_dimension_numbers<[2], [2], [1], [1], [0, 0, 0, 1, 1, 1], [0], [0]>} : vector<8x16x4xf32>, vector<8x16x4xf32>, vector<8x16x16xf32> -> vector<8x16x16xf32>
    "tpu.trace_stop"() : () -> ()
    %cst_15 = arith.constant dense<0xFF800000> : vector<8x16xf32>
    %42 = vector.multi_reduction <maximumf>, %41, %cst_15 [2] : vector<8x16x16xf32> to vector<8x16xf32>
    %43 = vector.shape_cast %42 : vector<8x16xf32> to vector<8x16x1xf32>
    %44 = vector.broadcast %43 : vector<8x16x1xf32> to vector<8x16x16xf32>
    %45 = arith.subf %41, %44 : vector<8x16x16xf32>
    %46 = math.exp %45 : vector<8x16x16xf32>
    %cst_16 = arith.constant dense<0.000000e+00> : vector<8x16xf32>
    %47 = vector.multi_reduction <add>, %46, %cst_16 [2] : vector<8x16x16xf32> to vector<8x16xf32>
    %48 = vector.shape_cast %47 : vector<8x16xf32> to vector<8x16x1xf32>
    %49 = tpu.reciprocal %48 {approx = true} : vector<8x16x1xf32> -> vector<8x16x1xf32>
    %50 = vector.broadcast %49 : vector<8x16x1xf32> to vector<8x16x16xf32>
    %51 = arith.mulf %46, %50 : vector<8x16x16xf32>
    "tpu.trace_start"() <{level = 10 : i32, message = "bqk,bkd->bqd"}> : () -> ()
    %cst_17 = arith.constant dense<0.000000e+00> : vector<8x16x4xf32>
    %52 = tpu.matmul %51, %40, %cst_17 {dimension_numbers = #tpu.dot_dimension_numbers<[2], [1], [1], [2], [0, 0, 0, 1, 1, 2], [0], [0]>} : vector<8x16x16xf32>, vector<8x16x4xf32>, vector<8x16x4xf32> -> vector<8x16x4xf32>
    "tpu.trace_stop"() : () -> ()
    %53 = vector.extract_strided_slice %7 {offsets = [0, 0, 12], sizes = [8, 16, 4], strides = [1, 1, 1]} : vector<8x16x96xf32> to vector<8x16x4xf32>
    %54 = vector.extract_strided_slice %7 {offsets = [0, 0, 44], sizes = [8, 16, 4], strides = [1, 1, 1]} : vector<8x16x96xf32> to vector<8x16x4xf32>
    %55 = vector.extract_strided_slice %7 {offsets = [0, 0, 76], sizes = [8, 16, 4], strides = [1, 1, 1]} : vector<8x16x96xf32> to vector<8x16x4xf32>
    "tpu.trace_start"() <{level = 10 : i32, message = "bqd,bkd->bqk"}> : () -> ()
    %cst_18 = arith.constant dense<0.000000e+00> : vector<8x16x16xf32>
    %56 = tpu.matmul %53, %54, %cst_18 {dimension_numbers = #tpu.dot_dimension_numbers<[2], [2], [1], [1], [0, 0, 0, 1, 1, 1], [0], [0]>} : vector<8x16x4xf32>, vector<8x16x4xf32>, vector<8x16x16xf32> -> vector<8x16x16xf32>
    "tpu.trace_stop"() : () -> ()
    %cst_19 = arith.constant dense<0xFF800000> : vector<8x16xf32>
    %57 = vector.multi_reduction <maximumf>, %56, %cst_19 [2] : vector<8x16x16xf32> to vector<8x16xf32>
    %58 = vector.shape_cast %57 : vector<8x16xf32> to vector<8x16x1xf32>
    %59 = vector.broadcast %58 : vector<8x16x1xf32> to vector<8x16x16xf32>
    %60 = arith.subf %56, %59 : vector<8x16x16xf32>
    %61 = math.exp %60 : vector<8x16x16xf32>
    %cst_20 = arith.constant dense<0.000000e+00> : vector<8x16xf32>
    %62 = vector.multi_reduction <add>, %61, %cst_20 [2] : vector<8x16x16xf32> to vector<8x16xf32>
    %63 = vector.shape_cast %62 : vector<8x16xf32> to vector<8x16x1xf32>
    %64 = tpu.reciprocal %63 {approx = true} : vector<8x16x1xf32> -> vector<8x16x1xf32>
    %65 = vector.broadcast %64 : vector<8x16x1xf32> to vector<8x16x16xf32>
    %66 = arith.mulf %61, %65 : vector<8x16x16xf32>
    "tpu.trace_start"() <{level = 10 : i32, message = "bqk,bkd->bqd"}> : () -> ()
    %cst_21 = arith.constant dense<0.000000e+00> : vector<8x16x4xf32>
    %67 = tpu.matmul %66, %55, %cst_21 {dimension_numbers = #tpu.dot_dimension_numbers<[2], [1], [1], [2], [0, 0, 0, 1, 1, 2], [0], [0]>} : vector<8x16x16xf32>, vector<8x16x4xf32>, vector<8x16x4xf32> -> vector<8x16x4xf32>
    "tpu.trace_stop"() : () -> ()
    %68 = vector.extract_strided_slice %7 {offsets = [0, 0, 16], sizes = [8, 16, 4], strides = [1, 1, 1]} : vector<8x16x96xf32> to vector<8x16x4xf32>
    %69 = vector.extract_strided_slice %7 {offsets = [0, 0, 48], sizes = [8, 16, 4], strides = [1, 1, 1]} : vector<8x16x96xf32> to vector<8x16x4xf32>
    %70 = vector.extract_strided_slice %7 {offsets = [0, 0, 80], sizes = [8, 16, 4], strides = [1, 1, 1]} : vector<8x16x96xf32> to vector<8x16x4xf32>
    "tpu.trace_start"() <{level = 10 : i32, message = "bqd,bkd->bqk"}> : () -> ()
    %cst_22 = arith.constant dense<0.000000e+00> : vector<8x16x16xf32>
    %71 = tpu.matmul %68, %69, %cst_22 {dimension_numbers = #tpu.dot_dimension_numbers<[2], [2], [1], [1], [0, 0, 0, 1, 1, 1], [0], [0]>} : vector<8x16x4xf32>, vector<8x16x4xf32>, vector<8x16x16xf32> -> vector<8x16x16xf32>
    "tpu.trace_stop"() : () -> ()
    %cst_23 = arith.constant dense<0xFF800000> : vector<8x16xf32>
    %72 = vector.multi_reduction <maximumf>, %71, %cst_23 [2] : vector<8x16x16xf32> to vector<8x16xf32>
    %73 = vector.shape_cast %72 : vector<8x16xf32> to vector<8x16x1xf32>
    %74 = vector.broadcast %73 : vector<8x16x1xf32> to vector<8x16x16xf32>
    %75 = arith.subf %71, %74 : vector<8x16x16xf32>
    %76 = math.exp %75 : vector<8x16x16xf32>
    %cst_24 = arith.constant dense<0.000000e+00> : vector<8x16xf32>
    %77 = vector.multi_reduction <add>, %76, %cst_24 [2] : vector<8x16x16xf32> to vector<8x16xf32>
    %78 = vector.shape_cast %77 : vector<8x16xf32> to vector<8x16x1xf32>
    %79 = tpu.reciprocal %78 {approx = true} : vector<8x16x1xf32> -> vector<8x16x1xf32>
    %80 = vector.broadcast %79 : vector<8x16x1xf32> to vector<8x16x16xf32>
    %81 = arith.mulf %76, %80 : vector<8x16x16xf32>
    "tpu.trace_start"() <{level = 10 : i32, message = "bqk,bkd->bqd"}> : () -> ()
    %cst_25 = arith.constant dense<0.000000e+00> : vector<8x16x4xf32>
    %82 = tpu.matmul %81, %70, %cst_25 {dimension_numbers = #tpu.dot_dimension_numbers<[2], [1], [1], [2], [0, 0, 0, 1, 1, 2], [0], [0]>} : vector<8x16x16xf32>, vector<8x16x4xf32>, vector<8x16x4xf32> -> vector<8x16x4xf32>
    "tpu.trace_stop"() : () -> ()
    %83 = vector.extract_strided_slice %7 {offsets = [0, 0, 20], sizes = [8, 16, 4], strides = [1, 1, 1]} : vector<8x16x96xf32> to vector<8x16x4xf32>
    %84 = vector.extract_strided_slice %7 {offsets = [0, 0, 52], sizes = [8, 16, 4], strides = [1, 1, 1]} : vector<8x16x96xf32> to vector<8x16x4xf32>
    %85 = vector.extract_strided_slice %7 {offsets = [0, 0, 84], sizes = [8, 16, 4], strides = [1, 1, 1]} : vector<8x16x96xf32> to vector<8x16x4xf32>
    "tpu.trace_start"() <{level = 10 : i32, message = "bqd,bkd->bqk"}> : () -> ()
    %cst_26 = arith.constant dense<0.000000e+00> : vector<8x16x16xf32>
    %86 = tpu.matmul %83, %84, %cst_26 {dimension_numbers = #tpu.dot_dimension_numbers<[2], [2], [1], [1], [0, 0, 0, 1, 1, 1], [0], [0]>} : vector<8x16x4xf32>, vector<8x16x4xf32>, vector<8x16x16xf32> -> vector<8x16x16xf32>
    "tpu.trace_stop"() : () -> ()
    %cst_27 = arith.constant dense<0xFF800000> : vector<8x16xf32>
    %87 = vector.multi_reduction <maximumf>, %86, %cst_27 [2] : vector<8x16x16xf32> to vector<8x16xf32>
    %88 = vector.shape_cast %87 : vector<8x16xf32> to vector<8x16x1xf32>
    %89 = vector.broadcast %88 : vector<8x16x1xf32> to vector<8x16x16xf32>
    %90 = arith.subf %86, %89 : vector<8x16x16xf32>
    %91 = math.exp %90 : vector<8x16x16xf32>
    %cst_28 = arith.constant dense<0.000000e+00> : vector<8x16xf32>
    %92 = vector.multi_reduction <add>, %91, %cst_28 [2] : vector<8x16x16xf32> to vector<8x16xf32>
    %93 = vector.shape_cast %92 : vector<8x16xf32> to vector<8x16x1xf32>
    %94 = tpu.reciprocal %93 {approx = true} : vector<8x16x1xf32> -> vector<8x16x1xf32>
    %95 = vector.broadcast %94 : vector<8x16x1xf32> to vector<8x16x16xf32>
    %96 = arith.mulf %91, %95 : vector<8x16x16xf32>
    "tpu.trace_start"() <{level = 10 : i32, message = "bqk,bkd->bqd"}> : () -> ()
    %cst_29 = arith.constant dense<0.000000e+00> : vector<8x16x4xf32>
    %97 = tpu.matmul %96, %85, %cst_29 {dimension_numbers = #tpu.dot_dimension_numbers<[2], [1], [1], [2], [0, 0, 0, 1, 1, 2], [0], [0]>} : vector<8x16x16xf32>, vector<8x16x4xf32>, vector<8x16x4xf32> -> vector<8x16x4xf32>
    "tpu.trace_stop"() : () -> ()
    %98 = vector.extract_strided_slice %7 {offsets = [0, 0, 24], sizes = [8, 16, 4], strides = [1, 1, 1]} : vector<8x16x96xf32> to vector<8x16x4xf32>
    %99 = vector.extract_strided_slice %7 {offsets = [0, 0, 56], sizes = [8, 16, 4], strides = [1, 1, 1]} : vector<8x16x96xf32> to vector<8x16x4xf32>
    %100 = vector.extract_strided_slice %7 {offsets = [0, 0, 88], sizes = [8, 16, 4], strides = [1, 1, 1]} : vector<8x16x96xf32> to vector<8x16x4xf32>
    "tpu.trace_start"() <{level = 10 : i32, message = "bqd,bkd->bqk"}> : () -> ()
    %cst_30 = arith.constant dense<0.000000e+00> : vector<8x16x16xf32>
    %101 = tpu.matmul %98, %99, %cst_30 {dimension_numbers = #tpu.dot_dimension_numbers<[2], [2], [1], [1], [0, 0, 0, 1, 1, 1], [0], [0]>} : vector<8x16x4xf32>, vector<8x16x4xf32>, vector<8x16x16xf32> -> vector<8x16x16xf32>
    "tpu.trace_stop"() : () -> ()
    %cst_31 = arith.constant dense<0xFF800000> : vector<8x16xf32>
    %102 = vector.multi_reduction <maximumf>, %101, %cst_31 [2] : vector<8x16x16xf32> to vector<8x16xf32>
    %103 = vector.shape_cast %102 : vector<8x16xf32> to vector<8x16x1xf32>
    %104 = vector.broadcast %103 : vector<8x16x1xf32> to vector<8x16x16xf32>
    %105 = arith.subf %101, %104 : vector<8x16x16xf32>
    %106 = math.exp %105 : vector<8x16x16xf32>
    %cst_32 = arith.constant dense<0.000000e+00> : vector<8x16xf32>
    %107 = vector.multi_reduction <add>, %106, %cst_32 [2] : vector<8x16x16xf32> to vector<8x16xf32>
    %108 = vector.shape_cast %107 : vector<8x16xf32> to vector<8x16x1xf32>
    %109 = tpu.reciprocal %108 {approx = true} : vector<8x16x1xf32> -> vector<8x16x1xf32>
    %110 = vector.broadcast %109 : vector<8x16x1xf32> to vector<8x16x16xf32>
    %111 = arith.mulf %106, %110 : vector<8x16x16xf32>
    "tpu.trace_start"() <{level = 10 : i32, message = "bqk,bkd->bqd"}> : () -> ()
    %cst_33 = arith.constant dense<0.000000e+00> : vector<8x16x4xf32>
    %112 = tpu.matmul %111, %100, %cst_33 {dimension_numbers = #tpu.dot_dimension_numbers<[2], [1], [1], [2], [0, 0, 0, 1, 1, 2], [0], [0]>} : vector<8x16x16xf32>, vector<8x16x4xf32>, vector<8x16x4xf32> -> vector<8x16x4xf32>
    "tpu.trace_stop"() : () -> ()
    %113 = vector.extract_strided_slice %7 {offsets = [0, 0, 28], sizes = [8, 16, 4], strides = [1, 1, 1]} : vector<8x16x96xf32> to vector<8x16x4xf32>
    %114 = vector.extract_strided_slice %7 {offsets = [0, 0, 60], sizes = [8, 16, 4], strides = [1, 1, 1]} : vector<8x16x96xf32> to vector<8x16x4xf32>
    %115 = vector.extract_strided_slice %7 {offsets = [0, 0, 92], sizes = [8, 16, 4], strides = [1, 1, 1]} : vector<8x16x96xf32> to vector<8x16x4xf32>
    "tpu.trace_start"() <{level = 10 : i32, message = "bqd,bkd->bqk"}> : () -> ()
    %cst_34 = arith.constant dense<0.000000e+00> : vector<8x16x16xf32>
    %116 = tpu.matmul %113, %114, %cst_34 {dimension_numbers = #tpu.dot_dimension_numbers<[2], [2], [1], [1], [0, 0, 0, 1, 1, 1], [0], [0]>} : vector<8x16x4xf32>, vector<8x16x4xf32>, vector<8x16x16xf32> -> vector<8x16x16xf32>
    "tpu.trace_stop"() : () -> ()
    %cst_35 = arith.constant dense<0xFF800000> : vector<8x16xf32>
    %117 = vector.multi_reduction <maximumf>, %116, %cst_35 [2] : vector<8x16x16xf32> to vector<8x16xf32>
    %118 = vector.shape_cast %117 : vector<8x16xf32> to vector<8x16x1xf32>
    %119 = vector.broadcast %118 : vector<8x16x1xf32> to vector<8x16x16xf32>
    %120 = arith.subf %116, %119 : vector<8x16x16xf32>
    %121 = math.exp %120 : vector<8x16x16xf32>
    %cst_36 = arith.constant dense<0.000000e+00> : vector<8x16xf32>
    %122 = vector.multi_reduction <add>, %121, %cst_36 [2] : vector<8x16x16xf32> to vector<8x16xf32>
    %123 = vector.shape_cast %122 : vector<8x16xf32> to vector<8x16x1xf32>
    %124 = tpu.reciprocal %123 {approx = true} : vector<8x16x1xf32> -> vector<8x16x1xf32>
    %125 = vector.broadcast %124 : vector<8x16x1xf32> to vector<8x16x16xf32>
    %126 = arith.mulf %121, %125 : vector<8x16x16xf32>
    "tpu.trace_start"() <{level = 10 : i32, message = "bqk,bkd->bqd"}> : () -> ()
    %cst_37 = arith.constant dense<0.000000e+00> : vector<8x16x4xf32>
    %127 = tpu.matmul %126, %115, %cst_37 {dimension_numbers = #tpu.dot_dimension_numbers<[2], [1], [1], [2], [0, 0, 0, 1, 1, 2], [0], [0]>} : vector<8x16x16xf32>, vector<8x16x4xf32>, vector<8x16x4xf32> -> vector<8x16x4xf32>
    "tpu.trace_stop"() : () -> ()
    %128 = tpu.concatenate %22, %37, %52, %67, %82, %97, %112, %127 in 2 : vector<8x16x4xf32>, vector<8x16x4xf32>, vector<8x16x4xf32>, vector<8x16x4xf32>, vector<8x16x4xf32>, vector<8x16x4xf32>, vector<8x16x4xf32>, vector<8x16x4xf32> -> vector<8x16x32xf32>
    %129 = vector.shape_cast %128 : vector<8x16x32xf32> to vector<128x32xf32>
    %c0_38 = arith.constant 0 : index
    %c0_39 = arith.constant 0 : index
    %130 = vector.load %arg4[%c0_38, %c0_39] : memref<32x32xf32, #tpu.memory_space<vmem>>, vector<32x32xf32>
    %cst_40 = arith.constant dense<0.000000e+00> : vector<128x32xf32>
    %131 = tpu.matmul %129, %130, %cst_40 {dimension_numbers = #tpu.dot_dimension_numbers<[1], [0], [0], [1], [0, 0, 1, 1], [], []>} : vector<128x32xf32>, vector<32x32xf32>, vector<128x32xf32> -> vector<128x32xf32>
    %c0_41 = arith.constant 0 : index
    %c0_42 = arith.constant 0 : index
    %132 = vector.load %arg5[%c0_41, %c0_42] : memref<1x32xf32, #tpu.memory_space<vmem>>, vector<1x32xf32>
    %133 = vector.broadcast %132 : vector<1x32xf32> to vector<128x32xf32>
    %134 = arith.addf %131, %133 : vector<128x32xf32>
    %135 = arith.addf %1, %134 : vector<128x32xf32>
    %cst_43 = arith.constant dense<0.000000e+00> : vector<128xf32>
    %136 = vector.multi_reduction <add>, %135, %cst_43 [1] : vector<128x32xf32> to vector<128xf32>
    %137 = vector.shape_cast %136 : vector<128xf32> to vector<128x1xf32>
    %cst_44 = arith.constant 3.200000e+01 : f32
    %138 = vector.broadcast %cst_44 : f32 to vector<128x1xf32>
    %139 = arith.divf %137, %138 : vector<128x1xf32>
    %140 = vector.broadcast %139 : vector<128x1xf32> to vector<128x32xf32>
    %141 = arith.subf %135, %140 : vector<128x32xf32>
    %142 = arith.mulf %141, %141 : vector<128x32xf32>
    %cst_45 = arith.constant dense<0.000000e+00> : vector<128xf32>
    %143 = vector.multi_reduction <add>, %142, %cst_45 [1] : vector<128x32xf32> to vector<128xf32>
    %144 = vector.shape_cast %143 : vector<128xf32> to vector<128x1xf32>
    %cst_46 = arith.constant 3.200000e+01 : f32
    %145 = vector.broadcast %cst_46 : f32 to vector<128x1xf32>
    %146 = arith.divf %144, %145 : vector<128x1xf32>
    %147 = vector.broadcast %139 : vector<128x1xf32> to vector<128x32xf32>
    %148 = arith.subf %135, %147 : vector<128x32xf32>
    %cst_47 = arith.constant 9.99999974E-6 : f32
    %149 = vector.broadcast %cst_47 : f32 to vector<128x1xf32>
    %150 = arith.addf %146, %149 : vector<128x1xf32>
    %151 = math.rsqrt %150 : vector<128x1xf32>
    %152 = vector.broadcast %151 : vector<128x1xf32> to vector<128x32xf32>
    %153 = arith.mulf %148, %152 : vector<128x32xf32>
    %c0_48 = arith.constant 0 : index
    %c0_49 = arith.constant 0 : index
    %154 = vector.load %arg6[%c0_48, %c0_49] : memref<1x32xf32, #tpu.memory_space<vmem>>, vector<1x32xf32>
    %155 = vector.broadcast %154 : vector<1x32xf32> to vector<128x32xf32>
    %156 = arith.mulf %153, %155 : vector<128x32xf32>
    %c0_50 = arith.constant 0 : index
    %c0_51 = arith.constant 0 : index
    %157 = vector.load %arg7[%c0_50, %c0_51] : memref<1x32xf32, #tpu.memory_space<vmem>>, vector<1x32xf32>
    %158 = vector.broadcast %157 : vector<1x32xf32> to vector<128x32xf32>
    %159 = arith.addf %156, %158 : vector<128x32xf32>
    %c0_52 = arith.constant 0 : index
    %c0_53 = arith.constant 0 : index
    %160 = vector.load %arg8[%c0_52, %c0_53] : memref<32x64xf32, #tpu.memory_space<vmem>>, vector<32x64xf32>
    %cst_54 = arith.constant dense<0.000000e+00> : vector<128x64xf32>
    %161 = tpu.matmul %159, %160, %cst_54 {dimension_numbers = #tpu.dot_dimension_numbers<[1], [0], [0], [1], [0, 0, 1, 1], [], []>} : vector<128x32xf32>, vector<32x64xf32>, vector<128x64xf32> -> vector<128x64xf32>
    %c0_55 = arith.constant 0 : index
    %c0_56 = arith.constant 0 : index
    %162 = vector.load %arg9[%c0_55, %c0_56] : memref<1x64xf32, #tpu.memory_space<vmem>>, vector<1x64xf32>
    %163 = vector.broadcast %162 : vector<1x64xf32> to vector<128x64xf32>
    %164 = arith.addf %161, %163 : vector<128x64xf32>
    %cst_57 = arith.constant 0.000000e+00 : f32
    %165 = vector.broadcast %cst_57 : f32 to vector<128x64xf32>
    %166 = arith.maximumf %164, %165 : vector<128x64xf32>
    %c0_58 = arith.constant 0 : index
    %c0_59 = arith.constant 0 : index
    %167 = vector.load %arg10[%c0_58, %c0_59] : memref<64x32xf32, #tpu.memory_space<vmem>>, vector<64x32xf32>
    %cst_60 = arith.constant dense<0.000000e+00> : vector<128x32xf32>
    %168 = tpu.matmul %166, %167, %cst_60 {dimension_numbers = #tpu.dot_dimension_numbers<[1], [0], [0], [1], [0, 0, 1, 1], [], []>} : vector<128x64xf32>, vector<64x32xf32>, vector<128x32xf32> -> vector<128x32xf32>
    %169 = arith.addf %159, %168 : vector<128x32xf32>
    %c0_61 = arith.constant 0 : index
    %c0_62 = arith.constant 0 : index
    %170 = vector.load %arg11[%c0_61, %c0_62] : memref<1x32xf32, #tpu.memory_space<vmem>>, vector<1x32xf32>
    %171 = vector.broadcast %170 : vector<1x32xf32> to vector<128x32xf32>
    %172 = arith.addf %169, %171 : vector<128x32xf32>
    %cst_63 = arith.constant dense<0.000000e+00> : vector<128xf32>
    %173 = vector.multi_reduction <add>, %172, %cst_63 [1] : vector<128x32xf32> to vector<128xf32>
    %174 = vector.shape_cast %173 : vector<128xf32> to vector<128x1xf32>
    %cst_64 = arith.constant 3.200000e+01 : f32
    %175 = vector.broadcast %cst_64 : f32 to vector<128x1xf32>
    %176 = arith.divf %174, %175 : vector<128x1xf32>
    %177 = vector.broadcast %176 : vector<128x1xf32> to vector<128x32xf32>
    %178 = arith.subf %172, %177 : vector<128x32xf32>
    %179 = arith.mulf %178, %178 : vector<128x32xf32>
    %cst_65 = arith.constant dense<0.000000e+00> : vector<128xf32>
    %180 = vector.multi_reduction <add>, %179, %cst_65 [1] : vector<128x32xf32> to vector<128xf32>
    %181 = vector.shape_cast %180 : vector<128xf32> to vector<128x1xf32>
    %cst_66 = arith.constant 3.200000e+01 : f32
    %182 = vector.broadcast %cst_66 : f32 to vector<128x1xf32>
    %183 = arith.divf %181, %182 : vector<128x1xf32>
    %184 = vector.broadcast %176 : vector<128x1xf32> to vector<128x32xf32>
    %185 = arith.subf %172, %184 : vector<128x32xf32>
    %cst_67 = arith.constant 9.99999974E-6 : f32
    %186 = vector.broadcast %cst_67 : f32 to vector<128x1xf32>
    %187 = arith.addf %183, %186 : vector<128x1xf32>
    %188 = math.rsqrt %187 : vector<128x1xf32>
    %189 = vector.broadcast %188 : vector<128x1xf32> to vector<128x32xf32>
    %190 = arith.mulf %185, %189 : vector<128x32xf32>
    %c0_68 = arith.constant 0 : index
    %c0_69 = arith.constant 0 : index
    %191 = vector.load %arg12[%c0_68, %c0_69] : memref<1x32xf32, #tpu.memory_space<vmem>>, vector<1x32xf32>
    %192 = vector.broadcast %191 : vector<1x32xf32> to vector<128x32xf32>
    %193 = arith.mulf %190, %192 : vector<128x32xf32>
    %c0_70 = arith.constant 0 : index
    %c0_71 = arith.constant 0 : index
    %194 = vector.load %arg13[%c0_70, %c0_71] : memref<1x32xf32, #tpu.memory_space<vmem>>, vector<1x32xf32>
    %195 = vector.broadcast %194 : vector<1x32xf32> to vector<128x32xf32>
    %196 = arith.addf %193, %195 : vector<128x32xf32>
    %197 = vector.shape_cast %196 : vector<128x32xf32> to vector<8x16x32xf32>
    %c0_72 = arith.constant 0 : index
    %c0_73 = arith.constant 0 : index
    %c0_74 = arith.constant 0 : index
    %198 = vector.load %arg14[%c0_72, %c0_73, %c0_74] : memref<8x16x32xf32, #tpu.memory_space<vmem>>, vector<8x16x32xf32>
    tpu.vector_store %arg14[%c0_72, %c0_73, %c0_74], %197 {strides = array<i32>} : memref<8x16x32xf32, #tpu.memory_space<vmem>>, vector<8x16x32xf32>,
    return
  }
  func.func @transform_0(%arg0: i32) -> (i32, i32, i32) {
    %c0_i32 = arith.constant 0 : i32
    %c0_i32_0 = arith.constant 0 : i32
    %c0_i32_1 = arith.constant 0 : i32
    return %arg0, %c0_i32, %c0_i32_0 : i32, i32, i32
  }
  func.func @transform_1(%arg0: i32) -> (i32, i32) {
    %c0_i32 = arith.constant 0 : i32
    %c0_i32_0 = arith.constant 0 : i32
    %c0_i32_1 = arith.constant 0 : i32
    return %c0_i32, %c0_i32_0 : i32, i32
  }
  func.func @transform_2(%arg0: i32) -> (i32, i32) {
    %c0_i32 = arith.constant 0 : i32
    %c0_i32_0 = arith.constant 0 : i32
    %c0_i32_1 = arith.constant 0 : i32
    return %c0_i32, %c0_i32_0 : i32, i32
  }
  func.func @transform_3(%arg0: i32) -> (i32, i32) {
    %c0_i32 = arith.constant 0 : i32
    %c0_i32_0 = arith.constant 0 : i32
    %c0_i32_1 = arith.constant 0 : i32
    return %c0_i32, %c0_i32_0 : i32, i32
  }
  func.func @transform_4(%arg0: i32) -> (i32, i32) {
    %c0_i32 = arith.constant 0 : i32
    %c0_i32_0 = arith.constant 0 : i32
    %c0_i32_1 = arith.constant 0 : i32
    return %c0_i32, %c0_i32_0 : i32, i32
  }
  func.func @transform_5(%arg0: i32) -> (i32, i32) {
    %c0_i32 = arith.constant 0 : i32
    %c0_i32_0 = arith.constant 0 : i32
    %c0_i32_1 = arith.constant 0 : i32
    return %c0_i32, %c0_i32_0 : i32, i32
  }
  func.func @transform_6(%arg0: i32) -> (i32, i32) {
    %c0_i32 = arith.constant 0 : i32
    %c0_i32_0 = arith.constant 0 : i32
    %c0_i32_1 = arith.constant 0 : i32
    return %c0_i32, %c0_i32_0 : i32, i32
  }
  func.func @transform_7(%arg0: i32) -> (i32, i32) {
    %c0_i32 = arith.constant 0 : i32
    %c0_i32_0 = arith.constant 0 : i32
    %c0_i32_1 = arith.constant 0 : i32
    return %c0_i32, %c0_i32_0 : i32, i32
  }
  func.func @transform_8(%arg0: i32) -> (i32, i32) {
    %c0_i32 = arith.constant 0 : i32
    %c0_i32_0 = arith.constant 0 : i32
    %c0_i32_1 = arith.constant 0 : i32
    return %c0_i32, %c0_i32_0 : i32, i32
  }
  func.func @transform_9(%arg0: i32) -> (i32, i32) {
    %c0_i32 = arith.constant 0 : i32
    %c0_i32_0 = arith.constant 0 : i32
    %c0_i32_1 = arith.constant 0 : i32
    return %c0_i32, %c0_i32_0 : i32, i32
  }
  func.func @transform_10(%arg0: i32) -> (i32, i32) {
    %c0_i32 = arith.constant 0 : i32
    %c0_i32_0 = arith.constant 0 : i32
    %c0_i32_1 = arith.constant 0 : i32
    return %c0_i32, %c0_i32_0 : i32, i32
  }
  func.func @transform_11(%arg0: i32) -> (i32, i32) {
    %c0_i32 = arith.constant 0 : i32
    %c0_i32_0 = arith.constant 0 : i32
    %c0_i32_1 = arith.constant 0 : i32
    return %c0_i32, %c0_i32_0 : i32, i32
  }
  func.func @transform_12(%arg0: i32) -> (i32, i32) {
    %c0_i32 = arith.constant 0 : i32
    %c0_i32_0 = arith.constant 0 : i32
    %c0_i32_1 = arith.constant 0 : i32
    return %c0_i32, %c0_i32_0 : i32, i32
  }
  func.func @transform_13(%arg0: i32) -> (i32, i32, i32) {
    %c0_i32 = arith.constant 0 : i32
    %c0_i32_0 = arith.constant 0 : i32
    %c0_i32_1 = arith.constant 0 : i32
    return %arg0, %c0_i32, %c0_i32_0 : i32, i32, i32
  }
}

</mosaic_0001>

<bundles_post_ra>
// kernel: tpu_custom_call.1
= control target key start
LH: loop header
LB: loop body
LE: loop exit
PB: predicated region body
PF: predicated region fallthrough
CT: control target
= control target key end

     0   :  { %s15327_s0 = inlined_call_operand.hbm [shape: f32[16,16,32], index: 0, kind: input, shape index: {}]   ;;  %s15328_s1 = inlined_call_operand.vmem [shape: f32[32,96], index: 1, kind: input, shape index: {}]   ;;  %s15329_s2 = inlined_call_operand.vmem [shape: f32[1,96], index: 2, kind: input, shape index: {}]   ;;  %s15330_s3 = inlined_call_operand.vmem [shape: f32[32,32], index: 3, kind: input, shape index: {}]   ;;  %s15331_s4 = inlined_call_operand.vmem [shape: f32[1,32], index: 4, kind: input, shape index: {}]   ;;  %s15332_s5 = inlined_call_operand.vmem [shape: f32[1,32], index: 5, kind: input, shape index: {}]   ;;  %s15333_s6 = inlined_call_operand.vmem [shape: f32[1,32], index: 6, kind: input, shape index: {}]   ;;  %s15334_s7 = inlined_call_operand.vmem [shape: f32[32,64], index: 7, kind: input, shape index: {}]   ;;  %s15335_s8 = inlined_call_operand.vmem [shape: f32[1,64], index: 8, kind: input, shape index: {}]   ;;  %s15336_s9 = inlined_call_operand.vmem [shape: f32[64,32], index: 9, kind: input, shape index: {}]   ;;  %s15337_s10 = inlined_call_operand.vmem [shape: f32[1,32], index: 10, kind: input, shape index: {}]   ;;  %s15338_s11 = inlined_call_operand.vmem [shape: f32[1,32], index: 11, kind: input, shape index: {}]   ;;  %s15339_s12 = inlined_call_operand.vmem [shape: f32[1,32], index: 12, kind: input, shape index: {}]   ;;  %s15340_s13 = inlined_call_operand.hbm [shape: f32[16,16,32], index: 13, kind: output, shape index: {}]  }
   0x1   :  { %15391 = sst [smem:[#allocation138_spill]] %s15327_s0 }
   0x2   :  { %15392 = sst [smem:[#allocation139_spill]] %s15340_s13 }
   0x3   :  { %18 = vsyncpa [#allocation3], 0 }
   0x4   :  { %20 = vsyncpa [#allocation3 + $0x1], 0 }
   0x5   :  { %21 = vsyncpa [#allocation4], 0 }
   0x6   :  { %23 = vsyncpa [#allocation4 + $0x1], 0  ;;  %s10314_s25 = smov 0   ;;  %s10316_s26 = smov 0  }
   0x7   :  { %s10318_s27 = smov 0   ;;  %s10320_s28 = smov 0  }
   0x8 LB: > { %15393 = sst [smem:[#allocation8_spill]] %s10196_s25  ;;  %s10335_s29 = sadd.s32 4294967295, %s10208_s28   ;;  %s10208_s28 = sphi %s10320_s28, %s16013_s28   ;;  %s10204_s27 = sphi %s10318_s27, %s16015_s27   ;;  %s10200_s26 = sphi %s10316_s26, %s16017_s26   ;;  %s10196_s25 = sphi %s10314_s25, %s16016_s25  }
   0x9   : > { %15394 = sst [smem:[#allocation9_spill]] %s10204_s27  ;;  %s8626_s30 = sadd.s32 4294967294, %s10208_s28  }
   0xa   : > { %s10339_s14 = sadd.s32 1, %s10208_s28   ;;  %s36_s15 = sadd.s32 1, %s10204_s27 }
   0xb   : > { %15395 = sst [smem:[#allocation10_spill]] %s10339_s14  ;;  %s33_s16 = ssub.s32 %s10208_s28, %s10339_s14 }
   0xc   : > { %p43_p0 = scmp.ne.s32.totalorder %s10204_s27, %s10200_s26  ;;  %p34_p1 = scmp.eq.s32.totalorder %s33_s16, 0 }
   0xd   : > { %p44_p2 = scmp.eq.s32.totalorder %s10208_s28, 0  ;;  %p49_p3 = scmp.ne.s32.totalorder %s10200_s26, %s10196_s25 }
   0xe   : > { %p50_p4 = scmp.eq.s32.totalorder %s10335_s29, 0  ;;  %p325_p7 = scmp.eq.s32.totalorder %s10335_s29, 1 }
   0xf   : > { %s10351_s17 = scalar_select %p34_p1, %s10204_s27, %s36_s15  }
  0x10   : > { %p10353_p5 = por %p44_p2, %p43_p0  ;;  %p10357_p6 = por %p50_p4, %p49_p3 }
  0x11   : > { %15396 = sst [smem:[#allocation11_spill]] %s10351_s17  ;;  %p331_p8 = scmp.eq.s32.totalorder %s8626_s30, 1 }
  0x12   : > { %p9122_p10 = scmp.lt.s32.totalorder %s10208_s28, 2  ;;  %p10364_p11 = por %p325_p7, %p43_p0 }
  0x13   : > { %p10368_p12 = por %p331_p8, %p49_p3  ;;  %s387_s22 = sand.u32 1, %s10204_s27  }
  0x14   : > { %s15399_s20 = scalar_select %p10364_p11, 1, 0 }
  0x15   : > { %s15401_s21 = scalar_select %p10368_p12, 1, 0 }
  0x16   : > { %15400 = sst [smem:[#allocation12_spill]] %s15399_s20  ;;  %s9091_s23 = sshll.u32 %s10208_s28, 7 }
  0x17   : > { %15402 = sst [smem:[#allocation13_spill]] %s15401_s21  ;;  %s8629_s24 = sshll.u32 %s387_s22, 7 }
  0x18   : > { %s15403_s0 = sld [smem:[#allocation138_spill]]  ;;  %s391_s30 = scalar_lea.vmem [#allocation2], %s8629_s24 }
  0x19   : > { %s400_s25 = sshll.u32 %s391_s30, 4  ;;  %p10379_p13 = pnand %p9122_p10, %p10353_p5  ;;  %s401_s25 = int_to_ptr.vmem [resolvable:$true] %s400_s25 }
  0x1a   : > { %p8633_p0 = scmp.ge.s32.totalorder %s10208_s28, 1  ;;  %p408_p1 = scmp.lt.s32.totalorder %s10208_s28, 3 }
  0x1b   : > { %s388_s27 = scalar_lea.sflag [#allocation3], %s387_s22  ;;  %p10116_p3 = pneg %p10379_p13 }
  0x1e   : > { %s397_s17 = scalar_lea.hbm %s15403_s0, %s9091_s23  ;;  %s10119_s18 = scalar_lea.hbm %s15403_s0, 256 }
  0x1f   : > { %s398_s14 = sshll.u32 %s397_s17, 4  ;;  %s399_s14 = int_to_ptr.hbm [resolvable:$true] %s398_s14 }
  0x20   : > { %s10112_s21 = sshra.s32 %s399_s14, 4  ;;  %s10113_s21 = int_to_ptr.hbm [resolvable:$true] %s10112_s21 }
  0x21   : > { %s10114_s20 = scalar_lea.hbm %s10113_s21, 128  ;;  %p10120_p5 = scmp.lt.s32.totalorder %s10113_s21, %s15403_s0 }
  0x22   : > { %p10115_p2 = scmp.ne.s32.totalorder %s10113_s21, %s10114_s20  ;;  %p10121_p8 = scmp.lt.s32.totalorder %s10119_s18, %s10114_s20 }
  0x24   : > { %p10117_p4 = pnand %p10116_p3, %p10115_p2  ;;  %p10122_p10 = por %p10121_p8, %p10120_p5 }
  0x26   : > { %p10118_p7 = pneg %p10117_p4 }
  0x28   : > { %p10123_p9 = pnand %p10122_p10, %p10118_p7 }
  0x2a   : > { %10126 = shalt.err (!%p10123_p9)
}
  0x2b   : > { %s10210_s22 = smov 128   ;;  %s10211_s16 = smov 8  }
  0x2c   : > { %9117 = dma.hbm_to_vmem [thread:$0]  (!%p10379_p13), %s399_s14, 2048, %s401_s25, %s388_s27, %s10210_s22, %s10210_s22, %s10211_s16  }
  0x2d   : > { %p409_p2 = pnand %p8633_p0, %p408_p1 }
  0x2f   : > { %412 = sbr.rel (%p409_p2) target bundleno = 5757 (0x167d), region = 72 }
  0x34   : > { %s10400_s30 = sand.u32 1, %s10200_s26  }
  0x35   : > { %s15390_s20 = sshll.u32 %s10400_s30, 7  ;;  %s415_s21 = scalar_lea.sflag [#allocation3], %s10400_s30 }
  0x36   : > { %s10406_s17 = scalar_lea.vmem [#allocation2], %s15390_s20 }
  0x37   : > { %10187 = dma.done.wait (%p10357_p6), %s415_s21, 2048  }
  0x38   : > { %10189 = vsyncadd (%p10357_p6), %s415_s21, 4294965248  ;;  %v483_v0 = vld [vmem:[%s15328_s1 + $0x18] sm:$0xff]  ;;  %v482_v1 = vld [vmem:[%s15328_s1 + $0x10] sm:$0xff]  ;;  %vm488_vm0 = vcmask 261120   ;;  %s10212_s16 = smov 124   ;;  %s10213_s21 = smov 92  }
  0x39   : > { %549 = vmatpush.msra.mxu0 %v483_v0  ;;  %9094 = vmatpush.msra.mxu3 %v483_v0  ;;  %v481_v2 = vld [vmem:[%s15328_s1 + $0x8] sm:$0xff]  ;;  %v480_v3 = vld [vmem:[%s15328_s1] sm:$0xff]  ;;  %v466_v8 = vld [vmem:[%s10406_s17 + $0x10] sm:$0xff]  ;;  %s10214_s13 = smov 96   ;;  %s10215_s25 = smov 60   ;;  %vm608_vm1 = vcmask 31744  }
  0x3a   : > { %v464_v4 = vld [vmem:[%s10406_s17] sm:$0xff]  ;;  %v465_v6 = vld [vmem:[%s10406_s17 + $0x8] sm:$0xff]  ;;  %v478_v9 = vld [vmem:[%s10406_s17 + $0x70] sm:$0xff]  ;;  %s10216_s27 = smov 64   ;;  %s10217_s14 = smov 88   ;;  %vm899_vm2 = vcmask 130048  }
  0x3b   : > { %550 = vmatpush.msra.mxu0 %v482_v1  ;;  %9095 = vmatpush.msra.mxu3 %v482_v1  ;;  %v476_v5 = vld [vmem:[%s10406_s17 + $0x60] sm:$0xff]  ;;  %v477_v7 = vld [vmem:[%s10406_s17 + $0x68] sm:$0xff]  ;;  %v467_v10 = vld [vmem:[%s10406_s17 + $0x18] sm:$0xff]  ;;  %s10218_s23 = smov 120   ;;  %s10219_s18 = smov 56   ;;  %vm7196_vm3 = vcmask 64512  }
  0x3c   : > { %v479_v11 = vld [vmem:[%s10406_s17 + $0x78] sm:$0xff]  ;;  %v468_v12 = vld [vmem:[%s10406_s17 + $0x20] sm:$0xff]  ;;  %v469_v13 = vld [vmem:[%s10406_s17 + $0x28] sm:$0xff]  ;;  %s10220_s19 = smov 84   ;;  %s10221_s24 = smov 116   ;;  %vm7213_vm4 = vcmask 97280  }
  0x3d   : > { %551 = vmatpush.msra.mxu0 %v481_v2  ;;  %9096 = vmatpush.msra.mxu3 %v481_v2  ;;  %v470_v14 = vld [vmem:[%s10406_s17 + $0x30] sm:$0xff]  ;;  %v471_v15 = vld [vmem:[%s10406_s17 + $0x38] sm:$0xff]  ;;  %v472_v16 = vld [vmem:[%s10406_s17 + $0x40] sm:$0xff]  ;;  %s10222_s15 = smov 52   ;;  %s10223_s22 = smov 80   ;;  %vm7246_vm5 = vcmask 162816  }
  0x3e   : > { %v473_v17 = vld [vmem:[%s10406_s17 + $0x48] sm:$0xff]  ;;  %v474_v18 = vld [vmem:[%s10406_s17 + $0x50] sm:$0xff]  ;;  %v475_v19 = vld [vmem:[%s10406_s17 + $0x58] sm:$0xff]  ;;  %vm7263_vm6 = vcmask 195584   ;;  %vm7280_vm7 = vcmask 228352  }
  0x3f   : > { %552 = vmatpush.msra.mxu0 %v480_v3  ;;  %9097 = vmatpush.msra.mxu3 %v480_v3  ;;  %v10459_v20 = vld [vmem:[%s15329_s2] ss:$0 sm:$0xff] }
  0x40   : > { %8636 = vmatmul.msk.f32.vlgmr.msra.gmra.mxu0 %vm488_vm0, %v464_v4  ;;  %8648 = vmatmul.msk.f32.vlgmr.msra.gmra.mxu3 %vm488_vm0, %v476_v5 }
  0x48   : > { %8637 = vmatmul.msk.f32.gmra.mxu0 %vm488_vm0, %v465_v6  ;;  %8649 = vmatmul.msk.f32.gmra.mxu3 %vm488_vm0, %v477_v7 }
  0x50   : > { %8638 = vmatmul.msk.f32.gmra.mxu0 %vm488_vm0, %v466_v8  ;;  %8650 = vmatmul.msk.f32.gmra.mxu3 %vm488_vm0, %v478_v9 }
  0x58   : > { %8639 = vmatmul.msk.f32.gmra.mxu0 %vm488_vm0, %v467_v10  ;;  %8651 = vmatmul.msk.f32.gmra.mxu3 %vm488_vm0, %v479_v11 }
  0x60   : > { %8640 = vmatmul.msk.f32.gmra.mxu0 %vm488_vm0, %v468_v12 }
  0x68   : > { %8641 = vmatmul.msk.f32.gmra.mxu0 %vm488_vm0, %v469_v13 }
  0x70   : > { %8642 = vmatmul.msk.f32.gmra.mxu0 %vm488_vm0, %v470_v14 }
  0x78   : > { %8643 = vmatmul.msk.f32.gmra.mxu0 %vm488_vm0, %v471_v15 }
  0x80   : > { %8644 = vmatmul.msk.f32.gmra.mxu0 %vm488_vm0, %v472_v16 }
  0x88   : > { %8645 = vmatmul.msk.f32.gmra.mxu0 %vm488_vm0, %v473_v17 }
  0x90   : > { %8646 = vmatmul.msk.f32.gmra.mxu0 %vm488_vm0, %v474_v18 }
  0x98   : > { %8647 = vmatmul.msk.f32.gmra.mxu0 %vm488_vm0, %v475_v19 }
  0xbd   : > { %v554_v21 = vpop.f32.mrf.mxu0 }
  0xbe   : > { %v10462_v22 = vadd.f32 %v10459_v20, %v554_v21 }
  0xc0   : > { %1356 = vrot.lane.b32.xlu1 %v10462_v22, %s10212_s16  ;;  %1360 = vrot.lane.b32.xlu0 %v10462_v22, %s10213_s21 }
  0xc1   : > { %604 = vrot.lane.b32.xlu2 %v10462_v22, %s10214_s13 }
  0xc3   : > { %v590_v23 = vpop.f32.mrf.mxu3 }
  0xc4   : > { %v10471_v24 = vadd.f32 %v10459_v20, %v590_v23 }
  0xc5   : > { %v557_v25 = vpop.f32.mrf.mxu0 }
  0xc6   : > { %v10474_v26 = vadd.f32 %v10459_v20, %v557_v25 }
  0xc8   : > { %606 = vrot.lane.b32.xlu1 %v10474_v26, %s10214_s13  ;;  %v10480_v27 = vpack.i.bf16 %v10462_v22, %v10474_v26 }
  0xc9   : > { %827 = vrot.lane.b32.xlu2 %v10471_v24, %s10214_s13 }
  0xca   : > { %15405 = vst [vmem:[#allocation14_spill] sm:$0xff] %v10480_v27  ;;  %9191 = vrot.lane.b32.xlu0 %v10480_v27, %s10215_s25 }
  0xcb   : > { %v593_v28 = vpop.f32.mrf.mxu3 }
  0xcc   : > { %v10487_v29 = vadd.f32 %v10459_v20, %v593_v28 }
  0xcd   : > { %v560_v31 = vpop.f32.mrf.mxu0 }
  0xce   : > { %v10497_v30 = vpack.i.bf16 %v10471_v24, %v10487_v29  ;;  %v10506_v32 = vadd.f32 %v10459_v20, %v560_v31 }
  0xd0   : > { %1358 = vrot.lane.b32.xlu1 %v10474_v26, %s10212_s16  ;;  %15406 = vst [vmem:[#allocation15_spill] sm:$0xff] %v10497_v30 }
  0xd1   : > { %1594 = vrot.lane.b32.xlu2 %v10471_v24, %s10213_s21 }
  0xd2   : > { %829 = vrot.lane.b32.xlu0 %v10487_v29, %s10214_s13 }
  0xd3   : > { %v596_v33 = vpop.f32.mrf.mxu3 }
  0xd4   : > { %v10515_v35 = vadd.f32 %v10459_v20, %v596_v33 }
  0xd5   : > { %v563_v34 = vpop.f32.mrf.mxu0 }
  0xd6   : > { %v10533_v39 = vadd.f32 %v10459_v20, %v563_v34 }
  0xd8   : > { %9196 = vrot.lane.b32.xlu1 %v10497_v30, %s10216_s27  ;;  %v10539_v41 = vpack.i.bf16 %v10506_v32, %v10533_v39 }
  0xd9   : > { %1590 = vrot.lane.b32.xlu2 %v10471_v24, %s10212_s16 }
  0xda   : > { %1592 = vrot.lane.b32.xlu0 %v10487_v29, %s10212_s16  ;;  %15407 = vst [vmem:[#allocation16_spill] sm:$0xff] %v10539_v41 }
  0xdb   : > { %v599_v36 = vpop.f32.mrf.mxu3 }
  0xdc   : > { %v10524_v38 = vadd.f32 %v10459_v20, %v599_v36 }
  0xdd   : > { %v566_v37 = vpop.f32.mrf.mxu0 }
  0xde   : > { %v10546_v42 = vadd.f32 %v10459_v20, %v566_v37  ;;  %v10559_v45 = vpack.i.bf16 %v10515_v35, %v10524_v38 }
  0xe0   : > { %1596 = vrot.lane.b32.xlu1 %v10487_v29, %s10213_s21  ;;  %v9210_v43 = vpack.i.bf16 %v10546_v42, %v10462_v22 }
  0xe1   : > { %1362 = vrot.lane.b32.xlu2 %v10474_v26, %s10213_s21 }
  0xe2   : > { %1395 = vrot.lane.b32.xlu0 %v10506_v32, %s10212_s16 }
  0xe5   : > { %v569_v40 = vpop.f32.mrf.mxu0 }
  0xe6   : > { %v10564_v46 = vadd.f32 %v10459_v20, %v569_v40 }
  0xe8   : > { %1399 = vrot.lane.b32.xlu1 %v10506_v32, %s10213_s21  ;;  %v9215_v48 = vpack.i.bf16 %v10564_v46, %v10474_v26  ;;  %v10604_v57 = vpack.i.bf16 %v10546_v42, %v10564_v46 }
  0xe9   : > { %642 = vrot.lane.b32.xlu2 %v10506_v32, %s10214_s13 }
  0xea   : > { %864 = vrot.lane.b32.xlu0 %v10515_v35, %s10214_s13  ;;  %15409 = vst [vmem:[#allocation18_spill] sm:$0xff] %v10604_v57 }
  0xed   : > { %v572_v44 = vpop.f32.mrf.mxu0 }
  0xee   : > { %v10607_v58 = vadd.f32 %v10459_v20, %v572_v44 }
  0xf0   : > { %1633 = vrot.lane.b32.xlu1 %v10515_v35, %s10213_s21  ;;  %v10644_v5 = vpack.i.bf16 %v10471_v24, %v10607_v58 }
  0xf1   : > { %1635 = vrot.lane.b32.xlu2 %v10524_v38, %s10213_s21 }
  0xf2   : > { %1629 = vrot.lane.b32.xlu0 %v10515_v35, %s10212_s16  ;;  %15413 = vst [vmem:[#allocation22_spill] sm:$0xff] %v10644_v5 }
  0xf5   : > { %v575_v47 = vpop.f32.mrf.mxu0 }
  0xf6   : > { %v10571_v49 = vadd.f32 %v10459_v20, %v575_v47 }
  0xf8   : > { %644 = vrot.lane.b32.xlu1 %v10533_v39, %s10214_s13  ;;  %v10719_v34 = vpack.i.bf16 %v10487_v29, %v10571_v49 }
  0xf9   : > { %1631 = vrot.lane.b32.xlu2 %v10524_v38, %s10212_s16 }
  0xfa   : > { %9201 = vrot.lane.b32.xlu0 %v10539_v41, %s10216_s27  ;;  %15421 = vst [vmem:[#allocation30_spill] sm:$0xff] %v10719_v34 }
  0xfd   : > { %v578_v50 = vpop.f32.mrf.mxu0 }
  0xfe   : > { %v10585_v52 = vadd.f32 %v10459_v20, %v578_v50 }
 0x100   : > { %1397 = vrot.lane.b32.xlu1 %v10533_v39, %s10212_s16  ;;  %v10660_v10 = vpack.i.bf16 %v10585_v52, %v10506_v32 }
 0x101   : > { %9211 = vrot.lane.b32.xlu2 %v9210_v43, %s10216_s27 }
 0x102   : > { %1401 = vrot.lane.b32.xlu0 %v10533_v39, %s10213_s21  ;;  %15415 = vst [vmem:[#allocation24_spill] sm:$0xff] %v10660_v10 }
 0x105   : > { %v581_v53 = vpop.f32.mrf.mxu0 }
 0x106   : > { %v10594_v54 = vadd.f32 %v10459_v20, %v581_v53 }
 0x108   : > { %866 = vrot.lane.b32.xlu1 %v10524_v38, %s10214_s13  ;;  %v10600_v56 = vpack.i.bf16 %v10585_v52, %v10594_v54  ;;  %v10725_v36 = vpack.i.bf16 %v10594_v54, %v10533_v39 }
 0x109   : > { %1434 = vrot.lane.b32.xlu2 %v10546_v42, %s10212_s16 }
 0x10a   : > { %9206 = vrot.lane.b32.xlu0 %v10559_v45, %s10216_s27  ;;  %15408 = vst [vmem:[#allocation17_spill] sm:$0xff] %v10600_v56 }
 0x10b   : > { %15422 = vst [vmem:[#allocation31_spill] sm:$0xff] %v10725_v36 }
 0x10d   : > { %v584_v62 = vpop.f32.mrf.mxu0 }
 0x10e   : > { %v10630_v0 = vadd.f32 %v10459_v20, %v584_v62 }
 0x110   : > { %9216 = vrot.lane.b32.xlu1 %v9215_v48, %s10216_s27  ;;  %v9230_v17 = vpack.i.bf16 %v10630_v0, %v10607_v58 }
 0x111   : > { %718 = vrot.lane.b32.xlu2 %v10571_v49, %s10214_s13 }
 0x112   : > { %679 = vrot.lane.b32.xlu0 %v10546_v42, %s10214_s13 }
 0x115   : > { %v587_v11 = vpop.f32.mrf.mxu0 }
 0x116   : > { %v10675_v14 = vadd.f32 %v10459_v20, %v587_v11 }
 0x118   : > { %1440 = vrot.lane.b32.xlu1 %v10564_v46, %s10213_s21  ;;  %v9235_v16 = vpack.i.bf16 %v10675_v14, %v10571_v49  ;;  %v10768_v62 = vpack.i.bf16 %v10630_v0, %v10675_v14 }
 0x119   : > { %1479 = vrot.lane.b32.xlu2 %v10571_v49, %s10213_s21 }
 0x11a   : > { %1438 = vrot.lane.b32.xlu0 %v10546_v42, %s10213_s21  ;;  %15423 = vst [vmem:[#allocation32_spill] sm:$0xff] %v10768_v62 }
 0x11b   : > { %v605_v51 = vpop.permute.xlu2 %604 }
 0x120   : > { %1436 = vrot.lane.b32.xlu1 %v10564_v46, %s10212_s16 }
 0x121   : > { %753 = vrot.lane.b32.xlu2 %v10585_v52, %s10214_s13 }
 0x122   : > { %681 = vrot.lane.b32.xlu0 %v10564_v46, %s10214_s13 }
 0x123   : > { %v10596_v55 = vpop.permute.xlu2 %827 }
 0x128   : > { %9221 = vrot.lane.b32.xlu1 %v10604_v57, %s10215_s25 }
 0x129   : > { %9226 = vrot.lane.b32.xlu2 %v10600_v56, %s10216_s27 }
 0x12a   : > { %1477 = vrot.lane.b32.xlu0 %v10607_v58, %s10213_s21 }
 0x12b   : > { %v10615_v59 = vpop.permute.xlu2 %1594 }
 0x12c   : > { %15410 = vst [vmem:[#allocation19_spill] sm:$0xff] %v10615_v59 }
 0x130   : > { %716 = vrot.lane.b32.xlu1 %v10607_v58, %s10214_s13 }
 0x131   : > { %1518 = vrot.lane.b32.xlu2 %v10594_v54, %s10213_s21 }
 0x132   : > { %v10621_v60 = vpop.permute.xlu1 %1356  ;;  %1475 = vrot.lane.b32.xlu0 %v10571_v49, %s10212_s16  ;;  %v10627_v63 = vpop.permute.xlu0 %1360 }
 0x133   : > { %15411 = vst [vmem:[#allocation20_spill] sm:$0xff] %v10621_v60  ;;  %v10625_v61 = vpop.permute.xlu2 %1590 }
 0x134   : > { %15412 = vst [vmem:[#allocation21_spill] sm:$0xff] %v10625_v61 }
 0x138   : > { %1473 = vrot.lane.b32.xlu1 %v10607_v58, %s10212_s16 }
 0x139   : > { %1551 = vrot.lane.b32.xlu2 %v10630_v0, %s10212_s16 }
 0x13a   : > { %v607_v1 = vpop.permute.xlu1 %606  ;;  %1516 = vrot.lane.b32.xlu0 %v10585_v52, %s10213_s21 }
 0x13b   : > { %v10638_v2 = vpop.permute.xlu2 %1362  ;;  %8652 = vmatpush.xpose.msk.msra.mxu1 %vm608_vm1, %v607_v1 }
 0x13c   : > { %v9192_v3 = vpop.permute.xlu0 %9191 }
 0x13d   : > { %v9193_v4 = vunpack.i.l.bf16 %v9192_v3  ;;  %v9194_v6 = vunpack.i.h.bf16 %v9192_v3 }
 0x13f   : > { %8653 = vmatpush.xpose.msk.msra.mxu1 %vm608_vm1, %v605_v51  ;;  %1870 = vmatpush.msrb.mxu0 %v9193_v4 }
 0x140   : > { %1514 = vrot.lane.b32.xlu1 %v10594_v54, %s10212_s16 }
 0x141   : > { %9246 = vrot.lane.b32.xlu2 %v10644_v5, %s10215_s25  ;;  %1871 = vmatpush.msrb.mxu0 %v9194_v6 }
 0x142   : > { %v10650_v7 = vpop.permute.xlu1 %1358  ;;  %1512 = vrot.lane.b32.xlu0 %v10585_v52, %s10212_s16  ;;  %8654 = vmatmul.msk.f32.vlgmr.msra.gmra.mxu1 %vm608_vm1, %v10462_v22 }
 0x143   : > { %15414 = vst [vmem:[#allocation23_spill] sm:$0xff] %v10650_v7  ;;  %v643_v8 = vpop.permute.xlu2 %642 }
 0x144   : > { %v10656_v9 = vpop.permute.xlu0 %829 }
 0x148   : > { %790 = vrot.lane.b32.xlu1 %v10630_v0, %s10214_s13 }
 0x149   : > { %9256 = vrot.lane.b32.xlu2 %v10660_v10, %s10215_s25 }
 0x14a   : > { %v10666_v12 = vpop.permute.xlu1 %9196  ;;  %755 = vrot.lane.b32.xlu0 %v10594_v54, %s10214_s13  ;;  %8655 = vmatmul.msk.f32.gmra.mxu1 %vm608_vm1, %v10474_v26 }
 0x14b   : > { %v10672_v13 = vpop.permute.xlu2 %1635 }
 0x14c   : > { %v10677_v15 = vpop.permute.xlu0 %1592 }
 0x14d   : > { %15416 = vst [vmem:[#allocation25_spill] sm:$0xff] %v10677_v15 }
 0x150   : > { %9236 = vrot.lane.b32.xlu1 %v9235_v16, %s10216_s27 }
 0x151   : > { %2247 = vrot.lane.b32.xlu2 %v10571_v49, %s10217_s14 }
 0x152   : > { %v10686_v18 = vpop.permute.xlu1 %1596  ;;  %9231 = vrot.lane.b32.xlu0 %v9230_v17, %s10216_s27  ;;  %s10228_s27 = smov 44  }
 0x153   : > { %15417 = vst [vmem:[#allocation26_spill] sm:$0xff] %v10686_v18  ;;  %v10689_v19 = vpop.permute.xlu2 %1631 }
 0x154   : > { %15418 = vst [vmem:[#allocation27_spill] sm:$0xff] %v10689_v19  ;;  %v10691_v20 = vpop.permute.xlu0 %1395 }
 0x158   : > { %1557 = vrot.lane.b32.xlu1 %v10675_v14, %s10213_s21 }
 0x159   : > { %2245 = vrot.lane.b32.xlu2 %v10607_v58, %s10217_s14 }
 0x15a   : > { %v10697_v21 = vpop.permute.xlu1 %1399  ;;  %1555 = vrot.lane.b32.xlu0 %v10630_v0, %s10213_s21  ;;  %s10225_s21 = smov 48  }
 0x15b   : > { %v10701_v23 = vpop.permute.xlu2 %9211 }
 0x15c   : > { %v10703_v25 = vpop.permute.xlu0 %864 }
 0x160   : > { %1553 = vrot.lane.b32.xlu1 %v10675_v14, %s10212_s16  ;;  %s10224_s16 = smov 112  }
 0x161   : > { %2241 = vrot.lane.b32.xlu2 %v10607_v58, %s10218_s23 }
 0x162   : > { %v10709_v28 = vpop.permute.xlu1 %1633  ;;  %792 = vrot.lane.b32.xlu0 %v10675_v14, %s10214_s13  ;;  %s10226_s13 = smov 76  }
 0x163   : > { %v10713_v31 = vpop.permute.xlu2 %1434 }
 0x164   : > { %15419 = vst [vmem:[#allocation28_spill] sm:$0xff] %v10713_v31  ;;  %v10715_v33 = vpop.permute.xlu0 %1629 }
 0x165   : > { %15420 = vst [vmem:[#allocation29_spill] sm:$0xff] %v10715_v33 }
 0x168   : > { %9241 = vrot.lane.b32.xlu1 %v10719_v34, %s10215_s25 }
 0x169   : > { %2169 = vrot.lane.b32.xlu2 %v10533_v39, %s10217_s14 }
 0x16a   : > { %v645_v37 = vpop.permute.xlu1 %644  ;;  %9251 = vrot.lane.b32.xlu0 %v10725_v36, %s10215_s25 }
 0x16b   : > { %v719_v40 = vpop.permute.xlu2 %718  ;;  %8656 = vmatpush.xpose.msk.msra.mxu2 %vm608_vm1, %v645_v37 }
 0x16c   : > { %v9202_v43 = vpop.permute.xlu0 %9201  ;;  %8664 = vmatpush.xpose.msk.msrb.mxu1 %vm608_vm1, %v719_v40 }
 0x16d   : > { %v9203_v40 = vunpack.i.l.bf16 %v9202_v43 }
 0x16f   : > { %8657 = vmatpush.xpose.msk.msra.mxu2 %vm608_vm1, %v643_v8 }
 0x170   : > { %9261 = vrot.lane.b32.xlu1 %v10559_v45, %s10215_s25 }
 0x171   : > { %2167 = vrot.lane.b32.xlu2 %v10506_v32, %s10217_s14 }
 0x172   : > { %v10738_v44 = vpop.permute.xlu1 %1397  ;;  %2208 = vrot.lane.b32.xlu0 %v10564_v46, %s10217_s14  ;;  %8658 = vmatmul.msk.f32.vlgmr.msra.gmra.mxu2 %vm608_vm1, %v10506_v32 }
 0x173   : > { %v10802_v16 = vpop.permute.xlu2 %1479 }
 0x174   : > { %v10744_v47 = vpop.permute.xlu0 %1401  ;;  %15427 = vst [vmem:[#allocation36_spill] sm:$0xff] %v10802_v16 }
 0x178   : > { %2202 = vrot.lane.b32.xlu1 %v10546_v42, %s10218_s23 }
 0x179   : > { %2243 = vrot.lane.b32.xlu2 %v10571_v49, %s10218_s23 }
 0x17a   : > { %v10750_v48 = vpop.permute.xlu1 %866  ;;  %2206 = vrot.lane.b32.xlu0 %v10546_v42, %s10217_s14  ;;  %8659 = vmatmul.msk.f32.gmra.mxu2 %vm608_vm1, %v10533_v39 }
 0x17c   : > { %v10756_v50 = vpop.permute.xlu0 %9206 }
 0x180   : > { %2130 = vrot.lane.b32.xlu1 %v10474_v26, %s10217_s14 }
 0x181   : > { %2163 = vrot.lane.b32.xlu2 %v10506_v32, %s10218_s23 }
 0x182   : > { %v10762_v51 = vpop.permute.xlu1 %9216  ;;  %2204 = vrot.lane.b32.xlu0 %v10564_v46, %s10218_s23 }
 0x184   : > { %v680_v53 = vpop.permute.xlu0 %679 }
 0x188   : > { %9266 = vrot.lane.b32.xlu1 %v10768_v62, %s10215_s25  ;;  %s10227_s25 = smov 108  }
 0x189   : > { %2397 = vrot.lane.b32.xlu2 %v10515_v35, %s10218_s23 }
 0x18a   : > { %v10774_v1 = vpop.permute.xlu1 %1440  ;;  %2364 = vrot.lane.b32.xlu0 %v10487_v29, %s10217_s14 }
 0x18c   : > { %v10778_v3 = vpop.permute.xlu0 %1438 }
 0x190   : > { %2128 = vrot.lane.b32.xlu1 %v10462_v22, %s10217_s14 }
 0x191   : > { %2325 = vrot.lane.b32.xlu2 %v10675_v14, %s10217_s14 }
 0x192   : > { %v10784_v4 = vpop.permute.xlu1 %1436  ;;  %2124 = vrot.lane.b32.xlu0 %v10462_v22, %s10218_s23 }
 0x193   : > { %15424 = vst [vmem:[#allocation33_spill] sm:$0xff] %v10784_v4 }
 0x194   : > { %v682_v6 = vpop.permute.xlu0 %681 }
 0x195   : > { %8660 = vmatpush.xpose.msk.msrb.mxu3 %vm608_vm1, %v682_v6  ;;  %v754_v6 = vpop.permute.xlu2 %753 }
 0x198   : > { %2358 = vrot.lane.b32.xlu1 %v10471_v24, %s10218_s23 }
 0x199   : > { %2319 = vrot.lane.b32.xlu2 %v10630_v0, %s10218_s23  ;;  %8661 = vmatpush.xpose.msk.msrb.mxu3 %vm608_vm1, %v680_v53  ;;  %v9204_v53 = vunpack.i.h.bf16 %v9202_v43 }
 0x19a   : > { %v10794_v8 = vpop.permute.xlu1 %9221  ;;  %2362 = vrot.lane.b32.xlu0 %v10471_v24, %s10217_s14 }
 0x19b   : > { %15425 = vst [vmem:[#allocation34_spill] sm:$0xff] %v10794_v8 }
 0x19c   : > { %8662 = vmatmul.msk.f32.vlgmr.msrb.gmra.mxu3 %vm608_vm1, %v10546_v42  ;;  %v10800_v11 = vpop.permute.xlu0 %1477 }
 0x19d   : > { %15426 = vst [vmem:[#allocation35_spill] sm:$0xff] %v10800_v11 }
 0x1a0   : > { %2360 = vrot.lane.b32.xlu1 %v10487_v29, %s10218_s23 }
 0x1a1   : > { %9281 = vrot.lane.b32.xlu2 %v10719_v34, %s10219_s18 }
 0x1a2   : > { %v717_v17 = vpop.permute.xlu1 %716  ;;  %2126 = vrot.lane.b32.xlu0 %v10474_v26, %s10218_s23 }
 0x1a3   : > { %8665 = vmatpush.xpose.msk.msrb.mxu1 %vm608_vm1, %v717_v17 }
 0x1a4   : > { %8663 = vmatmul.msk.f32.gmra.mxu3 %vm608_vm1, %v10564_v46  ;;  %v10813_v37 = vpop.permute.xlu0 %1475 }
 0x1a5   : > { %15428 = vst [vmem:[#allocation37_spill] sm:$0xff] %v10813_v37 }
 0x1a6   : > { %8666 = vmatmul.msk.f32.vlgmr.msrb.gmra.mxu1 %vm608_vm1, %v10607_v58 }
 0x1a7   : > { %8676 = vmatpush.xpose.msk.msra.mxu1 %vm608_vm1, %v10656_v9 }
 0x1a8   : > { %2280 = vrot.lane.b32.xlu1 %v10585_v52, %s10218_s23 }
 0x1aa   : > { %2286 = vrot.lane.b32.xlu0 %v10594_v54, %s10217_s14  ;;  %v10831_v9 = vpop.permute.xlu1 %1473 }
 0x1ab   : > { %8677 = vmatpush.xpose.msk.msra.mxu1 %vm608_vm1, %v10596_v55  ;;  %15429 = vst [vmem:[#allocation38_spill] sm:$0xff] %v10831_v9  ;;  %v9227_v55 = vpop.permute.xlu2 %9226  ;;  %v9213_v9 = vunpack.i.l.bf16 %v10701_v23 }
 0x1ac   : > { %v10825_v17 = vpop.permute.xlu0 %1516 }
 0x1ae   : > { %8667 = vmatmul.msk.f32.gmra.mxu1 %vm608_vm1, %v10571_v49 }
 0x1af   : > { %1137 = vmatpush.msrb.mxu1 %v9203_v40  ;;  %v9228_v40 = vunpack.i.l.bf16 %v9227_v55 }
 0x1b0   : > { %2165 = vrot.lane.b32.xlu1 %v10533_v39, %s10218_s23 }
 0x1b1   : > { %1138 = vmatpush.msrb.mxu1 %v9204_v53  ;;  %v9229_v53 = vunpack.i.h.bf16 %v9227_v55 }
 0x1b2   : > { %2284 = vrot.lane.b32.xlu0 %v10585_v52, %s10217_s14  ;;  %v10843_v56 = vpop.permute.xlu1 %1514 }
 0x1b3   : > { %15430 = vst [vmem:[#allocation39_spill] sm:$0xff] %v10843_v56  ;;  %v10846_v30 = vpop.permute.xlu2 %1518 }
 0x1b4   : > { %v10835_v43 = vpop.permute.xlu0 %1512 }
 0x1b6   : > { %8678 = vmatmul.msk.f32.vlgmr.msra.gmra.mxu1 %vm608_vm1, %v10471_v24 }
 0x1b7   : > { %1242 = vmatpush.msra.mxu1 %v9228_v40 }
 0x1b8   : > { %2323 = vrot.lane.b32.xlu1 %v10630_v0, %s10217_s14 }
 0x1b9   : > { %1243 = vmatpush.msra.mxu1 %v9229_v53  ;;  %v9214_v53 = vunpack.i.h.bf16 %v10701_v23 }
 0x1ba   : > { %2403 = vrot.lane.b32.xlu0 %v10524_v38, %s10217_s14  ;;  %v791_v40 = vpop.permute.xlu1 %790 }
 0x1bc   : > { %v756_v41 = vpop.permute.xlu0 %755 }
 0x1bd   : > { %8668 = vmatpush.xpose.msk.msrb.mxu2 %vm608_vm1, %v756_v41  ;;  %v9219_v41 = vunpack.i.h.bf16 %v10762_v51 }
 0x1be   : > { %8679 = vmatmul.msk.f32.gmra.mxu1 %vm608_vm1, %v10487_v29 }
 0x1bf   : > { %v10850_v34 = vpop.f32.mrf.mxu1 }
 0x1c0   : > { %2321 = vrot.lane.b32.xlu1 %v10675_v14, %s10218_s23 }
 0x1c1   : > { %8669 = vmatpush.xpose.msk.msrb.mxu2 %vm608_vm1, %v754_v6  ;;  %v10867_v6 = vpop.permute.xlu2 %1551 }
 0x1c2   : > { %2401 = vrot.lane.b32.xlu0 %v10515_v35, %s10217_s14  ;;  %15431 = vst [vmem:[#allocation40_spill] sm:$0xff] %v10867_v6  ;;  %s10229_s14 = smov 72  }
 0x1c4   : > { %v9232_v55 = vpop.permute.xlu0 %9231  ;;  %8670 = vmatmul.msk.f32.vlgmr.msrb.gmra.mxu2 %vm608_vm1, %v10585_v52 }
 0x1c5   : > { %8680 = vmatpush.xpose.msk.msra.mxu2 %vm608_vm1, %v10750_v48 }
 0x1c7   : > { %v10865_v15 = vpop.f32.mrf.mxu1 }
 0x1c8   : > { %v903_v48 = vsel %vm899_vm2, %v10865_v15, -inf }
 0x1c9   : > { %8681 = vmatpush.xpose.msk.msra.mxu2 %vm608_vm1, %v10703_v25  ;;  %v9237_v25 = vpop.permute.xlu1 %9236  ;;  %v10877_v37 = vpop.permute.xlu2 %9246 }
 0x1ca   : > { %904 = vmax.xlane.f32.xlu2 %v903_v48  ;;  %2282 = vrot.lane.b32.xlu0 %v10594_v54, %s10218_s23  ;;  %15433 = vst [vmem:[#allocation42_spill] sm:$0xff] %v10877_v37  ;;  %v9218_v48 = vunpack.i.l.bf16 %v10762_v51  ;;  %v9238_v8 = vunpack.i.l.bf16 %v9237_v25 }
 0x1cc   : > { %v10873_v61 = vpop.permute.xlu0 %1555  ;;  %8671 = vmatmul.msk.f32.gmra.mxu2 %vm608_vm1, %v10594_v54 }
 0x1cd   : > { %1172 = vmatpush.msrb.mxu2 %v9219_v41  ;;  %15432 = vst [vmem:[#allocation41_spill] sm:$0xff] %v10873_v61  ;;  %v9239_v41 = vunpack.i.h.bf16 %v9237_v25  ;;  %v900_v25 = vsel %vm899_vm2, %v10850_v34, -inf }
 0x1cf   : > { %1173 = vmatpush.msrb.mxu2 %v9214_v53  ;;  %v9234_v53 = vunpack.i.h.bf16 %v9232_v55 }
 0x1d1   : > { %v10889_v4 = vpop.permute.xlu2 %9256  ;;  %v10901_v23 = vpop.permute.xlu1 %1557 }
 0x1d2   : > { %2399 = vrot.lane.b32.xlu0 %v10524_v38, %s10218_s23  ;;  %15434 = vst [vmem:[#allocation43_spill] sm:$0xff] %v10889_v4  ;;  %s10230_s23 = smov 104  }
 0x1d3   : > { %15436 = vst [vmem:[#allocation45_spill] sm:$0xff] %v10901_v23 }
 0x1d4   : > { %v793_v6 = vpop.permute.xlu0 %792  ;;  %8682 = vmatmul.msk.f32.vlgmr.msra.gmra.mxu2 %vm608_vm1, %v10515_v35 }
 0x1d5   : > { %1277 = vmatpush.msra.mxu2 %v9239_v41  ;;  %8672 = vmatpush.xpose.msk.msra.mxu3 %vm608_vm1, %v793_v6  ;;  %v9259_v6 = vunpack.i.h.bf16 %v10889_v4 }
 0x1d7   : > { %1278 = vmatpush.msra.mxu2 %v9234_v53 }
 0x1d9   : > { %8673 = vmatpush.xpose.msk.msra.mxu3 %vm608_vm1, %v791_v40  ;;  %v9233_v40 = vunpack.i.l.bf16 %v9232_v55  ;;  %v10905_v53 = vpop.permute.xlu1 %1553 }
 0x1da   : > { %9271 = vrot.lane.b32.xlu0 %v10604_v57, %s10219_s18  ;;  %15437 = vst [vmem:[#allocation46_spill] sm:$0xff] %v10905_v53 }
 0x1dc   : > { %8674 = vmatmul.msk.f32.vlgmr.msra.gmra.mxu3 %vm608_vm1, %v10630_v0  ;;  %v10893_v41 = vpop.permute.xlu0 %9251  ;;  %8683 = vmatmul.msk.f32.gmra.mxu2 %vm608_vm1, %v10524_v38 }
 0x1dd   : > { %1102 = vmatpush.msrb.mxu3 %v9218_v48  ;;  %15435 = vst [vmem:[#allocation44_spill] sm:$0xff] %v10893_v41  ;;  %v9254_v51 = vunpack.i.h.bf16 %v10893_v41 }
 0x1df   : > { %1103 = vmatpush.msrb.mxu3 %v9213_v9  ;;  %2010 = vmatpush.msra.mxu0 %v9254_v51  ;;  %v10909_v9 = vpop.permute.xlu2 %2247 }
 0x1e0   : > { %15438 = vst [vmem:[#allocation47_spill] sm:$0xff] %v10909_v9 }
 0x1e1   : > { %1207 = vmatpush.msra.mxu3 %v9238_v8  ;;  %2011 = vmatpush.msra.mxu0 %v9259_v6  ;;  %v10913_v55 = vpop.permute.xlu1 %9241 }
 0x1e3   : > { %1208 = vmatpush.msra.mxu3 %v9233_v40 }
 0x1e4   : > { %8675 = vmatmul.msk.f32.gmra.mxu3 %vm608_vm1, %v10675_v14  ;;  %v10911_v8 = vpop.permute.xlu0 %2208 }
 0x1e5   : > { %15439 = vst [vmem:[#allocation48_spill] sm:$0xff] %v10911_v8 }
 0x1e7   : > { %v10919_v6 = vpop.permute.xlu2 %2245 }
 0x1e8   : > { %15440 = vst [vmem:[#allocation49_spill] sm:$0xff] %v10919_v6 }
 0x1e9   : > { %v10927_v9 = vpop.permute.xlu1 %9261 }
 0x1ea   : > { %901 = vmax.xlane.f32.xlu1 %v900_v25  ;;  %15442 = vst [vmem:[#allocation51_spill] sm:$0xff] %v10927_v9 }
 0x1ec   : > { %v10921_v4 = vpop.permute.xlu0 %2206 }
 0x1ed   : > { %15441 = vst [vmem:[#allocation50_spill] sm:$0xff] %v10921_v4 }
 0x1ef   : > { %v10929_v8 = vpop.permute.xlu2 %2241 }
 0x1f0   : > { %15443 = vst [vmem:[#allocation52_spill] sm:$0xff] %v10929_v8 }
 0x1f1   : > { %v10933_v31 = vpop.permute.xlu1 %2202 }
 0x1f2   : > { %15445 = vst [vmem:[#allocation54_spill] sm:$0xff] %v10933_v31 }
 0x1f4   : > { %v10931_v53 = vpop.permute.xlu0 %2204 }
 0x1f5   : > { %v10907_v48 = vpop.f32.mrf.mxu2  ;;  %15444 = vst [vmem:[#allocation53_spill] sm:$0xff] %v10931_v53 }
 0x1f6   : > { %v906_v25 = vsel %vm899_vm2, %v10907_v48, -inf }
 0x1f9   : > { %v10941_v4 = vpop.permute.xlu1 %2130 }
 0x1fa   : > { %15448 = vst [vmem:[#allocation57_spill] sm:$0xff] %v10941_v4 }
 0x1fc   : > { %v10937_v6 = vpop.permute.xlu0 %2364 }
 0x1fd   : > { %v10915_v51 = vpop.f32.mrf.mxu2  ;;  %15447 = vst [vmem:[#allocation56_spill] sm:$0xff] %v10937_v6 }
 0x1fe   : > { %v909_v40 = vsel %vm899_vm2, %v10915_v51, -inf }
 0x1ff   : > { %910 = vmax.xlane.f32.xlu2 %v909_v40  ;;  %v10935_v40 = vpop.permute.xlu2 %2169 }
 0x200   : > { %15446 = vst [vmem:[#allocation55_spill] sm:$0xff] %v10935_v40 }
 0x201   : > { %v10951_v53 = vpop.permute.xlu1 %9266 }
 0x202   : > { %15451 = vst [vmem:[#allocation60_spill] sm:$0xff] %v10951_v53 }
 0x203   : > { %9276 = vrot.lane.b32.xlu1 %v10480_v27, %s10219_s18 }
 0x204   : > { %907 = vmax.xlane.f32.xlu0 %v906_v25  ;;  %v10949_v8 = vpop.permute.xlu0 %2124 }
 0x205   : > { %15450 = vst [vmem:[#allocation59_spill] sm:$0xff] %v10949_v8 }
 0x207   : > { %v10947_v41 = vpop.permute.xlu2 %2167 }
 0x208   : > { %15449 = vst [vmem:[#allocation58_spill] sm:$0xff] %v10947_v41 }
 0x209   : > { %v10961_v59 = vpop.permute.xlu1 %2128 }
 0x20a   : > { %15454 = vst [vmem:[#allocation63_spill] sm:$0xff] %v10961_v59 }
 0x20c   : > { %v10957_v40 = vpop.permute.xlu0 %2362 }
 0x20d   : > { %15453 = vst [vmem:[#allocation62_spill] sm:$0xff] %v10957_v40 }
 0x20f   : > { %v10955_v6 = vpop.permute.xlu2 %2243 }
 0x210   : > { %15452 = vst [vmem:[#allocation61_spill] sm:$0xff] %v10955_v6 }
 0x211   : > { %v10967_v8 = vpop.permute.xlu1 %2358 }
 0x212   : > { %15457 = vst [vmem:[#allocation66_spill] sm:$0xff] %v10967_v8 }
 0x214   : > { %v10965_v41 = vpop.permute.xlu0 %2126 }
 0x215   : > { %15456 = vst [vmem:[#allocation65_spill] sm:$0xff] %v10965_v41 }
 0x217   : > { %v10963_v18 = vpop.permute.xlu2 %2163 }
 0x218   : > { %9286 = vrot.lane.b32.xlu0 %v10644_v5, %s10219_s18  ;;  %15455 = vst [vmem:[#allocation64_spill] sm:$0xff] %v10963_v18 }
 0x219   : > { %v10979_v59 = vpop.permute.xlu1 %2360 }
 0x21a   : > { %15460 = vst [vmem:[#allocation69_spill] sm:$0xff] %v10979_v59 }
 0x21c   : > { %v10975_v40 = vpop.permute.xlu0 %2286 }
 0x21d   : > { %15459 = vst [vmem:[#allocation68_spill] sm:$0xff] %v10975_v40 }
 0x21f   : > { %v10943_v7 = vpop.f32.mrf.mxu3  ;;  %v10973_v6 = vpop.permute.xlu2 %2397 }
 0x220   : > { %v912_v25 = vsel %vm899_vm2, %v10943_v7, -inf  ;;  %15458 = vst [vmem:[#allocation67_spill] sm:$0xff] %v10973_v6 }
 0x221   : > { %913 = vmax.xlane.f32.xlu2 %v912_v25  ;;  %v10991_v41 = vpop.permute.xlu1 %2280 }
 0x222   : > { %15463 = vst [vmem:[#allocation72_spill] sm:$0xff] %v10991_v41 }
 0x223   : > { %v10971_v25 = vpop.f32.mrf.mxu1 }
 0x227   : > { %v10953_v31 = vpop.f32.mrf.mxu3  ;;  %v10985_v8 = vpop.permute.xlu2 %2325 }
 0x228   : > { %v915_v4 = vsel %vm899_vm2, %v10953_v31, -inf  ;;  %15461 = vst [vmem:[#allocation70_spill] sm:$0xff] %v10985_v8 }
 0x229   : > { %v11001_v60 = vpop.permute.xlu1 %2165 }
 0x22a   : > { %15466 = vst [vmem:[#allocation75_spill] sm:$0xff] %v11001_v60 }
 0x22b   : > { %v10981_v18 = vpop.f32.mrf.mxu1 }
 0x22c   : > { %v921_v6 = vsel %vm899_vm2, %v10981_v18, -inf }
 0x22d   : > { %916 = vmax.xlane.f32.xlu1 %v915_v4  ;;  %v918_v4 = vsel %vm899_vm2, %v10971_v25, -inf }
 0x22f   : > { %v10997_v59 = vpop.permute.xlu2 %2319 }
 0x230   : > { %15464 = vst [vmem:[#allocation73_spill] sm:$0xff] %v10997_v59 }
 0x233   : > { %v10993_v40 = vpop.f32.mrf.mxu1 }
 0x237   : > { %v11003_v8 = vpop.permute.xlu2 %9281 }
 0x238   : > { %15467 = vst [vmem:[#allocation76_spill] sm:$0xff] %v11003_v8 }
 0x239   : > { %9296 = vrot.lane.b32.xlu2 %v10660_v10, %s10219_s18  ;;  %v10987_v10 = vpop.permute.xlu0 %2284 }
 0x23a   : > { %15462 = vst [vmem:[#allocation71_spill] sm:$0xff] %v10987_v10 }
 0x23f   : > { %v905_v23 = vpop.xlane.xlu2 %904 }
 0x240   : > { %v949_v8 = vsub.f32 %v10865_v15, %v905_v23 }
 0x241   : > { %v10999_v53 = vpop.permute.xlu0 %2403 }
 0x242   : > { %919 = vmax.xlane.f32.xlu0 %v918_v4  ;;  %v936_v4 = vsel %vm899_vm2, %v10993_v40, -inf  ;;  %15465 = vst [vmem:[#allocation74_spill] sm:$0xff] %v10999_v53 }
 0x246   : > { %9291 = vrot.lane.b32.xlu1 %v10725_v36, %s10219_s18 }
 0x247   : > { %v11007_v61 = vpop.f32.mrf.mxu2 }
 0x248   : > { %v924_v41 = vsel %vm899_vm2, %v11007_v61, -inf }
 0x249   : > { %v11005_v10 = vpop.permute.xlu0 %2401 }
 0x24a   : > { %922 = vmax.xlane.f32.xlu0 %v921_v6  ;;  %15468 = vst [vmem:[#allocation77_spill] sm:$0xff] %v11005_v10  ;;  %v11009_v6 = vpop.permute.xlu1 %2323 }
 0x24b   : > { %15469 = vst [vmem:[#allocation78_spill] sm:$0xff] %v11009_v6 }
 0x24f   : > { %v11022_v53 = vpop.f32.mrf.mxu2 }
 0x250   : > { %v927_v15 = vsel %vm899_vm2, %v11022_v53, -inf }
 0x251   : > { %v11017_v59 = vpop.permute.xlu0 %2282 }
 0x252   : > { %937 = vmax.xlane.f32.xlu0 %v936_v4  ;;  %v11013_v4 = vpop.f32.mrf.mxu1  ;;  %15470 = vst [vmem:[#allocation79_spill] sm:$0xff] %v11017_v59  ;;  %v11024_v60 = vpop.permute.xlu1 %2321 }
 0x253   : > { %v939_v10 = vsel %vm899_vm2, %v11013_v4, -inf  ;;  %15471 = vst [vmem:[#allocation80_spill] sm:$0xff] %v11024_v60 }
 0x257   : > { %v11034_v59 = vpop.f32.mrf.mxu2 }
 0x258   : > { %v942_v60 = vsel %vm899_vm2, %v11034_v59, -inf }
 0x259   : > { %v11030_v16 = vpop.permute.xlu0 %2399 }
 0x25a   : > { %15472 = vst [vmem:[#allocation81_spill] sm:$0xff] %v11030_v16 }
 0x25d   : > { %v902_v23 = vpop.xlane.xlu1 %901 }
 0x25f   : > { %v11026_v6 = vpop.f32.mrf.mxu3 }
 0x260   : > { %v930_v11 = vsel %vm899_vm2, %v11026_v6, -inf }
 0x261   : > { %v11043_v16 = vpop.permute.xlu0 %9271 }
 0x262   : > { %925 = vmax.xlane.f32.xlu2 %v924_v41  ;;  %v966_v41 = vmul.f32 1.442695, %v949_v8  ;;  %v948_v8 = vsub.f32 %v10850_v34, %v902_v23  ;;  %15473 = vst [vmem:[#allocation82_spill] sm:$0xff] %v11043_v16 }
 0x264   : > { %9518 = vpow2.f32 %v966_v41  ;;  %v964_v41 = vmul.f32 1.442695, %v948_v8 }
 0x266   : > { %2976 = vrot.lane.b32.xlu0 %v10564_v46, %s10220_s19  ;;  %9520 = vpow2.f32 %v964_v41  ;;  %v11057_v41 = vpop.f32.mrf.mxu2 }
 0x26a   : > { %940 = vmax.xlane.f32.xlu2 %v939_v10  ;;  %v11036_v10 = vpop.eup %9518 }
 0x270   : > { %931 = vmax.xlane.f32.xlu1 %v930_v11  ;;  %v999_v11 = vsel %vm899_vm2, %v11036_v10, 0.0 }
 0x272   : > { %928 = vmax.xlane.f32.xlu2 %v927_v15  ;;  %v911_v5 = vpop.xlane.xlu2 %910  ;;  %v11045_v15 = vpop.f32.mrf.mxu3 }
 0x273   : > { %v951_v36 = vsub.f32 %v10915_v51, %v911_v5  ;;  %v933_v34 = vsel %vm899_vm2, %v11045_v15, -inf  ;;  %v945_v5 = vsel %vm899_vm2, %v11057_v41, -inf }
 0x275   : > { %v970_v23 = vmul.f32 1.442695, %v951_v36 }
 0x277   : > { %v908_v19 = vpop.xlane.xlu0 %907  ;;  %9522 = vpow2.f32 %v970_v23 }
 0x278   : > { %943 = vmax.xlane.f32.xlu1 %v942_v60  ;;  %v11050_v60 = vpop.eup %9520  ;;  %v950_v8 = vsub.f32 %v10907_v48, %v908_v19 }
 0x27a   : > { %1000 = vadd.xlane.f32.xlu2 %v999_v11  ;;  %v996_v11 = vsel %vm899_vm2, %v11050_v60, 0.0  ;;  %v968_v16 = vmul.f32 1.442695, %v950_v8  ;;  %v11068_v8 = vpop.permute.xlu1 %9276 }
 0x27b   : > { %15474 = vst [vmem:[#allocation83_spill] sm:$0xff] %v11068_v8 }
 0x27c   : > { %9524 = vpow2.f32 %v968_v16 }
 0x27d   : > { %v11055_v33 = vpop.eup %9522 }
 0x27e   : > { %v1005_v36 = vsel %vm899_vm2, %v11055_v33, 0.0 }
 0x280   : > { %934 = vmax.xlane.f32.xlu1 %v933_v34 }
 0x282   : > { %v11063_v51 = vpop.eup %9524 }
 0x283   : > { %v1002_v23 = vsel %vm899_vm2, %v11063_v51, 0.0 }
 0x288   : > { %997 = vadd.xlane.f32.xlu1 %v996_v11 }
 0x290   : > { %946 = vmax.xlane.f32.xlu0 %v945_v5  ;;  %1006 = vadd.xlane.f32.xlu1 %v1005_v36 }
 0x294   : > { %v914_v19 = vpop.xlane.xlu2 %913 }
 0x295   : > { %v952_v48 = vsub.f32 %v10943_v7, %v914_v19 }
 0x297   : > { %v972_v34 = vmul.f32 1.442695, %v952_v48  ;;  %v11079_v48 = vpop.permute.xlu0 %9286 }
 0x298   : > { %1003 = vadd.xlane.f32.xlu0 %v1002_v23  ;;  %15475 = vst [vmem:[#allocation84_spill] sm:$0xff] %v11079_v48 }
 0x299   : > { %9526 = vpow2.f32 %v972_v34 }
 0x29f   : > { %v11070_v16 = vpop.eup %9526 }
 0x2a0   : > { %v917_v11 = vpop.xlane.xlu1 %916  ;;  %v1008_v5 = vsel %vm899_vm2, %v11070_v16, 0.0 }
 0x2a1   : > { %v953_v36 = vsub.f32 %v10953_v31, %v917_v11  ;;  %1009 = vadd.xlane.f32.xlu2 %v1008_v5 }
 0x2a3   : > { %v974_v9 = vmul.f32 1.442695, %v953_v36 }
 0x2a5   : > { %9528 = vpow2.f32 %v974_v9 }
 0x2ab   : > { %v11075_v7 = vpop.eup %9528 }
 0x2ac   : > { %v1011_v19 = vsel %vm899_vm2, %v11075_v7, 0.0 }
 0x2ad   : > { %1012 = vadd.xlane.f32.xlu0 %v1011_v19 }
 0x2b5   : > { %v920_v34 = vpop.xlane.xlu0 %919 }
 0x2b6   : > { %v954_v23 = vsub.f32 %v10971_v25, %v920_v34 }
 0x2b8   : > { %v976_v8 = vmul.f32 1.442695, %v954_v23  ;;  %v11099_v23 = vpop.permute.xlu1 %9291 }
 0x2ba   : > { %9530 = vpow2.f32 %v976_v8 }
 0x2bd   : > { %v923_v56 = vpop.xlane.xlu0 %922 }
 0x2be   : > { %v955_v37 = vsub.f32 %v10981_v18, %v923_v56  ;;  %v11092_v56 = vpop.permute.xlu2 %9296 }
 0x2c0   : > { %v11083_v31 = vpop.eup %9530  ;;  %v978_v11 = vmul.f32 1.442695, %v955_v37 }
 0x2c1   : > { %v1014_v9 = vsel %vm899_vm2, %v11083_v31, 0.0 }
 0x2c2   : > { %9532 = vpow2.f32 %v978_v11  ;;  %1015 = vadd.xlane.f32.xlu0 %v1014_v9 }
 0x2c5   : > { %v938_v5 = vpop.xlane.xlu0 %937 }
 0x2c6   : > { %v960_v36 = vsub.f32 %v10993_v40, %v938_v5 }
 0x2c8   : > { %v11088_v19 = vpop.eup %9532  ;;  %v988_v48 = vmul.f32 1.442695, %v960_v36 }
 0x2c9   : > { %v1017_v25 = vsel %vm899_vm2, %v11088_v19, 0.0 }
 0x2ca   : > { %9534 = vpow2.f32 %v988_v48  ;;  %1018 = vadd.xlane.f32.xlu0 %v1017_v25 }
 0x2d0   : > { %v11094_v18 = vpop.eup %9534 }
 0x2d1   : > { %v1032_v37 = vsel %vm899_vm2, %v11094_v18, 0.0 }
 0x2d2   : > { %1033 = vadd.xlane.f32.xlu0 %v1032_v37 }
 0x2d5   : > { %v926_v8 = vpop.xlane.xlu2 %925 }
 0x2d6   : > { %v956_v34 = vsub.f32 %v11007_v61, %v926_v8 }
 0x2d8   : > { %v980_v40 = vmul.f32 1.442695, %v956_v34 }
 0x2da   : > { %9536 = vpow2.f32 %v980_v40 }
 0x2dd   : > { %v941_v11 = vpop.xlane.xlu2 %940 }
 0x2de   : > { %v961_v9 = vsub.f32 %v11013_v4, %v941_v11 }
 0x2e0   : > { %v11102_v48 = vpop.eup %9536  ;;  %v990_v5 = vmul.f32 1.442695, %v961_v9 }
 0x2e1   : > { %v1020_v36 = vsel %vm899_vm2, %v11102_v48, 0.0 }
 0x2e2   : > { %9538 = vpow2.f32 %v990_v5  ;;  %1021 = vadd.xlane.f32.xlu1 %v1020_v36  ;;  %v11127_v5 = vpop.permute.xlu0 %2976 }
 0x2e3   : > { %v11106_v25 = vpop.xlane.xlu1 %931  ;;  %15476 = vst [vmem:[#allocation85_spill] sm:$0xff] %v11127_v5  ;;  %v9199_v5 = vunpack.i.h.bf16 %v10666_v12 }
 0x2e5   : > { %v929_v37 = vpop.xlane.xlu2 %928 }
 0x2e6   : > { %v957_v61 = vsub.f32 %v11022_v53, %v929_v37  ;;  %2898 = vrot.lane.b32.xlu0 %v10474_v26, %s10220_s19 }
 0x2e8   : > { %v11111_v8 = vpop.eup %9538  ;;  %v982_v34 = vmul.f32 1.442695, %v957_v61 }
 0x2e9   : > { %v1035_v4 = vsel %vm899_vm2, %v11111_v8, 0.0 }
 0x2ea   : > { %9540 = vpow2.f32 %v982_v34  ;;  %1036 = vadd.xlane.f32.xlu2 %v1035_v4 }
 0x2eb   : > { %v11115_v40 = vpop.xlane.xlu1 %943 }
 0x2ed   : > { %v1001_v37 = vpop.xlane.xlu2 %1000 }
 0x2ee   : > { %2974 = vrot.lane.b32.xlu0 %v10546_v42, %s10220_s19 }
 0x2f0   : > { %v11119_v11 = vpop.eup %9540 }
 0x2f1   : > { %v1023_v53 = vsel %vm899_vm2, %v11119_v11, 0.0 }
 0x2f2   : > { %1024 = vadd.xlane.f32.xlu1 %v1023_v53  ;;  %v9198_v53 = vunpack.i.l.bf16 %v10666_v12 }
 0x2f3   : > { %v11123_v9 = vpop.xlane.xlu1 %934 }
 0x2f6   : > { %2970 = vrot.lane.b32.xlu0 %v10546_v42, %s10221_s24 }
 0x2fb   : > { %v998_v36 = vpop.xlane.xlu1 %997 }
 0x2fc   : > { %9542 = vrcp.f32 %v998_v36 }
 0x2fd   : > { %9544 = vrcp.f32 %v1001_v37 }
 0x2fe   : > { %3130 = vrot.lane.b32.xlu0 %v10471_v24, %s10220_s19 }
 0x302   : > { %v9543_v61 = vpop.eup %9542  ;;  %9306 = vrot.lane.b32.xlu2 %v10768_v62, %s10219_s18 }
 0x303   : > { %v1060_v34 = vmul.f32 %v9543_v61, %v11050_v60  ;;  %v11134_v4 = vpop.xlane.xlu0 %946  ;;  %v9545_v36 = vpop.eup %9544 }
 0x304   : > { %v1061_v60 = vmul.f32 %v9545_v36, %v11036_v10  ;;  %v1007_v12 = vpop.xlane.xlu1 %1006 }
 0x305   : > { %8684 = vmatmul.msk.f32.vlgmr.msrb.gmra.mxu3 %vm899_vm2, %v1060_v34  ;;  %v9208_v34 = vunpack.i.l.bf16 %v10756_v50 }
 0x306   : > { %1312 = vmatpush.msrb.mxu3 %v9198_v53  ;;  %3011 = vrot.lane.b32.xlu0 %v10571_v49, %s10221_s24  ;;  %v9209_v53 = vunpack.i.h.bf16 %v10756_v50 }
 0x308   : > { %1313 = vmatpush.msrb.mxu3 %v9199_v5 }
 0x30a   : > { %3015 = vrot.lane.b32.xlu2 %v10571_v49, %s10220_s19 }
 0x30b   : > { %v1004_v37 = vpop.xlane.xlu0 %1003  ;;  %9301 = vrot.lane.b32.xlu1 %v10559_v45, %s10219_s18  ;;  %s10231_s18 = smov 40  }
 0x30c   : > { %9546 = vrcp.f32 %v1004_v37 }
 0x30d   : > { %8685 = vmatmul.msk.f32.gmra.mxu3 %vm899_vm2, %v1061_v60  ;;  %9548 = vrcp.f32 %v1007_v12 }
 0x30e   : > { %2933 = vrot.lane.b32.xlu0 %v10533_v39, %s10221_s24 }
 0x312   : > { %v9547_v61 = vpop.eup %9546  ;;  %2894 = vrot.lane.b32.xlu2 %v10474_v26, %s10221_s24 }
 0x313   : > { %v1062_v5 = vmul.f32 %v9547_v61, %v11063_v51  ;;  %2896 = vrot.lane.b32.xlu1 %v10462_v22, %s10220_s19  ;;  %v9549_v36 = vpop.eup %9548 }
 0x314   : > { %v1010_v10 = vpop.xlane.xlu2 %1009  ;;  %v1063_v37 = vmul.f32 %v9549_v36, %v11055_v33 }
 0x315   : > { %9550 = vrcp.f32 %v1010_v10  ;;  %8686 = vmatmul.msk.f32.vlgmr.msrb.gmra.mxu1 %vm899_vm2, %v1062_v5 }
 0x316   : > { %1347 = vmatpush.msrb.mxu1 %v9208_v34  ;;  %3169 = vrot.lane.b32.xlu0 %v10515_v35, %s10220_s19 }
 0x318   : > { %1348 = vmatpush.msrb.mxu1 %v9209_v53 }
 0x31a   : > { %3013 = vrot.lane.b32.xlu2 %v10607_v58, %s10220_s19 }
 0x31b   : > { %v9551_v51 = vpop.eup %9550  ;;  %2892 = vrot.lane.b32.xlu1 %v10462_v22, %s10221_s24 }
 0x31c   : > { %v1064_v60 = vmul.f32 %v9551_v51, %v11070_v16 }
 0x31d   : > { %8687 = vmatmul.msk.f32.gmra.mxu1 %vm899_vm2, %v1063_v37 }
 0x31e   : > { %3087 = vrot.lane.b32.xlu0 %v10630_v0, %s10221_s24  ;;  %8688 = vmatmul.msk.f32.vlgmr.msrb.gmra.mxu2 %vm899_vm2, %v1064_v60 }
 0x31f   : > { %8700 = vmatpush.xpose.msk.msrb.mxu2 %vm608_vm1, %v10638_v2  ;;  %v9325_v2 = vpack.i.bf16 %v10571_v49, %v10506_v32 }
 0x320   : > { %v1013_v50 = vpop.xlane.xlu0 %1012 }
 0x321   : > { %9552 = vrcp.f32 %v1013_v50 }
 0x322   : > { %3009 = vrot.lane.b32.xlu2 %v10607_v58, %s10221_s24 }
 0x323   : > { %8701 = vmatpush.xpose.msk.msrb.mxu2 %vm608_vm1, %v10627_v63  ;;  %2972 = vrot.lane.b32.xlu1 %v10564_v46, %s10221_s24 }
 0x326   : > { %9311 = vrot.lane.b32.xlu0 %v10480_v27, %s10222_s15 }
 0x327   : > { %v9553_v33 = vpop.eup %9552 }
 0x328   : > { %v1065_v16 = vmul.f32 %v9553_v33, %v11075_v7  ;;  %v958_v7 = vsub.f32 %v11026_v6, %v11106_v25  ;;  %v962_v6 = vsub.f32 %v11034_v59, %v11115_v40  ;;  %v959_v59 = vsub.f32 %v11045_v15, %v11123_v9 }
 0x329   : > { %v963_v15 = vsub.f32 %v11057_v41, %v11134_v4 }
 0x32a   : > { %8689 = vmatmul.msk.f32.gmra.mxu2 %vm899_vm2, %v1065_v16  ;;  %v984_v61 = vmul.f32 1.442695, %v958_v7  ;;  %v15480_v7 = vld [vmem:[#allocation29_spill] sm:$0xff] }
 0x32b   : > { %3132 = vrot.lane.b32.xlu1 %v10487_v29, %s10220_s19 }
 0x32e   : > { %9326 = vrot.lane.b32.xlu0 %v9325_v2, %s10222_s15 }
 0x333   : > { %2937 = vrot.lane.b32.xlu1 %v10533_v39, %s10220_s19 }
 0x335   : > { %v1016_v63 = vpop.xlane.xlu0 %1015 }
 0x336   : > { %9554 = vrcp.f32 %v1016_v63  ;;  %3666 = vrot.lane.b32.xlu0 %v10474_v26, %s10223_s22 }
 0x33b   : > { %3054 = vrot.lane.b32.xlu1 %v10594_v54, %s10220_s19 }
 0x33c   : > { %v9555_v12 = vpop.eup %9554 }
 0x33d   : > { %v1066_v5 = vmul.f32 %v9555_v12, %v11083_v31  ;;  %v1019_v34 = vpop.xlane.xlu0 %1018  ;;  %v992_v31 = vmul.f32 1.442695, %v962_v6  ;;  %v15484_v6 = vld [vmem:[#allocation31_spill] sm:$0xff] }
 0x33e   : > { %9556 = vrcp.f32 %v1019_v34  ;;  %9341 = vrot.lane.b32.xlu0 %v10768_v62, %s10222_s15 }
 0x33f   : > { %8690 = vmatmul.msk.f32.vlgmr.msra.gmra.mxu3 %vm899_vm2, %v1066_v5  ;;  %9558 = vpow2.f32 %v984_v61  ;;  %v15481_v61 = vld [vmem:[#allocation27_spill] sm:$0xff] }
 0x340   : > { %8704 = vmatpush.xpose.msk.msra.mxu3 %vm608_vm1, %v10744_v47 }
 0x343   : > { %3126 = vrot.lane.b32.xlu1 %v10471_v24, %s10221_s24 }
 0x344   : > { %v9557_v25 = vpop.eup %9556  ;;  %8705 = vmatpush.xpose.msk.msra.mxu3 %vm608_vm1, %v10697_v21 }
 0x345   : > { %v1034_v10 = vpop.xlane.xlu0 %1033  ;;  %v1067_v53 = vmul.f32 %v9557_v25, %v11088_v19  ;;  %v11209_v47 = vpop.eup %9558  ;;  %v986_v19 = vmul.f32 1.442695, %v959_v59 }
 0x346   : > { %9560 = vrcp.f32 %v1034_v10  ;;  %9346 = vrot.lane.b32.xlu0 %v10559_v45, %s10222_s15  ;;  %v1026_v40 = vsel %vm899_vm2, %v11209_v47, 0.0 }
 0x347   : > { %8691 = vmatmul.msk.f32.gmra.mxu3 %vm899_vm2, %v1067_v53  ;;  %9562 = vpow2.f32 %v992_v31  ;;  %v15486_v31 = vld [vmem:[#allocation22_spill] sm:$0xff] }
 0x348   : > { %9564 = vpow2.f32 %v986_v19 }
 0x34b   : > { %1027 = vadd.xlane.f32.xlu2 %v1026_v40  ;;  %3052 = vrot.lane.b32.xlu1 %v10585_v52, %s10220_s19 }
 0x34c   : > { %v9561_v21 = vpop.eup %9560 }
 0x34d   : > { %v1072_v36 = vmul.f32 %v9561_v21, %v11094_v18  ;;  %v11221_v51 = vpop.eup %9562  ;;  %v994_v18 = vmul.f32 1.442695, %v963_v15  ;;  %v15490_v15 = vld [vmem:[#allocation36_spill] sm:$0xff] }
 0x34e   : > { %3660 = vrot.lane.b32.xlu0 %v10462_v22, %s10224_s16  ;;  %v1038_v9 = vsel %vm899_vm2, %v11221_v51, 0.0  ;;  %v11234_v60 = vpop.eup %9564 }
 0x34f   : > { %8696 = vmatmul.msk.f32.vlgmr.msrb.gmra.mxu3 %vm899_vm2, %v1072_v36 }
 0x350   : > { %8716 = vmatpush.xpose.msk.msrb.mxu3 %vm608_vm1, %v10846_v30  ;;  %v1029_v30 = vsel %vm899_vm2, %v11234_v60, 0.0 }
 0x353   : > { %1039 = vadd.xlane.f32.xlu2 %v1038_v9  ;;  %3048 = vrot.lane.b32.xlu1 %v10585_v52, %s10221_s24 }
 0x354   : > { %8717 = vmatpush.xpose.msk.msrb.mxu3 %vm608_vm1, %v10825_v17 }
 0x355   : > { %v1022_v37 = vpop.xlane.xlu1 %1021 }
 0x356   : > { %9566 = vrcp.f32 %v1022_v37 }
 0x357   : > { %9568 = vpow2.f32 %v994_v18  ;;  %v15491_v18 = vld [vmem:[#allocation35_spill] sm:$0xff] }
 0x35b   : > { %1030 = vadd.xlane.f32.xlu2 %v1029_v30  ;;  %3171 = vrot.lane.b32.xlu1 %v10524_v38, %s10220_s19 }
 0x35c   : > { %v9567_v41 = vpop.eup %9566 }
 0x35d   : > { %v1068_v4 = vmul.f32 %v9567_v41, %v11102_v48  ;;  %v1037_v50 = vpop.xlane.xlu2 %1036  ;;  %v11241_v33 = vpop.eup %9568 }
 0x35e   : > { %9570 = vrcp.f32 %v1037_v50  ;;  %v1041_v17 = vsel %vm899_vm2, %v11241_v33, 0.0  ;;  %v15494_v50 = vld [vmem:[#allocation41_spill] sm:$0xff] }
 0x35f   : > { %8692 = vmatmul.msk.f32.vlgmr.msra.gmra.mxu1 %vm899_vm2, %v1068_v4 }
 0x360   : > { %8708 = vmatpush.xpose.msk.msra.mxu1 %vm608_vm1, %v10774_v1 }
 0x363   : > { %1042 = vadd.xlane.f32.xlu2 %v1041_v17  ;;  %3093 = vrot.lane.b32.xlu1 %v10675_v14, %s10220_s19 }
 0x364   : > { %v9571_v16 = vpop.eup %9570  ;;  %8709 = vmatpush.xpose.msk.msra.mxu1 %vm608_vm1, %v10778_v3 }
 0x365   : > { %v1025_v48 = vpop.xlane.xlu1 %1024  ;;  %v1073_v2 = vmul.f32 %v9571_v16, %v11111_v8 }
 0x366   : > { %9572 = vrcp.f32 %v1025_v48 }
 0x367   : > { %8697 = vmatmul.msk.f32.gmra.mxu3 %vm899_vm2, %v1073_v2 }
 0x36b   : > { %3091 = vrot.lane.b32.xlu1 %v10630_v0, %s10220_s19 }
 0x36c   : > { %v9573_v1 = vpop.eup %9572 }
 0x36d   : > { %v1069_v63 = vmul.f32 %v9573_v1, %v11119_v11  ;;  %v11288_v11 = vpop.permute.xlu2 %9306 }
 0x36f   : > { %8693 = vmatmul.msk.f32.gmra.mxu1 %vm899_vm2, %v1069_v63  ;;  %8706 = vmatmul.msk.f32.vlgmr.msra.gmra.mxu3 %vm608_vm1, %v10691_v20  ;;  %v9243_v20 = vunpack.i.l.bf16 %v10913_v55  ;;  %v15496_v63 = vld [vmem:[#allocation20_spill] sm:$0xff] }
 0x370   : > { %8728 = vmatpush.xpose.msk.msra.mxu3 %vm608_vm1, %v10672_v13  ;;  %v15477_v13 = vld [vmem:[#allocation42_spill] sm:$0xff] }
 0x371   : > { %v9248_v3 = vunpack.i.l.bf16 %v15477_v13 }
 0x373   : > { %3089 = vrot.lane.b32.xlu1 %v10675_v14, %s10221_s24 }
 0x374   : > { %8729 = vmatpush.xpose.msk.msra.mxu3 %vm608_vm1, %v10709_v28  ;;  %v9330_v28 = vpack.i.bf16 %v10487_v29, %v10585_v52 }
 0x375   : > { %v11299_v5 = vpop.permute.xlu2 %3015 }
 0x376   : > { %15482 = vst [vmem:[#allocation42_spill] sm:$0xff] %v11299_v5 }
 0x377   : > { %8707 = vmatmul.msk.f32.gmra.mxu3 %vm608_vm1, %v10738_v44  ;;  %v15478_v44 = vld [vmem:[#allocation39_spill] sm:$0xff] }
 0x37b   : > { %2935 = vrot.lane.b32.xlu2 %v10506_v32, %s10220_s19  ;;  %9316 = vrot.lane.b32.xlu1 %v10604_v57, %s10222_s15  ;;  %s10232_s19 = smov 68  }
 0x37d   : > { %v11305_v34 = vpop.permute.xlu2 %2894  ;;  %v11339_v2 = vpop.permute.xlu1 %9301 }
 0x37e   : > { %15483 = vst [vmem:[#allocation39_spill] sm:$0xff] %v11305_v34 }
 0x37f   : > { %8718 = vmatmul.msk.f32.vlgmr.msrb.gmra.mxu3 %vm608_vm1, %v10835_v43  ;;  %v15479_v43 = vld [vmem:[#allocation51_spill] sm:$0xff] }
 0x380   : > { %1975 = vmatpush.msrb.mxu3 %v9243_v20  ;;  %v9263_v8 = vunpack.i.l.bf16 %v15479_v43  ;;  %v9264_v12 = vunpack.i.h.bf16 %v15479_v43  ;;  %v15497_v20 = vld [vmem:[#allocation26_spill] sm:$0xff] }
 0x382   : > { %1976 = vmatpush.msrb.mxu3 %v9248_v3 }
 0x383   : > { %2931 = vrot.lane.b32.xlu2 %v10506_v32, %s10221_s24  ;;  %9331 = vrot.lane.b32.xlu1 %v9330_v28, %s10222_s15  ;;  %v15500_v28 = vld [vmem:[#allocation44_spill] sm:$0xff] }
 0x385   : > { %v11311_v25 = vpop.permute.xlu2 %3013  ;;  %v11352_v43 = vpop.permute.xlu1 %2896 }
 0x386   : > { %15485 = vst [vmem:[#allocation51_spill] sm:$0xff] %v11311_v25 }
 0x387   : > { %8719 = vmatmul.msk.f32.gmra.mxu3 %vm608_vm1, %v15478_v44  ;;  %v9253_v44 = vunpack.i.l.bf16 %v15500_v28  ;;  %v9249_v28 = vunpack.i.h.bf16 %v15477_v13 }
 0x388   : > { %v11317_v53 = vpop.f32.mrf.mxu3 }
 0x389   : > { %15488 = vst [vmem:[#allocation27_spill] sm:$0xff] %v11317_v53 }
 0x38b   : > { %3128 = vrot.lane.b32.xlu2 %v10487_v29, %s10221_s24  ;;  %3744 = vrot.lane.b32.xlu1 %v10564_v46, %s10223_s22 }
 0x38d   : > { %v11315_v10 = vpop.permute.xlu2 %3009 }
 0x38e   : > { %15487 = vst [vmem:[#allocation29_spill] sm:$0xff] %v11315_v10 }
 0x38f   : > { %8730 = vmatmul.msk.f32.vlgmr.msra.gmra.mxu3 %vm608_vm1, %v15480_v7  ;;  %v15503_v7 = vld [vmem:[#allocation43_spill] sm:$0xff] }
 0x390   : > { %2115 = vmatpush.msra.mxu3 %v9263_v8  ;;  %v11319_v21 = vpop.f32.mrf.mxu3  ;;  %v15501_v8 = vld [vmem:[#allocation23_spill] sm:$0xff] }
 0x391   : > { %15489 = vst [vmem:[#allocation86_spill] sm:$0xff] %v11319_v21 }
 0x392   : > { %2116 = vmatpush.msra.mxu3 %v9264_v12  ;;  %v9258_v12 = vunpack.i.l.bf16 %v15503_v7 }
 0x393   : > { %3050 = vrot.lane.b32.xlu2 %v10594_v54, %s10221_s24  ;;  %3664 = vrot.lane.b32.xlu1 %v10462_v22, %s10223_s22 }
 0x397   : > { %8731 = vmatmul.msk.f32.gmra.mxu3 %vm608_vm1, %v15481_v61 }
 0x39b   : > { %3165 = vrot.lane.b32.xlu2 %v10515_v35, %s10221_s24  ;;  %3742 = vrot.lane.b32.xlu1 %v10546_v42, %s10223_s22 }
 0x3a3   : > { %3167 = vrot.lane.b32.xlu2 %v10524_v38, %s10221_s24  ;;  %s10233_s24 = smov 100  }
 0x3ab   : > { %9321 = vrot.lane.b32.xlu2 %v15484_v6, %s10222_s15 }
 0x3b3   : > { %9336 = vrot.lane.b32.xlu2 %v15486_v31, %s10222_s15  ;;  %s10234_s15 = smov 36  }
 0x3be   : > { %v1028_v59 = vpop.xlane.xlu2 %1027 }
 0x3bf   : > { %9574 = vrcp.f32 %v1028_v59  ;;  %v15505_v59 = vld [vmem:[#allocation34_spill] sm:$0xff] }
 0x3c2   : > { %v11327_v37 = vpop.f32.mrf.mxu3 }
 0x3c3   : > { %15492 = vst [vmem:[#allocation36_spill] sm:$0xff] %v11327_v37 }
 0x3c5   : > { %v9575_v40 = vpop.eup %9574 }
 0x3c6   : > { %v1070_v19 = vmul.f32 %v9575_v40, %v11209_v47  ;;  %v1040_v36 = vpop.xlane.xlu2 %1039  ;;  %v15493_v47 = vld [vmem:[#allocation45_spill] sm:$0xff]  ;;  %v9223_v40 = vunpack.i.l.bf16 %v15505_v59 }
 0x3c7   : > { %9576 = vrcp.f32 %v1040_v36  ;;  %v15507_v36 = vld [vmem:[#allocation38_spill] sm:$0xff] }
 0x3c8   : > { %8694 = vmatmul.msk.f32.vlgmr.msra.gmra.mxu2 %vm899_vm2, %v1070_v19  ;;  %v15506_v19 = vld [vmem:[#allocation33_spill] sm:$0xff] }
 0x3c9   : > { %8712 = vmatpush.xpose.msk.msra.mxu2 %vm608_vm1, %v15490_v15  ;;  %v9224_v15 = vunpack.i.h.bf16 %v15505_v59  ;;  %v11403_v59 = vpop.f32.mrf.mxu1 }
 0x3ca   : > { %v11336_v48 = vpop.f32.mrf.mxu3  ;;  %15518 = vst [vmem:[#allocation23_spill] sm:$0xff] %v11403_v59 }
 0x3cb   : > { %15495 = vst [vmem:[#allocation35_spill] sm:$0xff] %v11336_v48 }
 0x3cd   : > { %v9577_v9 = vpop.eup %9576  ;;  %8713 = vmatpush.xpose.msk.msra.mxu2 %vm608_vm1, %v15491_v18 }
 0x3ce   : > { %v1074_v30 = vmul.f32 %v9577_v9, %v11221_v51  ;;  %v1031_v41 = vpop.xlane.xlu2 %1030  ;;  %v11367_v9 = vpop.permute.xlu1 %2892 }
 0x3cf   : > { %9578 = vrcp.f32 %v1031_v41  ;;  %15508 = vst [vmem:[#allocation20_spill] sm:$0xff] %v11367_v9  ;;  %v15509_v41 = vld [vmem:[#allocation60_spill] sm:$0xff] }
 0x3d0   : > { %8698 = vmatmul.msk.f32.vlgmr.msrb.gmra.mxu1 %vm899_vm2, %v1074_v30 }
 0x3d1   : > { %8720 = vmatpush.xpose.msk.msrb.mxu1 %vm608_vm1, %v15493_v47  ;;  %v9268_v47 = vunpack.i.l.bf16 %v15509_v41  ;;  %v11407_v13 = vpop.f32.mrf.mxu1 }
 0x3d2   : > { %v11347_v3 = vpop.f32.mrf.mxu3  ;;  %15520 = vst [vmem:[#allocation43_spill] sm:$0xff] %v11407_v13 }
 0x3d3   : > { %15498 = vst [vmem:[#allocation45_spill] sm:$0xff] %v11347_v3 }
 0x3d5   : > { %v9579_v4 = vpop.eup %9578  ;;  %8721 = vmatpush.xpose.msk.msrb.mxu1 %vm608_vm1, %v15494_v50  ;;  %v15511_v50 = vld [vmem:[#allocation40_spill] sm:$0xff] }
 0x3d6   : > { %v1043_v17 = vpop.xlane.xlu2 %1042  ;;  %v1071_v16 = vmul.f32 %v9579_v4, %v11234_v60  ;;  %v15499_v60 = vld [vmem:[#allocation19_spill] sm:$0xff]  ;;  %v15510_v4 = vld [vmem:[#allocation37_spill] sm:$0xff] }
 0x3d7   : > { %9580 = vrcp.f32 %v1043_v17  ;;  %v9269_v17 = vunpack.i.h.bf16 %v15509_v41 }
 0x3d8   : > { %8695 = vmatmul.msk.f32.gmra.mxu2 %vm899_vm2, %v1071_v16 }
 0x3dd   : > { %v9581_v51 = vpop.eup %9580 }
 0x3de   : > { %v1075_v1 = vmul.f32 %v9581_v51, %v11241_v33  ;;  %v15502_v33 = vld [vmem:[#allocation28_spill] sm:$0xff]  ;;  %v11381_v51 = vpop.permute.xlu1 %2972 }
 0x3df   : > { %15512 = vst [vmem:[#allocation26_spill] sm:$0xff] %v11381_v51 }
 0x3e0   : > { %8699 = vmatmul.msk.f32.gmra.mxu1 %vm899_vm2, %v1075_v1  ;;  %8702 = vmatmul.msk.f32.vlgmr.msrb.gmra.mxu2 %vm608_vm1, %v15496_v63  ;;  %v9244_v63 = vunpack.i.h.bf16 %v10913_v55 }
 0x3e1   : > { %8724 = vmatpush.xpose.msk.msrb.mxu2 %vm608_vm1, %v15497_v20  ;;  %v15513_v20 = vld [vmem:[#allocation46_spill] sm:$0xff] }
 0x3e5   : > { %8725 = vmatpush.xpose.msk.msrb.mxu2 %vm608_vm1, %v15499_v60  ;;  %v15514_v60 = vld [vmem:[#allocation21_spill] sm:$0xff] }
 0x3e8   : > { %8703 = vmatmul.msk.f32.gmra.mxu2 %vm608_vm1, %v15501_v8  ;;  %8710 = vmatmul.msk.f32.vlgmr.msra.gmra.mxu1 %vm608_vm1, %v15502_v33  ;;  %v15516_v8 = vld [vmem:[#allocation25_spill] sm:$0xff] }
 0x3e9   : > { %1905 = vmatpush.msra.mxu1 %v9253_v44  ;;  %v11391_v44 = vpop.permute.xlu1 %3132 }
 0x3ea   : > { %v11359_v61 = vpop.f32.mrf.mxu3  ;;  %15515 = vst [vmem:[#allocation19_spill] sm:$0xff] %v11391_v44 }
 0x3eb   : > { %15504 = vst [vmem:[#allocation41_spill] sm:$0xff] %v11359_v61  ;;  %1906 = vmatpush.msra.mxu1 %v9258_v12 }
 0x3f0   : > { %8711 = vmatmul.msk.f32.gmra.mxu1 %vm608_vm1, %v15506_v19  ;;  %8714 = vmatmul.msk.f32.vlgmr.msra.gmra.mxu2 %vm608_vm1, %v15507_v36  ;;  %v11411_v36 = vpop.f32.mrf.mxu2 }
 0x3f1   : > { %1940 = vmatpush.msra.mxu2 %v9223_v40  ;;  %v11395_v33 = vpop.permute.xlu1 %2937  ;;  %15522 = vst [vmem:[#allocation33_spill] sm:$0xff] %v11411_v36 }
 0x3f2   : > { %v11369_v18 = vpop.f32.mrf.mxu3 }
 0x3f3   : > { %1941 = vmatpush.msra.mxu2 %v9224_v15  ;;  %v1674_v30 = vsel %vm899_vm2, %v11369_v18, -inf  ;;  %v11413_v15 = vpop.f32.mrf.mxu1 }
 0x3f4   : > { %1675 = vmax.xlane.f32.xlu1 %v1674_v30  ;;  %15523 = vst [vmem:[#allocation38_spill] sm:$0xff] %v11413_v15 }
 0x3f8   : > { %8715 = vmatmul.msk.f32.gmra.mxu2 %vm608_vm1, %v15510_v4  ;;  %8722 = vmatmul.msk.f32.vlgmr.msrb.gmra.mxu1 %vm608_vm1, %v15511_v50  ;;  %v11415_v30 = vpop.f32.mrf.mxu2  ;;  %v11421_v4 = vpop.permute.xlu0 %2898 }
 0x3f9   : > { %2045 = vmatpush.msrb.mxu1 %v9268_v47  ;;  %v11397_v7 = vpop.permute.xlu1 %3054  ;;  %15524 = vst [vmem:[#allocation60_spill] sm:$0xff] %v11415_v30 }
 0x3fa   : > { %v11379_v16 = vpop.f32.mrf.mxu3 }
 0x3fb   : > { %2046 = vmatpush.msrb.mxu1 %v9269_v17  ;;  %v1677_v1 = vsel %vm899_vm2, %v11379_v16, -inf  ;;  %v11419_v47 = vpop.f32.mrf.mxu1 }
 0x3fc   : > { %1678 = vmax.xlane.f32.xlu1 %v1677_v1  ;;  %15525 = vst [vmem:[#allocation37_spill] sm:$0xff] %v11419_v47 }
 0x400   : > { %8723 = vmatmul.msk.f32.gmra.mxu1 %vm608_vm1, %v15513_v20  ;;  %8726 = vmatmul.msk.f32.vlgmr.msrb.gmra.mxu2 %vm608_vm1, %v15514_v60 }
 0x401   : > { %2080 = vmatpush.msrb.mxu2 %v9244_v63  ;;  %v11399_v55 = vpop.permute.xlu1 %3126  ;;  %v11429_v63 = vpop.permute.xlu0 %2974 }
 0x402   : > { %15517 = vst [vmem:[#allocation44_spill] sm:$0xff] %v11399_v55  ;;  %v11449_v36 = vpop.f32.mrf.mxu3 }
 0x403   : > { %2081 = vmatpush.msrb.mxu2 %v9249_v28  ;;  %15528 = vst [vmem:[#allocation21_spill] sm:$0xff] %v11429_v63 }
 0x408   : > { %8727 = vmatmul.msk.f32.gmra.mxu2 %vm608_vm1, %v15516_v8 }
 0x409   : > { %v11401_v12 = vpop.permute.xlu1 %3052  ;;  %v11439_v61 = vpop.permute.xlu0 %2970 }
 0x40a   : > { %15532 = vst [vmem:[#allocation89_spill] sm:$0xff] %v11439_v61  ;;  %v11465_v47 = vpop.f32.mrf.mxu3 }
 0x411   : > { %v11405_v40 = vpop.permute.xlu1 %3048  ;;  %v11457_v21 = vpop.permute.xlu0 %3130 }
 0x412   : > { %15519 = vst [vmem:[#allocation28_spill] sm:$0xff] %v11405_v40 }
 0x413   : > { %15534 = vst [vmem:[#allocation91_spill] sm:$0xff] %v11457_v21 }
 0x419   : > { %v11409_v19 = vpop.permute.xlu1 %3171  ;;  %v11469_v53 = vpop.permute.xlu0 %3011 }
 0x41a   : > { %15521 = vst [vmem:[#allocation34_spill] sm:$0xff] %v11409_v19 }
 0x41b   : > { %15536 = vst [vmem:[#allocation93_spill] sm:$0xff] %v11469_v53 }
 0x421   : > { %v11417_v41 = vpop.permute.xlu1 %3093  ;;  %v11473_v15 = vpop.permute.xlu0 %2933 }
 0x422   : > { %15538 = vst [vmem:[#allocation95_spill] sm:$0xff] %v11473_v15 }
 0x429   : > { %v11425_v17 = vpop.permute.xlu1 %3091 }
 0x431   : > { %v11435_v28 = vpop.permute.xlu1 %3089 }
 0x432   : > { %15531 = vst [vmem:[#allocation88_spill] sm:$0xff] %v11435_v28 }
 0x439   : > { %v11447_v30 = vpop.permute.xlu1 %9316 }
 0x43a   : > { %15533 = vst [vmem:[#allocation90_spill] sm:$0xff] %v11447_v30 }
 0x44b   : > { %v11423_v50 = vpop.f32.mrf.mxu2 }
 0x44c   : > { %15526 = vst [vmem:[#allocation40_spill] sm:$0xff] %v11423_v50  ;;  %v11463_v50 = vpop.permute.xlu1 %9331 }
 0x44d   : > { %v11427_v1 = vpop.f32.mrf.mxu1  ;;  %15535 = vst [vmem:[#allocation92_spill] sm:$0xff] %v11463_v50 }
 0x44e   : > { %15527 = vst [vmem:[#allocation46_spill] sm:$0xff] %v11427_v1 }
 0x45b   : > { %v11431_v20 = vpop.f32.mrf.mxu2 }
 0x45c   : > { %15529 = vst [vmem:[#allocation25_spill] sm:$0xff] %v11431_v20  ;;  %v1695_v20 = vsel %vm899_vm2, %v11465_v47, -inf }
 0x45d   : > { %v11433_v60 = vpop.f32.mrf.mxu1 }
 0x45e   : > { %15530 = vst [vmem:[#allocation87_spill] sm:$0xff] %v11433_v60 }
 0x463   : > { %v11437_v8 = vpop.f32.mrf.mxu2 }
 0x464   : > { %v1668_v3 = vsel %vm899_vm2, %v11437_v8, -inf }
 0x465   : > { %v11443_v37 = vpop.f32.mrf.mxu1  ;;  %1669 = vmax.xlane.f32.xlu1 %v1668_v3 }
 0x466   : > { %v1680_v1 = vsel %vm899_vm2, %v11443_v37, -inf }
 0x467   : > { %1681 = vmax.xlane.f32.xlu0 %v1680_v1  ;;  %v1692_v1 = vsel %vm899_vm2, %v11449_v36, -inf }
 0x46b   : > { %v11451_v60 = vpop.f32.mrf.mxu2 }
 0x46c   : > { %v1671_v13 = vsel %vm899_vm2, %v11451_v60, -inf }
 0x46d   : > { %v11455_v59 = vpop.f32.mrf.mxu1  ;;  %1672 = vmax.xlane.f32.xlu1 %v1671_v13  ;;  %v11471_v13 = vpop.permute.xlu1 %3744 }
 0x46e   : > { %v1683_v3 = vsel %vm899_vm2, %v11455_v59, -inf  ;;  %15537 = vst [vmem:[#allocation94_spill] sm:$0xff] %v11471_v13 }
 0x46f   : > { %1684 = vmax.xlane.f32.xlu2 %v1683_v3  ;;  %1693 = vmax.xlane.f32.xlu0 %v1692_v1  ;;  %v11483_v3 = vpop.permute.xlu0 %3169  ;;  %v11487_v1 = vpop.permute.xlu2 %2935 }
 0x470   : > { %15540 = vst [vmem:[#allocation97_spill] sm:$0xff] %v11483_v3  ;;  %v11502_v3 = vpop.f32.mrf.mxu3 }
 0x471   : > { %v1710_v50 = vsel %vm899_vm2, %v11502_v3, -inf }
 0x473   : > { %v11496_v51 = vpop.f32.mrf.mxu2 }
 0x475   : > { %v11477_v48 = vpop.permute.xlu1 %3664  ;;  %v11504_v21 = vpop.f32.mrf.mxu1 }
 0x476   : > { %15539 = vst [vmem:[#allocation96_spill] sm:$0xff] %v11477_v48  ;;  %v1698_v44 = vsel %vm899_vm2, %v11504_v21, -inf }
 0x477   : > { %1696 = vmax.xlane.f32.xlu0 %v1695_v20  ;;  %v11489_v13 = vpop.permute.xlu0 %3087  ;;  %v11491_v10 = vpop.permute.xlu2 %2931 }
 0x478   : > { %15542 = vst [vmem:[#allocation99_spill] sm:$0xff] %v11489_v13 }
 0x479   : > { %15543 = vst [vmem:[#allocation100_spill] sm:$0xff] %v11491_v10 }
 0x47b   : > { %v11510_v40 = vpop.f32.mrf.mxu2 }
 0x47d   : > { %v11485_v20 = vpop.permute.xlu1 %3742 }
 0x47e   : > { %15541 = vst [vmem:[#allocation98_spill] sm:$0xff] %v11485_v20 }
 0x47f   : > { %v11493_v19 = vpop.permute.xlu0 %9311  ;;  %v11498_v61 = vpop.permute.xlu2 %3128 }
 0x480   : > { %15544 = vst [vmem:[#allocation101_spill] sm:$0xff] %v11493_v19 }
 0x481   : > { %15545 = vst [vmem:[#allocation102_spill] sm:$0xff] %v11498_v61 }
 0x485   : > { %v1676_v53 = vpop.xlane.xlu1 %1675 }
 0x486   : > { %3738 = vrot.lane.b32.xlu1 %v10546_v42, %s10224_s16 }
 0x487   : > { %3662 = vrot.lane.b32.xlu2 %v10474_v26, %s10224_s16  ;;  %v11500_v30 = vpop.permute.xlu0 %9326 }
 0x488   : > { %15546 = vst [vmem:[#allocation103_spill] sm:$0xff] %v11500_v30 }
 0x48b   : > { %3705 = vrot.lane.b32.xlu0 %v10533_v39, %s10223_s22 }
 0x48d   : > { %v1679_v48 = vpop.xlane.xlu1 %1678 }
 0x48e   : > { %v1719_v55 = vsub.f32 %v11379_v16, %v1679_v48  ;;  %v11512_v48 = vpop.permute.xlu2 %3050 }
 0x48f   : > { %15547 = vst [vmem:[#allocation104_spill] sm:$0xff] %v11512_v48  ;;  %v11516_v61 = vpop.permute.xlu0 %3666 }
 0x490   : > { %v1738_v20 = vmul.f32 1.442695, %v1719_v55  ;;  %15548 = vst [vmem:[#allocation105_spill] sm:$0xff] %v11516_v61  ;;  %v11518_v55 = vpop.f32.mrf.mxu3  ;;  %v1718_v61 = vsub.f32 %v11369_v18, %v1676_v53 }
 0x491   : > { %v1713_v34 = vsel %vm899_vm2, %v11518_v55, -inf }
 0x492   : > { %9582 = vpow2.f32 %v1738_v20  ;;  %v1686_v20 = vsel %vm899_vm2, %v11496_v51, -inf  ;;  %v1736_v25 = vmul.f32 1.442695, %v1718_v61 }
 0x494   : > { %9584 = vpow2.f32 %v1736_v25 }
 0x496   : > { %v11531_v48 = vpop.permute.xlu2 %3165 }
 0x497   : > { %15549 = vst [vmem:[#allocation106_spill] sm:$0xff] %v11531_v48 }
 0x498   : > { %v11514_v16 = vpop.eup %9582 }
 0x499   : > { %v1773_v28 = vsel %vm899_vm2, %v11514_v16, 0.0 }
 0x49a   : > { %v11549_v61 = vpop.eup %9584 }
 0x49e   : > { %v11543_v53 = vpop.permute.xlu2 %3167 }
 0x49f   : > { %15551 = vst [vmem:[#allocation108_spill] sm:$0xff] %v11543_v53 }
 0x4a6   : > { %v11553_v25 = vpop.permute.xlu2 %9321 }
 0x4a7   : > { %15553 = vst [vmem:[#allocation110_spill] sm:$0xff] %v11553_v25 }
 0x4b0   : > { %1699 = vmax.xlane.f32.xlu1 %v1698_v44  ;;  %1711 = vmax.xlane.f32.xlu2 %v1710_v50  ;;  %v11526_v44 = vpop.f32.mrf.mxu1  ;;  %v11528_v50 = vpop.f32.mrf.mxu2 }
 0x4b1   : > { %v1701_v13 = vsel %vm899_vm2, %v11526_v44, -inf  ;;  %v1704_v5 = vsel %vm899_vm2, %v11528_v50, -inf }
 0x4b5   : > { %1687 = vmax.xlane.f32.xlu0 %v1686_v20  ;;  %v11535_v20 = vpop.permute.xlu0 %9341 }
 0x4b6   : > { %15550 = vst [vmem:[#allocation107_spill] sm:$0xff] %v11535_v20  ;;  %v11557_v20 = vpop.permute.xlu2 %9336 }
 0x4b7   : > { %15555 = vst [vmem:[#allocation112_spill] sm:$0xff] %v11557_v20 }
 0x4b8   : > { %1774 = vadd.xlane.f32.xlu1 %v1773_v28  ;;  %1714 = vmax.xlane.f32.xlu2 %v1713_v34  ;;  %v11539_v34 = vpop.f32.mrf.mxu2  ;;  %v1689_v28 = vsel %vm899_vm2, %v11510_v40, -inf }
 0x4b9   : > { %v1707_v18 = vsel %vm899_vm2, %v11539_v34, -inf }
 0x4bd   : > { %1702 = vmax.xlane.f32.xlu0 %v1701_v13  ;;  %v11547_v13 = vpop.permute.xlu0 %9346 }
 0x4be   : > { %15552 = vst [vmem:[#allocation109_spill] sm:$0xff] %v11547_v13 }
 0x4c0   : > { %1705 = vmax.xlane.f32.xlu2 %v1704_v5  ;;  %v1770_v5 = vsel %vm899_vm2, %v11549_v61, 0.0 }
 0x4c5   : > { %1690 = vmax.xlane.f32.xlu0 %v1689_v28  ;;  %v11555_v48 = vpop.permute.xlu0 %3660 }
 0x4c6   : > { %15554 = vst [vmem:[#allocation111_spill] sm:$0xff] %v11555_v48 }
 0x4c8   : > { %1708 = vmax.xlane.f32.xlu2 %v1707_v18 }
 0x4cd   : > { %1771 = vadd.xlane.f32.xlu0 %v1770_v5 }
 0x4d8   : > { %v1670_v15 = vpop.xlane.xlu1 %1669 }
 0x4d9   : > { %v1716_v48 = vsub.f32 %v11437_v8, %v1670_v15 }
 0x4da   : > { %v1682_v28 = vpop.xlane.xlu0 %1681 }
 0x4db   : > { %v1720_v53 = vsub.f32 %v11443_v37, %v1682_v28  ;;  %v1732_v37 = vmul.f32 1.442695, %v1716_v48 }
 0x4dd   : > { %v1740_v9 = vmul.f32 1.442695, %v1720_v53 }
 0x4df   : > { %9586 = vpow2.f32 %v1740_v9 }
 0x4e0   : > { %v1673_v53 = vpop.xlane.xlu1 %1672 }
 0x4e2   : > { %v1685_v13 = vpop.xlane.xlu2 %1684  ;;  %v1694_v18 = vpop.xlane.xlu0 %1693 }
 0x4e3   : > { %v1721_v19 = vsub.f32 %v11455_v59, %v1685_v13  ;;  %v1724_v63 = vsub.f32 %v11449_v36, %v1694_v18 }
 0x4e5   : > { %v11562_v30 = vpop.eup %9586  ;;  %v1742_v5 = vmul.f32 1.442695, %v1721_v19  ;;  %v1748_v10 = vmul.f32 1.442695, %v1724_v63  ;;  %v1717_v19 = vsub.f32 %v11451_v60, %v1673_v53 }
 0x4e6   : > { %v1776_v20 = vsel %vm899_vm2, %v11562_v30, 0.0 }
 0x4e7   : > { %9588 = vpow2.f32 %v1742_v5  ;;  %1777 = vadd.xlane.f32.xlu2 %v1776_v20  ;;  %v1734_v63 = vmul.f32 1.442695, %v1717_v19 }
 0x4e8   : > { %9590 = vpow2.f32 %v1748_v10 }
 0x4e9   : > { %9592 = vpow2.f32 %v1732_v37 }
 0x4ea   : > { %v1697_v9 = vpop.xlane.xlu0 %1696  ;;  %v11589_v5 = vpop.permute.xlu2 %3662 }
 0x4eb   : > { %v1725_v28 = vsub.f32 %v11465_v47, %v1697_v9  ;;  %15556 = vst [vmem:[#allocation113_spill] sm:$0xff] %v11589_v5 }
 0x4ed   : > { %v11568_v59 = vpop.eup %9588  ;;  %v1750_v36 = vmul.f32 1.442695, %v1725_v28 }
 0x4ee   : > { %v11570_v13 = vpop.eup %9590  ;;  %v1779_v15 = vsel %vm899_vm2, %v11568_v59, 0.0 }
 0x4ef   : > { %9594 = vpow2.f32 %v1750_v36  ;;  %1780 = vadd.xlane.f32.xlu0 %v1779_v15  ;;  %v1788_v10 = vsel %vm899_vm2, %v11570_v13, 0.0  ;;  %v11577_v8 = vpop.eup %9592 }
 0x4f0   : > { %1789 = vadd.xlane.f32.xlu2 %v1788_v10  ;;  %9596 = vpow2.f32 %v1734_v63  ;;  %v1764_v60 = vsel %vm899_vm2, %v11577_v8, 0.0 }
 0x4f5   : > { %v11579_v47 = vpop.eup %9594 }
 0x4f6   : > { %v1791_v48 = vsel %vm899_vm2, %v11579_v47, 0.0  ;;  %v11585_v20 = vpop.eup %9596 }
 0x4f7   : > { %1792 = vadd.xlane.f32.xlu1 %v1791_v48  ;;  %v1767_v18 = vsel %vm899_vm2, %v11585_v20, 0.0 }
 0x4f8   : > { %1765 = vadd.xlane.f32.xlu2 %v1764_v60  ;;  %v11591_v37 = vpop.permute.xlu1 %3738 }
 0x4f9   : > { %15557 = vst [vmem:[#allocation114_spill] sm:$0xff] %v11591_v37 }
 0x4fd   : > { %v11593_v9 = vpop.permute.xlu0 %3705 }
 0x4fe   : > { %15558 = vst [vmem:[#allocation115_spill] sm:$0xff] %v11593_v9 }
 0x500   : > { %1768 = vadd.xlane.f32.xlu2 %v1767_v18 }
 0x523   : > { %v1700_v53 = vpop.xlane.xlu1 %1699  ;;  %v1712_v28 = vpop.xlane.xlu2 %1711 }
 0x524   : > { %v1726_v36 = vsub.f32 %v11504_v21, %v1700_v53  ;;  %v1730_v19 = vsub.f32 %v11502_v3, %v1712_v28 }
 0x526   : > { %v1752_v15 = vmul.f32 1.442695, %v1726_v36  ;;  %v1760_v10 = vmul.f32 1.442695, %v1730_v19 }
 0x528   : > { %9598 = vpow2.f32 %v1752_v15  ;;  %v1688_v63 = vpop.xlane.xlu0 %1687 }
 0x529   : > { %9600 = vpow2.f32 %v1760_v10  ;;  %v1722_v48 = vsub.f32 %v11496_v51, %v1688_v63 }
 0x52b   : > { %v1744_v60 = vmul.f32 1.442695, %v1722_v48  ;;  %v1715_v18 = vpop.xlane.xlu2 %1714 }
 0x52c   : > { %v1731_v5 = vsub.f32 %v11518_v55, %v1715_v18 }
 0x52d   : > { %9602 = vpow2.f32 %v1744_v60 }
 0x52e   : > { %v11599_v37 = vpop.eup %9598  ;;  %v1762_v25 = vmul.f32 1.442695, %v1731_v5 }
 0x52f   : > { %v11601_v9 = vpop.eup %9600  ;;  %v1794_v21 = vsel %vm899_vm2, %v11599_v37, 0.0 }
 0x530   : > { %v1703_v3 = vpop.xlane.xlu0 %1702  ;;  %v1806_v53 = vsel %vm899_vm2, %v11601_v9, 0.0  ;;  %1795 = vadd.xlane.f32.xlu2 %v1794_v21  ;;  %9604 = vpow2.f32 %v1762_v25 }
 0x531   : > { %v1727_v51 = vsub.f32 %v11526_v44, %v1703_v3  ;;  %1807 = vadd.xlane.f32.xlu1 %v1806_v53 }
 0x533   : > { %v11608_v28 = vpop.eup %9602  ;;  %v1754_v55 = vmul.f32 1.442695, %v1727_v51  ;;  %v1706_v36 = vpop.xlane.xlu2 %1705 }
 0x534   : > { %v1782_v19 = vsel %vm899_vm2, %v11608_v28, 0.0  ;;  %v1728_v44 = vsub.f32 %v11528_v50, %v1706_v36  ;;  %v1775_v50 = vpop.xlane.xlu1 %1774 }
 0x535   : > { %9606 = vpow2.f32 %v1754_v55  ;;  %1783 = vadd.xlane.f32.xlu0 %v1782_v19 }
 0x536   : > { %v11612_v15 = vpop.eup %9604  ;;  %v1756_v53 = vmul.f32 1.442695, %v1728_v44  ;;  %v15559_v44 = vld [vmem:[#allocation55_spill] sm:$0xff] }
 0x537   : > { %v1809_v21 = vsel %vm899_vm2, %v11612_v15, 0.0 }
 0x538   : > { %v1691_v5 = vpop.xlane.xlu0 %1690 }
 0x539   : > { %v1723_v10 = vsub.f32 %v11510_v40, %v1691_v5 }
 0x53b   : > { %v11615_v63 = vpop.eup %9606  ;;  %v1746_v48 = vmul.f32 1.442695, %v1723_v10  ;;  %v1709_v60 = vpop.xlane.xlu2 %1708 }
 0x53c   : > { %v1729_v25 = vsub.f32 %v11539_v34, %v1709_v60  ;;  %v1797_v18 = vsel %vm899_vm2, %v11615_v63, 0.0 }
 0x53d   : > { %9608 = vpow2.f32 %v1746_v48  ;;  %1798 = vadd.xlane.f32.xlu1 %v1797_v18  ;;  %1810 = vadd.xlane.f32.xlu0 %v1809_v21 }
 0x53e   : > { %v1758_v3 = vmul.f32 1.442695, %v1729_v25  ;;  %v15560_v25 = vld [vmem:[#allocation58_spill] sm:$0xff] }
 0x540   : > { %9610 = vpow2.f32 %v1758_v3  ;;  %v1772_v40 = vpop.xlane.xlu0 %1771 }
 0x541   : > { %9612 = vrcp.f32 %v1772_v40  ;;  %v15561_v40 = vld [vmem:[#allocation48_spill] sm:$0xff] }
 0x542   : > { %9614 = vpow2.f32 %v1756_v53 }
 0x543   : > { %v11623_v51 = vpop.eup %9608  ;;  %9616 = vrcp.f32 %v1775_v50 }
 0x544   : > { %v1785_v34 = vsel %vm899_vm2, %v11623_v51, 0.0 }
 0x545   : > { %1786 = vadd.xlane.f32.xlu2 %v1785_v34  ;;  %v15562_v34 = vld [vmem:[#allocation50_spill] sm:$0xff] }
 0x546   : > { %v11627_v55 = vpop.eup %9610 }
 0x547   : > { %v9613_v36 = vpop.eup %9612  ;;  %v1803_v19 = vsel %vm899_vm2, %v11627_v55, 0.0 }
 0x548   : > { %v1830_v5 = vmul.f32 %v9613_v36, %v11549_v61  ;;  %1804 = vadd.xlane.f32.xlu1 %v1803_v19  ;;  %v11632_v10 = vpop.eup %9614 }
 0x549   : > { %v1800_v48 = vsel %vm899_vm2, %v11632_v10, 0.0  ;;  %v9617_v60 = vpop.eup %9616 }
 0x54a   : > { %8734 = vmatmul.msk.f32.vlgmr.msra.gmra.mxu1 %vm899_vm2, %v1830_v5  ;;  %v1831_v18 = vmul.f32 %v9617_v60, %v11514_v16  ;;  %v15564_v60 = vld [vmem:[#allocation63_spill] sm:$0xff] }
 0x54b   : > { %8752 = vmatpush.xpose.msk.msra.mxu1 %vm608_vm1, %v15559_v44 }
 0x54d   : > { %1801 = vadd.xlane.f32.xlu2 %v1800_v48 }
 0x54f   : > { %8753 = vmatpush.xpose.msk.msra.mxu1 %vm608_vm1, %v15560_v25 }
 0x551   : > { %3740 = vrot.lane.b32.xlu0 %v10564_v46, %s10224_s16 }
 0x552   : > { %8735 = vmatmul.msk.f32.gmra.mxu1 %vm899_vm2, %v1831_v18 }
 0x559   : > { %3900 = vrot.lane.b32.xlu0 %v10487_v29, %s10223_s22 }
 0x55a   : > { %v1778_v61 = vpop.xlane.xlu2 %1777 }
 0x55b   : > { %9618 = vrcp.f32 %v1778_v61 }
 0x561   : > { %v9619_v21 = vpop.eup %9618  ;;  %3781 = vrot.lane.b32.xlu0 %v10607_v58, %s10223_s22  ;;  %3822 = vrot.lane.b32.xlu1 %v10594_v54, %s10223_s22 }
 0x562   : > { %v1832_v3 = vmul.f32 %v9619_v21, %v11562_v30  ;;  %v1781_v16 = vpop.xlane.xlu0 %1780 }
 0x563   : > { %9620 = vrcp.f32 %v1781_v16  ;;  %v1790_v53 = vpop.xlane.xlu2 %1789  ;;  %v15567_v16 = vld [vmem:[#allocation83_spill] sm:$0xff] }
 0x564   : > { %8736 = vmatmul.msk.f32.vlgmr.msra.gmra.mxu2 %vm899_vm2, %v1832_v3  ;;  %v15566_v3 = vld [vmem:[#allocation71_spill] sm:$0xff] }
 0x565   : > { %8756 = vmatpush.xpose.msk.msra.mxu2 %vm608_vm1, %v15561_v40  ;;  %3820 = vrot.lane.b32.xlu2 %v10585_v52, %s10223_s22  ;;  %v15568_v40 = vld [vmem:[#allocation59_spill] sm:$0xff] }
 0x569   : > { %v9621_v50 = vpop.eup %9620  ;;  %8757 = vmatpush.xpose.msk.msra.mxu2 %vm608_vm1, %v15562_v34  ;;  %3816 = vrot.lane.b32.xlu0 %v10585_v52, %s10224_s16  ;;  %v15570_v34 = vld [vmem:[#allocation24_spill] sm:$0xff] }
 0x56a   : > { %3783 = vrot.lane.b32.xlu1 %v10571_v49, %s10223_s22  ;;  %v1833_v30 = vmul.f32 %v9621_v50, %v11568_v59  ;;  %v15563_v59 = vld [vmem:[#allocation57_spill] sm:$0xff]  ;;  %v1793_v25 = vpop.xlane.xlu1 %1792 }
 0x56b   : > { %v1766_v36 = vpop.xlane.xlu2 %1765  ;;  %v15569_v50 = vld [vmem:[#allocation65_spill] sm:$0xff] }
 0x56c   : > { %9622 = vrcp.f32 %v1766_v36  ;;  %8737 = vmatmul.msk.f32.gmra.mxu2 %vm899_vm2, %v1833_v30  ;;  %v9294_v36 = vunpack.i.h.bf16 %v11099_v23 }
 0x56d   : > { %3699 = vrot.lane.b32.xlu2 %v10506_v32, %s10224_s16 }
 0x571   : > { %3701 = vrot.lane.b32.xlu0 %v10533_v39, %s10224_s16 }
 0x572   : > { %v9623_v19 = vpop.eup %9622  ;;  %3703 = vrot.lane.b32.xlu1 %v10506_v32, %s10223_s22 }
 0x573   : > { %v1769_v5 = vpop.xlane.xlu2 %1768  ;;  %v1828_v44 = vmul.f32 %v9623_v19, %v11577_v8  ;;  %v15571_v19 = vld [vmem:[#allocation72_spill] sm:$0xff] }
 0x574   : > { %9624 = vrcp.f32 %v1769_v5  ;;  %v9299_v5 = vunpack.i.h.bf16 %v11092_v56 }
 0x575   : > { %8732 = vmatmul.msk.f32.vlgmr.msrb.gmra.mxu0 %vm899_vm2, %v1828_v44  ;;  %3894 = vrot.lane.b32.xlu2 %v10471_v24, %s10224_s16  ;;  %9626 = vrcp.f32 %v1790_v53  ;;  %v9278_v53 = vunpack.i.l.bf16 %v15567_v16 }
 0x576   : > { %8748 = vmatpush.xpose.msk.msrb.mxu0 %vm608_vm1, %v15563_v59  ;;  %9628 = vrcp.f32 %v1793_v25  ;;  %v15573_v25 = vld [vmem:[#allocation70_spill] sm:$0xff] }
 0x579   : > { %3779 = vrot.lane.b32.xlu0 %v10571_v49, %s10224_s16 }
 0x57a   : > { %v9625_v48 = vpop.eup %9624  ;;  %8749 = vmatpush.xpose.msk.msrb.mxu0 %vm608_vm1, %v15564_v60  ;;  %3898 = vrot.lane.b32.xlu1 %v10471_v24, %s10223_s22 }
 0x57b   : > { %v1829_v8 = vmul.f32 %v9625_v48, %v11585_v20  ;;  %v9627_v18 = vpop.eup %9626  ;;  %v15565_v20 = vld [vmem:[#allocation68_spill] sm:$0xff] }
 0x57c   : > { %v1836_v61 = vmul.f32 %v9627_v18, %v11570_v13  ;;  %v9629_v21 = vpop.eup %9628 }
 0x57d   : > { %8733 = vmatmul.msk.f32.gmra.mxu0 %vm899_vm2, %v1829_v8  ;;  %3861 = vrot.lane.b32.xlu2 %v10675_v14, %s10223_s22  ;;  %v1837_v13 = vmul.f32 %v9629_v21, %v11579_v47  ;;  %v9279_v47 = vunpack.i.h.bf16 %v15567_v16  ;;  %v15572_v8 = vld [vmem:[#allocation79_spill] sm:$0xff]  ;;  %v15574_v21 = vld [vmem:[#allocation30_spill] sm:$0xff]  ;;  %v15577_v16 = vld [vmem:[#allocation49_spill] sm:$0xff] }
 0x581   : > { %3859 = vrot.lane.b32.xlu0 %v10630_v0, %s10223_s22 }
 0x582   : > { %3777 = vrot.lane.b32.xlu1 %v10607_v58, %s10224_s16 }
 0x585   : > { %8740 = vmatmul.msk.f32.vlgmr.msra.gmra.mxu0 %vm899_vm2, %v1836_v61  ;;  %3939 = vrot.lane.b32.xlu2 %v10524_v38, %s10223_s22 }
 0x586   : > { %8764 = vmatpush.xpose.msk.msra.mxu0 %vm608_vm1, %v15565_v20 }
 0x589   : > { %3933 = vrot.lane.b32.xlu0 %v10515_v35, %s10224_s16 }
 0x58a   : > { %8765 = vmatpush.xpose.msk.msra.mxu0 %vm608_vm1, %v15566_v3  ;;  %3818 = vrot.lane.b32.xlu1 %v10594_v54, %s10224_s16  ;;  %v15575_v3 = vld [vmem:[#allocation78_spill] sm:$0xff] }
 0x58d   : > { %8741 = vmatmul.msk.f32.gmra.mxu0 %vm899_vm2, %v1837_v13  ;;  %3855 = vrot.lane.b32.xlu2 %v10630_v0, %s10224_s16 }
 0x591   : > { %9356 = vrot.lane.b32.xlu0 %v10604_v57, %s10225_s21 }
 0x592   : > { %3896 = vrot.lane.b32.xlu1 %v10487_v29, %s10224_s16 }
 0x595   : > { %8750 = vmatmul.msk.f32.vlgmr.msrb.gmra.mxu0 %vm608_vm1, %v15568_v40  ;;  %3935 = vrot.lane.b32.xlu2 %v10524_v38, %s10224_s16 }
 0x596   : > { %2638 = vmatpush.msrb.mxu0 %v9278_v53 }
 0x598   : > { %2639 = vmatpush.msrb.mxu0 %v9279_v47 }
 0x599   : > { %9361 = vrot.lane.b32.xlu0 %v15484_v6, %s10225_s21 }
 0x59a   : > { %3937 = vrot.lane.b32.xlu1 %v10515_v35, %s10223_s22  ;;  %s10235_s22 = smov 4  }
 0x59d   : > { %8751 = vmatmul.msk.f32.gmra.mxu0 %vm608_vm1, %v15569_v50  ;;  %9366 = vrot.lane.b32.xlu2 %v15570_v34, %s10225_s21 }
 0x5a2   : > { %3857 = vrot.lane.b32.xlu1 %v10675_v14, %s10224_s16  ;;  %s10236_s16 = smov 12  }
 0x5a3   : > { %v1796_v30 = vpop.xlane.xlu2 %1795 }
 0x5a4   : > { %9630 = vrcp.f32 %v1796_v30  ;;  %v1808_v44 = vpop.xlane.xlu1 %1807  ;;  %v9293_v30 = vunpack.i.l.bf16 %v11099_v23 }
 0x5a5   : > { %8766 = vmatmul.msk.f32.vlgmr.msra.gmra.mxu0 %vm608_vm1, %v15571_v19  ;;  %v9298_v19 = vunpack.i.l.bf16 %v11092_v56  ;;  %v15580_v56 = vld [vmem:[#allocation56_spill] sm:$0xff] }
 0x5a6   : > { %2778 = vmatpush.msra.mxu0 %v9294_v36  ;;  %v15578_v36 = vld [vmem:[#allocation64_spill] sm:$0xff] }
 0x5a8   : > { %2779 = vmatpush.msra.mxu0 %v9299_v5  ;;  %v1784_v59 = vpop.xlane.xlu0 %1783 }
 0x5a9   : > { %9632 = vrcp.f32 %v1784_v59 }
 0x5aa   : > { %v9631_v48 = vpop.eup %9630  ;;  %9351 = vrot.lane.b32.xlu1 %v10480_v27, %s10225_s21 }
 0x5ab   : > { %v1838_v60 = vmul.f32 %v9631_v48, %v11599_v37  ;;  %v15576_v37 = vld [vmem:[#allocation47_spill] sm:$0xff] }
 0x5ac   : > { %v15579_v48 = vld [vmem:[#allocation75_spill] sm:$0xff] }
 0x5ad   : > { %8767 = vmatmul.msk.f32.gmra.mxu0 %vm608_vm1, %v15572_v8  ;;  %8742 = vmatmul.msk.f32.vlgmr.msrb.gmra.mxu1 %vm899_vm2, %v1838_v60  ;;  %v15581_v8 = vld [vmem:[#allocation74_spill] sm:$0xff] }
 0x5ae   : > { %8768 = vmatpush.xpose.msk.msrb.mxu1 %vm608_vm1, %v15573_v25 }
 0x5af   : > { %v9633_v18 = vpop.eup %9632 }
 0x5b0   : > { %v1834_v61 = vmul.f32 %v9633_v18, %v11608_v28  ;;  %v1799_v20 = vpop.xlane.xlu1 %1798  ;;  %v1811_v5 = vpop.xlane.xlu0 %1810  ;;  %v15582_v18 = vld [vmem:[#allocation62_spill] sm:$0xff] }
 0x5b1   : > { %9634 = vrcp.f32 %v1799_v20  ;;  %v9308_v20 = vunpack.i.l.bf16 %v11288_v11 }
 0x5b2   : > { %9371 = vrot.lane.b32.xlu1 %v15574_v21, %s10225_s21  ;;  %8769 = vmatpush.xpose.msk.msrb.mxu1 %vm608_vm1, %v15575_v3  ;;  %v15584_v3 = vld [vmem:[#allocation73_spill] sm:$0xff] }
 0x5b3   : > { %8738 = vmatmul.msk.f32.vlgmr.msrb.gmra.mxu3 %vm899_vm2, %v1834_v61 }
 0x5b4   : > { %8760 = vmatpush.xpose.msk.msrb.mxu3 %vm608_vm1, %v15576_v37  ;;  %v9309_v37 = vunpack.i.h.bf16 %v11288_v11 }
 0x5b7   : > { %v9635_v13 = vpop.eup %9634 }
 0x5b8   : > { %8761 = vmatpush.xpose.msk.msrb.mxu3 %vm608_vm1, %v15577_v16  ;;  %v1787_v53 = vpop.xlane.xlu2 %1786  ;;  %v1839_v28 = vmul.f32 %v9635_v13, %v11615_v63  ;;  %v15585_v13 = vld [vmem:[#allocation82_spill] sm:$0xff] }
 0x5b9   : > { %9636 = vrcp.f32 %v1787_v53  ;;  %v9273_v16 = vunpack.i.l.bf16 %v15585_v13  ;;  %v15586_v53 = vld [vmem:[#allocation76_spill] sm:$0xff] }
 0x5ba   : > { %8743 = vmatmul.msk.f32.gmra.mxu1 %vm899_vm2, %v1839_v28  ;;  %9638 = vrcp.f32 %v1808_v44  ;;  %v9283_v28 = vunpack.i.l.bf16 %v15586_v53 }
 0x5bb   : > { %v1805_v63 = vpop.xlane.xlu1 %1804 }
 0x5bf   : > { %v9637_v40 = vpop.eup %9636 }
 0x5c0   : > { %v1802_v47 = vpop.xlane.xlu2 %1801  ;;  %v1835_v50 = vmul.f32 %v9637_v40, %v11623_v51  ;;  %v9639_v59 = vpop.eup %9638  ;;  %v9274_v40 = vunpack.i.h.bf16 %v15585_v13 }
 0x5c1   : > { %9640 = vrcp.f32 %v1802_v47  ;;  %v1842_v51 = vmul.f32 %v9639_v59, %v11601_v9  ;;  %v15583_v9 = vld [vmem:[#allocation77_spill] sm:$0xff]  ;;  %v15589_v47 = vld [vmem:[#allocation80_spill] sm:$0xff]  ;;  %v15594_v59 = vld [vmem:[#allocation67_spill] sm:$0xff] }
 0x5c2   : > { %8739 = vmatmul.msk.f32.gmra.mxu3 %vm899_vm2, %v1835_v50  ;;  %8754 = vmatmul.msk.f32.vlgmr.msra.gmra.mxu1 %vm608_vm1, %v15578_v36  ;;  %9642 = vrcp.f32 %v1811_v5  ;;  %v15590_v50 = vld [vmem:[#allocation84_spill] sm:$0xff]  ;;  %v15592_v36 = vld [vmem:[#allocation61_spill] sm:$0xff]  ;;  %v9303_v5 = vunpack.i.l.bf16 %v11339_v2 }
 0x5c3   : > { %2673 = vmatpush.msra.mxu1 %v9293_v30  ;;  %9644 = vrcp.f32 %v1805_v63  ;;  %v9288_v11 = vunpack.i.l.bf16 %v15590_v50  ;;  %v15591_v30 = vld [vmem:[#allocation53_spill] sm:$0xff]  ;;  %v15593_v63 = vld [vmem:[#allocation66_spill] sm:$0xff] }
 0x5c5   : > { %2674 = vmatpush.msra.mxu1 %v9298_v19  ;;  %v9284_v19 = vunpack.i.h.bf16 %v15586_v53 }
 0x5c7   : > { %v9641_v44 = vpop.eup %9640 }
 0x5c8   : > { %v1840_v23 = vmul.f32 %v9641_v44, %v11632_v10  ;;  %v9643_v60 = vpop.eup %9642  ;;  %v9289_v44 = vunpack.i.h.bf16 %v15590_v50 }
 0x5c9   : > { %v9645_v25 = vpop.eup %9644  ;;  %v1843_v61 = vmul.f32 %v9643_v60, %v11612_v15  ;;  %v15588_v15 = vld [vmem:[#allocation52_spill] sm:$0xff] }
 0x5ca   : > { %8744 = vmatmul.msk.f32.vlgmr.msrb.gmra.mxu2 %vm899_vm2, %v1840_v23  ;;  %8746 = vmatmul.msk.f32.vlgmr.msra.gmra.mxu3 %vm899_vm2, %v1842_v51  ;;  %v1841_v10 = vmul.f32 %v9645_v25, %v11627_v55  ;;  %v15587_v55 = vld [vmem:[#allocation54_spill] sm:$0xff]  ;;  %v9304_v51 = vunpack.i.h.bf16 %v11339_v2 }
 0x5cb   : > { %8755 = vmatmul.msk.f32.gmra.mxu1 %vm608_vm1, %v15579_v48  ;;  %8772 = vmatpush.xpose.msk.msrb.mxu2 %vm608_vm1, %v15580_v56  ;;  %v15596_v48 = vld [vmem:[#allocation69_spill] sm:$0xff] }
 0x5cc   : > { %8776 = vmatpush.xpose.msk.msra.mxu3 %vm608_vm1, %v15581_v8  ;;  %v15597_v56 = vld [vmem:[#allocation81_spill] sm:$0xff] }
 0x5cf   : > { %8773 = vmatpush.xpose.msk.msrb.mxu2 %vm608_vm1, %v15582_v18 }
 0x5d0   : > { %8777 = vmatpush.xpose.msk.msra.mxu3 %vm608_vm1, %v15583_v9 }
 0x5d2   : > { %8745 = vmatmul.msk.f32.gmra.mxu2 %vm899_vm2, %v1841_v10  ;;  %8747 = vmatmul.msk.f32.gmra.mxu3 %vm899_vm2, %v1843_v61  ;;  %v11819_v10 = vpop.f32.mrf.mxu1 }
 0x5d3   : > { %8770 = vmatmul.msk.f32.vlgmr.msrb.gmra.mxu1 %vm608_vm1, %v15584_v3  ;;  %15601 = vst [vmem:[#allocation57_spill] sm:$0xff] %v11819_v10 }
 0x5d4   : > { %2813 = vmatpush.msrb.mxu1 %v9308_v20 }
 0x5d6   : > { %2814 = vmatpush.msrb.mxu1 %v9309_v37 }
 0x5da   : > { %8758 = vmatmul.msk.f32.vlgmr.msra.gmra.mxu2 %vm608_vm1, %v15587_v55  ;;  %8762 = vmatmul.msk.f32.vlgmr.msrb.gmra.mxu3 %vm608_vm1, %v15588_v15  ;;  %v11823_v20 = vpop.f32.mrf.mxu1 }
 0x5db   : > { %8771 = vmatmul.msk.f32.gmra.mxu1 %vm608_vm1, %v15589_v47  ;;  %2708 = vmatpush.msra.mxu2 %v9273_v16  ;;  %15602 = vst [vmem:[#allocation63_spill] sm:$0xff] %v11823_v20 }
 0x5dc   : > { %2743 = vmatpush.msrb.mxu3 %v9283_v28 }
 0x5dd   : > { %2709 = vmatpush.msra.mxu2 %v9274_v40 }
 0x5de   : > { %2744 = vmatpush.msrb.mxu3 %v9288_v11 }
 0x5e2   : > { %8759 = vmatmul.msk.f32.gmra.mxu2 %vm608_vm1, %v15591_v30  ;;  %8763 = vmatmul.msk.f32.gmra.mxu3 %vm608_vm1, %v15592_v36 }
 0x5e7   : > { %v11833_v53 = vpop.f32.mrf.mxu2 }
 0x5e8   : > { %15605 = vst [vmem:[#allocation83_spill] sm:$0xff] %v11833_v53 }
 0x5ea   : > { %8774 = vmatmul.msk.f32.vlgmr.msrb.gmra.mxu2 %vm608_vm1, %v15593_v63  ;;  %8778 = vmatmul.msk.f32.vlgmr.msra.gmra.mxu3 %vm608_vm1, %v15594_v59  ;;  %v11859_v59 = vpop.permute.xlu0 %3740 }
 0x5eb   : > { %2848 = vmatpush.msrb.mxu2 %v9284_v19  ;;  %2883 = vmatpush.msra.mxu3 %v9303_v5  ;;  %15611 = vst [vmem:[#allocation70_spill] sm:$0xff] %v11859_v59 }
 0x5ed   : > { %2849 = vmatpush.msrb.mxu2 %v9289_v44  ;;  %2884 = vmatpush.msra.mxu3 %v9304_v51 }
 0x5ef   : > { %v11841_v40 = vpop.f32.mrf.mxu2 }
 0x5f0   : > { %15607 = vst [vmem:[#allocation65_spill] sm:$0xff] %v11841_v40 }
 0x5f2   : > { %v11801_v23 = vpop.f32.mrf.mxu0  ;;  %8775 = vmatmul.msk.f32.gmra.mxu2 %vm608_vm1, %v15596_v48  ;;  %8779 = vmatmul.msk.f32.gmra.mxu3 %vm608_vm1, %v15597_v56 }
 0x5f3   : > { %15595 = vst [vmem:[#allocation55_spill] sm:$0xff] %v11801_v23 }
 0x5fa   : > { %v11807_v60 = vpop.f32.mrf.mxu0 }
 0x5fb   : > { %15598 = vst [vmem:[#allocation58_spill] sm:$0xff] %v11807_v60 }
 0x602   : > { %v11809_v8 = vpop.f32.mrf.mxu0 }
 0x603   : > { %15599 = vst [vmem:[#allocation48_spill] sm:$0xff] %v11809_v8 }
 0x60a   : > { %v11811_v25 = vpop.f32.mrf.mxu0 }
 0x60b   : > { %15600 = vst [vmem:[#allocation50_spill] sm:$0xff] %v11811_v25 }
 0x612   : > { %v11813_v18 = vpop.f32.mrf.mxu0 }
 0x613   : > { %v2436_v2 = vsel %vm899_vm2, %v11813_v18, -inf }
 0x614   : > { %2437 = vmax.xlane.f32.xlu2 %v2436_v2 }
 0x61a   : > { %v11817_v9 = vpop.f32.mrf.mxu0 }
 0x61b   : > { %v2439_v11 = vsel %vm899_vm2, %v11817_v9, -inf }
 0x622   : > { %v11821_v61 = vpop.f32.mrf.mxu0 }
 0x623   : > { %v2460_v56 = vsel %vm899_vm2, %v11821_v61, -inf }
 0x62a   : > { %v11825_v3 = vpop.f32.mrf.mxu0  ;;  %v11829_v13 = vpop.f32.mrf.mxu1 }
 0x62b   : > { %v2463_v37 = vsel %vm899_vm2, %v11825_v3, -inf  ;;  %15603 = vst [vmem:[#allocation68_spill] sm:$0xff] %v11829_v13 }
 0x62c   : > { %2464 = vmax.xlane.f32.xlu1 %v2463_v37  ;;  %v11871_v37 = vpop.permute.xlu0 %3900 }
 0x62d   : > { %15614 = vst [vmem:[#allocation49_spill] sm:$0xff] %v11871_v37 }
 0x636   : > { %v11835_v28 = vpop.f32.mrf.mxu3 }
 0x637   : > { %v11831_v16 = vpop.f32.mrf.mxu1  ;;  %15606 = vst [vmem:[#allocation59_spill] sm:$0xff] %v11835_v28 }
 0x638   : > { %15604 = vst [vmem:[#allocation71_spill] sm:$0xff] %v11831_v16 }
 0x63f   : > { %v11837_v55 = vpop.f32.mrf.mxu1 }
 0x640   : > { %v2442_v15 = vsel %vm899_vm2, %v11837_v55, -inf }
 0x641   : > { %2443 = vmax.xlane.f32.xlu0 %v2442_v15 }
 0x645   : > { %v11843_v47 = vpop.f32.mrf.mxu3 }
 0x646   : > { %15608 = vst [vmem:[#allocation24_spill] sm:$0xff] %v11843_v47 }
 0x648   : > { %v11845_v50 = vpop.f32.mrf.mxu1 }
 0x649   : > { %2440 = vmax.xlane.f32.xlu0 %v2439_v11  ;;  %v2445_v30 = vsel %vm899_vm2, %v11845_v50, -inf }
 0x64a   : > { %2446 = vmax.xlane.f32.xlu2 %v2445_v30  ;;  %v11877_v30 = vpop.permute.xlu2 %3820 }
 0x64d   : > { %v11851_v36 = vpop.f32.mrf.mxu2  ;;  %v11853_v19 = vpop.f32.mrf.mxu3 }
 0x64e   : > { %15609 = vst [vmem:[#allocation72_spill] sm:$0xff] %v11851_v36  ;;  %v11889_v36 = vpop.permute.xlu0 %3781 }
 0x64f   : > { %15610 = vst [vmem:[#allocation79_spill] sm:$0xff] %v11853_v19 }
 0x650   : > { %v11855_v5 = vpop.f32.mrf.mxu1  ;;  %15615 = vst [vmem:[#allocation64_spill] sm:$0xff] %v11889_v36 }
 0x651   : > { %v2466_v63 = vsel %vm899_vm2, %v11855_v5, -inf }
 0x652   : > { %2467 = vmax.xlane.f32.xlu2 %v2466_v63  ;;  %v11893_v13 = vpop.permute.xlu2 %3699 }
 0x653   : > { %15616 = vst [vmem:[#allocation75_spill] sm:$0xff] %v11893_v13 }
 0x655   : > { %v11861_v44 = vpop.f32.mrf.mxu2  ;;  %v11863_v51 = vpop.f32.mrf.mxu3 }
 0x656   : > { %15612 = vst [vmem:[#allocation78_spill] sm:$0xff] %v11861_v44  ;;  %v11883_v44 = vpop.permute.xlu1 %3822  ;;  %v11905_v28 = vpop.permute.xlu0 %3816 }
 0x657   : > { %15613 = vst [vmem:[#allocation47_spill] sm:$0xff] %v11863_v51 }
 0x658   : > { %v11865_v48 = vpop.f32.mrf.mxu1  ;;  %15618 = vst [vmem:[#allocation74_spill] sm:$0xff] %v11905_v28 }
 0x659   : > { %v2469_v2 = vsel %vm899_vm2, %v11865_v48, -inf }
 0x65a   : > { %2461 = vmax.xlane.f32.xlu2 %v2460_v56  ;;  %2470 = vmax.xlane.f32.xlu0 %v2469_v2  ;;  %v11907_v47 = vpop.permute.xlu2 %3894 }
 0x65b   : > { %15619 = vst [vmem:[#allocation62_spill] sm:$0xff] %v11907_v47 }
 0x65d   : > { %v11873_v15 = vpop.f32.mrf.mxu2  ;;  %v11875_v11 = vpop.f32.mrf.mxu3 }
 0x65e   : > { %v2454_v63 = vsel %vm899_vm2, %v11875_v11, -inf  ;;  %v2448_v51 = vsel %vm899_vm2, %v11873_v15, -inf  ;;  %v11895_v16 = vpop.permute.xlu1 %3783  ;;  %v11917_v60 = vpop.permute.xlu0 %3701 }
 0x65f   : > { %15617 = vst [vmem:[#allocation56_spill] sm:$0xff] %v11895_v16 }
 0x660   : > { %15620 = vst [vmem:[#allocation77_spill] sm:$0xff] %v11917_v60 }
 0x662   : > { %2455 = vmax.xlane.f32.xlu2 %v2454_v63  ;;  %2449 = vmax.xlane.f32.xlu0 %v2448_v51 }
 0x665   : > { %v11885_v56 = vpop.f32.mrf.mxu2  ;;  %v11887_v2 = vpop.f32.mrf.mxu3 }
 0x666   : > { %v2451_v19 = vsel %vm899_vm2, %v11885_v56, -inf  ;;  %v2457_v63 = vsel %vm899_vm2, %v11887_v2, -inf  ;;  %v11911_v53 = vpop.permute.xlu1 %3703  ;;  %v11927_v57 = vpop.permute.xlu0 %3779 }
 0x667   : > { %2452 = vmax.xlane.f32.xlu1 %v2451_v19  ;;  %15622 = vst [vmem:[#allocation82_spill] sm:$0xff] %v11927_v57 }
 0x66d   : > { %v11897_v25 = vpop.f32.mrf.mxu2  ;;  %v11899_v8 = vpop.f32.mrf.mxu3 }
 0x66e   : > { %v2478_v51 = vsel %vm899_vm2, %v11899_v8, -inf  ;;  %v2472_v40 = vsel %vm899_vm2, %v11897_v25, -inf  ;;  %v11925_v23 = vpop.permute.xlu1 %3898 }
 0x66f   : > { %2479 = vmax.xlane.f32.xlu0 %v2478_v51  ;;  %2458 = vmax.xlane.f32.xlu1 %v2457_v63  ;;  %v11921_v63 = vpop.permute.xlu2 %3861  ;;  %15621 = vst [vmem:[#allocation73_spill] sm:$0xff] %v11925_v23 }
 0x675   : > { %v11909_v19 = vpop.f32.mrf.mxu2  ;;  %v11919_v51 = vpop.f32.mrf.mxu3 }
 0x676   : > { %v2475_v20 = vsel %vm899_vm2, %v11909_v19, -inf  ;;  %v2481_v10 = vsel %vm899_vm2, %v11919_v51, -inf  ;;  %v11931_v47 = vpop.permute.xlu1 %3777 }
 0x677   : > { %2473 = vmax.xlane.f32.xlu1 %v2472_v40  ;;  %2476 = vmax.xlane.f32.xlu0 %v2475_v20  ;;  %v11929_v6 = vpop.permute.xlu2 %3939  ;;  %15624 = vst [vmem:[#allocation54_spill] sm:$0xff] %v11931_v47  ;;  %v11935_v20 = vpop.permute.xlu0 %3859 }
 0x678   : > { %15623 = vst [vmem:[#allocation76_spill] sm:$0xff] %v11929_v6 }
 0x67e   : > { %v11939_v59 = vpop.permute.xlu1 %3818 }
 0x67f   : > { %2482 = vmax.xlane.f32.xlu1 %v2481_v10  ;;  %v11937_v40 = vpop.permute.xlu2 %3855  ;;  %15626 = vst [vmem:[#allocation80_spill] sm:$0xff] %v11939_v59  ;;  %v11941_v37 = vpop.permute.xlu0 %3933 }
 0x680   : > { %15625 = vst [vmem:[#allocation52_spill] sm:$0xff] %v11937_v40 }
 0x681   : > { %15627 = vst [vmem:[#allocation84_spill] sm:$0xff] %v11941_v37 }
 0x686   : > { %v11947_v57 = vpop.permute.xlu1 %3896 }
 0x687   : > { %v11945_v10 = vpop.permute.xlu2 %3935  ;;  %15629 = vst [vmem:[#allocation61_spill] sm:$0xff] %v11947_v57  ;;  %v11949_v47 = vpop.permute.xlu0 %9356 }
 0x688   : > { %15628 = vst [vmem:[#allocation53_spill] sm:$0xff] %v11945_v10 }
 0x689   : > { %15630 = vst [vmem:[#allocation66_spill] sm:$0xff] %v11949_v47 }
 0x68b   : > { %4434 = vrot.lane.b32.xlu0 %v10474_v26, %s10226_s13 }
 0x68e   : > { %v11953_v23 = vpop.permute.xlu1 %3937 }
 0x68f   : > { %v11951_v6 = vpop.permute.xlu2 %9366  ;;  %15632 = vst [vmem:[#allocation69_spill] sm:$0xff] %v11953_v23  ;;  %v11955_v36 = vpop.permute.xlu0 %9361 }
 0x690   : > { %15631 = vst [vmem:[#allocation67_spill] sm:$0xff] %v11951_v6 }
 0x696   : > { %v11958_v21 = vpop.permute.xlu1 %3857 }
 0x697   : > { %v2438_v16 = vpop.xlane.xlu2 %2437  ;;  %15633 = vst [vmem:[#allocation81_spill] sm:$0xff] %v11958_v21 }
 0x698   : > { %9376 = vrot.lane.b32.xlu1 %v15486_v31, %s10225_s21  ;;  %v2484_v59 = vsub.f32 %v11813_v18, %v2438_v16 }
 0x69a   : > { %v2500_v37 = vmul.f32 1.442695, %v2484_v59 }
 0x69c   : > { %9646 = vpow2.f32 %v2500_v37 }
 0x69e   : > { %v11961_v57 = vpop.permute.xlu1 %9351 }
 0x6a2   : > { %v11964_v60 = vpop.eup %9646 }
 0x6b4   : > { %v2444_v28 = vpop.xlane.xlu0 %2443 }
 0x6b5   : > { %v2486_v31 = vsub.f32 %v11837_v55, %v2444_v28  ;;  %v11973_v55 = vpop.permute.xlu1 %9371 }
 0x6b6   : > { %15634 = vst [vmem:[#allocation116_spill] sm:$0xff] %v11973_v55 }
 0x6b7   : > { %v2504_v10 = vmul.f32 1.442695, %v2486_v31  ;;  %v2532_v31 = vsel %vm899_vm2, %v11964_v60, 0.0 }
 0x6b9   : > { %9648 = vpow2.f32 %v2504_v10 }
 0x6bc   : > { %v2441_v47 = vpop.xlane.xlu0 %2440 }
 0x6bd   : > { %v2485_v40 = vsub.f32 %v11817_v9, %v2441_v47  ;;  %v2447_v23 = vpop.xlane.xlu2 %2446 }
 0x6be   : > { %v2487_v6 = vsub.f32 %v11845_v50, %v2447_v23 }
 0x6bf   : > { %v11967_v18 = vpop.eup %9648  ;;  %v2502_v16 = vmul.f32 1.442695, %v2485_v40 }
 0x6c0   : > { %v2506_v59 = vmul.f32 1.442695, %v2487_v6  ;;  %v2538_v28 = vsel %vm899_vm2, %v11967_v18, 0.0 }
 0x6c1   : > { %9650 = vpow2.f32 %v2502_v16  ;;  %2539 = vadd.xlane.f32.xlu2 %v2538_v28 }
 0x6c2   : > { %9652 = vpow2.f32 %v2506_v59  ;;  %2533 = vadd.xlane.f32.xlu1 %v2532_v31  ;;  %v2465_v59 = vpop.xlane.xlu1 %2464 }
 0x6c3   : > { %v2493_v55 = vsub.f32 %v11825_v3, %v2465_v59 }
 0x6c5   : > { %v2468_v9 = vpop.xlane.xlu2 %2467 }
 0x6c6   : > { %v2494_v47 = vsub.f32 %v11855_v5, %v2468_v9 }
 0x6c7   : > { %v11976_v23 = vpop.eup %9650 }
 0x6c8   : > { %v11978_v50 = vpop.eup %9652  ;;  %v2520_v6 = vmul.f32 1.442695, %v2494_v47  ;;  %v2535_v37 = vsel %vm899_vm2, %v11976_v23, 0.0 }
 0x6c9   : > { %2536 = vadd.xlane.f32.xlu2 %v2535_v37  ;;  %v2541_v40 = vsel %vm899_vm2, %v11978_v50, 0.0 }
 0x6ca   : > { %9654 = vpow2.f32 %v2520_v6  ;;  %2542 = vadd.xlane.f32.xlu0 %v2541_v40  ;;  %v2518_v6 = vmul.f32 1.442695, %v2493_v55 }
 0x6cd   : > { %v2471_v10 = vpop.xlane.xlu0 %2470  ;;  %v2462_v16 = vpop.xlane.xlu2 %2461 }
 0x6ce   : > { %v2495_v28 = vsub.f32 %v11865_v48, %v2471_v10  ;;  %v2492_v5 = vsub.f32 %v11821_v61, %v2462_v16 }
 0x6d0   : > { %v11986_v31 = vpop.eup %9654  ;;  %v2522_v9 = vmul.f32 1.442695, %v2495_v28  ;;  %v2516_v47 = vmul.f32 1.442695, %v2492_v5 }
 0x6d1   : > { %v2562_v37 = vsel %vm899_vm2, %v11986_v31, 0.0 }
 0x6d2   : > { %9656 = vpow2.f32 %v2522_v9  ;;  %2563 = vadd.xlane.f32.xlu1 %v2562_v37 }
 0x6d3   : > { %9658 = vpow2.f32 %v2516_v47 }
 0x6d4   : > { %9660 = vpow2.f32 %v2518_v6 }
 0x6d5   : > { %v2450_v40 = vpop.xlane.xlu0 %2449  ;;  %v2456_v21 = vpop.xlane.xlu2 %2455 }
 0x6d6   : > { %v2488_v13 = vsub.f32 %v11873_v15, %v2450_v40  ;;  %v2490_v10 = vsub.f32 %v11875_v11, %v2456_v21 }
 0x6d8   : > { %v11992_v48 = vpop.eup %9656  ;;  %v2508_v61 = vmul.f32 1.442695, %v2488_v13  ;;  %v2512_v59 = vmul.f32 1.442695, %v2490_v10 }
 0x6d9   : > { %v11995_v16 = vpop.eup %9658  ;;  %v2565_v3 = vsel %vm899_vm2, %v11992_v48, 0.0 }
 0x6da   : > { %9662 = vpow2.f32 %v2508_v61  ;;  %2566 = vadd.xlane.f32.xlu0 %v2565_v3  ;;  %v2556_v55 = vsel %vm899_vm2, %v11995_v16, 0.0  ;;  %v12001_v28 = vpop.eup %9660  ;;  %v12027_v9 = vpop.xlane.xlu1 %2452 }
 0x6db   : > { %2557 = vadd.xlane.f32.xlu1 %v2556_v55  ;;  %9664 = vpow2.f32 %v2512_v59  ;;  %v2559_v13 = vsel %vm899_vm2, %v12001_v28, 0.0 }
 0x6e0   : > { %v12003_v15 = vpop.eup %9662 }
 0x6e1   : > { %v2544_v21 = vsel %vm899_vm2, %v12003_v15, 0.0  ;;  %v12009_v11 = vpop.eup %9664 }
 0x6e2   : > { %2545 = vadd.xlane.f32.xlu2 %v2544_v21  ;;  %v2550_v5 = vsel %vm899_vm2, %v12009_v11, 0.0  ;;  %v12035_v47 = vpop.xlane.xlu1 %2458  ;;  %v12045_v6 = vpop.xlane.xlu0 %2479 }
 0x6e3   : > { %2560 = vadd.xlane.f32.xlu1 %v2559_v13 }
 0x6ea   : > { %2551 = vadd.xlane.f32.xlu2 %v2550_v5  ;;  %v2474_v37 = vpop.xlane.xlu1 %2473  ;;  %v2477_v10 = vpop.xlane.xlu0 %2476 }
 0x6eb   : > { %v2496_v61 = vsub.f32 %v11897_v25, %v2474_v37  ;;  %v2497_v55 = vsub.f32 %v11909_v19, %v2477_v10 }
 0x6ed   : > { %v2524_v3 = vmul.f32 1.442695, %v2496_v61  ;;  %v2526_v21 = vmul.f32 1.442695, %v2497_v55 }
 0x6ee   : > { %4510 = vrot.lane.b32.xlu0 %v10546_v42, %s10226_s13 }
 0x6ef   : > { %9666 = vpow2.f32 %v2524_v3 }
 0x6f0   : > { %9668 = vpow2.f32 %v2526_v21 }
 0x6f2   : > { %v12051_v40 = vpop.xlane.xlu1 %2482 }
 0x6f5   : > { %v12063_v13 = vpop.eup %9666 }
 0x6f6   : > { %4471 = vrot.lane.b32.xlu0 %v10506_v32, %s10226_s13  ;;  %v2568_v37 = vsel %vm899_vm2, %v12063_v13, 0.0  ;;  %v12071_v61 = vpop.eup %9668 }
 0x6fc   : > { %9381 = vrot.lane.b32.xlu1 %v10768_v62, %s10225_s21 }
 0x6fd   : > { %v12067_v5 = vpop.permute.xlu0 %4434 }
 0x6fe   : > { %4467 = vrot.lane.b32.xlu0 %v10506_v32, %s10227_s25 }
 0x702   : > { %4428 = vrot.lane.b32.xlu2 %v10462_v22, %s10227_s25 }
 0x704   : > { %4432 = vrot.lane.b32.xlu1 %v10462_v22, %s10226_s13 }
 0x706   : > { %4551 = vrot.lane.b32.xlu0 %v10571_v49, %s10226_s13 }
 0x70a   : > { %4512 = vrot.lane.b32.xlu2 %v10564_v46, %s10226_s13  ;;  %v12059_v59 = vpop.permute.xlu1 %9376 }
 0x70c   : > { %4506 = vrot.lane.b32.xlu1 %v10546_v42, %s10227_s25 }
 0x70e   : > { %4666 = vrot.lane.b32.xlu0 %v10471_v24, %s10226_s13 }
 0x712   : > { %9386 = vrot.lane.b32.xlu2 %v10559_v45, %s10225_s21  ;;  %s10237_s21 = smov 8  }
 0x714   : > { %4508 = vrot.lane.b32.xlu1 %v10564_v46, %s10227_s25 }
 0x71a   : > { %4430 = vrot.lane.b32.xlu2 %v10474_v26, %s10227_s25 }
 0x71c   : > { %4668 = vrot.lane.b32.xlu1 %v10487_v29, %s10226_s13 }
 0x722   : > { %4473 = vrot.lane.b32.xlu2 %v10533_v39, %s10226_s13 }
 0x724   : > { %4469 = vrot.lane.b32.xlu1 %v10533_v39, %s10227_s25 }
 0x72a   : > { %4590 = vrot.lane.b32.xlu2 %v10594_v54, %s10226_s13 }
 0x72c   : > { %4662 = vrot.lane.b32.xlu1 %v10471_v24, %s10227_s25 }
 0x732   : > { %4588 = vrot.lane.b32.xlu2 %v10585_v52, %s10226_s13 }
 0x734   : > { %4547 = vrot.lane.b32.xlu1 %v10571_v49, %s10227_s25  ;;  %v2540_v25 = vpop.xlane.xlu2 %2539 }
 0x735   : > { %9670 = vrcp.f32 %v2540_v25  ;;  %v2534_v19 = vpop.xlane.xlu1 %2533 }
 0x736   : > { %9672 = vrcp.f32 %v2534_v19 }
 0x738   : > { %2569 = vadd.xlane.f32.xlu0 %v2568_v37  ;;  %v2571_v37 = vsel %vm899_vm2, %v12071_v61, 0.0 }
 0x73a   : > { %4584 = vrot.lane.b32.xlu2 %v10585_v52, %s10227_s25 }
 0x73b   : > { %v9671_v10 = vpop.eup %9670 }
 0x73c   : > { %v9673_v3 = vpop.eup %9672  ;;  %v2598_v55 = vmul.f32 %v9671_v10, %v11967_v18  ;;  %4707 = vrot.lane.b32.xlu1 %v10524_v38, %s10226_s13  ;;  %v2537_v21 = vpop.xlane.xlu2 %2536 }
 0x73d   : > { %v2596_v25 = vmul.f32 %v9673_v3, %v11964_v60  ;;  %v2543_v19 = vpop.xlane.xlu0 %2542  ;;  %9674 = vrcp.f32 %v2537_v21 }
 0x73e   : > { %9676 = vrcp.f32 %v2543_v19  ;;  %8782 = vmatmul.msk.f32.vlgmr.msra.gmra.mxu1 %vm899_vm2, %v2598_v55 }
 0x73f   : > { %8800 = vmatpush.xpose.msk.msra.mxu1 %vm608_vm1, %v11395_v33  ;;  %8780 = vmatmul.msk.f32.vlgmr.msrb.gmra.mxu0 %vm899_vm2, %v2596_v25 }
 0x740   : > { %8796 = vmatpush.xpose.msk.msrb.mxu0 %vm608_vm1, %v11421_v4  ;;  %2572 = vadd.xlane.f32.xlu0 %v2571_v37 }
 0x743   : > { %v9675_v18 = vpop.eup %9674  ;;  %8801 = vmatpush.xpose.msk.msra.mxu1 %vm608_vm1, %v11487_v1 }
 0x744   : > { %v9677_v60 = vpop.eup %9676  ;;  %4701 = vrot.lane.b32.xlu1 %v10515_v35, %s10227_s25  ;;  %8797 = vmatpush.xpose.msk.msrb.mxu0 %vm608_vm1, %v11352_v43  ;;  %v2597_v33 = vmul.f32 %v9675_v18, %v11976_v23  ;;  %v2489_v43 = vsub.f32 %v11885_v56, %v12027_v9 }
 0x745   : > { %v2564_v10 = vpop.xlane.xlu1 %2563  ;;  %v2599_v3 = vmul.f32 %v9677_v60, %v11978_v50  ;;  %v15635_v60 = vld [vmem:[#allocation110_spill] sm:$0xff] }
 0x746   : > { %9678 = vrcp.f32 %v2564_v10  ;;  %v15637_v10 = vld [vmem:[#allocation85_spill] sm:$0xff] }
 0x747   : > { %8783 = vmatmul.msk.f32.gmra.mxu1 %vm899_vm2, %v2599_v3  ;;  %8781 = vmatmul.msk.f32.gmra.mxu0 %vm899_vm2, %v2597_v33  ;;  %v9323_v33 = vunpack.i.l.bf16 %v15635_v60 }
 0x74c   : > { %v9679_v4 = vpop.eup %9678 }
 0x74d   : > { %v2606_v1 = vmul.f32 %v9679_v4, %v11986_v31  ;;  %v2567_v55 = vpop.xlane.xlu0 %2566  ;;  %v2510_v31 = vmul.f32 1.442695, %v2489_v43  ;;  %v15639_v4 = vld [vmem:[#allocation21_spill] sm:$0xff]  ;;  %v15641_v43 = vld [vmem:[#allocation95_spill] sm:$0xff] }
 0x74e   : > { %9680 = vrcp.f32 %v2567_v55  ;;  %v2558_v21 = vpop.xlane.xlu1 %2557  ;;  %v15640_v55 = vld [vmem:[#allocation101_spill] sm:$0xff] }
 0x74f   : > { %9682 = vrcp.f32 %v2558_v21  ;;  %8790 = vmatmul.msk.f32.vlgmr.msrb.gmra.mxu1 %vm899_vm2, %v2606_v1  ;;  %v9313_v21 = vunpack.i.l.bf16 %v15640_v55 }
 0x750   : > { %8816 = vmatpush.xpose.msk.msrb.mxu1 %vm608_vm1, %v11417_v41 }
 0x754   : > { %v9681_v23 = vpop.eup %9680  ;;  %8817 = vmatpush.xpose.msk.msrb.mxu1 %vm608_vm1, %v11425_v17  ;;  %4586 = vrot.lane.b32.xlu0 %v10594_v54, %s10227_s25 }
 0x755   : > { %v9683_v50 = vpop.eup %9682  ;;  %v2546_v25 = vpop.xlane.xlu2 %2545  ;;  %v2607_v19 = vmul.f32 %v9681_v23, %v11992_v48  ;;  %v15642_v23 = vld [vmem:[#allocation20_spill] sm:$0xff] }
 0x756   : > { %v2604_v37 = vmul.f32 %v9683_v50, %v11995_v16  ;;  %v2561_v18 = vpop.xlane.xlu1 %2560  ;;  %9684 = vrcp.f32 %v2546_v25  ;;  %v15643_v50 = vld [vmem:[#allocation42_spill] sm:$0xff]  ;;  %v15644_v25 = vld [vmem:[#allocation51_spill] sm:$0xff] }
 0x757   : > { %9686 = vrcp.f32 %v2561_v18  ;;  %8791 = vmatmul.msk.f32.gmra.mxu1 %vm899_vm2, %v2607_v19 }
 0x758   : > { %8788 = vmatmul.msk.f32.vlgmr.msra.gmra.mxu0 %vm899_vm2, %v2604_v37  ;;  %9688 = vpow2.f32 %v2510_v31  ;;  %v9314_v31 = vunpack.i.h.bf16 %v15640_v55  ;;  %v15646_v37 = vld [vmem:[#allocation99_spill] sm:$0xff] }
 0x759   : > { %8812 = vmatpush.xpose.msk.msra.mxu0 %vm608_vm1, %v11397_v7  ;;  %v15636_v7 = vld [vmem:[#allocation100_spill] sm:$0xff] }
 0x75c   : > { %v9685_v41 = vpop.eup %9684  ;;  %4627 = vrot.lane.b32.xlu0 %v10630_v0, %s10226_s13 }
 0x75d   : > { %v9687_v17 = vpop.eup %9686  ;;  %v2600_v56 = vmul.f32 %v9685_v41, %v12003_v15  ;;  %8813 = vmatpush.xpose.msk.msra.mxu0 %vm608_vm1, %v11401_v12  ;;  %v2552_v48 = vpop.xlane.xlu2 %2551  ;;  %v15638_v15 = vld [vmem:[#allocation103_spill] sm:$0xff] }
 0x75e   : > { %9690 = vrcp.f32 %v2552_v48  ;;  %v2605_v16 = vmul.f32 %v9687_v17, %v12001_v28  ;;  %v12119_v9 = vpop.eup %9688  ;;  %v9328_v12 = vunpack.i.l.bf16 %v15638_v15  ;;  %v15647_v41 = vld [vmem:[#allocation39_spill] sm:$0xff]  ;;  %v9395_v17 = vpack.i.bf16 %v10533_v39, %v10564_v46  ;;  %v15648_v48 = vld [vmem:[#allocation88_spill] sm:$0xff] }
 0x75f   : > { %8784 = vmatmul.msk.f32.vlgmr.msra.gmra.mxu2 %vm899_vm2, %v2600_v56  ;;  %8802 = vmatmul.msk.f32.vlgmr.msra.gmra.mxu1 %vm608_vm1, %v15636_v7  ;;  %v2547_v28 = vsel %vm899_vm2, %v12119_v9, 0.0  ;;  %v9324_v56 = vunpack.i.h.bf16 %v15635_v60  ;;  %v2491_v60 = vsub.f32 %v11887_v2, %v12035_v47 }
 0x760   : > { %8789 = vmatmul.msk.f32.gmra.mxu0 %vm899_vm2, %v2605_v16  ;;  %8804 = vmatpush.xpose.msk.msra.mxu2 %vm608_vm1, %v15637_v10  ;;  %v15649_v16 = vld [vmem:[#allocation28_spill] sm:$0xff] }
 0x761   : > { %3441 = vmatpush.msra.mxu1 %v9323_v33  ;;  %v15650_v33 = vld [vmem:[#allocation92_spill] sm:$0xff] }
 0x762   : > { %v9333_v7 = vunpack.i.l.bf16 %v15650_v33  ;;  %v15651_v10 = vld [vmem:[#allocation104_spill] sm:$0xff] }
 0x763   : > { %3442 = vmatpush.msra.mxu1 %v9328_v12  ;;  %2548 = vadd.xlane.f32.xlu2 %v2547_v28 }
 0x764   : > { %v9691_v3 = vpop.eup %9690  ;;  %8805 = vmatpush.xpose.msk.msra.mxu2 %vm608_vm1, %v15639_v4  ;;  %4664 = vrot.lane.b32.xlu0 %v10487_v29, %s10227_s25  ;;  %v2498_v4 = vsub.f32 %v11899_v8, %v12045_v6  ;;  %v12188_v8 = vpop.permute.xlu0 %4510 }
 0x765   : > { %v2602_v1 = vmul.f32 %v9691_v3, %v12009_v11  ;;  %v15645_v11 = vld [vmem:[#allocation107_spill] sm:$0xff]  ;;  %v12168_v12 = vpop.permute.xlu2 %4428  ;;  %v2514_v3 = vmul.f32 1.442695, %v2491_v60  ;;  %15655 = vst [vmem:[#allocation103_spill] sm:$0xff] %v12188_v8 }
 0x766   : > { %v9343_v19 = vunpack.i.l.bf16 %v15645_v11  ;;  %v9344_v18 = vunpack.i.h.bf16 %v15645_v11  ;;  %15652 = vst [vmem:[#allocation110_spill] sm:$0xff] %v12168_v12  ;;  %v2528_v55 = vmul.f32 1.442695, %v2498_v4 }
 0x767   : > { %8786 = vmatmul.msk.f32.vlgmr.msrb.gmra.mxu3 %vm899_vm2, %v2602_v1  ;;  %8803 = vmatmul.msk.f32.gmra.mxu1 %vm608_vm1, %v15641_v43  ;;  %9692 = vpow2.f32 %v2514_v3  ;;  %v2499_v43 = vsub.f32 %v11919_v51, %v12051_v40 }
 0x768   : > { %8798 = vmatmul.msk.f32.vlgmr.msrb.gmra.mxu0 %vm608_vm1, %v15642_v23  ;;  %8808 = vmatpush.xpose.msk.msrb.mxu3 %vm608_vm1, %v15643_v50  ;;  %9694 = vpow2.f32 %v2528_v55 }
 0x769   : > { %3406 = vmatpush.msrb.mxu0 %v9313_v21  ;;  %v2530_v2 = vmul.f32 1.442695, %v2499_v43 }
 0x76b   : > { %3407 = vmatpush.msrb.mxu0 %v9314_v31  ;;  %9696 = vpow2.f32 %v2530_v2 }
 0x76c   : > { %8809 = vmatpush.xpose.msk.msrb.mxu3 %vm608_vm1, %v15644_v25  ;;  %4625 = vrot.lane.b32.xlu0 %v10675_v14, %s10227_s25  ;;  %v12196_v51 = vpop.permute.xlu0 %4471 }
 0x76d   : > { %v12172_v28 = vpop.permute.xlu2 %4512  ;;  %v12178_v21 = vpop.eup %9692 }
 0x76e   : > { %15653 = vst [vmem:[#allocation100_spill] sm:$0xff] %v12172_v28  ;;  %v2553_v23 = vsel %vm899_vm2, %v12178_v21, 0.0  ;;  %v12186_v50 = vpop.eup %9694 }
 0x76f   : > { %8818 = vmatmul.msk.f32.vlgmr.msrb.gmra.mxu1 %vm608_vm1, %v15646_v37  ;;  %v2574_v6 = vsel %vm899_vm2, %v12186_v50, 0.0 }
 0x770   : > { %8799 = vmatmul.msk.f32.gmra.mxu0 %vm608_vm1, %v15647_v41  ;;  %3581 = vmatpush.msrb.mxu1 %v9343_v19 }
 0x771   : > { %v12192_v31 = vpop.eup %9696 }
 0x772   : > { %3582 = vmatpush.msrb.mxu1 %v9344_v18  ;;  %v2577_v40 = vsel %vm899_vm2, %v12192_v31, 0.0 }
 0x774   : > { %9396 = vrot.lane.b32.xlu0 %v9395_v17, %s10228_s27  ;;  %v12204_v37 = vpop.permute.xlu0 %4467 }
 0x775   : > { %v12176_v1 = vpop.permute.xlu2 %9386  ;;  %15657 = vst [vmem:[#allocation101_spill] sm:$0xff] %v12204_v37 }
 0x777   : > { %8819 = vmatmul.msk.f32.gmra.mxu1 %vm608_vm1, %v15648_v48 }
 0x778   : > { %8814 = vmatmul.msk.f32.vlgmr.msra.gmra.mxu0 %vm608_vm1, %v15649_v16 }
 0x779   : > { %3546 = vmatpush.msra.mxu0 %v9324_v56 }
 0x77b   : > { %3547 = vmatpush.msra.mxu0 %v9333_v7  ;;  %4549 = vrot.lane.b32.xlu2 %v10607_v58, %s10226_s13 }
 0x77c   : > { %v12212_v56 = vpop.permute.xlu0 %4551 }
 0x77d   : > { %v12184_v47 = vpop.permute.xlu2 %4430  ;;  %15660 = vst [vmem:[#allocation42_spill] sm:$0xff] %v12212_v56 }
 0x77e   : > { %15654 = vst [vmem:[#allocation85_spill] sm:$0xff] %v12184_v47 }
 0x780   : > { %8815 = vmatmul.msk.f32.gmra.mxu0 %vm608_vm1, %v15651_v10 }
 0x784   : > { %v12222_v10 = vpop.permute.xlu0 %4666 }
 0x785   : > { %v12194_v25 = vpop.permute.xlu2 %4473  ;;  %15664 = vst [vmem:[#allocation39_spill] sm:$0xff] %v12222_v10 }
 0x78d   : > { %v12200_v11 = vpop.permute.xlu2 %4590 }
 0x795   : > { %v12208_v41 = vpop.permute.xlu2 %4588 }
 0x79d   : > { %v12220_v7 = vpop.permute.xlu2 %4584 }
 0x79e   : > { %15663 = vst [vmem:[#allocation99_spill] sm:$0xff] %v12220_v7 }
 0x7a4   : > { %2554 = vadd.xlane.f32.xlu2 %v2553_v23 }
 0x7ab   : > { %v2570_v55 = vpop.xlane.xlu0 %2569 }
 0x7ac   : > { %2575 = vadd.xlane.f32.xlu2 %v2574_v6 }
 0x7b4   : > { %2578 = vadd.xlane.f32.xlu2 %v2577_v40  ;;  %v2573_v40 = vpop.xlane.xlu0 %2572 }
 0x7bb   : > { %v12202_v19 = vpop.f32.mrf.mxu1 }
 0x7bc   : > { %15656 = vst [vmem:[#allocation21_spill] sm:$0xff] %v12202_v19  ;;  %v12206_v18 = vpop.f32.mrf.mxu0  ;;  %v15669_v19 = vld [vmem:[#allocation91_spill] sm:$0xff] }
 0x7bd   : > { %15658 = vst [vmem:[#allocation95_spill] sm:$0xff] %v12206_v18 }
 0x7c4   : > { %v12210_v17 = vpop.f32.mrf.mxu1  ;;  %v12218_v16 = vpop.f32.mrf.mxu0 }
 0x7c5   : > { %15659 = vst [vmem:[#allocation20_spill] sm:$0xff] %v12210_v17  ;;  %v15671_v17 = vld [vmem:[#allocation89_spill] sm:$0xff] }
 0x7c6   : > { %15662 = vst [vmem:[#allocation107_spill] sm:$0xff] %v12218_v16  ;;  %v15676_v16 = vld [vmem:[#allocation102_spill] sm:$0xff] }
 0x7cc   : > { %4545 = vrot.lane.b32.xlu2 %v10607_v58, %s10227_s25  ;;  %v12216_v48 = vpop.f32.mrf.mxu1 }
 0x7cd   : > { %15661 = vst [vmem:[#allocation51_spill] sm:$0xff] %v12216_v48 }
 0x7d4   : > { %4629 = vrot.lane.b32.xlu2 %v10675_v14, %s10226_s13  ;;  %v12226_v60 = vpop.f32.mrf.mxu1 }
 0x7d5   : > { %15665 = vst [vmem:[#allocation88_spill] sm:$0xff] %v12226_v60  ;;  %v12228_v3 = vpop.f32.mrf.mxu0 }
 0x7d6   : > { %15666 = vst [vmem:[#allocation28_spill] sm:$0xff] %v12228_v3  ;;  %v2549_v4 = vpop.xlane.xlu2 %2548 }
 0x7d7   : > { %9698 = vrcp.f32 %v2549_v4 }
 0x7d8   : > { %9700 = vrcp.f32 %v2570_v55 }
 0x7d9   : > { %9702 = vrcp.f32 %v2573_v40 }
 0x7dc   : > { %4623 = vrot.lane.b32.xlu2 %v10630_v0, %s10227_s25  ;;  %v12232_v43 = vpop.f32.mrf.mxu1 }
 0x7dd   : > { %v9699_v23 = vpop.eup %9698  ;;  %v12234_v2 = vpop.f32.mrf.mxu0 }
 0x7de   : > { %15667 = vst [vmem:[#allocation92_spill] sm:$0xff] %v12234_v2  ;;  %v2601_v6 = vmul.f32 %v9699_v23, %v12119_v9  ;;  %v9701_v60 = vpop.eup %9700  ;;  %v15668_v23 = vld [vmem:[#allocation19_spill] sm:$0xff]  ;;  %v12290_v18 = vpop.permute.xlu2 %4549 }
 0x7df   : > { %v2608_v55 = vmul.f32 %v9701_v60, %v12063_v13  ;;  %15675 = vst [vmem:[#allocation104_spill] sm:$0xff] %v12290_v18  ;;  %v15678_v18 = vld [vmem:[#allocation97_spill] sm:$0xff] }
 0x7e0   : > { %8785 = vmatmul.msk.f32.gmra.mxu2 %vm899_vm2, %v2601_v6  ;;  %v9703_v6 = vpop.eup %9702 }
 0x7e1   : > { %v2609_v60 = vmul.f32 %v9703_v6, %v12071_v61 }
 0x7e4   : > { %4705 = vrot.lane.b32.xlu2 %v10515_v35, %s10226_s13  ;;  %v12240_v4 = vpop.f32.mrf.mxu1  ;;  %s10238_s13 = smov 16  }
 0x7e5   : > { %v12242_v3 = vpop.f32.mrf.mxu0  ;;  %v3213_v48 = vsel %vm899_vm2, %v12240_v4, -inf }
 0x7e6   : > { %3214 = vmax.xlane.f32.xlu1 %v3213_v48  ;;  %v3204_v9 = vsel %vm899_vm2, %v12242_v3, -inf }
 0x7e7   : > { %3205 = vmax.xlane.f32.xlu0 %v3204_v9  ;;  %v15670_v9 = vld [vmem:[#allocation90_spill] sm:$0xff] }
 0x7e8   : > { %8792 = vmatmul.msk.f32.vlgmr.msrb.gmra.mxu2 %vm899_vm2, %v2608_v55  ;;  %v9319_v61 = vunpack.i.h.bf16 %v15670_v9 }
 0x7e9   : > { %8820 = vmatpush.xpose.msk.msrb.mxu2 %vm608_vm1, %v15668_v23  ;;  %v9318_v23 = vunpack.i.l.bf16 %v15670_v9  ;;  %v15673_v9 = vld [vmem:[#allocation44_spill] sm:$0xff] }
 0x7ec   : > { %4703 = vrot.lane.b32.xlu2 %v10524_v38, %s10227_s25  ;;  %v12254_v40 = vpop.f32.mrf.mxu1  ;;  %s10239_s25 = smov 20  }
 0x7ed   : > { %v12256_v2 = vpop.f32.mrf.mxu0  ;;  %8821 = vmatpush.xpose.msk.msrb.mxu2 %vm608_vm1, %v15669_v19  ;;  %v3234_v13 = vsel %vm899_vm2, %v12254_v40, -inf }
 0x7ee   : > { %v3207_v48 = vsel %vm899_vm2, %v12256_v2, -inf }
 0x7ef   : > { %3235 = vmax.xlane.f32.xlu0 %v3234_v13  ;;  %3208 = vmax.xlane.f32.xlu1 %v3207_v48 }
 0x7f0   : > { %8793 = vmatmul.msk.f32.gmra.mxu2 %vm899_vm2, %v2609_v60 }
 0x7f4   : > { %9391 = vrot.lane.b32.xlu2 %v10480_v27, %s10228_s27  ;;  %v12276_v6 = vpop.f32.mrf.mxu1 }
 0x7f5   : > { %v12268_v55 = vpop.f32.mrf.mxu0  ;;  %v3237_v48 = vsel %vm899_vm2, %v12276_v6, -inf }
 0x7f6   : > { %v3228_v19 = vsel %vm899_vm2, %v12268_v55, -inf }
 0x7f7   : > { %3229 = vmax.xlane.f32.xlu1 %v3228_v19  ;;  %v15672_v19 = vld [vmem:[#allocation26_spill] sm:$0xff] }
 0x7f8   : > { %8806 = vmatmul.msk.f32.vlgmr.msra.gmra.mxu2 %vm608_vm1, %v15671_v17  ;;  %v9334_v17 = vunpack.i.h.bf16 %v15650_v33 }
 0x7f9   : > { %3476 = vmatpush.msra.mxu2 %v9318_v23  ;;  %v15674_v23 = vld [vmem:[#allocation112_spill] sm:$0xff] }
 0x7fb   : > { %3477 = vmatpush.msra.mxu2 %v9319_v61  ;;  %v9339_v61 = vunpack.i.h.bf16 %v15674_v23 }
 0x7fd   : > { %v12278_v13 = vpop.f32.mrf.mxu0 }
 0x7fe   : > { %v3231_v60 = vsel %vm899_vm2, %v12278_v13, -inf }
 0x7ff   : > { %3238 = vmax.xlane.f32.xlu1 %v3237_v48  ;;  %3232 = vmax.xlane.f32.xlu0 %v3231_v60  ;;  %v3210_v48 = vsel %vm899_vm2, %v12232_v43, -inf }
 0x800   : > { %8807 = vmatmul.msk.f32.gmra.mxu2 %vm608_vm1, %v15672_v19 }
 0x808   : > { %8822 = vmatmul.msk.f32.vlgmr.msrb.gmra.mxu2 %vm608_vm1, %v15673_v9 }
 0x809   : > { %3616 = vmatpush.msrb.mxu2 %v9334_v17 }
 0x80b   : > { %3617 = vmatpush.msrb.mxu2 %v9339_v61 }
 0x810   : > { %8823 = vmatmul.msk.f32.gmra.mxu2 %vm608_vm1, %v15676_v16  ;;  %v15677_v16 = vld [vmem:[#allocation34_spill] sm:$0xff] }
 0x817   : > { %v2555_v10 = vpop.xlane.xlu2 %2554 }
 0x818   : > { %9704 = vrcp.f32 %v2555_v10 }
 0x81d   : > { %3211 = vmax.xlane.f32.xlu2 %v3210_v48 }
 0x81e   : > { %v9705_v60 = vpop.eup %9704 }
 0x81f   : > { %v2576_v33 = vpop.xlane.xlu2 %2575  ;;  %v2603_v19 = vmul.f32 %v9705_v60, %v12178_v21  ;;  %v9329_v21 = vunpack.i.h.bf16 %v15638_v15  ;;  %v15679_v60 = vld [vmem:[#allocation29_spill] sm:$0xff]  ;;  %v15683_v15 = vld [vmem:[#allocation108_spill] sm:$0xff] }
 0x820   : > { %9706 = vrcp.f32 %v2576_v33  ;;  %v15680_v33 = vld [vmem:[#allocation93_spill] sm:$0xff] }
 0x821   : > { %8787 = vmatmul.msk.f32.gmra.mxu3 %vm899_vm2, %v2603_v19  ;;  %v15681_v19 = vld [vmem:[#allocation109_spill] sm:$0xff] }
 0x826   : > { %v9707_v17 = vpop.eup %9706 }
 0x827   : > { %v2610_v9 = vmul.f32 %v9707_v17, %v12186_v50  ;;  %v2579_v61 = vpop.xlane.xlu2 %2578  ;;  %v9338_v50 = vunpack.i.l.bf16 %v15674_v23  ;;  %v9348_v17 = vunpack.i.l.bf16 %v15681_v19 }
 0x828   : > { %9708 = vrcp.f32 %v2579_v61 }
 0x829   : > { %8794 = vmatmul.msk.f32.vlgmr.msra.gmra.mxu3 %vm899_vm2, %v2610_v9  ;;  %v15682_v9 = vld [vmem:[#allocation106_spill] sm:$0xff] }
 0x82a   : > { %8824 = vmatpush.xpose.msk.msra.mxu3 %vm608_vm1, %v15677_v16  ;;  %v12324_v16 = vpop.permute.xlu1 %9381 }
 0x82e   : > { %v9709_v10 = vpop.eup %9708  ;;  %8825 = vmatpush.xpose.msk.msra.mxu3 %vm608_vm1, %v15678_v18  ;;  %v12318_v18 = vpop.f32.mrf.mxu2 }
 0x82f   : > { %v2611_v48 = vmul.f32 %v9709_v10, %v12192_v31  ;;  %v9349_v31 = vunpack.i.h.bf16 %v15681_v19  ;;  %15684 = vst [vmem:[#allocation19_spill] sm:$0xff] %v12318_v18  ;;  %v12356_v18 = vpop.f32.mrf.mxu3 }
 0x830   : > { %15694 = vst [vmem:[#allocation29_spill] sm:$0xff] %v12356_v18 }
 0x831   : > { %8795 = vmatmul.msk.f32.gmra.mxu3 %vm899_vm2, %v2611_v48 }
 0x832   : > { %v12328_v48 = vpop.permute.xlu1 %4432 }
 0x839   : > { %8810 = vmatmul.msk.f32.vlgmr.msrb.gmra.mxu3 %vm608_vm1, %v15679_v60 }
 0x83a   : > { %3511 = vmatpush.msrb.mxu3 %v9329_v21 }
 0x83c   : > { %3512 = vmatpush.msrb.mxu3 %v9338_v50  ;;  %v12334_v50 = vpop.permute.xlu1 %4506 }
 0x83d   : > { %15688 = vst [vmem:[#allocation26_spill] sm:$0xff] %v12334_v50 }
 0x841   : > { %8811 = vmatmul.msk.f32.gmra.mxu3 %vm608_vm1, %v15680_v33 }
 0x844   : > { %v12338_v19 = vpop.permute.xlu1 %4508 }
 0x845   : > { %15689 = vst [vmem:[#allocation44_spill] sm:$0xff] %v12338_v19 }
 0x849   : > { %8826 = vmatmul.msk.f32.vlgmr.msra.gmra.mxu3 %vm608_vm1, %v15682_v9  ;;  %v12342_v9 = vpop.permute.xlu0 %4586 }
 0x84a   : > { %3651 = vmatpush.msra.mxu3 %v9348_v17  ;;  %15690 = vst [vmem:[#allocation112_spill] sm:$0xff] %v12342_v9 }
 0x84c   : > { %3652 = vmatpush.msra.mxu3 %v9349_v31  ;;  %v12344_v31 = vpop.permute.xlu2 %4545 }
 0x84d   : > { %15691 = vst [vmem:[#allocation102_spill] sm:$0xff] %v12344_v31 }
 0x851   : > { %8827 = vmatmul.msk.f32.gmra.mxu3 %vm608_vm1, %v15683_v15 }
 0x863   : > { %v12320_v23 = vpop.f32.mrf.mxu2 }
 0x864   : > { %15685 = vst [vmem:[#allocation91_spill] sm:$0xff] %v12320_v23  ;;  %v12354_v23 = vpop.permute.xlu2 %4629 }
 0x86b   : > { %v12322_v61 = vpop.f32.mrf.mxu2 }
 0x86c   : > { %15686 = vst [vmem:[#allocation90_spill] sm:$0xff] %v12322_v61  ;;  %v12350_v61 = vpop.permute.xlu1 %4668  ;;  %v12362_v56 = vpop.permute.xlu2 %4623 }
 0x86d   : > { %15692 = vst [vmem:[#allocation34_spill] sm:$0xff] %v12350_v61 }
 0x86e   : > { %15697 = vst [vmem:[#allocation106_spill] sm:$0xff] %v12362_v56 }
 0x873   : > { %v12326_v10 = vpop.f32.mrf.mxu2 }
 0x874   : > { %15687 = vst [vmem:[#allocation89_spill] sm:$0xff] %v12326_v10  ;;  %v12358_v19 = vpop.permute.xlu1 %4469 }
 0x875   : > { %15695 = vst [vmem:[#allocation93_spill] sm:$0xff] %v12358_v19 }
 0x87b   : > { %v12330_v21 = vpop.f32.mrf.mxu2 }
 0x87c   : > { %v3216_v60 = vsel %vm899_vm2, %v12330_v21, -inf  ;;  %v12366_v9 = vpop.permute.xlu1 %4662 }
 0x87d   : > { %3217 = vmax.xlane.f32.xlu2 %v3216_v60  ;;  %v12352_v60 = vpop.permute.xlu0 %4627  ;;  %15699 = vst [vmem:[#allocation117_spill] sm:$0xff] %v12366_v9 }
 0x87e   : > { %15693 = vst [vmem:[#allocation97_spill] sm:$0xff] %v12352_v60 }
 0x883   : > { %v12336_v33 = vpop.f32.mrf.mxu2 }
 0x884   : > { %v12374_v7 = vpop.permute.xlu1 %4547 }
 0x885   : > { %v12360_v50 = vpop.permute.xlu0 %4664  ;;  %15703 = vst [vmem:[#allocation121_spill] sm:$0xff] %v12374_v7 }
 0x886   : > { %15696 = vst [vmem:[#allocation109_spill] sm:$0xff] %v12360_v50 }
 0x88b   : > { %v12340_v17 = vpop.f32.mrf.mxu2 }
 0x88c   : > { %v12384_v56 = vpop.permute.xlu1 %4707  ;;  %v3240_v37 = vsel %vm899_vm2, %v12340_v17, -inf }
 0x88d   : > { %v12370_v61 = vpop.permute.xlu0 %4625  ;;  %15707 = vst [vmem:[#allocation125_spill] sm:$0xff] %v12384_v56 }
 0x88e   : > { %15701 = vst [vmem:[#allocation119_spill] sm:$0xff] %v12370_v61 }
 0x893   : > { %v12346_v15 = vpop.f32.mrf.mxu2 }
 0x894   : > { %v3243_v10 = vsel %vm899_vm2, %v12346_v15, -inf }
 0x895   : > { %3244 = vmax.xlane.f32.xlu1 %v3243_v10  ;;  %v12372_v10 = vpop.permute.xlu2 %4705  ;;  %v12378_v18 = vpop.permute.xlu0 %9396 }
 0x896   : > { %15702 = vst [vmem:[#allocation120_spill] sm:$0xff] %v12372_v10 }
 0x897   : > { %15705 = vst [vmem:[#allocation123_spill] sm:$0xff] %v12378_v18 }
 0x89d   : > { %v12380_v62 = vpop.permute.xlu2 %4703 }
 0x89e   : > { %15706 = vst [vmem:[#allocation124_spill] sm:$0xff] %v12380_v62  ;;  %v12396_v62 = vpop.permute.xlu1 %4701 }
 0x89f   : > { %15709 = vst [vmem:[#allocation127_spill] sm:$0xff] %v12396_v62 }
 0x8a4   : > { %v12364_v31 = vpop.f32.mrf.mxu3 }
 0x8a5   : > { %15698 = vst [vmem:[#allocation108_spill] sm:$0xff] %v12364_v31  ;;  %v12388_v9 = vpop.permute.xlu2 %9391 }
 0x8a6   : > { %15708 = vst [vmem:[#allocation126_spill] sm:$0xff] %v12388_v9  ;;  %v3215_v12 = vpop.xlane.xlu1 %3214 }
 0x8ac   : > { %v12368_v8 = vpop.f32.mrf.mxu3 }
 0x8ad   : > { %15700 = vst [vmem:[#allocation118_spill] sm:$0xff] %v12368_v8  ;;  %v3206_v8 = vpop.xlane.xlu0 %3205  ;;  %v3212_v61 = vpop.xlane.xlu2 %3211 }
 0x8ae   : > { %v3252_v19 = vsub.f32 %v12242_v3, %v3206_v8 }
 0x8b0   : > { %v3268_v9 = vmul.f32 1.442695, %v3252_v19  ;;  %v3209_v19 = vpop.xlane.xlu1 %3208 }
 0x8b2   : > { %9710 = vpow2.f32 %v3268_v9 }
 0x8b4   : > { %v12376_v28 = vpop.f32.mrf.mxu3 }
 0x8b5   : > { %15704 = vst [vmem:[#allocation122_spill] sm:$0xff] %v12376_v28  ;;  %v3219_v28 = vsel %vm899_vm2, %v12336_v33, -inf  ;;  %v3236_v56 = vpop.xlane.xlu0 %3235 }
 0x8bc   : > { %v12382_v50 = vpop.f32.mrf.mxu3 }
 0x8bd   : > { %v3222_v31 = vsel %vm899_vm2, %v12382_v50, -inf  ;;  %v3233_v60 = vpop.xlane.xlu0 %3232 }
 0x8be   : > { %3223 = vmax.xlane.f32.xlu0 %v3222_v31  ;;  %v3254_v31 = vsub.f32 %v12232_v43, %v3212_v61  ;;  %v12412_v61 = vpop.eup %9710 }
 0x8c0   : > { %v3272_v18 = vmul.f32 1.442695, %v3254_v31 }
 0x8c2   : > { %9712 = vpow2.f32 %v3272_v18 }
 0x8c4   : > { %v12390_v10 = vpop.f32.mrf.mxu3 }
 0x8c5   : > { %v3225_v7 = vsel %vm899_vm2, %v12390_v10, -inf }
 0x8c6   : > { %3220 = vmax.xlane.f32.xlu0 %v3219_v28  ;;  %3226 = vmax.xlane.f32.xlu2 %v3225_v7  ;;  %v3255_v28 = vsub.f32 %v12240_v4, %v3215_v12  ;;  %v3261_v7 = vsub.f32 %v12278_v13, %v3233_v60  ;;  %v3253_v4 = vsub.f32 %v12256_v2, %v3209_v19  ;;  %v3300_v13 = vsel %vm899_vm2, %v12412_v61, 0.0 }
 0x8c8   : > { %v3286_v43 = vmul.f32 1.442695, %v3261_v7  ;;  %v12414_v12 = vpop.eup %9712  ;;  %v3270_v9 = vmul.f32 1.442695, %v3253_v4 }
 0x8c9   : > { %v3306_v18 = vsel %vm899_vm2, %v12414_v12, 0.0 }
 0x8cc   : > { %v12400_v47 = vpop.f32.mrf.mxu3 }
 0x8cd   : > { %v3246_v8 = vsel %vm899_vm2, %v12400_v47, -inf }
 0x8ce   : > { %3241 = vmax.xlane.f32.xlu2 %v3240_v37  ;;  %v3274_v37 = vmul.f32 1.442695, %v3255_v28  ;;  %v3262_v28 = vsub.f32 %v12254_v40, %v3236_v56 }
 0x8d0   : > { %9714 = vpow2.f32 %v3274_v37 }
 0x8d1   : > { %9716 = vpow2.f32 %v3286_v43 }
 0x8d2   : > { %9718 = vpow2.f32 %v3270_v9 }
 0x8d4   : > { %v12406_v62 = vpop.f32.mrf.mxu3 }
 0x8d5   : > { %v3249_v3 = vsel %vm899_vm2, %v12406_v62, -inf }
 0x8d6   : > { %3247 = vmax.xlane.f32.xlu2 %v3246_v8  ;;  %3250 = vmax.xlane.f32.xlu0 %v3249_v3  ;;  %v12421_v60 = vpop.eup %9714  ;;  %v3230_v8 = vpop.xlane.xlu1 %3229  ;;  %v3288_v3 = vmul.f32 1.442695, %v3262_v28 }
 0x8d7   : > { %v12423_v31 = vpop.eup %9716  ;;  %v3309_v2 = vsel %vm899_vm2, %v12421_v60, 0.0  ;;  %v3260_v43 = vsub.f32 %v12268_v55, %v3230_v8 }
 0x8d8   : > { %v3327_v7 = vsel %vm899_vm2, %v12423_v31, 0.0  ;;  %v12430_v37 = vpop.eup %9718  ;;  %9720 = vpow2.f32 %v3288_v3 }
 0x8d9   : > { %v3303_v19 = vsel %vm899_vm2, %v12430_v37, 0.0  ;;  %v3284_v56 = vmul.f32 1.442695, %v3260_v43 }
 0x8db   : > { %9722 = vpow2.f32 %v3284_v56 }
 0x8de   : > { %3301 = vadd.xlane.f32.xlu2 %v3300_v13  ;;  %3307 = vadd.xlane.f32.xlu0 %v3306_v18  ;;  %v3239_v4 = vpop.xlane.xlu1 %3238  ;;  %v12436_v18 = vpop.eup %9720 }
 0x8df   : > { %v3263_v28 = vsub.f32 %v12276_v6, %v3239_v4 }
 0x8e1   : > { %v3290_v55 = vmul.f32 1.442695, %v3263_v28 }
 0x8e6   : > { %3310 = vadd.xlane.f32.xlu2 %v3309_v2  ;;  %3328 = vadd.xlane.f32.xlu0 %v3327_v7  ;;  %v3330_v2 = vsel %vm899_vm2, %v12436_v18, 0.0  ;;  %v12441_v7 = vpop.eup %9722 }
 0x8e7   : > { %v3324_v6 = vsel %vm899_vm2, %v12441_v7, 0.0 }
 0x8ee   : > { %3304 = vadd.xlane.f32.xlu2 %v3303_v19 }
 0x8f0   : > { %v3218_v40 = vpop.xlane.xlu2 %3217 }
 0x8f1   : > { %v3256_v13 = vsub.f32 %v12330_v21, %v3218_v40 }
 0x8f3   : > { %v3276_v9 = vmul.f32 1.442695, %v3256_v13 }
 0x8f5   : > { %9724 = vpow2.f32 %v3276_v9 }
 0x8f6   : > { %3331 = vadd.xlane.f32.xlu2 %v3330_v2  ;;  %9726 = vpow2.f32 %v3290_v55 }
 0x8fa   : > { %9406 = vrot.lane.b32.xlu0 %v15570_v34, %s10228_s27 }
 0x8fb   : > { %v12445_v8 = vpop.eup %9724 }
 0x8fc   : > { %v3312_v21 = vsel %vm899_vm2, %v12445_v8, 0.0  ;;  %v12451_v3 = vpop.eup %9726 }
 0x8fd   : > { %3313 = vadd.xlane.f32.xlu1 %v3312_v21  ;;  %v3333_v43 = vsel %vm899_vm2, %v12451_v3, 0.0 }
 0x8fe   : > { %3325 = vadd.xlane.f32.xlu2 %v3324_v6 }
 0x906   : > { %3334 = vadd.xlane.f32.xlu2 %v3333_v43 }
 0x908   : > { %v3245_v43 = vpop.xlane.xlu1 %3244 }
 0x916   : > { %5202 = vrot.lane.b32.xlu1 %v10474_v26, %s10229_s14 }
 0x931   : > { %v3224_v19 = vpop.xlane.xlu0 %3223 }
 0x932   : > { %v3258_v56 = vsub.f32 %v12382_v50, %v3224_v19 }
 0x934   : > { %v3280_v40 = vmul.f32 1.442695, %v3258_v56 }
 0x936   : > { %9728 = vpow2.f32 %v3280_v40 }
 0x939   : > { %v3221_v4 = vpop.xlane.xlu0 %3220  ;;  %v3227_v13 = vpop.xlane.xlu2 %3226 }
 0x93a   : > { %v3257_v9 = vsub.f32 %v12336_v33, %v3221_v4  ;;  %v3259_v28 = vsub.f32 %v12390_v10, %v3227_v13  ;;  %v3265_v33 = vsub.f32 %v12346_v15, %v3245_v43 }
 0x93c   : > { %v12460_v2 = vpop.eup %9728  ;;  %v3278_v55 = vmul.f32 1.442695, %v3257_v9  ;;  %v3282_v21 = vmul.f32 1.442695, %v3259_v28  ;;  %v3294_v9 = vmul.f32 1.442695, %v3265_v33 }
 0x93d   : > { %v3318_v6 = vsel %vm899_vm2, %v12460_v2, 0.0 }
 0x93e   : > { %9730 = vpow2.f32 %v3278_v55  ;;  %3319 = vadd.xlane.f32.xlu2 %v3318_v6 }
 0x93f   : > { %9732 = vpow2.f32 %v3282_v21 }
 0x941   : > { %v3242_v50 = vpop.xlane.xlu2 %3241 }
 0x942   : > { %v3264_v19 = vsub.f32 %v12340_v17, %v3242_v50 }
 0x944   : > { %v12465_v56 = vpop.eup %9730  ;;  %v3292_v40 = vmul.f32 1.442695, %v3264_v19 }
 0x945   : > { %v12468_v10 = vpop.eup %9732  ;;  %v3315_v4 = vsel %vm899_vm2, %v12465_v56, 0.0 }
 0x946   : > { %9734 = vpow2.f32 %v3292_v40  ;;  %3316 = vadd.xlane.f32.xlu2 %v3315_v4  ;;  %v3321_v13 = vsel %vm899_vm2, %v12468_v10, 0.0 }
 0x947   : > { %3322 = vadd.xlane.f32.xlu0 %v3321_v13  ;;  %9736 = vpow2.f32 %v3294_v9 }
 0x949   : > { %v12474_v28 = vpop.xlane.xlu0 %3250  ;;  %v3248_v17 = vpop.xlane.xlu2 %3247 }
 0x94a   : > { %v3266_v55 = vsub.f32 %v12400_v47, %v3248_v17 }
 0x94c   : > { %v12477_v21 = vpop.eup %9734  ;;  %v3296_v15 = vmul.f32 1.442695, %v3266_v55 }
 0x94d   : > { %v3336_v6 = vsel %vm899_vm2, %v12477_v21, 0.0  ;;  %v12481_v19 = vpop.eup %9736 }
 0x94e   : > { %3337 = vadd.xlane.f32.xlu1 %v3336_v6  ;;  %9738 = vpow2.f32 %v3296_v15  ;;  %v3339_v47 = vsel %vm899_vm2, %v12481_v19, 0.0  ;;  %v15710_v15 = vld [vmem:[#allocation115_spill] sm:$0xff]  ;;  %v9400_v6 = vpack.i.bf16 %v10594_v54, %v10546_v42 }
 0x951   : > { %v3308_v43 = vpop.xlane.xlu0 %3307  ;;  %v3302_v50 = vpop.xlane.xlu2 %3301 }
 0x952   : > { %9740 = vrcp.f32 %v3308_v43  ;;  %v15711_v43 = vld [vmem:[#allocation105_spill] sm:$0xff] }
 0x953   : > { %9742 = vrcp.f32 %v3302_v50 }
 0x954   : > { %v12483_v33 = vpop.eup %9738 }
 0x955   : > { %v3342_v40 = vsel %vm899_vm2, %v12483_v33, 0.0 }
 0x956   : > { %3340 = vadd.xlane.f32.xlu1 %v3339_v47  ;;  %3343 = vadd.xlane.f32.xlu0 %v3342_v40 }
 0x958   : > { %v9741_v4 = vpop.eup %9740 }
 0x959   : > { %v9743_v13 = vpop.eup %9742  ;;  %v3366_v9 = vmul.f32 %v9741_v4, %v12414_v12  ;;  %v3311_v17 = vpop.xlane.xlu2 %3310  ;;  %v15712_v12 = vld [vmem:[#allocation96_spill] sm:$0xff] }
 0x95a   : > { %v3364_v55 = vmul.f32 %v9743_v13, %v12412_v61  ;;  %9744 = vrcp.f32 %v3311_v17  ;;  %v9415_v13 = vpack.i.bf16 %v10675_v14, %v10607_v58 }
 0x95b   : > { %8830 = vmatmul.msk.f32.vlgmr.msra.gmra.mxu1 %vm899_vm2, %v3366_v9 }
 0x95c   : > { %8828 = vmatmul.msk.f32.vlgmr.msrb.gmra.mxu0 %vm899_vm2, %v3364_v55  ;;  %8848 = vmatpush.xpose.msk.msra.mxu1 %vm608_vm1, %v15710_v15  ;;  %v3329_v15 = vpop.xlane.xlu0 %3328 }
 0x95d   : > { %8844 = vmatpush.xpose.msk.msrb.mxu0 %vm608_vm1, %v15711_v43 }
 0x95e   : > { %9401 = vrot.lane.b32.xlu2 %v9400_v6, %s10228_s27 }
 0x960   : > { %8849 = vmatpush.xpose.msk.msra.mxu1 %vm608_vm1, %v11911_v53  ;;  %v9745_v61 = vpop.eup %9744 }
 0x961   : > { %8845 = vmatpush.xpose.msk.msrb.mxu0 %vm608_vm1, %v15712_v12  ;;  %v3305_v50 = vpop.xlane.xlu2 %3304  ;;  %v3367_v47 = vmul.f32 %v9745_v61, %v12421_v60 }
 0x962   : > { %9746 = vrcp.f32 %v3305_v50 }
 0x963   : > { %8831 = vmatmul.msk.f32.gmra.mxu1 %vm899_vm2, %v3367_v47 }
 0x968   : > { %v9747_v40 = vpop.eup %9746 }
 0x969   : > { %v3332_v4 = vpop.xlane.xlu2 %3331  ;;  %v3365_v9 = vmul.f32 %v9747_v40, %v12430_v37  ;;  %v3267_v37 = vsub.f32 %v12406_v62, %v12474_v28  ;;  %v15713_v62 = vld [vmem:[#allocation94_spill] sm:$0xff]  ;;  %v15716_v40 = vld [vmem:[#allocation67_spill] sm:$0xff] }
 0x96a   : > { %9748 = vrcp.f32 %v3332_v4  ;;  %9416 = vrot.lane.b32.xlu0 %v9415_v13, %s10228_s27  ;;  %v9368_v4 = vunpack.i.l.bf16 %v15716_v40  ;;  %v15717_v13 = vld [vmem:[#allocation111_spill] sm:$0xff] }
 0x96b   : > { %8829 = vmatmul.msk.f32.gmra.mxu0 %vm899_vm2, %v3365_v9  ;;  %v3298_v61 = vmul.f32 1.442695, %v3267_v37  ;;  %v9354_v9 = vunpack.i.h.bf16 %v11961_v57  ;;  %v9384_v37 = vunpack.i.h.bf16 %v12324_v16 }
 0x96f   : > { %5198 = vrot.lane.b32.xlu1 %v10474_v26, %s10230_s23 }
 0x970   : > { %v9749_v53 = vpop.eup %9748  ;;  %v3314_v60 = vpop.xlane.xlu1 %3313 }
 0x971   : > { %v3374_v17 = vmul.f32 %v9749_v53, %v12436_v18  ;;  %9750 = vrcp.f32 %v3314_v60  ;;  %v3326_v55 = vpop.xlane.xlu2 %3325  ;;  %v15718_v53 = vld [vmem:[#allocation77_spill] sm:$0xff] }
 0x972   : > { %9752 = vrcp.f32 %v3326_v55  ;;  %5196 = vrot.lane.b32.xlu0 %v10462_v22, %s10230_s23  ;;  %v15719_v60 = vld [vmem:[#allocation113_spill] sm:$0xff]  ;;  %v9364_v55 = vunpack.i.h.bf16 %v11955_v36 }
 0x973   : > { %8838 = vmatmul.msk.f32.vlgmr.msrb.gmra.mxu1 %vm899_vm2, %v3374_v17  ;;  %9754 = vrcp.f32 %v3329_v15  ;;  %v9383_v17 = vunpack.i.l.bf16 %v12324_v16  ;;  %v15721_v15 = vld [vmem:[#allocation74_spill] sm:$0xff]  ;;  %v9420_v16 = vpack.i.bf16 %v10630_v0, %v10471_v24 }
 0x974   : > { %8864 = vmatpush.xpose.msk.msrb.mxu1 %vm608_vm1, %v11921_v63 }
 0x977   : > { %v9751_v6 = vpop.eup %9750  ;;  %5354 = vrot.lane.b32.xlu1 %v10594_v54, %s10230_s23 }
 0x978   : > { %v9753_v18 = vpop.eup %9752  ;;  %v3368_v43 = vmul.f32 %v9751_v6, %v12445_v8  ;;  %8865 = vmatpush.xpose.msk.msrb.mxu1 %vm608_vm1, %v11935_v20  ;;  %v15714_v20 = vld [vmem:[#allocation98_spill] sm:$0xff]  ;;  %v9369_v6 = vunpack.i.h.bf16 %v15716_v40 }
 0x979   : > { %v3372_v12 = vmul.f32 %v9753_v18, %v12441_v7  ;;  %v3335_v50 = vpop.xlane.xlu2 %3334  ;;  %v9755_v63 = vpop.eup %9754  ;;  %v15722_v18 = vld [vmem:[#allocation30_spill] sm:$0xff] }
 0x97a   : > { %9756 = vrcp.f32 %v3335_v50  ;;  %8832 = vmatmul.msk.f32.vlgmr.msra.gmra.mxu2 %vm899_vm2, %v3368_v43  ;;  %5280 = vrot.lane.b32.xlu0 %v10564_v46, %s10229_s14  ;;  %v3373_v28 = vmul.f32 %v9755_v63, %v12423_v31  ;;  %v9353_v31 = vunpack.i.l.bf16 %v11961_v57  ;;  %v15720_v57 = vld [vmem:[#allocation52_spill] sm:$0xff] }
 0x97b   : > { %8852 = vmatpush.xpose.msk.msra.mxu2 %vm608_vm1, %v15713_v62  ;;  %8836 = vmatmul.msk.f32.vlgmr.msra.gmra.mxu0 %vm899_vm2, %v3372_v12  ;;  %9758 = vpow2.f32 %v3298_v61  ;;  %v15724_v43 = vld [vmem:[#allocation80_spill] sm:$0xff]  ;;  %v12594_v12 = vpop.permute.xlu0 %9406 }
 0x97c   : > { %8860 = vmatpush.xpose.msk.msra.mxu0 %vm608_vm1, %v11883_v44 }
 0x97f   : > { %8853 = vmatpush.xpose.msk.msra.mxu2 %vm608_vm1, %v15714_v20  ;;  %5391 = vrot.lane.b32.xlu1 %v10630_v0, %s10230_s23 }
 0x980   : > { %v9757_v7 = vpop.eup %9756  ;;  %8861 = vmatpush.xpose.msk.msra.mxu0 %vm608_vm1, %v11877_v30  ;;  %v9363_v30 = vunpack.i.l.bf16 %v11955_v36  ;;  %v15723_v36 = vld [vmem:[#allocation81_spill] sm:$0xff] }
 0x981   : > { %v3375_v8 = vmul.f32 %v9757_v7, %v12451_v3  ;;  %v12543_v47 = vpop.eup %9758  ;;  %v15715_v3 = vld [vmem:[#allocation75_spill] sm:$0xff] }
 0x982   : > { %5241 = vrot.lane.b32.xlu0 %v10533_v39, %s10229_s14  ;;  %v3345_v44 = vsel %vm899_vm2, %v12543_v47, 0.0 }
 0x983   : > { %8839 = vmatmul.msk.f32.gmra.mxu1 %vm899_vm2, %v3375_v8  ;;  %8837 = vmatmul.msk.f32.gmra.mxu0 %vm899_vm2, %v3373_v28  ;;  %v15726_v8 = vld [vmem:[#allocation56_spill] sm:$0xff] }
 0x987   : > { %3346 = vadd.xlane.f32.xlu2 %v3345_v44  ;;  %5475 = vrot.lane.b32.xlu1 %v10524_v38, %s10229_s14  ;;  %v15727_v44 = vld [vmem:[#allocation64_spill] sm:$0xff] }
 0x988   : > { %v12600_v62 = vpop.permute.xlu1 %5202 }
 0x989   : > { %15725 = vst [vmem:[#allocation115_spill] sm:$0xff] %v12600_v62 }
 0x98a   : > { %5358 = vrot.lane.b32.xlu0 %v10594_v54, %s10229_s14 }
 0x98b   : > { %8850 = vmatmul.msk.f32.vlgmr.msra.gmra.mxu1 %vm608_vm1, %v15715_v3  ;;  %8846 = vmatmul.msk.f32.vlgmr.msrb.gmra.mxu0 %vm608_vm1, %v15717_v13 }
 0x98c   : > { %4209 = vmatpush.msra.mxu1 %v9363_v30  ;;  %4174 = vmatpush.msrb.mxu0 %v9353_v31 }
 0x98e   : > { %4210 = vmatpush.msra.mxu1 %v9368_v4  ;;  %4175 = vmatpush.msrb.mxu0 %v9354_v9 }
 0x992   : > { %9426 = vrot.lane.b32.xlu0 %v10559_v45, %s10228_s27 }
 0x993   : > { %8851 = vmatmul.msk.f32.gmra.mxu1 %vm608_vm1, %v15718_v53  ;;  %8847 = vmatmul.msk.f32.gmra.mxu0 %vm608_vm1, %v15719_v60  ;;  %v15729_v53 = vld [vmem:[#allocation73_spill] sm:$0xff] }
 0x99a   : > { %5239 = vrot.lane.b32.xlu0 %v10506_v32, %s10229_s14 }
 0x99b   : > { %8866 = vmatmul.msk.f32.vlgmr.msrb.gmra.mxu1 %vm608_vm1, %v15720_v57  ;;  %8862 = vmatmul.msk.f32.vlgmr.msra.gmra.mxu0 %vm608_vm1, %v15721_v15  ;;  %v15731_v57 = vld [vmem:[#allocation69_spill] sm:$0xff] }
 0x99c   : > { %4349 = vmatpush.msrb.mxu1 %v9383_v17  ;;  %4314 = vmatpush.msra.mxu0 %v9364_v55  ;;  %v15730_v55 = vld [vmem:[#allocation76_spill] sm:$0xff] }
 0x99e   : > { %4350 = vmatpush.msrb.mxu1 %v9384_v37  ;;  %4315 = vmatpush.msra.mxu0 %v9369_v6  ;;  %v15732_v37 = vld [vmem:[#allocation66_spill] sm:$0xff] }
 0x99f   : > { %9411 = vrot.lane.b32.xlu2 %v15722_v18, %s10228_s27  ;;  %v9359_v15 = vunpack.i.h.bf16 %v15732_v37  ;;  %v15734_v6 = vld [vmem:[#allocation70_spill] sm:$0xff] }
 0x9a2   : > { %5356 = vrot.lane.b32.xlu0 %v10585_v52, %s10229_s14 }
 0x9a3   : > { %8867 = vmatmul.msk.f32.gmra.mxu1 %vm608_vm1, %v15723_v36  ;;  %8863 = vmatmul.msk.f32.gmra.mxu0 %vm608_vm1, %v15724_v43 }
 0x9a7   : > { %9421 = vrot.lane.b32.xlu2 %v9420_v16, %s10228_s27  ;;  %v15736_v16 = vld [vmem:[#allocation116_spill] sm:$0xff]  ;;  %s10240_s27 = smov 24  }
 0x9aa   : > { %5274 = vrot.lane.b32.xlu0 %v10546_v42, %s10230_s23 }
 0x9af   : > { %5200 = vrot.lane.b32.xlu2 %v10462_v22, %s10229_s14 }
 0x9b1   : > { %v3320_v61 = vpop.xlane.xlu2 %3319 }
 0x9b2   : > { %9760 = vrcp.f32 %v3320_v61  ;;  %5352 = vrot.lane.b32.xlu0 %v10585_v52, %s10230_s23  ;;  %v9374_v61 = vunpack.i.h.bf16 %v15736_v16 }
 0x9b7   : > { %5278 = vrot.lane.b32.xlu2 %v10546_v42, %s10229_s14 }
 0x9b8   : > { %v9761_v50 = vpop.eup %9760 }
 0x9b9   : > { %v3370_v63 = vmul.f32 %v9761_v50, %v12460_v2  ;;  %v3317_v20 = vpop.xlane.xlu2 %3316  ;;  %v15737_v50 = vld [vmem:[#allocation62_spill] sm:$0xff] }
 0x9ba   : > { %v3323_v7 = vpop.xlane.xlu0 %3322  ;;  %9762 = vrcp.f32 %v3317_v20  ;;  %5319 = vrot.lane.b32.xlu0 %v10571_v49, %s10229_s14 }
 0x9bb   : > { %9764 = vrcp.f32 %v3323_v7  ;;  %8834 = vmatmul.msk.f32.vlgmr.msrb.gmra.mxu3 %vm899_vm2, %v3370_v63  ;;  %v9379_v63 = vunpack.i.h.bf16 %v12059_v59 }
 0x9bc   : > { %8856 = vmatpush.xpose.msk.msrb.mxu3 %vm608_vm1, %v15726_v8 }
 0x9bf   : > { %5235 = vrot.lane.b32.xlu2 %v10506_v32, %s10230_s23 }
 0x9c0   : > { %v9763_v28 = vpop.eup %9762  ;;  %8857 = vmatpush.xpose.msk.msrb.mxu3 %vm608_vm1, %v15727_v44  ;;  %v15739_v44 = vld [vmem:[#allocation61_spill] sm:$0xff] }
 0x9c1   : > { %v9765_v2 = vpop.eup %9764  ;;  %v3338_v30 = vpop.xlane.xlu1 %3337  ;;  %v3369_v31 = vmul.f32 %v9763_v28, %v12465_v56  ;;  %v15728_v56 = vld [vmem:[#allocation49_spill] sm:$0xff] }
 0x9c2   : > { %9766 = vrcp.f32 %v3338_v30  ;;  %v3371_v3 = vmul.f32 %v9765_v2, %v12468_v10  ;;  %5237 = vrot.lane.b32.xlu0 %v10533_v39, %s10230_s23  ;;  %v12670_v8 = vpop.permute.xlu2 %9401 }
 0x9c3   : > { %8833 = vmatmul.msk.f32.gmra.mxu2 %vm899_vm2, %v3369_v31 }
 0x9c4   : > { %8835 = vmatmul.msk.f32.gmra.mxu3 %vm899_vm2, %v3371_v3 }
 0x9c7   : > { %5276 = vrot.lane.b32.xlu2 %v10564_v46, %s10230_s23 }
 0x9c8   : > { %v9767_v40 = vpop.eup %9766 }
 0x9c9   : > { %v3376_v4 = vmul.f32 %v9767_v40, %v12477_v21  ;;  %v3341_v13 = vpop.xlane.xlu1 %3340  ;;  %v3344_v9 = vpop.xlane.xlu0 %3343 }
 0x9ca   : > { %9768 = vrcp.f32 %v3341_v13  ;;  %5317 = vrot.lane.b32.xlu0 %v10607_v58, %s10229_s14 }
 0x9cb   : > { %9770 = vrcp.f32 %v3344_v9  ;;  %8840 = vmatmul.msk.f32.vlgmr.msrb.gmra.mxu2 %vm899_vm2, %v3376_v4 }
 0x9cc   : > { %8868 = vmatpush.xpose.msk.msrb.mxu2 %vm608_vm1, %v15728_v56 }
 0x9cf   : > { %5436 = vrot.lane.b32.xlu2 %v10487_v29, %s10229_s14 }
 0x9d0   : > { %v9769_v10 = vpop.eup %9768  ;;  %8869 = vmatpush.xpose.msk.msrb.mxu2 %vm608_vm1, %v15729_v53 }
 0x9d1   : > { %v9771_v21 = vpop.eup %9770  ;;  %v3377_v60 = vmul.f32 %v9769_v10, %v12481_v19  ;;  %v9358_v19 = vunpack.i.l.bf16 %v15732_v37 }
 0x9d2   : > { %v3378_v17 = vmul.f32 %v9771_v21, %v12483_v33  ;;  %5395 = vrot.lane.b32.xlu0 %v10630_v0, %s10229_s14  ;;  %v15733_v33 = vld [vmem:[#allocation114_spill] sm:$0xff]  ;;  %v9373_v21 = vunpack.i.l.bf16 %v15736_v16 }
 0x9d3   : > { %8841 = vmatmul.msk.f32.gmra.mxu2 %vm899_vm2, %v3377_v60 }
 0x9d4   : > { %8842 = vmatmul.msk.f32.vlgmr.msra.gmra.mxu3 %vm899_vm2, %v3378_v17  ;;  %v15746_v17 = vld [vmem:[#allocation54_spill] sm:$0xff] }
 0x9d5   : > { %8872 = vmatpush.xpose.msk.msra.mxu3 %vm608_vm1, %v15730_v55  ;;  %v9378_v55 = vunpack.i.l.bf16 %v12059_v59 }
 0x9d7   : > { %5397 = vrot.lane.b32.xlu2 %v10675_v14, %s10229_s14 }
 0x9d8   : > { %v12654_v36 = vpop.f32.mrf.mxu1 }
 0x9d9   : > { %8873 = vmatpush.xpose.msk.msra.mxu3 %vm608_vm1, %v15731_v57  ;;  %15735 = vst [vmem:[#allocation105_spill] sm:$0xff] %v12654_v36  ;;  %v12658_v43 = vpop.f32.mrf.mxu0 }
 0x9da   : > { %5430 = vrot.lane.b32.xlu0 %v10471_v24, %s10230_s23 }
 0x9db   : > { %8854 = vmatmul.msk.f32.vlgmr.msra.gmra.mxu2 %vm608_vm1, %v15733_v33 }
 0x9dc   : > { %4244 = vmatpush.msra.mxu2 %v9358_v19  ;;  %v12672_v28 = vpop.permute.xlu0 %9416 }
 0x9de   : > { %4245 = vmatpush.msra.mxu2 %v9359_v15  ;;  %v15747_v15 = vld [vmem:[#allocation82_spill] sm:$0xff] }
 0x9df   : > { %5434 = vrot.lane.b32.xlu2 %v10471_v24, %s10229_s14 }
 0x9e0   : > { %v12666_v20 = vpop.f32.mrf.mxu1 }
 0x9e2   : > { %5432 = vrot.lane.b32.xlu0 %v10487_v29, %s10230_s23 }
 0x9e3   : > { %8855 = vmatmul.msk.f32.gmra.mxu2 %vm608_vm1, %v15734_v6 }
 0x9e4   : > { %v12680_v3 = vpop.permute.xlu0 %5196 }
 0x9e5   : > { %15742 = vst [vmem:[#allocation75_spill] sm:$0xff] %v12680_v3 }
 0x9e7   : > { %5313 = vrot.lane.b32.xlu2 %v10607_v58, %s10230_s23 }
 0x9e8   : > { %v12668_v7 = vpop.f32.mrf.mxu0 }
 0x9e9   : > { %15738 = vst [vmem:[#allocation96_spill] sm:$0xff] %v12668_v7 }
 0x9eb   : > { %8870 = vmatmul.msk.f32.vlgmr.msrb.gmra.mxu2 %vm608_vm1, %v15737_v50 }
 0x9ec   : > { %4384 = vmatpush.msrb.mxu2 %v9374_v61  ;;  %v12688_v56 = vpop.permute.xlu0 %5280  ;;  %v9388_v61 = vunpack.i.l.bf16 %v12176_v1 }
 0x9ed   : > { %15745 = vst [vmem:[#allocation77_spill] sm:$0xff] %v12688_v56 }
 0x9ee   : > { %4385 = vmatpush.msrb.mxu2 %v9379_v63  ;;  %v15749_v63 = vld [vmem:[#allocation84_spill] sm:$0xff] }
 0x9ef   : > { %5315 = vrot.lane.b32.xlu2 %v10571_v49, %s10230_s23 }
 0x9f0   : > { %v12676_v2 = vpop.f32.mrf.mxu1 }
 0x9f1   : > { %15740 = vst [vmem:[#allocation94_spill] sm:$0xff] %v12676_v2 }
 0x9f3   : > { %8871 = vmatmul.msk.f32.gmra.mxu2 %vm608_vm1, %v15739_v44  ;;  %v9389_v44 = vunpack.i.h.bf16 %v12176_v1 }
 0x9f8   : > { %v12678_v30 = vpop.f32.mrf.mxu0 }
 0x9f9   : > { %15741 = vst [vmem:[#allocation98_spill] sm:$0xff] %v12678_v30 }
 0x9fa   : > { %v3347_v31 = vpop.xlane.xlu2 %3346 }
 0x9fb   : > { %9772 = vrcp.f32 %v3347_v31 }
 0xa00   : > { %v12682_v40 = vpop.f32.mrf.mxu1  ;;  %v12684_v13 = vpop.f32.mrf.mxu0 }
 0xa01   : > { %15743 = vst [vmem:[#allocation67_spill] sm:$0xff] %v12682_v40  ;;  %v9773_v4 = vpop.eup %9772 }
 0xa02   : > { %15744 = vst [vmem:[#allocation111_spill] sm:$0xff] %v12684_v13  ;;  %v3379_v9 = vmul.f32 %v9773_v4, %v12543_v47  ;;  %v12700_v47 = vpop.permute.xlu0 %5241  ;;  %v12770_v13 = vpop.permute.xlu1 %5198 }
 0xa03   : > { %15762 = vst [vmem:[#allocation66_spill] sm:$0xff] %v12770_v13 }
 0xa04   : > { %8843 = vmatmul.msk.f32.gmra.mxu3 %vm899_vm2, %v3379_v9 }
 0xa08   : > { %v12690_v10 = vpop.f32.mrf.mxu1  ;;  %v12692_v53 = vpop.f32.mrf.mxu0 }
 0xa09   : > { %v3978_v60 = vsel %vm899_vm2, %v12690_v10, -inf  ;;  %v3972_v33 = vsel %vm899_vm2, %v12692_v53, -inf }
 0xa0a   : > { %v12716_v16 = vpop.permute.xlu0 %5358 }
 0xa0b   : > { %15748 = vst [vmem:[#allocation113_spill] sm:$0xff] %v12716_v16 }
 0xa0c   : > { %8858 = vmatmul.msk.f32.vlgmr.msrb.gmra.mxu3 %vm608_vm1, %v15746_v17  ;;  %3979 = vmax.xlane.f32.xlu0 %v3978_v60  ;;  %v15750_v17 = vld [vmem:[#allocation53_spill] sm:$0xff] }
 0xa0d   : > { %4279 = vmatpush.msrb.mxu3 %v9373_v21 }
 0xa0f   : > { %4280 = vmatpush.msrb.mxu3 %v9378_v55 }
 0xa10   : > { %v12702_v57 = vpop.f32.mrf.mxu1  ;;  %v12704_v37 = vpop.f32.mrf.mxu0 }
 0xa11   : > { %v3975_v19 = vsel %vm899_vm2, %v12704_v37, -inf  ;;  %v3981_v50 = vsel %vm899_vm2, %v12702_v57, -inf }
 0xa12   : > { %3976 = vmax.xlane.f32.xlu1 %v3975_v19  ;;  %v12732_v60 = vpop.permute.xlu0 %9426 }
 0xa14   : > { %8859 = vmatmul.msk.f32.gmra.mxu3 %vm608_vm1, %v15747_v15  ;;  %3973 = vmax.xlane.f32.xlu0 %v3972_v33  ;;  %v12744_v15 = vpop.f32.mrf.mxu2 }
 0xa15   : > { %15753 = vst [vmem:[#allocation30_spill] sm:$0xff] %v12744_v15 }
 0xa18   : > { %v12712_v59 = vpop.f32.mrf.mxu1  ;;  %v12724_v31 = vpop.f32.mrf.mxu0 }
 0xa19   : > { %v4002_v6 = vsel %vm899_vm2, %v12712_v59, -inf  ;;  %v3996_v21 = vsel %vm899_vm2, %v12724_v31, -inf }
 0xa1a   : > { %4003 = vmax.xlane.f32.xlu1 %v4002_v6  ;;  %v12740_v19 = vpop.permute.xlu0 %5239  ;;  %v12746_v6 = vpop.permute.xlu2 %9411 }
 0xa1b   : > { %15751 = vst [vmem:[#allocation52_spill] sm:$0xff] %v12740_v19 }
 0xa1c   : > { %8874 = vmatmul.msk.f32.vlgmr.msra.gmra.mxu3 %vm608_vm1, %v15749_v63  ;;  %3982 = vmax.xlane.f32.xlu0 %v3981_v50 }
 0xa1d   : > { %4419 = vmatpush.msra.mxu3 %v9388_v61 }
 0xa1f   : > { %4420 = vmatpush.msra.mxu3 %v9389_v44 }
 0xa20   : > { %v12726_v4 = vpop.f32.mrf.mxu1  ;;  %v12736_v1 = vpop.f32.mrf.mxu0 }
 0xa21   : > { %v4005_v9 = vsel %vm899_vm2, %v12726_v4, -inf  ;;  %v3999_v55 = vsel %vm899_vm2, %v12736_v1, -inf }
 0xa22   : > { %4006 = vmax.xlane.f32.xlu2 %v4005_v9  ;;  %3997 = vmax.xlane.f32.xlu1 %v3996_v21  ;;  %v12742_v33 = vpop.permute.xlu0 %5356  ;;  %v12752_v63 = vpop.permute.xlu2 %9421 }
 0xa23   : > { %15752 = vst [vmem:[#allocation74_spill] sm:$0xff] %v12742_v33 }
 0xa24   : > { %8875 = vmatmul.msk.f32.gmra.mxu3 %vm608_vm1, %v15750_v17 }
 0xa2a   : > { %4000 = vmax.xlane.f32.xlu1 %v3999_v55  ;;  %v12748_v61 = vpop.permute.xlu0 %5274  ;;  %v12758_v21 = vpop.permute.xlu2 %5200 }
 0xa2b   : > { %15754 = vst [vmem:[#allocation81_spill] sm:$0xff] %v12748_v61  ;;  %v12778_v61 = vpop.permute.xlu1 %5354 }
 0xa2c   : > { %15758 = vst [vmem:[#allocation49_spill] sm:$0xff] %v12758_v21 }
 0xa2d   : > { %15765 = vst [vmem:[#allocation116_spill] sm:$0xff] %v12778_v61 }
 0xa32   : > { %v12754_v44 = vpop.permute.xlu0 %5352  ;;  %v12766_v2 = vpop.permute.xlu2 %5278 }
 0xa33   : > { %15756 = vst [vmem:[#allocation56_spill] sm:$0xff] %v12754_v44  ;;  %v12790_v36 = vpop.permute.xlu1 %5391 }
 0xa34   : > { %15761 = vst [vmem:[#allocation69_spill] sm:$0xff] %v12766_v2 }
 0xa35   : > { %15769 = vst [vmem:[#allocation82_spill] sm:$0xff] %v12790_v36 }
 0xa3a   : > { %v12760_v17 = vpop.permute.xlu0 %5319 }
 0xa3b   : > { %15759 = vst [vmem:[#allocation73_spill] sm:$0xff] %v12760_v17  ;;  %v12802_v61 = vpop.permute.xlu1 %5475 }
 0xa3c   : > { %15773 = vst [vmem:[#allocation129_spill] sm:$0xff] %v12802_v61 }
 0xa42   : > { %v12772_v15 = vpop.permute.xlu0 %5237 }
 0xa43   : > { %15763 = vst [vmem:[#allocation114_spill] sm:$0xff] %v12772_v15 }
 0xa46   : > { %v12750_v50 = vpop.f32.mrf.mxu2 }
 0xa47   : > { %15755 = vst [vmem:[#allocation80_spill] sm:$0xff] %v12750_v50 }
 0xa4a   : > { %v12780_v7 = vpop.permute.xlu0 %5317 }
 0xa4b   : > { %15766 = vst [vmem:[#allocation62_spill] sm:$0xff] %v12780_v7 }
 0xa4e   : > { %v12756_v9 = vpop.f32.mrf.mxu2 }
 0xa4f   : > { %15757 = vst [vmem:[#allocation64_spill] sm:$0xff] %v12756_v9  ;;  %v12776_v9 = vpop.permute.xlu2 %5235 }
 0xa50   : > { %15764 = vst [vmem:[#allocation70_spill] sm:$0xff] %v12776_v9 }
 0xa56   : > { %v12762_v55 = vpop.f32.mrf.mxu2 }
 0xa57   : > { %15760 = vst [vmem:[#allocation76_spill] sm:$0xff] %v12762_v55  ;;  %v12782_v55 = vpop.f32.mrf.mxu3  ;;  %v12788_v56 = vpop.permute.xlu2 %5276 }
 0xa58   : > { %15767 = vst [vmem:[#allocation61_spill] sm:$0xff] %v12782_v55 }
 0xa59   : > { %15768 = vst [vmem:[#allocation54_spill] sm:$0xff] %v12788_v56 }
 0xa5e   : > { %v12764_v40 = vpop.f32.mrf.mxu2 }
 0xa5f   : > { %v3984_v30 = vsel %vm899_vm2, %v12764_v40, -inf  ;;  %v12796_v13 = vpop.f32.mrf.mxu3  ;;  %v12800_v55 = vpop.permute.xlu2 %5436 }
 0xa60   : > { %3985 = vmax.xlane.f32.xlu2 %v3984_v30  ;;  %v12792_v30 = vpop.permute.xlu0 %5395  ;;  %15771 = vst [vmem:[#allocation53_spill] sm:$0xff] %v12796_v13 }
 0xa61   : > { %15770 = vst [vmem:[#allocation84_spill] sm:$0xff] %v12792_v30 }
 0xa62   : > { %15772 = vst [vmem:[#allocation128_spill] sm:$0xff] %v12800_v55 }
 0xa66   : > { %v12774_v50 = vpop.f32.mrf.mxu2 }
 0xa67   : > { %v12808_v36 = vpop.permute.xlu2 %5397 }
 0xa68   : > { %v12804_v15 = vpop.permute.xlu0 %5430  ;;  %15776 = vst [vmem:[#allocation132_spill] sm:$0xff] %v12808_v36 }
 0xa69   : > { %15774 = vst [vmem:[#allocation130_spill] sm:$0xff] %v12804_v15 }
 0xa6e   : > { %v12784_v17 = vpop.f32.mrf.mxu2 }
 0xa6f   : > { %v4008_v2 = vsel %vm899_vm2, %v12784_v17, -inf  ;;  %v12818_v55 = vpop.permute.xlu2 %5434 }
 0xa70   : > { %4009 = vmax.xlane.f32.xlu0 %v4008_v2  ;;  %v12806_v2 = vpop.f32.mrf.mxu3  ;;  %v12812_v9 = vpop.permute.xlu0 %5432  ;;  %15779 = vst [vmem:[#allocation135_spill] sm:$0xff] %v12818_v55 }
 0xa71   : > { %15775 = vst [vmem:[#allocation131_spill] sm:$0xff] %v12806_v2 }
 0xa72   : > { %15778 = vst [vmem:[#allocation134_spill] sm:$0xff] %v12812_v9 }
 0xa76   : > { %v12794_v44 = vpop.f32.mrf.mxu2 }
 0xa77   : > { %v4011_v7 = vsel %vm899_vm2, %v12794_v44, -inf  ;;  %v12826_v21 = vpop.permute.xlu2 %5313 }
 0xa78   : > { %4012 = vmax.xlane.f32.xlu0 %v4011_v7  ;;  %15780 = vst [vmem:[#allocation136_spill] sm:$0xff] %v12826_v21 }
 0xa7f   : > { %v3980_v16 = vpop.xlane.xlu0 %3979 }
 0xa80   : > { %v4022_v61 = vsub.f32 %v12690_v10, %v3980_v16 }
 0xa82   : > { %v4040_v9 = vmul.f32 1.442695, %v4022_v61 }
 0xa84   : > { %9774 = vpow2.f32 %v4040_v9 }
 0xa85   : > { %v3977_v56 = vpop.xlane.xlu1 %3976 }
 0xa86   : > { %v4021_v55 = vsub.f32 %v12704_v37, %v3977_v56  ;;  %v12840_v56 = vpop.permute.xlu2 %5315 }
 0xa87   : > { %v12810_v3 = vpop.f32.mrf.mxu3  ;;  %v3974_v36 = vpop.xlane.xlu0 %3973  ;;  %15781 = vst [vmem:[#allocation137_spill] sm:$0xff] %v12840_v56 }
 0xa88   : > { %15777 = vst [vmem:[#allocation133_spill] sm:$0xff] %v12810_v3  ;;  %v3987_v3 = vsel %vm899_vm2, %v12774_v50, -inf }
 0xa8d   : > { %v4004_v13 = vpop.xlane.xlu1 %4003 }
 0xa8f   : > { %v12814_v33 = vpop.f32.mrf.mxu3 }
 0xa90   : > { %v3990_v7 = vsel %vm899_vm2, %v12814_v33, -inf }
 0xa91   : > { %3991 = vmax.xlane.f32.xlu2 %v3990_v7  ;;  %v4020_v7 = vsub.f32 %v12692_v53, %v3974_v36  ;;  %v4030_v53 = vsub.f32 %v12712_v59, %v4004_v13 }
 0xa93   : > { %v4036_v61 = vmul.f32 1.442695, %v4020_v7 }
 0xa95   : > { %v3998_v2 = vpop.xlane.xlu1 %3997  ;;  %v4007_v13 = vpop.xlane.xlu2 %4006 }
 0xa96   : > { %v4028_v15 = vsub.f32 %v12724_v31, %v3998_v2  ;;  %v12836_v2 = vpop.eup %9774 }
 0xa97   : > { %v12822_v30 = vpop.f32.mrf.mxu3  ;;  %v4074_v37 = vsel %vm899_vm2, %v12836_v2, 0.0 }
 0xa98   : > { %v4052_v62 = vmul.f32 1.442695, %v4028_v15  ;;  %v3993_v16 = vsel %vm899_vm2, %v12822_v30, -inf  ;;  %v3983_v15 = vpop.xlane.xlu0 %3982 }
 0xa99   : > { %3988 = vmax.xlane.f32.xlu2 %v3987_v3  ;;  %v4038_v3 = vmul.f32 1.442695, %v4021_v55 }
 0xa9a   : > { %9776 = vpow2.f32 %v4052_v62  ;;  %v4023_v62 = vsub.f32 %v12702_v57, %v3983_v15  ;;  %v4056_v57 = vmul.f32 1.442695, %v4030_v53  ;;  %v4031_v15 = vsub.f32 %v12726_v4, %v4007_v13 }
 0xa9b   : > { %9778 = vpow2.f32 %v4038_v3 }
 0xa9c   : > { %9780 = vpow2.f32 %v4036_v61  ;;  %v4058_v53 = vmul.f32 1.442695, %v4031_v15 }
 0xa9d   : > { %v4001_v3 = vpop.xlane.xlu1 %4000 }
 0xa9e   : > { %v4029_v59 = vsub.f32 %v12736_v1, %v4001_v3 }
 0xa9f   : > { %v12830_v10 = vpop.f32.mrf.mxu3 }
 0xaa0   : > { %v4014_v31 = vsel %vm899_vm2, %v12830_v10, -inf  ;;  %v12838_v9 = vpop.eup %9776 }
 0xaa1   : > { %3994 = vmax.xlane.f32.xlu2 %v3993_v16  ;;  %4015 = vmax.xlane.f32.xlu1 %v4014_v31  ;;  %v4092_v55 = vsel %vm899_vm2, %v12838_v9, 0.0  ;;  %v4042_v16 = vmul.f32 1.442695, %v4023_v62  ;;  %v12852_v31 = vpop.eup %9778 }
 0xaa2   : > { %v12854_v61 = vpop.eup %9780  ;;  %v4071_v62 = vsel %vm899_vm2, %v12852_v31, 0.0 }
 0xaa3   : > { %9782 = vpow2.f32 %v4042_v16  ;;  %v4068_v56 = vsel %vm899_vm2, %v12854_v61, 0.0 }
 0xaa4   : > { %9784 = vpow2.f32 %v4056_v57 }
 0xaa7   : > { %v12843_v36 = vpop.f32.mrf.mxu3 }
 0xaa8   : > { %v4017_v7 = vsel %vm899_vm2, %v12843_v36, -inf }
 0xaa9   : > { %4075 = vadd.xlane.f32.xlu2 %v4074_v37  ;;  %4093 = vadd.xlane.f32.xlu1 %v4092_v55  ;;  %v4054_v37 = vmul.f32 1.442695, %v4029_v59  ;;  %v12862_v55 = vpop.eup %9782 }
 0xaaa   : > { %4018 = vmax.xlane.f32.xlu0 %v4017_v7  ;;  %v12864_v7 = vpop.eup %9784  ;;  %v4077_v1 = vsel %vm899_vm2, %v12862_v55, 0.0 }
 0xaab   : > { %9786 = vpow2.f32 %v4054_v37  ;;  %v4098_v4 = vsel %vm899_vm2, %v12864_v7, 0.0 }
 0xaac   : > { %9788 = vpow2.f32 %v4058_v53 }
 0xab1   : > { %4069 = vadd.xlane.f32.xlu2 %v4068_v56  ;;  %v12870_v56 = vpop.eup %9786 }
 0xab2   : > { %4072 = vadd.xlane.f32.xlu0 %v4071_v62  ;;  %v12872_v16 = vpop.eup %9788  ;;  %v4095_v57 = vsel %vm899_vm2, %v12870_v56, 0.0  ;;  %v15782_v62 = vld [vmem:[#allocation22_spill] sm:$0xff] }
 0xab3   : > { %v4101_v3 = vsel %vm899_vm2, %v12872_v16, 0.0 }
 0xab9   : > { %4078 = vadd.xlane.f32.xlu2 %v4077_v1 }
 0xaba   : > { %4099 = vadd.xlane.f32.xlu0 %v4098_v4 }
 0xac1   : > { %4096 = vadd.xlane.f32.xlu2 %v4095_v57 }
 0xac2   : > { %4102 = vadd.xlane.f32.xlu0 %v4101_v3  ;;  %5469 = vrot.lane.b32.xlu1 %v10515_v35, %s10230_s23 }
 0xaca   : > { %9431 = vrot.lane.b32.xlu1 %v10480_v27, %s10231_s18 }
 0xad2   : > { %5970 = vrot.lane.b32.xlu1 %v10474_v26, %s10232_s19 }
 0xad3   : > { %v3986_v13 = vpop.xlane.xlu2 %3985 }
 0xad4   : > { %v4024_v59 = vsub.f32 %v12764_v40, %v3986_v13 }
 0xad6   : > { %v4044_v15 = vmul.f32 1.442695, %v4024_v59 }
 0xad8   : > { %9790 = vpow2.f32 %v4044_v15 }
 0xada   : > { %9461 = vrot.lane.b32.xlu1 %v15782_v62, %s10231_s18 }
 0xade   : > { %v12887_v37 = vpop.eup %9790 }
 0xadf   : > { %v4080_v53 = vsel %vm899_vm2, %v12887_v37, 0.0 }
 0xae0   : > { %4081 = vadd.xlane.f32.xlu2 %v4080_v53 }
 0xae3   : > { %v4010_v3 = vpop.xlane.xlu0 %4009 }
 0xaeb   : > { %v12897_v53 = vpop.xlane.xlu0 %4012 }
 0xb04   : > { %v3992_v1 = vpop.xlane.xlu2 %3991 }
 0xb05   : > { %v4026_v4 = vsub.f32 %v12814_v33, %v3992_v1 }
 0xb07   : > { %v4048_v57 = vmul.f32 1.442695, %v4026_v4 }
 0xb09   : > { %9792 = vpow2.f32 %v4048_v57 }
 0xb0c   : > { %v3989_v21 = vpop.xlane.xlu2 %3988 }
 0xb0d   : > { %v4025_v40 = vsub.f32 %v12774_v50, %v3989_v21  ;;  %v4032_v21 = vsub.f32 %v12784_v17, %v4010_v3 }
 0xb0f   : > { %v12893_v13 = vpop.eup %9792  ;;  %v4046_v59 = vmul.f32 1.442695, %v4025_v40 }
 0xb10   : > { %v4086_v15 = vsel %vm899_vm2, %v12893_v13, 0.0 }
 0xb11   : > { %9794 = vpow2.f32 %v4046_v59  ;;  %4087 = vadd.xlane.f32.xlu0 %v4086_v15  ;;  %v4060_v59 = vmul.f32 1.442695, %v4032_v21 }
 0xb14   : > { %v4016_v62 = vpop.xlane.xlu1 %4015  ;;  %v3995_v27 = vpop.xlane.xlu2 %3994 }
 0xb15   : > { %v4034_v33 = vsub.f32 %v12830_v10, %v4016_v62  ;;  %v4027_v1 = vsub.f32 %v12822_v30, %v3995_v27 }
 0xb17   : > { %v12901_v4 = vpop.eup %9794  ;;  %v4064_v57 = vmul.f32 1.442695, %v4034_v33  ;;  %v4050_v50 = vmul.f32 1.442695, %v4027_v1 }
 0xb18   : > { %v4083_v40 = vsel %vm899_vm2, %v12901_v4, 0.0 }
 0xb19   : > { %9796 = vpow2.f32 %v4064_v57  ;;  %4084 = vadd.xlane.f32.xlu2 %v4083_v40 }
 0xb1a   : > { %9798 = vpow2.f32 %v4050_v50 }
 0xb1c   : > { %v4076_v15 = vpop.xlane.xlu2 %4075 }
 0xb1d   : > { %v12906_v19 = vpop.xlane.xlu0 %4018  ;;  %9800 = vrcp.f32 %v4076_v15 }
 0xb1e   : > { %9802 = vpow2.f32 %v4060_v59  ;;  %v15783_v59 = vld [vmem:[#allocation31_spill] sm:$0xff] }
 0xb1f   : > { %v12908_v10 = vpop.eup %9796 }
 0xb20   : > { %v12910_v27 = vpop.eup %9798  ;;  %v4110_v30 = vsel %vm899_vm2, %v12908_v10, 0.0 }
 0xb21   : > { %4111 = vadd.xlane.f32.xlu1 %v4110_v30  ;;  %v4089_v17 = vsel %vm899_vm2, %v12910_v27, 0.0 }
 0xb22   : > { %4090 = vadd.xlane.f32.xlu2 %v4089_v17 }
 0xb23   : > { %v9801_v3 = vpop.eup %9800 }
 0xb24   : > { %v4070_v62 = vpop.xlane.xlu2 %4069  ;;  %v4134_v33 = vmul.f32 %v9801_v3, %v12836_v2  ;;  %v12919_v57 = vpop.eup %9802  ;;  %v15784_v3 = vld [vmem:[#allocation18_spill] sm:$0xff] }
 0xb25   : > { %v4073_v1 = vpop.xlane.xlu0 %4072  ;;  %9804 = vrcp.f32 %v4070_v62  ;;  %5473 = vrot.lane.b32.xlu0 %v10515_v35, %s10229_s14  ;;  %v4104_v50 = vsel %vm899_vm2, %v12919_v57, 0.0  ;;  %s10241_s14 = smov 28  }
 0xb26   : > { %8878 = vmatmul.msk.f32.vlgmr.msra.gmra.mxu1 %vm899_vm2, %v4134_v33  ;;  %9806 = vrcp.f32 %v4073_v1 }
 0xb27   : > { %8896 = vmatpush.xpose.msk.msra.mxu1 %vm608_vm1, %v12194_v25  ;;  %v4094_v25 = vpop.xlane.xlu1 %4093 }
 0xb2a   : > { %4105 = vadd.xlane.f32.xlu2 %v4104_v50 }
 0xb2b   : > { %v9805_v21 = vpop.eup %9804  ;;  %8897 = vmatpush.xpose.msk.msra.mxu1 %vm608_vm1, %v12196_v51 }
 0xb2c   : > { %v4132_v2 = vmul.f32 %v9805_v21, %v12854_v61  ;;  %v4079_v40 = vpop.xlane.xlu2 %4078  ;;  %v9807_v30 = vpop.eup %9806 }
 0xb2d   : > { %9808 = vrcp.f32 %v4079_v40  ;;  %9436 = vrot.lane.b32.xlu0 %v15783_v59, %s10231_s18  ;;  %v4100_v15 = vpop.xlane.xlu0 %4099  ;;  %v4133_v51 = vmul.f32 %v9807_v30, %v12852_v31  ;;  %v15788_v59 = vld [vmem:[#allocation110_spill] sm:$0xff]  ;;  %v4033_v30 = vsub.f32 %v12794_v44, %v12897_v53  ;;  %v9419_v44 = vunpack.i.h.bf16 %v12672_v28  ;;  %v15793_v53 = vld [vmem:[#allocation100_spill] sm:$0xff] }
 0xb2e   : > { %8876 = vmatmul.msk.f32.vlgmr.msrb.gmra.mxu0 %vm899_vm2, %v4132_v2  ;;  %9810 = vrcp.f32 %v4094_v25  ;;  %v15787_v2 = vld [vmem:[#allocation126_spill] sm:$0xff] }
 0xb2f   : > { %8892 = vmatpush.xpose.msk.msrb.mxu0 %vm608_vm1, %v12067_v5  ;;  %9812 = vrcp.f32 %v4100_v15  ;;  %v9393_v40 = vunpack.i.l.bf16 %v15787_v2  ;;  %v4035_v15 = vsub.f32 %v12843_v36, %v12906_v19  ;;  %v15792_v19 = vld [vmem:[#allocation32_spill] sm:$0xff]  ;;  %v9404_v36 = vunpack.i.h.bf16 %v12670_v8 }
 0xb33   : > { %v9809_v17 = vpop.eup %9808  ;;  %8893 = vmatpush.xpose.msk.msrb.mxu0 %vm608_vm1, %v12328_v48 }
 0xb34   : > { %v4135_v61 = vmul.f32 %v9809_v17, %v12862_v55  ;;  %v4097_v62 = vpop.xlane.xlu2 %4096  ;;  %v9811_v5 = vpop.eup %9810  ;;  %v4066_v17 = vmul.f32 1.442695, %v4035_v15 }
 0xb35   : > { %9446 = vrot.lane.b32.xlu0 %v15784_v3, %s10231_s18  ;;  %v4103_v33 = vpop.xlane.xlu0 %4102  ;;  %v9813_v1 = vpop.eup %9812  ;;  %9814 = vrcp.f32 %v4097_v62  ;;  %v4140_v48 = vmul.f32 %v9811_v5, %v12838_v9  ;;  %v15785_v9 = vld [vmem:[#allocation97_spill] sm:$0xff]  ;;  %v4062_v62 = vmul.f32 1.442695, %v4033_v30 }
 0xb36   : > { %8877 = vmatmul.msk.f32.gmra.mxu0 %vm899_vm2, %v4133_v51  ;;  %8879 = vmatmul.msk.f32.gmra.mxu1 %vm899_vm2, %v4135_v61  ;;  %9816 = vrcp.f32 %v4103_v33  ;;  %v4142_v31 = vmul.f32 %v9813_v1, %v12864_v7  ;;  %v15790_v51 = vld [vmem:[#allocation85_spill] sm:$0xff]  ;;  %v15794_v33 = vld [vmem:[#allocation99_spill] sm:$0xff]  ;;  %v9409_v1 = vunpack.i.h.bf16 %v12594_v12 }
 0xb37   : > { %v15791_v61 = vld [vmem:[#allocation93_spill] sm:$0xff] }
 0xb3a   : > { %6009 = vrot.lane.b32.xlu1 %v10533_v39, %s10232_s19 }
 0xb3b   : > { %v9815_v55 = vpop.eup %9814 }
 0xb3c   : > { %v9817_v50 = vpop.eup %9816  ;;  %v4141_v7 = vmul.f32 %v9815_v55, %v12870_v56  ;;  %v9394_v56 = vunpack.i.h.bf16 %v15787_v2 }
 0xb3d   : > { %5968 = vrot.lane.b32.xlu0 %v10462_v22, %s10232_s19  ;;  %v4143_v21 = vmul.f32 %v9817_v50, %v12872_v16  ;;  %v9408_v16 = vunpack.i.l.bf16 %v12594_v12  ;;  %v15796_v50 = vld [vmem:[#allocation103_spill] sm:$0xff] }
 0xb3e   : > { %8884 = vmatmul.msk.f32.vlgmr.msra.gmra.mxu0 %vm899_vm2, %v4140_v48  ;;  %8886 = vmatmul.msk.f32.vlgmr.msrb.gmra.mxu1 %vm899_vm2, %v4142_v31  ;;  %v15795_v48 = vld [vmem:[#allocation106_spill] sm:$0xff]  ;;  %v9424_v31 = vunpack.i.h.bf16 %v12752_v63 }
 0xb3f   : > { %8908 = vmatpush.xpose.msk.msra.mxu0 %vm608_vm1, %v12200_v11  ;;  %8912 = vmatpush.xpose.msk.msrb.mxu1 %vm608_vm1, %v12354_v23  ;;  %v15786_v11 = vld [vmem:[#allocation123_spill] sm:$0xff] }
 0xb40   : > { %v9399_v23 = vunpack.i.h.bf16 %v15786_v11 }
 0xb42   : > { %5393 = vrot.lane.b32.xlu2 %v10675_v14, %s10230_s23 }
 0xb43   : > { %8909 = vmatpush.xpose.msk.msra.mxu0 %vm608_vm1, %v12208_v41  ;;  %8913 = vmatpush.xpose.msk.msrb.mxu1 %vm608_vm1, %v15785_v9  ;;  %v15789_v41 = vld [vmem:[#allocation101_spill] sm:$0xff]  ;;  %v15797_v9 = vld [vmem:[#allocation112_spill] sm:$0xff] }
 0xb46   : > { %8885 = vmatmul.msk.f32.gmra.mxu0 %vm899_vm2, %v4141_v7  ;;  %8887 = vmatmul.msk.f32.gmra.mxu1 %vm899_vm2, %v4143_v21  ;;  %v15798_v21 = vld [vmem:[#allocation119_spill] sm:$0xff] }
 0xb4a   : > { %5471 = vrot.lane.b32.xlu2 %v10524_v38, %s10230_s23 }
 0xb4e   : > { %8894 = vmatmul.msk.f32.vlgmr.msrb.gmra.mxu0 %vm608_vm1, %v15788_v59  ;;  %8898 = vmatmul.msk.f32.vlgmr.msra.gmra.mxu1 %vm608_vm1, %v15789_v41  ;;  %v15800_v41 = vld [vmem:[#allocation104_spill] sm:$0xff] }
 0xb4f   : > { %4942 = vmatpush.msrb.mxu0 %v9393_v40  ;;  %4977 = vmatpush.msra.mxu1 %v9399_v23  ;;  %v15799_v40 = vld [vmem:[#allocation42_spill] sm:$0xff] }
 0xb51   : > { %4943 = vmatpush.msrb.mxu0 %v9394_v56  ;;  %4978 = vmatpush.msra.mxu1 %v9408_v16 }
 0xb52   : > { %9441 = vrot.lane.b32.xlu2 %v15570_v34, %s10231_s18 }
 0xb53   : > { %v4082_v25 = vpop.xlane.xlu2 %4081 }
 0xb54   : > { %9818 = vrcp.f32 %v4082_v25 }
 0xb55   : > { %9820 = vpow2.f32 %v4066_v17 }
 0xb56   : > { %8895 = vmatmul.msk.f32.gmra.mxu0 %vm608_vm1, %v15790_v51  ;;  %8899 = vmatmul.msk.f32.gmra.mxu1 %vm608_vm1, %v15791_v61  ;;  %9822 = vpow2.f32 %v4062_v62  ;;  %v15802_v51 = vld [vmem:[#allocation125_spill] sm:$0xff] }
 0xb5a   : > { %v9819_v5 = vpop.eup %9818  ;;  %9451 = vrot.lane.b32.xlu2 %v15792_v19, %s10231_s18 }
 0xb5b   : > { %v4136_v34 = vmul.f32 %v9819_v5, %v12887_v37  ;;  %v12997_v37 = vpop.eup %9820 }
 0xb5c   : > { %v13002_v55 = vpop.eup %9822  ;;  %v4113_v12 = vsel %vm899_vm2, %v12997_v37, 0.0 }
 0xb5d   : > { %8880 = vmatmul.msk.f32.vlgmr.msra.gmra.mxu2 %vm899_vm2, %v4136_v34  ;;  %v4107_v7 = vsel %vm899_vm2, %v13002_v55, 0.0 }
 0xb5e   : > { %8900 = vmatpush.xpose.msk.msra.mxu2 %vm608_vm1, %v15793_v53  ;;  %8910 = vmatmul.msk.f32.vlgmr.msra.gmra.mxu0 %vm608_vm1, %v15794_v33 }
 0xb5f   : > { %8914 = vmatmul.msk.f32.vlgmr.msrb.gmra.mxu1 %vm608_vm1, %v15795_v48  ;;  %5082 = vmatpush.msra.mxu0 %v9404_v36 }
 0xb60   : > { %5117 = vmatpush.msrb.mxu1 %v9419_v44 }
 0xb61   : > { %5083 = vmatpush.msra.mxu0 %v9409_v1 }
 0xb62   : > { %5118 = vmatpush.msrb.mxu1 %v9424_v31  ;;  %5964 = vrot.lane.b32.xlu2 %v10462_v22, %s10233_s24  ;;  %v13018_v22 = vpop.permute.xlu1 %5469 }
 0xb63   : > { %8901 = vmatpush.xpose.msk.msra.mxu2 %vm608_vm1, %v15796_v50 }
 0xb64   : > { %4114 = vadd.xlane.f32.xlu1 %v4113_v12 }
 0xb66   : > { %8911 = vmatmul.msk.f32.gmra.mxu0 %vm608_vm1, %v15797_v9 }
 0xb67   : > { %8915 = vmatmul.msk.f32.gmra.mxu1 %vm608_vm1, %v15798_v21  ;;  %4108 = vadd.xlane.f32.xlu0 %v4107_v7 }
 0xb6a   : > { %9456 = vrot.lane.b32.xlu2 %v15722_v18, %s10231_s18  ;;  %v13024_v23 = vpop.permute.xlu1 %9431 }
 0xb72   : > { %6007 = vrot.lane.b32.xlu2 %v10506_v32, %s10232_s19  ;;  %v13034_v2 = vpop.permute.xlu1 %5970 }
 0xb7a   : > { %6046 = vrot.lane.b32.xlu2 %v10546_v42, %s10232_s19  ;;  %v13046_v59 = vpop.permute.xlu1 %9461 }
 0xb7b   : > { %5966 = vrot.lane.b32.xlu0 %v10474_v26, %s10233_s24 }
 0xb7d   : > { %6005 = vrot.lane.b32.xlu1 %v10533_v39, %s10233_s24 }
 0xb82   : > { %6042 = vrot.lane.b32.xlu2 %v10546_v42, %s10233_s24 }
 0xb83   : > { %6048 = vrot.lane.b32.xlu0 %v10564_v46, %s10232_s19 }
 0xb84   : > { %v4088_v18 = vpop.xlane.xlu0 %4087 }
 0xb85   : > { %9824 = vrcp.f32 %v4088_v18  ;;  %6081 = vrot.lane.b32.xlu1 %v10607_v58, %s10233_s24 }
 0xb8a   : > { %6044 = vrot.lane.b32.xlu2 %v10564_v46, %s10233_s24 }
 0xb8b   : > { %v9825_v26 = vpop.eup %9824  ;;  %6003 = vrot.lane.b32.xlu0 %v10506_v32, %s10233_s24 }
 0xb8c   : > { %v4138_v39 = vmul.f32 %v9825_v26, %v12893_v13  ;;  %v4085_v42 = vpop.xlane.xlu2 %4084 }
 0xb8d   : > { %9826 = vrcp.f32 %v4085_v42  ;;  %6124 = vrot.lane.b32.xlu1 %v10585_v52, %s10232_s19 }
 0xb8e   : > { %8882 = vmatmul.msk.f32.vlgmr.msrb.gmra.mxu3 %vm899_vm2, %v4138_v39 }
 0xb8f   : > { %8904 = vmatpush.xpose.msk.msrb.mxu3 %vm608_vm1, %v15799_v40 }
 0xb92   : > { %6087 = vrot.lane.b32.xlu2 %v10571_v49, %s10232_s19 }
 0xb93   : > { %v9827_v46 = vpop.eup %9826  ;;  %8905 = vmatpush.xpose.msk.msrb.mxu3 %vm608_vm1, %v15800_v41  ;;  %9466 = vrot.lane.b32.xlu0 %v10559_v45, %s10231_s18  ;;  %s16006_s18 = sshll.u32 %s10400_s30, 7 }
 0xb94   : > { %v4137_v32 = vmul.f32 %v9827_v46, %v12901_v4  ;;  %v4112_v56 = vpop.xlane.xlu1 %4111  ;;  %s15194_s20 = scalar_lea.vmem [#allocation5], %s16006_s18 }
 0xb95   : > { %v4091_v13 = vpop.xlane.xlu2 %4090  ;;  %6122 = vrot.lane.b32.xlu1 %v10594_v54, %s10233_s24 }
 0xb96   : > { %9828 = vrcp.f32 %v4091_v13  ;;  %8881 = vmatmul.msk.f32.gmra.mxu2 %vm899_vm2, %v4137_v32 }
 0xb97   : > { %9830 = vrcp.f32 %v4112_v56  ;;  %v13094_v36 = vpop.permute.xlu0 %5473 }
 0xb9a   : > { %6085 = vrot.lane.b32.xlu2 %v10607_v58, %s10232_s19 }
 0xb9b   : > { %6126 = vrot.lane.b32.xlu0 %v10594_v54, %s10232_s19 }
 0xb9c   : > { %v9829_v16 = vpop.eup %9828 }
 0xb9d   : > { %v4106_v15 = vpop.xlane.xlu2 %4105  ;;  %6163 = vrot.lane.b32.xlu1 %v10630_v0, %s10232_s19  ;;  %v4139_v4 = vmul.f32 %v9829_v16, %v12910_v27  ;;  %v9831_v25 = vpop.eup %9830  ;;  %v15801_v27 = vld [vmem:[#allocation34_spill] sm:$0xff] }
 0xb9e   : > { %9832 = vrcp.f32 %v4106_v15  ;;  %v4146_v54 = vmul.f32 %v9831_v25, %v12908_v10  ;;  %v15803_v10 = vld [vmem:[#allocation39_spill] sm:$0xff]  ;;  %v9413_v25 = vunpack.i.l.bf16 %v12746_v6 }
 0xb9f   : > { %8883 = vmatmul.msk.f32.gmra.mxu3 %vm899_vm2, %v4139_v4  ;;  %v13102_v53 = vpop.permute.xlu0 %9436 }
 0xba2   : > { %6083 = vrot.lane.b32.xlu2 %v10571_v49, %s10233_s24 }
 0xba3   : > { %6204 = vrot.lane.b32.xlu0 %v10487_v29, %s10232_s19  ;;  %v13080_v61 = vpop.f32.mrf.mxu1 }
 0xba4   : > { %v9833_v30 = vpop.eup %9832 }
 0xba5   : > { %v4144_v17 = vmul.f32 %v9833_v30, %v12919_v57  ;;  %v15804_v57 = vld [vmem:[#allocation120_spill] sm:$0xff]  ;;  %v15809_v30 = vld [vmem:[#allocation102_spill] sm:$0xff] }
 0xba7   : > { %8888 = vmatmul.msk.f32.vlgmr.msrb.gmra.mxu2 %vm899_vm2, %v4144_v17  ;;  %8890 = vmatmul.msk.f32.vlgmr.msra.gmra.mxu3 %vm899_vm2, %v4146_v54  ;;  %v13108_v48 = vpop.permute.xlu0 %9446  ;;  %v9398_v17 = vunpack.i.l.bf16 %v15786_v11 }
 0xba8   : > { %8916 = vmatpush.xpose.msk.msrb.mxu2 %vm608_vm1, %v15801_v27  ;;  %8920 = vmatpush.xpose.msk.msra.mxu3 %vm608_vm1, %v15802_v51  ;;  %v9403_v27 = vunpack.i.l.bf16 %v12670_v8  ;;  %v9428_v8 = vunpack.i.l.bf16 %v12732_v60 }
 0xbaa   : > { %6120 = vrot.lane.b32.xlu2 %v10585_v52, %s10233_s24 }
 0xbab   : > { %v13082_v62 = vpop.f32.mrf.mxu0 }
 0xbac   : > { %8917 = vmatpush.xpose.msk.msrb.mxu2 %vm608_vm1, %v15803_v10  ;;  %8921 = vmatpush.xpose.msk.msra.mxu3 %vm608_vm1, %v15804_v57  ;;  %v15811_v10 = vld [vmem:[#allocation121_spill] sm:$0xff]  ;;  %v15812_v57 = vld [vmem:[#allocation44_spill] sm:$0xff] }
 0xbaf   : > { %v13118_v9 = vpop.permute.xlu0 %5968 }
 0xbb2   : > { %6165 = vrot.lane.b32.xlu2 %v10675_v14, %s10232_s19 }
 0xbb3   : > { %v13090_v5 = vpop.f32.mrf.mxu0  ;;  %v13092_v34 = vpop.f32.mrf.mxu1 }
 0xbba   : > { %6159 = vrot.lane.b32.xlu2 %v10630_v0, %s10233_s24  ;;  %v13116_v0 = vpop.permute.xlu1 %6009 }
 0xbbb   : > { %v13098_v52 = vpop.f32.mrf.mxu0  ;;  %v13100_v44 = vpop.f32.mrf.mxu1 }
 0xbbc   : > { %15805 = vst [vmem:[#allocation22_spill] sm:$0xff] %v13098_v52 }
 0xbbd   : > { %15806 = vst [vmem:[#allocation31_spill] sm:$0xff] %v13100_v44 }
 0xbc3   : > { %v13104_v33 = vpop.f32.mrf.mxu0  ;;  %v13106_v1 = vpop.f32.mrf.mxu1 }
 0xbc4   : > { %15807 = vst [vmem:[#allocation18_spill] sm:$0xff] %v13104_v33 }
 0xbc5   : > { %15808 = vst [vmem:[#allocation97_spill] sm:$0xff] %v13106_v1 }
 0xbcb   : > { %v13110_v31 = vpop.f32.mrf.mxu0  ;;  %v13112_v50 = vpop.f32.mrf.mxu1 }
 0xbcc   : > { %v4746_v12 = vsel %vm899_vm2, %v13112_v50, -inf  ;;  %v4740_v26 = vsel %vm899_vm2, %v13110_v31, -inf }
 0xbcd   : > { %4747 = vmax.xlane.f32.xlu0 %v4746_v12  ;;  %v15813_v12 = vld [vmem:[#allocation127_spill] sm:$0xff] }
 0xbd3   : > { %v13120_v7 = vpop.f32.mrf.mxu0  ;;  %v13122_v21 = vpop.f32.mrf.mxu1 }
 0xbd4   : > { %v4743_v18 = vsel %vm899_vm2, %v13120_v7, -inf  ;;  %v4749_v46 = vsel %vm899_vm2, %v13122_v21, -inf }
 0xbd5   : > { %4744 = vmax.xlane.f32.xlu1 %v4743_v18  ;;  %4741 = vmax.xlane.f32.xlu0 %v4740_v26  ;;  %v9429_v18 = vunpack.i.h.bf16 %v12732_v60  ;;  %v9414_v26 = vunpack.i.h.bf16 %v12746_v6 }
 0xbd7   : > { %v4115_v39 = vpop.xlane.xlu1 %4114 }
 0xbd8   : > { %9834 = vrcp.f32 %v4115_v39  ;;  %v15814_v39 = vld [vmem:[#allocation117_spill] sm:$0xff] }
 0xbda   : > { %v4109_v42 = vpop.xlane.xlu0 %4108 }
 0xbdb   : > { %9836 = vrcp.f32 %v4109_v42  ;;  %v13136_v16 = vpop.f32.mrf.mxu0  ;;  %v9423_v42 = vunpack.i.l.bf16 %v12752_v63 }
 0xbdc   : > { %v13128_v40 = vpop.f32.mrf.mxu1  ;;  %v4764_v4 = vsel %vm899_vm2, %v13136_v16, -inf }
 0xbdd   : > { %4750 = vmax.xlane.f32.xlu0 %v4749_v46  ;;  %v4770_v41 = vsel %vm899_vm2, %v13128_v40, -inf  ;;  %v15815_v46 = vld [vmem:[#allocation124_spill] sm:$0xff] }
 0xbde   : > { %v9835_v32 = vpop.eup %9834  ;;  %4771 = vmax.xlane.f32.xlu1 %v4770_v41  ;;  %v15816_v41 = vld [vmem:[#allocation109_spill] sm:$0xff] }
 0xbdf   : > { %v4147_v13 = vmul.f32 %v9835_v32, %v12997_v37  ;;  %v9418_v37 = vunpack.i.l.bf16 %v12672_v28 }
 0xbe1   : > { %v9837_v56 = vpop.eup %9836  ;;  %8891 = vmatmul.msk.f32.gmra.mxu3 %vm899_vm2, %v4147_v13 }
 0xbe2   : > { %v4145_v15 = vmul.f32 %v9837_v56, %v13002_v55  ;;  %v15810_v55 = vld [vmem:[#allocation26_spill] sm:$0xff] }
 0xbe3   : > { %v13156_v28 = vpop.f32.mrf.mxu0 }
 0xbe4   : > { %8889 = vmatmul.msk.f32.gmra.mxu2 %vm899_vm2, %v4145_v15  ;;  %v13146_v54 = vpop.f32.mrf.mxu1  ;;  %v4767_v11 = vsel %vm899_vm2, %v13156_v28, -inf  ;;  %v13184_v15 = vpop.permute.xlu2 %5393 }
 0xbe5   : > { %v4773_v51 = vsel %vm899_vm2, %v13146_v54, -inf }
 0xbe6   : > { %4765 = vmax.xlane.f32.xlu1 %v4764_v4 }
 0xbe9   : > { %8906 = vmatmul.msk.f32.vlgmr.msrb.gmra.mxu3 %vm608_vm1, %v15809_v30 }
 0xbea   : > { %5047 = vmatpush.msrb.mxu3 %v9413_v25 }
 0xbec   : > { %5048 = vmatpush.msrb.mxu3 %v9418_v37  ;;  %8902 = vmatmul.msk.f32.vlgmr.msra.gmra.mxu2 %vm608_vm1, %v15810_v55  ;;  %v13192_v30 = vpop.permute.xlu2 %5471  ;;  %v13194_v37 = vpop.f32.mrf.mxu2 }
 0xbed   : > { %5012 = vmatpush.msra.mxu2 %v9398_v17  ;;  %v13174_v32 = vpop.permute.xlu0 %5966  ;;  %15823 = vst [vmem:[#allocation32_spill] sm:$0xff] %v13194_v37 }
 0xbee   : > { %4774 = vmax.xlane.f32.xlu1 %v4773_v51  ;;  %15817 = vst [vmem:[#allocation123_spill] sm:$0xff] %v13174_v32 }
 0xbef   : > { %5013 = vmatpush.msra.mxu2 %v9403_v27  ;;  %v13176_v60 = vpop.permute.xlu1 %6005 }
 0xbf0   : > { %15818 = vst [vmem:[#allocation126_spill] sm:$0xff] %v13176_v60 }
 0xbf1   : > { %8907 = vmatmul.msk.f32.gmra.mxu3 %vm608_vm1, %v15811_v10 }
 0xbf4   : > { %8903 = vmatmul.msk.f32.gmra.mxu2 %vm608_vm1, %v15812_v57  ;;  %v13204_v10 = vpop.permute.xlu2 %9441 }
 0xbf5   : > { %v13178_v13 = vpop.permute.xlu0 %6048 }
 0xbf6   : > { %4768 = vmax.xlane.f32.xlu1 %v4767_v11  ;;  %15819 = vst [vmem:[#allocation110_spill] sm:$0xff] %v13178_v13 }
 0xbf7   : > { %v13180_v6 = vpop.permute.xlu1 %6081 }
 0xbf8   : > { %15820 = vst [vmem:[#allocation101_spill] sm:$0xff] %v13180_v6 }
 0xbf9   : > { %8922 = vmatmul.msk.f32.vlgmr.msra.gmra.mxu3 %vm608_vm1, %v15813_v12 }
 0xbfa   : > { %5187 = vmatpush.msra.mxu3 %v9428_v8 }
 0xbfc   : > { %5188 = vmatpush.msra.mxu3 %v9429_v18  ;;  %8918 = vmatmul.msk.f32.vlgmr.msrb.gmra.mxu2 %vm608_vm1, %v15814_v39  ;;  %v13214_v18 = vpop.permute.xlu2 %9451 }
 0xbfd   : > { %5152 = vmatpush.msrb.mxu2 %v9414_v26  ;;  %v13182_v56 = vpop.permute.xlu0 %6003 }
 0xbfe   : > { %15821 = vst [vmem:[#allocation85_spill] sm:$0xff] %v13182_v56 }
 0xbff   : > { %5153 = vmatpush.msrb.mxu2 %v9423_v42  ;;  %v13186_v63 = vpop.permute.xlu1 %6124 }
 0xc01   : > { %8923 = vmatmul.msk.f32.gmra.mxu3 %vm608_vm1, %v15815_v46 }
 0xc04   : > { %8919 = vmatmul.msk.f32.gmra.mxu2 %vm608_vm1, %v15816_v41  ;;  %v13224_v44 = vpop.permute.xlu2 %5964 }
 0xc05   : > { %v13188_v4 = vpop.permute.xlu0 %9466  ;;  %15832 = vst [vmem:[#allocation34_spill] sm:$0xff] %v13224_v44 }
 0xc07   : > { %v13196_v17 = vpop.permute.xlu1 %6122 }
 0xc08   : > { %15824 = vst [vmem:[#allocation100_spill] sm:$0xff] %v13196_v17 }
 0xc0d   : > { %v13200_v27 = vpop.permute.xlu0 %6126 }
 0xc0f   : > { %v13206_v57 = vpop.permute.xlu1 %6163 }
 0xc10   : > { %15826 = vst [vmem:[#allocation106_spill] sm:$0xff] %v13206_v57 }
 0xc11   : > { %v13190_v25 = vpop.f32.mrf.mxu3 }
 0xc12   : > { %15822 = vst [vmem:[#allocation93_spill] sm:$0xff] %v13190_v25 }
 0xc15   : > { %v13210_v8 = vpop.permute.xlu0 %6204 }
 0xc16   : > { %15828 = vst [vmem:[#allocation112_spill] sm:$0xff] %v13210_v8 }
 0xc19   : > { %v13202_v51 = vpop.f32.mrf.mxu2 }
 0xc22   : > { %v13198_v55 = vpop.f32.mrf.mxu3 }
 0xc23   : > { %15825 = vst [vmem:[#allocation99_spill] sm:$0xff] %v13198_v55 }
 0xc2a   : > { %v13208_v11 = vpop.f32.mrf.mxu3  ;;  %v13212_v12 = vpop.f32.mrf.mxu2 }
 0xc2b   : > { %15827 = vst [vmem:[#allocation103_spill] sm:$0xff] %v13208_v11 }
 0xc2c   : > { %15829 = vst [vmem:[#allocation119_spill] sm:$0xff] %v13212_v12 }
 0xc40   : > { %v4748_v42 = vpop.xlane.xlu0 %4747 }
 0xc41   : > { %v4790_v60 = vsub.f32 %v13112_v50, %v4748_v42 }
 0xc43   : > { %v4808_v57 = vmul.f32 1.442695, %v4790_v60 }
 0xc48   : > { %v13216_v26 = vpop.xlane.xlu1 %4744  ;;  %v4742_v33 = vpop.xlane.xlu0 %4741 }
 0xc50   : > { %v4751_v8 = vpop.xlane.xlu0 %4750 }
 0xc51   : > { %v4772_v1 = vpop.xlane.xlu1 %4771  ;;  %v4791_v25 = vsub.f32 %v13122_v21, %v4751_v8 }
 0xc52   : > { %v4798_v21 = vsub.f32 %v13128_v40, %v4772_v1 }
 0xc59   : > { %v4766_v6 = vpop.xlane.xlu1 %4765 }
 0xc64   : > { %v13218_v39 = vpop.f32.mrf.mxu3 }
 0xc65   : > { %15830 = vst [vmem:[#allocation42_spill] sm:$0xff] %v13218_v39  ;;  %v13234_v39 = vpop.permute.xlu2 %9456 }
 0xc67   : > { %v13220_v46 = vpop.f32.mrf.mxu2 }
 0xc68   : > { %15831 = vst [vmem:[#allocation104_spill] sm:$0xff] %v13220_v46 }
 0xc6c   : > { %v13222_v41 = vpop.f32.mrf.mxu3 }
 0xc6d   : > { %v4758_v46 = vsel %vm899_vm2, %v13222_v41, -inf  ;;  %v13248_v44 = vpop.permute.xlu2 %6007 }
 0xc6f   : > { %v13226_v11 = vpop.f32.mrf.mxu2 }
 0xc70   : > { %v4752_v12 = vsel %vm899_vm2, %v13226_v11, -inf }
 0xc71   : > { %4753 = vmax.xlane.f32.xlu2 %v4752_v12  ;;  %v4810_v12 = vmul.f32 1.442695, %v4791_v25  ;;  %v4788_v25 = vsub.f32 %v13110_v31, %v4742_v33  ;;  %v4796_v31 = vsub.f32 %v13136_v16, %v4766_v6 }
 0xc73   : > { %9838 = vpow2.f32 %v4810_v12  ;;  %v4804_v12 = vmul.f32 1.442695, %v4788_v25  ;;  %v4820_v25 = vmul.f32 1.442695, %v4796_v31 }
 0xc74   : > { %v13230_v52 = vpop.f32.mrf.mxu3  ;;  %9840 = vpow2.f32 %v4808_v57 }
 0xc75   : > { %v4761_v60 = vsel %vm899_vm2, %v13230_v52, -inf  ;;  %v13265_v33 = vpop.permute.xlu2 %6046 }
 0xc77   : > { %v13232_v55 = vpop.f32.mrf.mxu2 }
 0xc78   : > { %v4755_v32 = vsel %vm899_vm2, %v13232_v55, -inf }
 0xc79   : > { %4759 = vmax.xlane.f32.xlu2 %v4758_v46  ;;  %v4775_v46 = vpop.xlane.xlu1 %4774  ;;  %v13263_v40 = vpop.eup %9838 }
 0xc7a   : > { %v4799_v42 = vsub.f32 %v13146_v54, %v4775_v46  ;;  %v13268_v57 = vpop.eup %9840  ;;  %v4845_v46 = vsel %vm899_vm2, %v13263_v40, 0.0 }
 0xc7b   : > { %v4842_v16 = vsel %vm899_vm2, %v13268_v57, 0.0 }
 0xc7c   : > { %v13239_v17 = vpop.f32.mrf.mxu3  ;;  %v4826_v37 = vmul.f32 1.442695, %v4799_v42 }
 0xc7d   : > { %v4782_v42 = vsel %vm899_vm2, %v13239_v17, -inf }
 0xc7f   : > { %v13242_v56 = vpop.f32.mrf.mxu2 }
 0xc80   : > { %v4776_v13 = vsel %vm899_vm2, %v13242_v56, -inf }
 0xc81   : > { %4756 = vmax.xlane.f32.xlu2 %v4755_v32  ;;  %4777 = vmax.xlane.f32.xlu0 %v4776_v13  ;;  %v4824_v13 = vmul.f32 1.442695, %v4798_v21  ;;  %v4769_v54 = vpop.xlane.xlu1 %4768  ;;  %v4789_v21 = vsub.f32 %v13120_v7, %v13216_v26 }
 0xc83   : > { %9842 = vpow2.f32 %v4824_v13  ;;  %v4806_v13 = vmul.f32 1.442695, %v4789_v21 }
 0xc84   : > { %v13251_v8 = vpop.f32.mrf.mxu3  ;;  %9844 = vpow2.f32 %v4804_v12 }
 0xc85   : > { %v4785_v50 = vsel %vm899_vm2, %v13251_v8, -inf  ;;  %9846 = vpow2.f32 %v4826_v37  ;;  %v13287_v37 = vpop.permute.xlu2 %6042 }
 0xc86   : > { %4786 = vmax.xlane.f32.xlu1 %v4785_v50  ;;  %v4797_v50 = vsub.f32 %v13156_v28, %v4769_v54  ;;  %9848 = vpow2.f32 %v4820_v25  ;;  %15833 = vst [vmem:[#allocation125_spill] sm:$0xff] %v13287_v37  ;;  %v15840_v37 = vld [vmem:[#allocation52_spill] sm:$0xff] }
 0xc87   : > { %v13257_v32 = vpop.f32.mrf.mxu2  ;;  %9850 = vpow2.f32 %v4806_v13 }
 0xc88   : > { %v4779_v1 = vsel %vm899_vm2, %v13257_v32, -inf }
 0xc89   : > { %4762 = vmax.xlane.f32.xlu2 %v4761_v60  ;;  %4780 = vmax.xlane.f32.xlu0 %v4779_v1  ;;  %v13279_v6 = vpop.eup %9842  ;;  %v4822_v60 = vmul.f32 1.442695, %v4797_v50 }
 0xc8a   : > { %v13281_v1 = vpop.eup %9844  ;;  %v4866_v28 = vsel %vm899_vm2, %v13279_v6, 0.0 }
 0xc8b   : > { %v13283_v7 = vpop.eup %9846  ;;  %9852 = vpow2.f32 %v4822_v60  ;;  %v4836_v26 = vsel %vm899_vm2, %v13281_v1, 0.0 }
 0xc8c   : > { %v4869_v12 = vsel %vm899_vm2, %v13283_v7, 0.0  ;;  %v13293_v31 = vpop.eup %9848 }
 0xc8d   : > { %v13295_v54 = vpop.eup %9850  ;;  %v4860_v21 = vsel %vm899_vm2, %v13293_v31, 0.0  ;;  %v13301_v50 = vpop.permute.xlu2 %6044 }
 0xc8e   : > { %4846 = vadd.xlane.f32.xlu1 %v4845_v46  ;;  %15834 = vst [vmem:[#allocation39_spill] sm:$0xff] %v13301_v50  ;;  %v4839_v25 = vsel %vm899_vm2, %v13295_v54, 0.0 }
 0xc91   : > { %4783 = vmax.xlane.f32.xlu2 %v4782_v42  ;;  %4843 = vadd.xlane.f32.xlu0 %v4842_v16  ;;  %v13297_v46 = vpop.eup %9852 }
 0xc92   : > { %v4863_v42 = vsel %vm899_vm2, %v13297_v46, 0.0 }
 0xc95   : > { %v13307_v16 = vpop.permute.xlu2 %6087 }
 0xc96   : > { %4867 = vadd.xlane.f32.xlu1 %v4866_v28  ;;  %v9485_v28 = vpack.i.bf16 %v10607_v58, %v10571_v49 }
 0xc99   : > { %4837 = vadd.xlane.f32.xlu0 %v4836_v26  ;;  %4870 = vadd.xlane.f32.xlu2 %v4869_v12  ;;  %v15836_v12 = vld [vmem:[#allocation15_spill] sm:$0xff] }
 0xc9d   : > { %v13309_v13 = vpop.permute.xlu2 %6085 }
 0xc9e   : > { %4861 = vadd.xlane.f32.xlu1 %v4860_v21 }
 0xca1   : > { %4840 = vadd.xlane.f32.xlu0 %v4839_v25  ;;  %4864 = vadd.xlane.f32.xlu2 %v4863_v42  ;;  %v15837_v25 = vld [vmem:[#allocation55_spill] sm:$0xff] }
 0xca5   : > { %v13315_v60 = vpop.permute.xlu2 %6083 }
 0xca6   : > { %15835 = vst [vmem:[#allocation120_spill] sm:$0xff] %v13315_v60 }
 0xcad   : > { %v13321_v26 = vpop.permute.xlu2 %6120 }
 0xcb5   : > { %6198 = vrot.lane.b32.xlu0 %v10471_v24, %s10233_s24  ;;  %v13326_v21 = vpop.permute.xlu2 %6165 }
 0xcb9   : > { %6161 = vrot.lane.b32.xlu2 %v10675_v14, %s10233_s24 }
 0xcbd   : > { %v13330_v14 = vpop.permute.xlu2 %6159 }
 0xcc1   : > { %6241 = vrot.lane.b32.xlu2 %v10515_v35, %s10232_s19 }
 0xcc9   : > { %9486 = vrot.lane.b32.xlu2 %v9485_v28, %s10234_s15 }
 0xcd1   : > { %9501 = vrot.lane.b32.xlu2 %v15836_v12, %s10234_s15 }
 0xcd9   : > { %9506 = vrot.lane.b32.xlu2 %v10559_v45, %s10234_s15 }
 0xce1   : > { %6748 = vrot.lane.b32.xlu2 %v15837_v25, %s10235_s22 }
 0xce4   : > { %v4754_v49 = vpop.xlane.xlu2 %4753 }
 0xce5   : > { %v4792_v58 = vsub.f32 %v13226_v11, %v4754_v49  ;;  %v15838_v11 = vld [vmem:[#allocation107_spill] sm:$0xff] }
 0xce7   : > { %v4812_v42 = vmul.f32 1.442695, %v4792_v58 }
 0xce9   : > { %9854 = vpow2.f32 %v4812_v42  ;;  %6876 = vrot.lane.b32.xlu2 %v12658_v43, %s10236_s16 }
 0xcec   : > { %v4760_v28 = vpop.xlane.xlu2 %4759 }
 0xced   : > { %v4794_v12 = vsub.f32 %v13222_v41, %v4760_v28 }
 0xcef   : > { %v13338_v60 = vpop.eup %9854  ;;  %v4816_v45 = vmul.f32 1.442695, %v4794_v12 }
 0xcf0   : > { %v4848_v50 = vsel %vm899_vm2, %v13338_v60, 0.0 }
 0xcf1   : > { %9856 = vpow2.f32 %v4816_v45  ;;  %4849 = vadd.xlane.f32.xlu1 %v4848_v50  ;;  %6814 = vrot.lane.b32.xlu2 %v15838_v11, %s10237_s21  ;;  %v15839_v50 = vld [vmem:[#allocation57_spill] sm:$0xff] }
 0xcf4   : > { %v4757_v25 = vpop.xlane.xlu2 %4756  ;;  %v4778_v49 = vpop.xlane.xlu0 %4777 }
 0xcf5   : > { %v4793_v58 = vsub.f32 %v13232_v55, %v4757_v25  ;;  %v4800_v43 = vsub.f32 %v13242_v56, %v4778_v49 }
 0xcf7   : > { %v13346_v42 = vpop.eup %9856  ;;  %v4814_v41 = vmul.f32 1.442695, %v4793_v58  ;;  %v4828_v28 = vmul.f32 1.442695, %v4800_v43 }
 0xcf8   : > { %v4854_v12 = vsel %vm899_vm2, %v13346_v42, 0.0 }
 0xcf9   : > { %9858 = vpow2.f32 %v4814_v41  ;;  %4855 = vadd.xlane.f32.xlu1 %v4854_v12  ;;  %6752 = vrot.lane.b32.xlu2 %v15839_v50, %s10235_s22  ;;  %v13352_v45 = vpop.xlane.xlu1 %4786 }
 0xcfa   : > { %9860 = vpow2.f32 %v4828_v28 }
 0xcfc   : > { %v4781_v11 = vpop.xlane.xlu0 %4780  ;;  %v13365_v41 = vpop.xlane.xlu2 %4762 }
 0xcfd   : > { %v4801_v55 = vsub.f32 %v13257_v32, %v4781_v11 }
 0xcff   : > { %v13355_v25 = vpop.eup %9858  ;;  %v4830_v56 = vmul.f32 1.442695, %v4801_v55 }
 0xd00   : > { %v13357_v49 = vpop.eup %9860  ;;  %v4851_v58 = vsel %vm899_vm2, %v13355_v25, 0.0 }
 0xd01   : > { %v4872_v43 = vsel %vm899_vm2, %v13357_v49, 0.0  ;;  %4852 = vadd.xlane.f32.xlu1 %v4851_v58  ;;  %6944 = vrot.lane.b32.xlu2 %v13080_v61, %s10238_s13  ;;  %9862 = vpow2.f32 %v4830_v56  ;;  %v4847_v32 = vpop.xlane.xlu1 %4846 }
 0xd02   : > { %4873 = vadd.xlane.f32.xlu0 %v4872_v43 }
 0xd04   : > { %v4844_v28 = vpop.xlane.xlu0 %4843  ;;  %v13373_v55 = vpop.xlane.xlu2 %4783 }
 0xd05   : > { %9864 = vrcp.f32 %v4844_v28 }
 0xd06   : > { %9866 = vrcp.f32 %v4847_v32 }
 0xd07   : > { %v13367_v12 = vpop.eup %9862 }
 0xd08   : > { %v4875_v50 = vsel %vm899_vm2, %v13367_v12, 0.0 }
 0xd09   : > { %6882 = vrot.lane.b32.xlu2 %v12666_v20, %s10236_s16  ;;  %v4868_v58 = vpop.xlane.xlu1 %4867 }
 0xd0a   : > { %4876 = vadd.xlane.f32.xlu0 %v4875_v50 }
 0xd0b   : > { %v9865_v11 = vpop.eup %9864 }
 0xd0c   : > { %v4902_v61 = vmul.f32 %v9865_v11, %v13268_v57  ;;  %v4838_v56 = vpop.xlane.xlu0 %4837  ;;  %v9867_v43 = vpop.eup %9866  ;;  %v15841_v11 = vld [vmem:[#allocation115_spill] sm:$0xff] }
 0xd0d   : > { %9868 = vrcp.f32 %v4838_v56  ;;  %v4903_v50 = vmul.f32 %v9867_v43, %v13263_v40  ;;  %v4871_v57 = vpop.xlane.xlu2 %4870  ;;  %v15843_v43 = vld [vmem:[#allocation132_spill] sm:$0xff] }
 0xd0e   : > { %8926 = vmatmul.msk.f32.vlgmr.msra.gmra.mxu1 %vm899_vm2, %v4902_v61  ;;  %9870 = vrcp.f32 %v4868_v58 }
 0xd0f   : > { %8944 = vmatpush.xpose.msk.msra.mxu1 %vm608_vm1, %v12700_v47 }
 0xd11   : > { %v4862_v47 = vpop.xlane.xlu1 %4861 }
 0xd13   : > { %v9869_v28 = vpop.eup %9868  ;;  %8945 = vmatpush.xpose.msk.msra.mxu1 %vm608_vm1, %v15840_v37 }
 0xd14   : > { %v4900_v20 = vmul.f32 %v9869_v28, %v13281_v1  ;;  %v4841_v32 = vpop.xlane.xlu0 %4840  ;;  %v9871_v61 = vpop.eup %9870  ;;  %v15842_v1 = vld [vmem:[#allocation49_spill] sm:$0xff] }
 0xd15   : > { %9872 = vrcp.f32 %v4841_v32  ;;  %v4910_v56 = vmul.f32 %v9871_v61, %v13279_v6  ;;  %v4865_v58 = vpop.xlane.xlu2 %4864  ;;  %v15844_v32 = vld [vmem:[#allocation84_spill] sm:$0xff]  ;;  %v4795_v61 = vsub.f32 %v13230_v52, %v13365_v41  ;;  %v4802_v52 = vsub.f32 %v13239_v17, %v13373_v55 }
 0xd16   : > { %8924 = vmatmul.msk.f32.vlgmr.msrb.gmra.mxu0 %vm899_vm2, %v4900_v20  ;;  %8927 = vmatmul.msk.f32.gmra.mxu1 %vm899_vm2, %v4903_v50  ;;  %9874 = vrcp.f32 %v4862_v47  ;;  %v9443_v47 = vunpack.i.l.bf16 %v13204_v10  ;;  %v9453_v41 = vunpack.i.l.bf16 %v13214_v18  ;;  %v4803_v17 = vsub.f32 %v13251_v8, %v13352_v45  ;;  %v15857_v45 = vld [vmem:[#allocation58_spill] sm:$0xff] }
 0xd17   : > { %8940 = vmatpush.xpose.msk.msrb.mxu0 %vm608_vm1, %v15841_v11  ;;  %9876 = vrcp.f32 %v4871_v57  ;;  %v15846_v57 = vld [vmem:[#allocation74_spill] sm:$0xff]  ;;  %v9438_v11 = vunpack.i.l.bf16 %v13102_v53 }
 0xd18   : > { %9878 = vrcp.f32 %v4865_v58  ;;  %v15851_v58 = vld [vmem:[#allocation114_spill] sm:$0xff] }
 0xd1a   : > { %6202 = vrot.lane.b32.xlu1 %v10471_v24, %s10232_s19 }
 0xd1b   : > { %v9873_v37 = vpop.eup %9872  ;;  %8941 = vmatpush.xpose.msk.msrb.mxu0 %vm608_vm1, %v15842_v1  ;;  %v15849_v1 = vld [vmem:[#allocation16_spill] sm:$0xff] }
 0xd1c   : > { %v4901_v40 = vmul.f32 %v9873_v37, %v13295_v54  ;;  %v9875_v24 = vpop.eup %9874  ;;  %v15845_v54 = vld [vmem:[#allocation113_spill] sm:$0xff]  ;;  %v9433_v37 = vunpack.i.l.bf16 %v13024_v23 }
 0xd1d   : > { %v9877_v28 = vpop.eup %9876  ;;  %v4908_v20 = vmul.f32 %v9875_v24, %v13293_v31  ;;  %v15852_v24 = vld [vmem:[#allocation17_spill] sm:$0xff] }
 0xd1e   : > { %6243 = vrot.lane.b32.xlu0 %v10524_v38, %s10232_s19  ;;  %8925 = vmatmul.msk.f32.gmra.mxu0 %vm899_vm2, %v4901_v40  ;;  %v4911_v6 = vmul.f32 %v9877_v28, %v13283_v7  ;;  %v9879_v50 = vpop.eup %9878  ;;  %v15847_v7 = vld [vmem:[#allocation14_spill] sm:$0xff]  ;;  %v15850_v40 = vld [vmem:[#allocation75_spill] sm:$0xff] }
 0xd1f   : > { %8934 = vmatmul.msk.f32.vlgmr.msrb.gmra.mxu1 %vm899_vm2, %v4910_v56  ;;  %v4909_v31 = vmul.f32 %v9879_v50, %v13297_v46  ;;  %v4818_v46 = vmul.f32 1.442695, %v4795_v61  ;;  %v9434_v56 = vunpack.i.h.bf16 %v13024_v23  ;;  %v15853_v28 = vld [vmem:[#allocation66_spill] sm:$0xff]  ;;  %v15855_v50 = vld [vmem:[#allocation95_spill] sm:$0xff] }
 0xd20   : > { %8960 = vmatpush.xpose.msk.msrb.mxu1 %vm608_vm1, %v15843_v43  ;;  %v4832_v43 = vmul.f32 1.442695, %v4802_v52 }
 0xd21   : > { %9880 = vpow2.f32 %v4818_v46 }
 0xd22   : > { %9882 = vpow2.f32 %v4832_v43 }
 0xd24   : > { %8961 = vmatpush.xpose.msk.msrb.mxu1 %vm608_vm1, %v15844_v32  ;;  %v9454_v32 = vunpack.i.h.bf16 %v13214_v18  ;;  %v9444_v18 = vunpack.i.h.bf16 %v13204_v10  ;;  %v15859_v10 = vld [vmem:[#allocation105_spill] sm:$0xff] }
 0xd26   : > { %6239 = vrot.lane.b32.xlu0 %v10524_v38, %s10233_s24  ;;  %8932 = vmatmul.msk.f32.vlgmr.msra.gmra.mxu0 %vm899_vm2, %v4908_v20  ;;  %v15848_v38 = vld [vmem:[#allocation70_spill] sm:$0xff] }
 0xd27   : > { %8935 = vmatmul.msk.f32.gmra.mxu1 %vm899_vm2, %v4911_v6  ;;  %8956 = vmatpush.xpose.msk.msra.mxu0 %vm608_vm1, %v15845_v54  ;;  %v15854_v20 = vld [vmem:[#allocation82_spill] sm:$0xff]  ;;  %v13438_v23 = vpop.eup %9880  ;;  %v9439_v6 = vunpack.i.h.bf16 %v13102_v53  ;;  %v4834_v54 = vmul.f32 1.442695, %v4803_v17  ;;  %v13474_v46 = vpop.permute.xlu0 %6198  ;;  %v15867_v17 = vld [vmem:[#allocation96_spill] sm:$0xff] }
 0xd28   : > { %v4857_v55 = vsel %vm899_vm2, %v13438_v23, 0.0  ;;  %v13453_v8 = vpop.eup %9882 }
 0xd29   : > { %9884 = vpow2.f32 %v4834_v54  ;;  %v4878_v53 = vsel %vm899_vm2, %v13453_v8, 0.0  ;;  %v15869_v54 = vld [vmem:[#allocation21_spill] sm:$0xff] }
 0xd2b   : > { %8957 = vmatpush.xpose.msk.msra.mxu0 %vm608_vm1, %v15846_v57  ;;  %v15856_v57 = vld [vmem:[#allocation56_spill] sm:$0xff] }
 0xd2e   : > { %9471 = vrot.lane.b32.xlu0 %v15847_v7, %s10234_s15  ;;  %8933 = vmatmul.msk.f32.gmra.mxu0 %vm899_vm2, %v4909_v31  ;;  %v15858_v31 = vld [vmem:[#allocation116_spill] sm:$0xff] }
 0xd2f   : > { %8946 = vmatmul.msk.f32.vlgmr.msra.gmra.mxu1 %vm608_vm1, %v15848_v38  ;;  %v15860_v38 = vld [vmem:[#allocation20_spill] sm:$0xff] }
 0xd30   : > { %5745 = vmatpush.msra.mxu1 %v9438_v11  ;;  %v13461_v11 = vpop.eup %9884 }
 0xd32   : > { %5746 = vmatpush.msra.mxu1 %v9443_v47 }
 0xd36   : > { %9476 = vrot.lane.b32.xlu0 %v15849_v1, %s10234_s15  ;;  %8942 = vmatmul.msk.f32.vlgmr.msrb.gmra.mxu0 %vm608_vm1, %v15850_v40  ;;  %v15862_v40 = vld [vmem:[#allocation69_spill] sm:$0xff] }
 0xd37   : > { %8947 = vmatmul.msk.f32.gmra.mxu1 %vm608_vm1, %v15851_v58  ;;  %5710 = vmatpush.msrb.mxu0 %v9433_v37 }
 0xd39   : > { %5711 = vmatpush.msrb.mxu0 %v9434_v56 }
 0xd3e   : > { %9491 = vrot.lane.b32.xlu0 %v15852_v24, %s10234_s15  ;;  %8943 = vmatmul.msk.f32.gmra.mxu0 %vm608_vm1, %v15853_v28  ;;  %v15865_v28 = vld [vmem:[#allocation128_spill] sm:$0xff] }
 0xd3f   : > { %8962 = vmatmul.msk.f32.vlgmr.msrb.gmra.mxu1 %vm608_vm1, %v15854_v20 }
 0xd40   : > { %5885 = vmatpush.msrb.mxu1 %v9453_v41  ;;  %v15864_v41 = vld [vmem:[#allocation62_spill] sm:$0xff] }
 0xd42   : > { %5886 = vmatpush.msrb.mxu1 %v9454_v32 }
 0xd44   : > { %4858 = vadd.xlane.f32.xlu1 %v4857_v55  ;;  %v15868_v55 = vld [vmem:[#allocation81_spill] sm:$0xff] }
 0xd46   : > { %6812 = vrot.lane.b32.xlu0 %v15855_v50, %s10237_s21  ;;  %8958 = vmatmul.msk.f32.vlgmr.msra.gmra.mxu0 %vm608_vm1, %v15856_v57  ;;  %v15870_v50 = vld [vmem:[#allocation54_spill] sm:$0xff] }
 0xd47   : > { %8963 = vmatmul.msk.f32.gmra.mxu1 %vm608_vm1, %v13184_v15  ;;  %5850 = vmatpush.msra.mxu0 %v9439_v6  ;;  %v4881_v15 = vsel %vm899_vm2, %v13461_v11, 0.0 }
 0xd49   : > { %5851 = vmatpush.msra.mxu0 %v9444_v18  ;;  %v9459_v18 = vunpack.i.h.bf16 %v13234_v39 }
 0xd4c   : > { %4879 = vadd.xlane.f32.xlu1 %v4878_v53  ;;  %v15872_v53 = vld [vmem:[#allocation63_spill] sm:$0xff] }
 0xd4e   : > { %6750 = vrot.lane.b32.xlu0 %v15857_v45, %s10235_s22  ;;  %8959 = vmatmul.msk.f32.gmra.mxu0 %vm608_vm1, %v15858_v31  ;;  %v9464_v45 = vunpack.i.h.bf16 %v13046_v59 }
 0xd54   : > { %4882 = vadd.xlane.f32.xlu1 %v4881_v15 }
 0xd56   : > { %6942 = vrot.lane.b32.xlu0 %v13090_v5, %s10238_s13  ;;  %v15861_v5 = vld [vmem:[#allocation77_spill] sm:$0xff] }
 0xd5e   : > { %6880 = vrot.lane.b32.xlu0 %v15859_v10, %s10236_s16  ;;  %v15876_v10 = vld [vmem:[#allocation134_spill] sm:$0xff] }
 0xd64   : > { %v4850_v7 = vpop.xlane.xlu1 %4849 }
 0xd65   : > { %9886 = vrcp.f32 %v4850_v7 }
 0xd66   : > { %6818 = vrot.lane.b32.xlu0 %v15860_v38, %s10237_s21 }
 0xd6b   : > { %v9887_v47 = vpop.eup %9886 }
 0xd6c   : > { %v4904_v61 = vmul.f32 %v9887_v47, %v13338_v60  ;;  %v4856_v37 = vpop.xlane.xlu1 %4855 }
 0xd6d   : > { %9888 = vrcp.f32 %v4856_v37  ;;  %6200 = vrot.lane.b32.xlu1 %v10487_v29, %s10233_s24  ;;  %v15863_v29 = vld [vmem:[#allocation73_spill] sm:$0xff] }
 0xd6e   : > { %8928 = vmatmul.msk.f32.vlgmr.msra.gmra.mxu2 %vm899_vm2, %v4904_v61 }
 0xd6f   : > { %8948 = vmatpush.xpose.msk.msra.mxu2 %vm608_vm1, %v15861_v5  ;;  %v13542_v5 = vpop.permute.xlu2 %6161 }
 0xd73   : > { %v9889_v1 = vpop.eup %9888  ;;  %8949 = vmatpush.xpose.msk.msra.mxu2 %vm608_vm1, %v15862_v40 }
 0xd74   : > { %v4906_v56 = vmul.f32 %v9889_v1, %v13346_v42  ;;  %v4853_v58 = vpop.xlane.xlu1 %4852 }
 0xd75   : > { %9890 = vrcp.f32 %v4853_v58  ;;  %6237 = vrot.lane.b32.xlu1 %v10515_v35, %s10233_s24  ;;  %v4874_v60 = vpop.xlane.xlu0 %4873  ;;  %s8550_s24 = sshll.u32 %s15194_s20, 4  ;;  %s8551_s24 = int_to_ptr.vmem [resolvable:$true] %s8550_s24 }
 0xd76   : > { %8930 = vmatmul.msk.f32.vlgmr.msrb.gmra.mxu3 %vm899_vm2, %v4906_v56  ;;  %9892 = vrcp.f32 %v4874_v60 }
 0xd77   : > { %8952 = vmatpush.xpose.msk.msrb.mxu3 %vm608_vm1, %v15863_v29 }
 0xd7b   : > { %v9891_v52 = vpop.eup %9890  ;;  %8953 = vmatpush.xpose.msk.msrb.mxu3 %vm608_vm1, %v15864_v41 }
 0xd7c   : > { %v4905_v43 = vmul.f32 %v9891_v52, %v13355_v25  ;;  %v9893_v35 = vpop.eup %9892  ;;  %v15866_v25 = vld [vmem:[#allocation135_spill] sm:$0xff]  ;;  %v13552_v52 = vpop.permute.xlu2 %6241 }
 0xd7d   : > { %9481 = vrot.lane.b32.xlu1 %v15784_v3, %s10234_s15  ;;  %v4877_v42 = vpop.xlane.xlu0 %4876  ;;  %v4912_v24 = vmul.f32 %v9893_v35, %v13357_v49 }
 0xd7e   : > { %8929 = vmatmul.msk.f32.gmra.mxu2 %vm899_vm2, %v4905_v43  ;;  %9894 = vrcp.f32 %v4877_v42 }
 0xd84   : > { %v9895_v20 = vpop.eup %9894 }
 0xd85   : > { %9496 = vrot.lane.b32.xlu1 %v15792_v19, %s10234_s15  ;;  %v4913_v3 = vmul.f32 %v9895_v20, %v13367_v12  ;;  %v9448_v19 = vunpack.i.l.bf16 %v13108_v48  ;;  %v9449_v12 = vunpack.i.h.bf16 %v13108_v48  ;;  %v15873_v48 = vld [vmem:[#allocation130_spill] sm:$0xff] }
 0xd86   : > { %8936 = vmatmul.msk.f32.vlgmr.msrb.gmra.mxu2 %vm899_vm2, %v4912_v24 }
 0xd87   : > { %8964 = vmatpush.xpose.msk.msrb.mxu2 %vm608_vm1, %v15865_v28  ;;  %v15878_v28 = vld [vmem:[#allocation129_spill] sm:$0xff] }
 0xd8b   : > { %8965 = vmatpush.xpose.msk.msrb.mxu2 %vm608_vm1, %v15866_v25  ;;  %v4980_v49 = vpop.f32.mrf.mxu1 }
 0xd8c   : > { %v13534_v7 = vpop.permute.xlu1 %6202 }
 0xd8d   : > { %6940 = vrot.lane.b32.xlu1 %v13082_v62, %s10238_s13 }
 0xd8e   : > { %8937 = vmatmul.msk.f32.gmra.mxu2 %vm899_vm2, %v4913_v3 }
 0xd93   : > { %v4945_v32 = vpop.f32.mrf.mxu0  ;;  %v13513_v6 = vpop.f32.mrf.mxu1 }
 0xd94   : > { %7004 = vrot.lane.b32.xlu2 %v4945_v32, %s10239_s25  ;;  %v13570_v32 = vpop.permute.xlu2 %9486 }
 0xd95   : > { %6878 = vrot.lane.b32.xlu1 %v15867_v17, %s10236_s16 }
 0xd96   : > { %8950 = vmatmul.msk.f32.vlgmr.msra.gmra.mxu2 %vm608_vm1, %v15868_v55 }
 0xd97   : > { %5780 = vmatpush.msra.mxu2 %v9448_v19 }
 0xd99   : > { %5781 = vmatpush.msra.mxu2 %v9449_v12  ;;  %v9458_v12 = vunpack.i.l.bf16 %v13234_v39  ;;  %v9468_v39 = vunpack.i.l.bf16 %v13188_v4 }
 0xd9b   : > { %v4948_v62 = vpop.f32.mrf.mxu0 }
 0xd9c   : > { %7006 = vrot.lane.b32.xlu2 %v4948_v62, %s10239_s25  ;;  %v13527_v31 = vpop.f32.mrf.mxu1  ;;  %v13583_v62 = vpop.permute.xlu2 %9501 }
 0xd9d   : > { %6816 = vrot.lane.b32.xlu1 %v15869_v54, %s10237_s21  ;;  %15874 = vst [vmem:[#allocation26_spill] sm:$0xff] %v13527_v31 }
 0xd9e   : > { %8951 = vmatmul.msk.f32.gmra.mxu2 %vm608_vm1, %v15870_v50 }
 0xda3   : > { %v13519_v57 = vpop.f32.mrf.mxu0 }
 0xda4   : > { %15871 = vst [vmem:[#allocation102_spill] sm:$0xff] %v13519_v57  ;;  %v13536_v38 = vpop.f32.mrf.mxu1 }
 0xda5   : > { %6754 = vrot.lane.b32.xlu1 %v15872_v53, %s10235_s22  ;;  %15877 = vst [vmem:[#allocation44_spill] sm:$0xff] %v13536_v38  ;;  %v13594_v53 = vpop.permute.xlu2 %9506 }
 0xda6   : > { %8966 = vmatmul.msk.f32.vlgmr.msrb.gmra.mxu2 %vm608_vm1, %v15873_v48  ;;  %v9469_v48 = vunpack.i.h.bf16 %v13188_v4 }
 0xda7   : > { %5920 = vmatpush.msrb.mxu2 %v9459_v18  ;;  %v15880_v18 = vld [vmem:[#allocation137_spill] sm:$0xff] }
 0xda9   : > { %5921 = vmatpush.msrb.mxu2 %v9464_v45 }
 0xdab   : > { %v13529_v15 = vpop.f32.mrf.mxu0 }
 0xdac   : > { %15875 = vst [vmem:[#allocation121_spill] sm:$0xff] %v13529_v15  ;;  %v13544_v1 = vpop.f32.mrf.mxu1 }
 0xdad   : > { %7008 = vrot.lane.b32.xlu1 %v4980_v49, %s10239_s25  ;;  %v5514_v41 = vsel %vm899_vm2, %v13544_v1, -inf }
 0xdae   : > { %8967 = vmatmul.msk.f32.gmra.mxu2 %vm608_vm1, %v15876_v10  ;;  %v13606_v10 = vpop.permute.xlu0 %6243 }
 0xdb3   : > { %v13538_v47 = vpop.f32.mrf.mxu0 }
 0xdb4   : > { %v5508_v61 = vsel %vm899_vm2, %v13538_v47, -inf  ;;  %v13558_v42 = vpop.f32.mrf.mxu1 }
 0xdb5   : > { %5509 = vmax.xlane.f32.xlu0 %v5508_v61  ;;  %v5517_v25 = vsel %vm899_vm2, %v13558_v42, -inf }
 0xdb7   : > { %v4859_v37 = vpop.xlane.xlu1 %4858 }
 0xdb8   : > { %9896 = vrcp.f32 %v4859_v37 }
 0xdbb   : > { %v13546_v40 = vpop.f32.mrf.mxu0 }
 0xdbc   : > { %v5511_v55 = vsel %vm899_vm2, %v13546_v40, -inf }
 0xdbe   : > { %v9897_v56 = vpop.eup %9896 }
 0xdbf   : > { %v4880_v58 = vpop.xlane.xlu1 %4879  ;;  %v4907_v60 = vmul.f32 %v9897_v56, %v13438_v23  ;;  %v13612_v56 = vpop.permute.xlu0 %6239 }
 0xdc0   : > { %9898 = vrcp.f32 %v4880_v58 }
 0xdc1   : > { %8931 = vmatmul.msk.f32.gmra.mxu3 %vm899_vm2, %v4907_v60 }
 0xdc3   : > { %v13550_v29 = vpop.f32.mrf.mxu0 }
 0xdc4   : > { %v5532_v43 = vsel %vm899_vm2, %v13550_v29, -inf }
 0xdc5   : > { %5515 = vmax.xlane.f32.xlu2 %v5514_v41  ;;  %5533 = vmax.xlane.f32.xlu0 %v5532_v43 }
 0xdc6   : > { %v9899_v35 = vpop.eup %9898 }
 0xdc7   : > { %v4914_v23 = vmul.f32 %v9899_v35, %v13453_v8  ;;  %v4883_v24 = vpop.xlane.xlu1 %4882  ;;  %v13574_v8 = vpop.f32.mrf.mxu1 }
 0xdc8   : > { %9900 = vrcp.f32 %v4883_v24  ;;  %v5538_v17 = vsel %vm899_vm2, %v13574_v8, -inf  ;;  %v13622_v41 = vpop.permute.xlu0 %9471 }
 0xdc9   : > { %8938 = vmatmul.msk.f32.vlgmr.msra.gmra.mxu3 %vm899_vm2, %v4914_v23 }
 0xdca   : > { %8968 = vmatpush.xpose.msk.msra.mxu3 %vm608_vm1, %v15878_v28 }
 0xdcb   : > { %v13564_v20 = vpop.f32.mrf.mxu0 }
 0xdcc   : > { %v5535_v3 = vsel %vm899_vm2, %v13564_v20, -inf }
 0xdcd   : > { %5518 = vmax.xlane.f32.xlu2 %v5517_v25  ;;  %5536 = vmax.xlane.f32.xlu0 %v5535_v3 }
 0xdce   : > { %v9901_v49 = vpop.eup %9900  ;;  %8969 = vmatpush.xpose.msk.msra.mxu3 %vm608_vm1, %v13094_v36  ;;  %v15879_v36 = vld [vmem:[#allocation136_spill] sm:$0xff] }
 0xdcf   : > { %v4915_v19 = vmul.f32 %v9901_v49, %v13461_v11  ;;  %v13585_v54 = vpop.f32.mrf.mxu1  ;;  %v9463_v11 = vunpack.i.l.bf16 %v13046_v59  ;;  %v13600_v59 = vpop.permute.xlu2 %6748 }
 0xdd0   : > { %v5541_v50 = vsel %vm899_vm2, %v13585_v54, -inf  ;;  %15881 = vst [vmem:[#allocation127_spill] sm:$0xff] %v13600_v59  ;;  %v13630_v23 = vpop.permute.xlu0 %9476 }
 0xdd1   : > { %8939 = vmatmul.msk.f32.gmra.mxu3 %vm899_vm2, %v4915_v19 }
 0xdd5   : > { %5539 = vmax.xlane.f32.xlu2 %v5538_v17 }
 0xdd7   : > { %5512 = vmax.xlane.f32.xlu1 %v5511_v55  ;;  %v13604_v45 = vpop.permute.xlu2 %6876 }
 0xdd8   : > { %15882 = vst [vmem:[#allocation117_spill] sm:$0xff] %v13604_v45  ;;  %v13640_v49 = vpop.permute.xlu0 %9491 }
 0xdd9   : > { %8954 = vmatmul.msk.f32.vlgmr.msrb.gmra.mxu3 %vm608_vm1, %v15879_v36 }
 0xdda   : > { %5815 = vmatpush.msrb.mxu3 %v9458_v12 }
 0xddc   : > { %5816 = vmatpush.msrb.mxu3 %v9463_v11 }
 0xddd   : > { %5542 = vmax.xlane.f32.xlu2 %v5541_v50 }
 0xddf   : > { %v13610_v37 = vpop.permute.xlu2 %6814  ;;  %v13616_v4 = vpop.permute.xlu1 %6200 }
 0xde0   : > { %15883 = vst [vmem:[#allocation124_spill] sm:$0xff] %v13610_v37  ;;  %v13650_v36 = vpop.permute.xlu0 %6812 }
 0xde1   : > { %8955 = vmatmul.msk.f32.gmra.mxu3 %vm608_vm1, %v15880_v18  ;;  %15890 = vst [vmem:[#allocation115_spill] sm:$0xff] %v13650_v36 }
 0xde7   : > { %v13620_v60 = vpop.permute.xlu2 %6752  ;;  %v13626_v43 = vpop.permute.xlu1 %6237 }
 0xde8   : > { %15885 = vst [vmem:[#allocation15_spill] sm:$0xff] %v13620_v60 }
 0xde9   : > { %8970 = vmatmul.msk.f32.vlgmr.msra.gmra.mxu3 %vm608_vm1, %v13018_v22 }
 0xdea   : > { %5955 = vmatpush.msra.mxu3 %v9468_v39 }
 0xdec   : > { %5956 = vmatpush.msra.mxu3 %v9469_v48 }
 0xdef   : > { %v13628_v35 = vpop.permute.xlu2 %6944  ;;  %v13636_v25 = vpop.permute.xlu1 %9481 }
 0xdf0   : > { %15887 = vst [vmem:[#allocation107_spill] sm:$0xff] %v13628_v35 }
 0xdf1   : > { %8971 = vmatmul.msk.f32.gmra.mxu3 %vm608_vm1, %v13192_v30  ;;  %v13608_v61 = vpop.f32.mrf.mxu2 }
 0xdf7   : > { %v13638_v3 = vpop.permute.xlu2 %6882  ;;  %v13648_v12 = vpop.permute.xlu1 %9496 }
 0xdf8   : > { %15888 = vst [vmem:[#allocation57_spill] sm:$0xff] %v13638_v3 }
 0xdf9   : > { %v13668_v60 = vpop.f32.mrf.mxu3 }
 0xdff   : > { %v13646_v55 = vpop.permute.xlu2 %7004  ;;  %v13658_v39 = vpop.permute.xlu1 %6940 }
 0xe00   : > { %15889 = vst [vmem:[#allocation52_spill] sm:$0xff] %v13646_v55 }
 0xe01   : > { %v13614_v22 = vpop.f32.mrf.mxu2  ;;  %15892 = vst [vmem:[#allocation132_spill] sm:$0xff] %v13658_v39 }
 0xe07   : > { %v13656_v18 = vpop.permute.xlu2 %7006  ;;  %v13666_v35 = vpop.permute.xlu1 %6878 }
 0xe08   : > { %15891 = vst [vmem:[#allocation49_spill] sm:$0xff] %v13656_v18 }
 0xe09   : > { %v13618_v58 = vpop.f32.mrf.mxu2  ;;  %15894 = vst [vmem:[#allocation113_spill] sm:$0xff] %v13666_v35 }
 0xe0a   : > { %15884 = vst [vmem:[#allocation109_spill] sm:$0xff] %v13618_v58 }
 0xe11   : > { %v13624_v30 = vpop.f32.mrf.mxu2 }
 0xe12   : > { %15886 = vst [vmem:[#allocation55_spill] sm:$0xff] %v13624_v30  ;;  %v13675_v30 = vpop.permute.xlu1 %6816 }
 0xe13   : > { %15897 = vst [vmem:[#allocation70_spill] sm:$0xff] %v13675_v30 }
 0xe19   : > { %v13632_v24 = vpop.f32.mrf.mxu2 }
 0xe1a   : > { %v5520_v28 = vsel %vm899_vm2, %v13632_v24, -inf }
 0xe1b   : > { %5521 = vmax.xlane.f32.xlu1 %v5520_v28 }
 0xe21   : > { %v13642_v19 = vpop.f32.mrf.mxu2 }
 0xe22   : > { %v5523_v17 = vsel %vm899_vm2, %v13642_v19, -inf }
 0xe23   : > { %5524 = vmax.xlane.f32.xlu1 %v5523_v17  ;;  %v13664_v17 = vpop.permute.xlu0 %6750 }
 0xe24   : > { %15893 = vst [vmem:[#allocation84_spill] sm:$0xff] %v13664_v17 }
 0xe29   : > { %v13652_v11 = vpop.f32.mrf.mxu2 }
 0xe2a   : > { %v5544_v50 = vsel %vm899_vm2, %v13652_v11, -inf }
 0xe2b   : > { %5545 = vmax.xlane.f32.xlu1 %v5544_v50  ;;  %v13670_v37 = vpop.permute.xlu0 %6942 }
 0xe2c   : > { %15895 = vst [vmem:[#allocation74_spill] sm:$0xff] %v13670_v37  ;;  %v13685_v37 = vpop.permute.xlu1 %6754 }
 0xe2d   : > { %15900 = vst [vmem:[#allocation114_spill] sm:$0xff] %v13685_v37 }
 0xe31   : > { %v13660_v48 = vpop.f32.mrf.mxu2 }
 0xe32   : > { %v5547_v28 = vsel %vm899_vm2, %v13660_v48, -inf }
 0xe33   : > { %5548 = vmax.xlane.f32.xlu1 %v5547_v28  ;;  %v13677_v39 = vpop.permute.xlu0 %6880 }
 0xe34   : > { %15898 = vst [vmem:[#allocation16_spill] sm:$0xff] %v13677_v39 }
 0xe38   : > { %v5516_v3 = vpop.xlane.xlu2 %5515 }
 0xe39   : > { %v5558_v59 = vsub.f32 %v13544_v1, %v5516_v3 }
 0xe3b   : > { %v13687_v45 = vpop.permute.xlu0 %6818 }
 0xe3c   : > { %15901 = vst [vmem:[#allocation17_spill] sm:$0xff] %v13687_v45 }
 0xe40   : > { %v5519_v50 = vpop.xlane.xlu2 %5518 }
 0xe41   : > { %v5559_v18 = vsub.f32 %v13558_v42, %v5519_v50 }
 0xe43   : > { %v5578_v58 = vmul.f32 1.442695, %v5559_v18  ;;  %v13691_v18 = vpop.permute.xlu1 %7008  ;;  %v5510_v50 = vpop.xlane.xlu0 %5509 }
 0xe44   : > { %v13673_v55 = vpop.f32.mrf.mxu3  ;;  %15903 = vst [vmem:[#allocation82_spill] sm:$0xff] %v13691_v18 }
 0xe45   : > { %15896 = vst [vmem:[#allocation14_spill] sm:$0xff] %v13673_v55  ;;  %9902 = vpow2.f32 %v5578_v58  ;;  %v5556_v58 = vsub.f32 %v13538_v47, %v5510_v50 }
 0xe47   : > { %v5572_v30 = vmul.f32 1.442695, %v5556_v58 }
 0xe48   : > { %v5540_v45 = vpop.xlane.xlu2 %5539 }
 0xe49   : > { %9904 = vpow2.f32 %v5572_v30  ;;  %v5566_v1 = vsub.f32 %v13574_v8, %v5540_v45 }
 0xe4b   : > { %v13679_v17 = vpop.eup %9902  ;;  %v5513_v36 = vpop.xlane.xlu1 %5512 }
 0xe4c   : > { %v13681_v28 = vpop.f32.mrf.mxu3  ;;  %v5613_v35 = vsel %vm899_vm2, %v13679_v17, 0.0  ;;  %v5534_v47 = vpop.xlane.xlu0 %5533 }
 0xe4d   : > { %15899 = vst [vmem:[#allocation75_spill] sm:$0xff] %v13681_v28  ;;  %5614 = vadd.xlane.f32.xlu1 %v5613_v35  ;;  %v5557_v35 = vsub.f32 %v13546_v40, %v5513_v36  ;;  %v5576_v36 = vmul.f32 1.442695, %v5558_v59  ;;  %v5592_v59 = vmul.f32 1.442695, %v5566_v1 }
 0xe4f   : > { %v5574_v18 = vmul.f32 1.442695, %v5557_v35  ;;  %v13703_v50 = vpop.eup %9904 }
 0xe50   : > { %v5604_v40 = vsel %vm899_vm2, %v13703_v50, 0.0  ;;  %v5543_v35 = vpop.xlane.xlu2 %5542 }
 0xe51   : > { %9906 = vpow2.f32 %v5574_v18 }
 0xe52   : > { %9908 = vpow2.f32 %v5576_v36 }
 0xe54   : > { %v13689_v42 = vpop.f32.mrf.mxu3 }
 0xe55   : > { %15902 = vst [vmem:[#allocation66_spill] sm:$0xff] %v13689_v42 }
 0xe57   : > { %v13713_v15 = vpop.eup %9906 }
 0xe5c   : > { %v13694_v39 = vpop.f32.mrf.mxu3 }
 0xe5d   : > { %v5526_v28 = vsel %vm899_vm2, %v13694_v39, -inf }
 0xe5e   : > { %5527 = vmax.xlane.f32.xlu0 %v5526_v28  ;;  %v5564_v28 = vsub.f32 %v13550_v29, %v5534_v47  ;;  %v5567_v29 = vsub.f32 %v13585_v54, %v5543_v35  ;;  %v5607_v47 = vsel %vm899_vm2, %v13713_v15, 0.0 }
 0xe64   : > { %v13699_v37 = vpop.f32.mrf.mxu3 }
 0xe65   : > { %v5529_v42 = vsel %vm899_vm2, %v13699_v37, -inf }
 0xe66   : > { %5530 = vmax.xlane.f32.xlu0 %v5529_v42  ;;  %v5588_v42 = vmul.f32 1.442695, %v5564_v28  ;;  %v5594_v28 = vmul.f32 1.442695, %v5567_v29 }
 0xe68   : > { %9910 = vpow2.f32 %v5588_v42 }
 0xe69   : > { %9912 = vpow2.f32 %v5592_v59 }
 0xe6a   : > { %9914 = vpow2.f32 %v5594_v28 }
 0xe6c   : > { %v13707_v58 = vpop.f32.mrf.mxu3 }
 0xe6d   : > { %v5550_v30 = vsel %vm899_vm2, %v13707_v58, -inf }
 0xe6e   : > { %5605 = vadd.xlane.f32.xlu0 %v5604_v40  ;;  %5551 = vmax.xlane.f32.xlu2 %v5550_v30  ;;  %v13723_v40 = vpop.eup %9908  ;;  %v5537_v30 = vpop.xlane.xlu0 %5536 }
 0xe6f   : > { %v13725_v36 = vpop.eup %9910  ;;  %v5565_v8 = vsub.f32 %v13564_v20, %v5537_v30  ;;  %v5610_v54 = vsel %vm899_vm2, %v13723_v40, 0.0 }
 0xe70   : > { %v5628_v45 = vsel %vm899_vm2, %v13725_v36, 0.0  ;;  %v13732_v35 = vpop.eup %9912 }
 0xe71   : > { %v5590_v42 = vmul.f32 1.442695, %v5565_v8  ;;  %v13734_v1 = vpop.eup %9914  ;;  %v5634_v29 = vsel %vm899_vm2, %v13732_v35, 0.0 }
 0xe72   : > { %v5637_v20 = vsel %vm899_vm2, %v13734_v1, 0.0 }
 0xe73   : > { %9916 = vpow2.f32 %v5590_v42 }
 0xe74   : > { %v13717_v3 = vpop.f32.mrf.mxu3 }
 0xe75   : > { %v5553_v18 = vsel %vm899_vm2, %v13717_v3, -inf }
 0xe76   : > { %5554 = vmax.xlane.f32.xlu2 %v5553_v18  ;;  %5608 = vadd.xlane.f32.xlu0 %v5607_v47 }
 0xe79   : > { %v13740_v18 = vpop.eup %9916 }
 0xe7a   : > { %v5631_v47 = vsel %vm899_vm2, %v13740_v18, 0.0 }
 0xe7e   : > { %5611 = vadd.xlane.f32.xlu2 %v5610_v54  ;;  %5629 = vadd.xlane.f32.xlu0 %v5628_v45  ;;  %v15904_v45 = vld [vmem:[#allocation19_spill] sm:$0xff] }
 0xe86   : > { %5635 = vadd.xlane.f32.xlu2 %v5634_v29  ;;  %5638 = vadd.xlane.f32.xlu0 %v5637_v20 }
 0xe8e   : > { %5632 = vadd.xlane.f32.xlu2 %v5631_v47  ;;  %v5522_v59 = vpop.xlane.xlu1 %5521 }
 0xe8f   : > { %v5560_v28 = vsub.f32 %v13632_v24, %v5522_v59 }
 0xe91   : > { %v5580_v30 = vmul.f32 1.442695, %v5560_v28 }
 0xe93   : > { %9918 = vpow2.f32 %v5580_v30 }
 0xe96   : > { %v5525_v42 = vpop.xlane.xlu1 %5524 }
 0xe97   : > { %v5561_v28 = vsub.f32 %v13642_v19, %v5525_v42 }
 0xe99   : > { %v13745_v8 = vpop.eup %9918 }
 0xe9a   : > { %v5616_v54 = vsel %vm899_vm2, %v13745_v8, 0.0 }
 0xe9b   : > { %5617 = vadd.xlane.f32.xlu2 %v5616_v54  ;;  %v5582_v54 = vmul.f32 1.442695, %v5561_v28 }
 0xe9e   : > { %v5546_v29 = vpop.xlane.xlu1 %5545 }
 0xea6   : > { %v5549_v20 = vpop.xlane.xlu1 %5548 }
 0xea7   : > { %v5569_v24 = vsub.f32 %v13660_v48, %v5549_v20 }
 0xea9   : > { %v5598_v38 = vmul.f32 1.442695, %v5569_v24 }
 0xeb3   : > { %6820 = vrot.lane.b32.xlu2 %v15904_v45, %s10237_s21 }
 0xebb   : > { %7012 = vrot.lane.b32.xlu2 %v13608_v61, %s10239_s25  ;;  %v5568_v61 = vsub.f32 %v13652_v11, %v5546_v29 }
 0xed1   : > { %v5528_v47 = vpop.xlane.xlu0 %5527 }
 0xed2   : > { %v5562_v59 = vsub.f32 %v13694_v39, %v5528_v47  ;;  %v5596_v39 = vmul.f32 1.442695, %v5568_v61 }
 0xed4   : > { %v5584_v30 = vmul.f32 1.442695, %v5562_v59 }
 0xed6   : > { %9920 = vpow2.f32 %v5584_v30 }
 0xed7   : > { %9922 = vpow2.f32 %v5598_v38 }
 0xed8   : > { %9924 = vpow2.f32 %v5582_v54 }
 0xed9   : > { %v5531_v31 = vpop.xlane.xlu0 %5530 }
 0xeda   : > { %v5563_v45 = vsub.f32 %v13699_v37, %v5531_v31 }
 0xedc   : > { %v13757_v57 = vpop.eup %9920  ;;  %v5586_v55 = vmul.f32 1.442695, %v5563_v45 }
 0xedd   : > { %v5622_v48 = vsel %vm899_vm2, %v13757_v57, 0.0  ;;  %v13762_v19 = vpop.eup %9922 }
 0xede   : > { %9926 = vpow2.f32 %v5586_v55  ;;  %5623 = vadd.xlane.f32.xlu0 %v5622_v48  ;;  %v13766_v38 = vpop.eup %9924  ;;  %v5643_v31 = vsel %vm899_vm2, %v13762_v19, 0.0  ;;  %v5615_v48 = vpop.xlane.xlu1 %5614 }
 0xedf   : > { %v5619_v11 = vsel %vm899_vm2, %v13766_v38, 0.0 }
 0xee1   : > { %v5606_v42 = vpop.xlane.xlu0 %5605  ;;  %v13764_v20 = vpop.xlane.xlu2 %5551 }
 0xee2   : > { %9928 = vrcp.f32 %v5606_v42 }
 0xee3   : > { %9930 = vpow2.f32 %v5596_v39 }
 0xee4   : > { %v13770_v37 = vpop.eup %9926  ;;  %5644 = vadd.xlane.f32.xlu2 %v5643_v31 }
 0xee5   : > { %v5625_v55 = vsel %vm899_vm2, %v13770_v37, 0.0 }
 0xee6   : > { %5626 = vadd.xlane.f32.xlu1 %v5625_v55  ;;  %5620 = vadd.xlane.f32.xlu0 %v5619_v11  ;;  %v15907_v11 = vld [vmem:[#allocation32_spill] sm:$0xff] }
 0xee8   : > { %v9929_v29 = vpop.eup %9928 }
 0xee9   : > { %v5668_v47 = vmul.f32 %v9929_v29, %v13703_v50  ;;  %v13777_v24 = vpop.xlane.xlu2 %5554  ;;  %v5609_v59 = vpop.xlane.xlu0 %5608 }
 0xeea   : > { %v13779_v28 = vpop.eup %9930  ;;  %9932 = vrcp.f32 %v5609_v59  ;;  %v15910_v59 = vld [vmem:[#allocation80_spill] sm:$0xff] }
 0xeeb   : > { %8972 = vmatmul.msk.f32.vlgmr.msrb.gmra.mxu0 %vm899_vm2, %v5668_v47  ;;  %v5640_v30 = vsel %vm899_vm2, %v13779_v28, 0.0  ;;  %v15909_v47 = vld [vmem:[#allocation106_spill] sm:$0xff] }
 0xeec   : > { %8988 = vmatpush.xpose.msk.msrb.mxu0 %vm608_vm1, %v13034_v2 }
 0xeee   : > { %5641 = vadd.xlane.f32.xlu1 %v5640_v30  ;;  %v15911_v30 = vld [vmem:[#allocation34_spill] sm:$0xff] }
 0xef0   : > { %v9933_v54 = vpop.eup %9932  ;;  %8989 = vmatpush.xpose.msk.msrb.mxu0 %vm608_vm1, %v13118_v9  ;;  %v15905_v9 = vld [vmem:[#allocation65_spill] sm:$0xff] }
 0xef1   : > { %v5612_v50 = vpop.xlane.xlu2 %5611  ;;  %v5630_v45 = vpop.xlane.xlu0 %5629  ;;  %v5669_v61 = vmul.f32 %v9933_v54, %v13713_v15 }
 0xef2   : > { %9934 = vrcp.f32 %v5612_v50  ;;  %v15912_v50 = vld [vmem:[#allocation108_spill] sm:$0xff] }
 0xef3   : > { %9936 = vrcp.f32 %v5630_v45  ;;  %8973 = vmatmul.msk.f32.gmra.mxu0 %vm899_vm2, %v5669_v61  ;;  %v9478_v61 = vunpack.i.l.bf16 %v13630_v23 }
 0xef4   : > { %9938 = vrcp.f32 %v5615_v48  ;;  %v15914_v48 = vld [vmem:[#allocation29_spill] sm:$0xff] }
 0xef8   : > { %v9935_v39 = vpop.eup %9934 }
 0xef9   : > { %v9937_v2 = vpop.eup %9936  ;;  %v5670_v42 = vmul.f32 %v9935_v39, %v13723_v40  ;;  %v5636_v31 = vpop.xlane.xlu2 %5635  ;;  %v15915_v39 = vld [vmem:[#allocation123_spill] sm:$0xff] }
 0xefa   : > { %v5676_v55 = vmul.f32 %v9937_v2, %v13725_v36  ;;  %7010 = vrot.lane.b32.xlu0 %v13513_v6, %s10239_s25  ;;  %v9939_v15 = vpop.eup %9938  ;;  %9940 = vrcp.f32 %v5636_v31  ;;  %v9479_v2 = vunpack.i.h.bf16 %v13630_v23  ;;  %v9494_v23 = vunpack.i.h.bf16 %v13640_v49 }
 0xefb   : > { %8974 = vmatmul.msk.f32.vlgmr.msra.gmra.mxu1 %vm899_vm2, %v5670_v42  ;;  %v5671_v40 = vmul.f32 %v9939_v15, %v13679_v17  ;;  %v9493_v42 = vunpack.i.l.bf16 %v13640_v49  ;;  %v5571_v49 = vsub.f32 %v13717_v3, %v13777_v24 }
 0xefc   : > { %8980 = vmatmul.msk.f32.vlgmr.msra.gmra.mxu0 %vm899_vm2, %v5676_v55  ;;  %8992 = vmatpush.xpose.msk.msra.mxu1 %vm608_vm1, %v13116_v0  ;;  %v15906_v0 = vld [vmem:[#allocation83_spill] sm:$0xff]  ;;  %v15917_v55 = vld [vmem:[#allocation126_spill] sm:$0xff] }
 0xefd   : > { %9004 = vmatpush.xpose.msk.msra.mxu0 %vm608_vm1, %v13200_v27  ;;  %6758 = vrot.lane.b32.xlu2 %v15905_v9, %s10235_s22  ;;  %v5639_v27 = vpop.xlane.xlu0 %5638  ;;  %v5602_v9 = vmul.f32 1.442695, %v5571_v49 }
 0xf00   : > { %8993 = vmatpush.xpose.msk.msra.mxu1 %vm608_vm1, %v13248_v44  ;;  %v9941_v36 = vpop.eup %9940 }
 0xf01   : > { %9005 = vmatpush.xpose.msk.msra.mxu0 %vm608_vm1, %v13186_v63  ;;  %v5633_v6 = vpop.xlane.xlu2 %5632  ;;  %v5678_v63 = vmul.f32 %v9941_v36, %v13732_v35 }
 0xf02   : > { %9942 = vrcp.f32 %v5633_v6  ;;  %6756 = vrot.lane.b32.xlu0 %v15906_v0, %s10235_s22 }
 0xf03   : > { %8975 = vmatmul.msk.f32.gmra.mxu1 %vm899_vm2, %v5671_v40  ;;  %9944 = vrcp.f32 %v5639_v27  ;;  %v15920_v40 = vld [vmem:[#allocation91_spill] sm:$0xff] }
 0xf05   : > { %6950 = vrot.lane.b32.xlu2 %v13202_v51, %s10238_s13  ;;  %v15908_v51 = vld [vmem:[#allocation61_spill] sm:$0xff] }
 0xf07   : > { %6946 = vrot.lane.b32.xlu1 %v13092_v34, %s10238_s13 }
 0xf08   : > { %v9943_v44 = vpop.eup %9942 }
 0xf09   : > { %v5677_v17 = vmul.f32 %v9943_v44, %v13740_v18  ;;  %v9945_v34 = vpop.eup %9944  ;;  %v9473_v18 = vunpack.i.l.bf16 %v13622_v41 }
 0xf0a   : > { %6948 = vrot.lane.b32.xlu0 %v15907_v11, %s10238_s13  ;;  %v5679_v35 = vmul.f32 %v9945_v34, %v13734_v1  ;;  %v15913_v1 = vld [vmem:[#allocation110_spill] sm:$0xff] }
 0xf0b   : > { %8981 = vmatmul.msk.f32.gmra.mxu0 %vm899_vm2, %v5677_v17  ;;  %8982 = vmatmul.msk.f32.vlgmr.msrb.gmra.mxu1 %vm899_vm2, %v5678_v63 }
 0xf0c   : > { %9008 = vmatpush.xpose.msk.msrb.mxu1 %vm608_vm1, %v13326_v21  ;;  %v9474_v21 = vunpack.i.h.bf16 %v13622_v41  ;;  %v15916_v41 = vld [vmem:[#allocation85_spill] sm:$0xff] }
 0xf0d   : > { %6888 = vrot.lane.b32.xlu2 %v15908_v51, %s10236_s16 }
 0xf0e   : > { %v5618_v29 = vpop.xlane.xlu2 %5617 }
 0xf0f   : > { %9946 = vrcp.f32 %v5618_v29  ;;  %v15923_v29 = vld [vmem:[#allocation93_spill] sm:$0xff] }
 0xf10   : > { %9009 = vmatpush.xpose.msk.msrb.mxu1 %vm608_vm1, %v15909_v47 }
 0xf12   : > { %6886 = vrot.lane.b32.xlu0 %v15910_v59, %s10236_s16 }
 0xf13   : > { %8983 = vmatmul.msk.f32.gmra.mxu1 %vm899_vm2, %v5679_v35  ;;  %8990 = vmatmul.msk.f32.vlgmr.msrb.gmra.mxu0 %vm608_vm1, %v15911_v30  ;;  %v9483_v30 = vunpack.i.l.bf16 %v13636_v25 }
 0xf14   : > { %6478 = vmatpush.msrb.mxu0 %v9473_v18  ;;  %v15925_v18 = vld [vmem:[#allocation53_spill] sm:$0xff] }
 0xf15   : > { %v9947_v54 = vpop.eup %9946  ;;  %6826 = vrot.lane.b32.xlu2 %v15912_v50, %s10237_s21 }
 0xf16   : > { %v5672_v45 = vmul.f32 %v9947_v54, %v13745_v8  ;;  %6479 = vmatpush.msrb.mxu0 %v9474_v21  ;;  %v5570_v8 = vsub.f32 %v13707_v58, %v13764_v20  ;;  %v15918_v58 = vld [vmem:[#allocation100_spill] sm:$0xff]  ;;  %v15926_v21 = vld [vmem:[#allocation125_spill] sm:$0xff]  ;;  %v15927_v54 = vld [vmem:[#allocation39_spill] sm:$0xff] }
 0xf18   : > { %8976 = vmatmul.msk.f32.vlgmr.msra.gmra.mxu2 %vm899_vm2, %v5672_v45  ;;  %v5600_v31 = vmul.f32 1.442695, %v5570_v8 }
 0xf19   : > { %8996 = vmatpush.xpose.msk.msra.mxu2 %vm608_vm1, %v15913_v1 }
 0xf1a   : > { %6824 = vrot.lane.b32.xlu0 %v15914_v48, %s10237_s21  ;;  %9948 = vpow2.f32 %v5600_v31 }
 0xf1b   : > { %8991 = vmatmul.msk.f32.gmra.mxu0 %vm608_vm1, %v15915_v39  ;;  %8994 = vmatmul.msk.f32.vlgmr.msra.gmra.mxu1 %vm608_vm1, %v15916_v41  ;;  %9950 = vpow2.f32 %v5602_v9 }
 0xf1c   : > { %6513 = vmatpush.msra.mxu1 %v9478_v61  ;;  %v9503_v61 = vunpack.i.l.bf16 %v13583_v62 }
 0xf1d   : > { %8997 = vmatpush.xpose.msk.msra.mxu2 %vm608_vm1, %v13265_v33  ;;  %v9498_v33 = vunpack.i.l.bf16 %v13648_v12 }
 0xf1e   : > { %6514 = vmatpush.msra.mxu1 %v9479_v2 }
 0xf20   : > { %v13866_v20 = vpop.eup %9948 }
 0xf21   : > { %v13874_v15 = vpop.eup %9950 }
 0xf22   : > { %7016 = vrot.lane.b32.xlu0 %v13668_v60, %s10239_s25  ;;  %v9499_v60 = vunpack.i.h.bf16 %v13648_v12  ;;  %v5649_v12 = vsel %vm899_vm2, %v13874_v15, 0.0 }
 0xf23   : > { %8995 = vmatmul.msk.f32.gmra.mxu1 %vm608_vm1, %v15917_v55  ;;  %9006 = vmatmul.msk.f32.vlgmr.msra.gmra.mxu0 %vm608_vm1, %v13321_v26  ;;  %v5646_v26 = vsel %vm899_vm2, %v13866_v20, 0.0 }
 0xf24   : > { %6618 = vmatpush.msra.mxu0 %v9493_v42 }
 0xf26   : > { %6619 = vmatpush.msra.mxu0 %v9494_v23 }
 0xf2b   : > { %9007 = vmatmul.msk.f32.gmra.mxu0 %vm608_vm1, %v15918_v58  ;;  %9010 = vmatmul.msk.f32.vlgmr.msrb.gmra.mxu1 %vm608_vm1, %v13330_v14  ;;  %v15919_v14 = vld [vmem:[#allocation30_spill] sm:$0xff] }
 0xf2c   : > { %6653 = vmatpush.msrb.mxu1 %v9498_v33 }
 0xf2e   : > { %6654 = vmatpush.msrb.mxu1 %v9499_v60 }
 0xf31   : > { %5647 = vadd.xlane.f32.xlu1 %v5646_v26 }
 0xf33   : > { %9011 = vmatmul.msk.f32.gmra.mxu1 %vm608_vm1, %v13542_v5  ;;  %v13882_v5 = vpop.permute.xlu2 %6820 }
 0xf3b   : > { %v13890_v36 = vpop.permute.xlu2 %7012 }
 0xf4a   : > { %6884 = vrot.lane.b32.xlu1 %v15919_v14, %s10236_s16 }
 0xf4c   : > { %5650 = vadd.xlane.f32.xlu0 %v5649_v12 }
 0xf51   : > { %v5624_v6 = vpop.xlane.xlu0 %5623 }
 0xf52   : > { %9952 = vrcp.f32 %v5624_v6  ;;  %6822 = vrot.lane.b32.xlu1 %v15920_v40, %s10237_s21 }
 0xf58   : > { %v9953_v0 = vpop.eup %9952 }
 0xf59   : > { %v5674_v3 = vmul.f32 %v9953_v0, %v13757_v57  ;;  %v5621_v24 = vpop.xlane.xlu0 %5620  ;;  %v5627_v27 = vpop.xlane.xlu1 %5626  ;;  %v15921_v57 = vld [vmem:[#allocation24_spill] sm:$0xff] }
 0xf5a   : > { %9954 = vrcp.f32 %v5621_v24  ;;  %7014 = vrot.lane.b32.xlu1 %v13614_v22, %s10239_s25  ;;  %v15922_v22 = vld [vmem:[#allocation59_spill] sm:$0xff] }
 0xf5b   : > { %9956 = vrcp.f32 %v5627_v27  ;;  %8978 = vmatmul.msk.f32.vlgmr.msrb.gmra.mxu3 %vm899_vm2, %v5674_v3 }
 0xf5c   : > { %9000 = vmatpush.xpose.msk.msrb.mxu3 %vm608_vm1, %v13307_v16  ;;  %v5645_v16 = vpop.xlane.xlu2 %5644 }
 0xf60   : > { %v9955_v44 = vpop.eup %9954  ;;  %9001 = vmatpush.xpose.msk.msrb.mxu3 %vm608_vm1, %v13309_v13  ;;  %6762 = vrot.lane.b32.xlu0 %v15921_v57, %s10235_s22  ;;  %v15928_v57 = vld [vmem:[#allocation101_spill] sm:$0xff] }
 0xf61   : > { %v9957_v63 = vpop.eup %9956  ;;  %v5642_v17 = vpop.xlane.xlu1 %5641  ;;  %v5673_v11 = vmul.f32 %v9955_v44, %v13766_v38  ;;  %v15924_v38 = vld [vmem:[#allocation112_spill] sm:$0xff]  ;;  %v9488_v44 = vunpack.i.l.bf16 %v13570_v32 }
 0xf62   : > { %9958 = vrcp.f32 %v5642_v17  ;;  %6760 = vrot.lane.b32.xlu1 %v15922_v22, %s10235_s22  ;;  %v5675_v51 = vmul.f32 %v9957_v63, %v13770_v37  ;;  %v9489_v63 = vunpack.i.h.bf16 %v13570_v32  ;;  %v15929_v17 = vld [vmem:[#allocation120_spill] sm:$0xff]  ;;  %v9508_v22 = vunpack.i.l.bf16 %v13594_v53 }
 0xf63   : > { %8977 = vmatmul.msk.f32.gmra.mxu2 %vm899_vm2, %v5673_v11  ;;  %9960 = vrcp.f32 %v5645_v16 }
 0xf64   : > { %8979 = vmatmul.msk.f32.gmra.mxu3 %vm899_vm2, %v5675_v51  ;;  %v14005_v16 = vpop.permute.xlu2 %6758 }
 0xf68   : > { %v9959_v34 = vpop.eup %9958  ;;  %v5713_v35 = vpop.f32.mrf.mxu0 }
 0xf69   : > { %v5680_v13 = vmul.f32 %v9959_v34, %v13779_v28  ;;  %v9961_v47 = vpop.eup %9960 }
 0xf6a   : > { %6952 = vrot.lane.b32.xlu1 %v15923_v29, %s10238_s13  ;;  %v5681_v37 = vmul.f32 %v9961_v47, %v13762_v19 }
 0xf6b   : > { %8984 = vmatmul.msk.f32.vlgmr.msrb.gmra.mxu2 %vm899_vm2, %v5680_v13 }
 0xf6c   : > { %9012 = vmatpush.xpose.msk.msrb.mxu2 %vm608_vm1, %v15924_v38  ;;  %v13926_v45 = vpop.permute.xlu0 %7010  ;;  %v14009_v13 = vpop.permute.xlu2 %6950 }
 0xf70   : > { %9013 = vmatpush.xpose.msk.msrb.mxu2 %vm608_vm1, %v13534_v7  ;;  %v5716_v59 = vpop.f32.mrf.mxu0  ;;  %v9484_v7 = vunpack.i.h.bf16 %v13636_v25  ;;  %v9504_v25 = vunpack.i.h.bf16 %v13583_v62 }
 0xf72   : > { %6890 = vrot.lane.b32.xlu1 %v15925_v18, %s10236_s16 }
 0xf73   : > { %8985 = vmatmul.msk.f32.gmra.mxu2 %vm899_vm2, %v5681_v37 }
 0xf74   : > { %v13936_v39 = vpop.permute.xlu0 %6756 }
 0xf78   : > { %v5748_v28 = vpop.f32.mrf.mxu1 }
 0xf79   : > { %7072 = vrot.lane.b32.xlu0 %v5748_v28, %s10240_s27  ;;  %v13924_v50 = vpop.f32.mrf.mxu0 }
 0xf7a   : > { %7070 = vrot.lane.b32.xlu1 %v5716_v59, %s10240_s27 }
 0xf7b   : > { %8998 = vmatmul.msk.f32.vlgmr.msra.gmra.mxu2 %vm608_vm1, %v15926_v21 }
 0xf7c   : > { %6548 = vmatpush.msra.mxu2 %v9483_v30  ;;  %v13944_v8 = vpop.permute.xlu0 %6948 }
 0xf7e   : > { %6549 = vmatpush.msra.mxu2 %v9484_v7 }
 0xf80   : > { %v5751_v19 = vpop.f32.mrf.mxu1 }
 0xf81   : > { %7068 = vrot.lane.b32.xlu0 %v5713_v35, %s10240_s27  ;;  %7074 = vrot.lane.b32.xlu2 %v5751_v19, %s10240_s27 }
 0xf83   : > { %8999 = vmatmul.msk.f32.gmra.mxu2 %vm608_vm1, %v15927_v54 }
 0xf84   : > { %v13952_v31 = vpop.permute.xlu0 %6886 }
 0xf88   : > { %v13928_v1 = vpop.f32.mrf.mxu1  ;;  %v13934_v48 = vpop.f32.mrf.mxu0 }
 0xf8b   : > { %9014 = vmatmul.msk.f32.vlgmr.msrb.gmra.mxu2 %vm608_vm1, %v13474_v46  ;;  %v13948_v46 = vpop.permute.xlu1 %6946 }
 0xf8c   : > { %6688 = vmatpush.msrb.mxu2 %v9503_v61  ;;  %v13963_v49 = vpop.permute.xlu0 %6824 }
 0xf8e   : > { %6689 = vmatpush.msrb.mxu2 %v9504_v25 }
 0xf90   : > { %v13938_v41 = vpop.f32.mrf.mxu1  ;;  %v13942_v2 = vpop.f32.mrf.mxu0 }
 0xf93   : > { %9015 = vmatmul.msk.f32.gmra.mxu2 %vm608_vm1, %v13616_v4  ;;  %v6276_v4 = vsel %vm899_vm2, %v13942_v2, -inf }
 0xf94   : > { %v13978_v6 = vpop.permute.xlu0 %7016 }
 0xf98   : > { %v13946_v42 = vpop.f32.mrf.mxu1  ;;  %v13950_v62 = vpop.f32.mrf.mxu0 }
 0xf99   : > { %v6279_v55 = vsel %vm899_vm2, %v13950_v62, -inf  ;;  %v6282_v58 = vsel %vm899_vm2, %v13946_v42, -inf }
 0xfa0   : > { %v13956_v33 = vpop.f32.mrf.mxu1 }
 0xfa1   : > { %v6285_v14 = vsel %vm899_vm2, %v13956_v33, -inf }
 0xfa4   : > { %6280 = vmax.xlane.f32.xlu1 %v6279_v55  ;;  %v5648_v23 = vpop.xlane.xlu1 %5647 }
 0xfa5   : > { %9962 = vrcp.f32 %v5648_v23 }
 0xfa8   : > { %v13966_v9 = vpop.f32.mrf.mxu1 }
 0xfa9   : > { %v6306_v12 = vsel %vm899_vm2, %v13966_v9, -inf }
 0xfaa   : > { %6277 = vmax.xlane.f32.xlu2 %v6276_v4 }
 0xfab   : > { %v9963_v60 = vpop.eup %9962  ;;  %6283 = vmax.xlane.f32.xlu0 %v6282_v58 }
 0xfac   : > { %v5682_v26 = vmul.f32 %v9963_v60, %v13866_v20  ;;  %v13976_v20 = vpop.f32.mrf.mxu0 }
 0xfad   : > { %v6300_v40 = vsel %vm899_vm2, %v13976_v20, -inf }
 0xfae   : > { %8986 = vmatmul.msk.f32.vlgmr.msra.gmra.mxu3 %vm899_vm2, %v5682_v26 }
 0xfaf   : > { %9016 = vmatpush.xpose.msk.msra.mxu3 %vm608_vm1, %v13606_v10  ;;  %v5783_v10 = vpop.f32.mrf.mxu2 }
 0xfb0   : > { %v13983_v0 = vpop.f32.mrf.mxu1 }
 0xfb1   : > { %v6309_v24 = vsel %vm899_vm2, %v13983_v0, -inf }
 0xfb2   : > { %6286 = vmax.xlane.f32.xlu2 %v6285_v14 }
 0xfb3   : > { %9017 = vmatpush.xpose.msk.msra.mxu3 %vm608_vm1, %v13552_v52  ;;  %6307 = vmax.xlane.f32.xlu0 %v6306_v12 }
 0xfb4   : > { %v14017_v38 = vpop.f32.mrf.mxu0 }
 0xfba   : > { %6301 = vmax.xlane.f32.xlu2 %v6300_v40 }
 0xfbc   : > { %v14035_v21 = vpop.permute.xlu1 %6884 }
 0xfbd   : > { %7076 = vrot.lane.b32.xlu1 %v5783_v10, %s10240_s27 }
 0xfbf   : > { %v5651_v3 = vpop.xlane.xlu0 %5650 }
 0xfc0   : > { %9964 = vrcp.f32 %v5651_v3 }
 0xfc2   : > { %6310 = vmax.xlane.f32.xlu2 %v6309_v24 }
 0xfc4   : > { %v14040_v55 = vpop.permute.xlu1 %6822 }
 0xfc6   : > { %v9965_v52 = vpop.eup %9964 }
 0xfc7   : > { %v5683_v27 = vmul.f32 %v9965_v52, %v13874_v15  ;;  %v9509_v15 = vunpack.i.h.bf16 %v13594_v53 }
 0xfc9   : > { %8987 = vmatmul.msk.f32.gmra.mxu3 %vm899_vm2, %v5683_v27 }
 0xfd1   : > { %9002 = vmatmul.msk.f32.vlgmr.msrb.gmra.mxu3 %vm608_vm1, %v15928_v57 }
 0xfd2   : > { %6583 = vmatpush.msrb.mxu3 %v9488_v44  ;;  %v14049_v14 = vpop.permute.xlu0 %6762 }
 0xfd4   : > { %6584 = vmatpush.msrb.mxu3 %v9489_v63 }
 0xfd9   : > { %9003 = vmatmul.msk.f32.gmra.mxu3 %vm608_vm1, %v15929_v17 }
 0xfde   : > { %v5818_v11 = vpop.f32.mrf.mxu3 }
 0xfdf   : > { %7080 = vrot.lane.b32.xlu2 %v5818_v11, %s10240_s27 }
 0xfe1   : > { %9018 = vmatmul.msk.f32.vlgmr.msra.gmra.mxu3 %vm608_vm1, %v13626_v43  ;;  %v14015_v43 = vpop.permute.xlu2 %6888 }
 0xfe2   : > { %6723 = vmatpush.msra.mxu3 %v9508_v22 }
 0xfe4   : > { %6724 = vmatpush.msra.mxu3 %v9509_v15 }
 0xfe6   : > { %v5786_v51 = vpop.f32.mrf.mxu2 }
 0xfe7   : > { %7078 = vrot.lane.b32.xlu0 %v5786_v51, %s10240_s27  ;;  %v14057_v3 = vpop.f32.mrf.mxu3 }
 0xfe9   : > { %9019 = vmatmul.msk.f32.gmra.mxu3 %vm608_vm1, %v13612_v56  ;;  %v6303_v56 = vsel %vm899_vm2, %v14017_v38, -inf  ;;  %v14023_v35 = vpop.permute.xlu2 %6826 }
 0xfeb   : > { %v14059_v24 = vpop.permute.xlu0 %7072 }
 0xfee   : > { %v14003_v32 = vpop.f32.mrf.mxu2 }
 0xff1   : > { %v14029_v28 = vpop.permute.xlu2 %7074 }
 0xff3   : > { %v14065_v27 = vpop.permute.xlu0 %7068 }
 0xff6   : > { %v14007_v34 = vpop.f32.mrf.mxu2 }
 0xffe   : > { %v14011_v29 = vpop.f32.mrf.mxu2 }
 0xfff   : > { %v6288_v53 = vsel %vm899_vm2, %v14011_v29, -inf }
0x1000   : > { %6289 = vmax.xlane.f32.xlu1 %v6288_v53 }
0x1006   : > { %v14021_v47 = vpop.f32.mrf.mxu2 }
0x1007   : > { %v6291_v37 = vsel %vm899_vm2, %v14021_v47, -inf }
0x1008   : > { %6304 = vmax.xlane.f32.xlu2 %v6303_v56 }
0x100e   : > { %v14027_v18 = vpop.f32.mrf.mxu2 }
0x100f   : > { %v6312_v59 = vsel %vm899_vm2, %v14027_v18, -inf }
0x1010   : > { %6292 = vmax.xlane.f32.xlu2 %v6291_v37 }
0x1016   : > { %v14033_v30 = vpop.f32.mrf.mxu2 }
0x1017   : > { %v6315_v54 = vsel %vm899_vm2, %v14033_v30, -inf }
0x1018   : > { %6313 = vmax.xlane.f32.xlu2 %v6312_v59 }
0x101d   : > { %v6278_v7 = vpop.xlane.xlu2 %6277 }
0x101e   : > { %v6324_v19 = vsub.f32 %v13942_v2, %v6278_v7  ;;  %v14047_v2 = vpop.permute.xlu1 %7014  ;;  %v6284_v63 = vpop.xlane.xlu0 %6283 }
0x101f   : > { %v6326_v17 = vsub.f32 %v13946_v42, %v6284_v63 }
0x1020   : > { %v6340_v61 = vmul.f32 1.442695, %v6324_v19  ;;  %6316 = vmax.xlane.f32.xlu2 %v6315_v54 }
0x1021   : > { %v6344_v15 = vmul.f32 1.442695, %v6326_v17 }
0x1022   : > { %9966 = vpow2.f32 %v6340_v61 }
0x1025   : > { %v6287_v25 = vpop.xlane.xlu2 %6286 }
0x1026   : > { %v14055_v10 = vpop.permute.xlu1 %6760  ;;  %v6327_v53 = vsub.f32 %v13956_v33, %v6287_v25 }
0x1028   : > { %v14042_v23 = vpop.eup %9966  ;;  %v6346_v59 = vmul.f32 1.442695, %v6327_v53 }
0x1029   : > { %v6372_v4 = vsel %vm899_vm2, %v14042_v23, 0.0 }
0x102a   : > { %6373 = vadd.xlane.f32.xlu2 %v6372_v4  ;;  %v6308_v4 = vpop.xlane.xlu0 %6307 }
0x102d   : > { %v6302_v58 = vpop.xlane.xlu2 %6301 }
0x102e   : > { %v6332_v60 = vsub.f32 %v13976_v20, %v6302_v58  ;;  %v14063_v20 = vpop.permute.xlu1 %6952  ;;  %v15930_v58 = vld [vmem:[#allocation99_spill] sm:$0xff] }
0x1030   : > { %v6356_v26 = vmul.f32 1.442695, %v6332_v60 }
0x1031   : > { %v14061_v52 = vpop.f32.mrf.mxu3 }
0x1032   : > { %9968 = vpow2.f32 %v6356_v26  ;;  %v6334_v26 = vsub.f32 %v13966_v9, %v6308_v4 }
0x1033   : > { %9970 = vpow2.f32 %v6344_v15 }
0x1034   : > { %9972 = vpow2.f32 %v6346_v59 }
0x1035   : > { %v6311_v33 = vpop.xlane.xlu2 %6310 }
0x1036   : > { %v14069_v57 = vpop.permute.xlu1 %6890 }
0x1038   : > { %v14051_v12 = vpop.eup %9968 }
0x1039   : > { %v6396_v40 = vsel %vm899_vm2, %v14051_v12, 0.0  ;;  %v14083_v7 = vpop.eup %9970 }
0x103a   : > { %6397 = vadd.xlane.f32.xlu2 %v6396_v40  ;;  %v6378_v54 = vsel %vm899_vm2, %v14083_v7, 0.0  ;;  %v14088_v25 = vpop.eup %9972  ;;  %v6360_v40 = vmul.f32 1.442695, %v6334_v26 }
0x103d   : > { %v14099_v17 = vpop.permute.xlu2 %7080 }
0x103e   : > { %v14076_v51 = vpop.permute.xlu1 %7070 }
0x1046   : > { %v6281_v42 = vpop.xlane.xlu1 %6280 }
0x1047   : > { %v6325_v19 = vsub.f32 %v13950_v62, %v6281_v42  ;;  %v6381_v62 = vsel %vm899_vm2, %v14088_v25, 0.0 }
0x1049   : > { %v6342_v61 = vmul.f32 1.442695, %v6325_v19 }
0x104b   : > { %9974 = vpow2.f32 %v6342_v61 }
0x104c   : > { %v14067_v44 = vpop.f32.mrf.mxu3  ;;  %9976 = vpow2.f32 %v6360_v40 }
0x104e   : > { %v14092_v60 = vpop.permute.xlu1 %7076 }
0x1051   : > { %v14097_v63 = vpop.eup %9974 }
0x1052   : > { %v6375_v53 = vsel %vm899_vm2, %v14097_v63, 0.0  ;;  %v14104_v9 = vpop.eup %9976 }
0x1053   : > { %v6402_v19 = vsel %vm899_vm2, %v14104_v9, 0.0 }
0x1054   : > { %v14072_v11 = vpop.f32.mrf.mxu3 }
0x1055   : > { %v6294_v22 = vsel %vm899_vm2, %v14072_v11, -inf }
0x1056   : > { %6295 = vmax.xlane.f32.xlu0 %v6294_v22 }
0x105c   : > { %v14079_v56 = vpop.f32.mrf.mxu3 }
0x105d   : > { %v6297_v37 = vsel %vm899_vm2, %v14079_v56, -inf }
0x105e   : > { %6298 = vmax.xlane.f32.xlu1 %v6297_v37 }
0x1066   : > { %6379 = vadd.xlane.f32.xlu1 %v6378_v54 }
0x106a   : > { %6954 = vrot.lane.b32.xlu0 %v15930_v58, %s10238_s13 }
0x106e   : > { %6382 = vadd.xlane.f32.xlu1 %v6381_v62 }
0x1073   : > { %v6290_v22 = vpop.xlane.xlu1 %6289 }
0x1074   : > { %v6328_v15 = vsub.f32 %v14011_v29, %v6290_v22 }
0x1076   : > { %v6348_v37 = vmul.f32 1.442695, %v6328_v15  ;;  %6376 = vadd.xlane.f32.xlu1 %v6375_v53  ;;  %v14120_v15 = vpop.f32.mrf.mxu3 }
0x1078   : > { %9978 = vpow2.f32 %v6348_v37  ;;  %v6335_v37 = vsub.f32 %v13983_v0, %v6311_v33 }
0x107b   : > { %v6305_v59 = vpop.xlane.xlu2 %6304 }
0x107c   : > { %v6333_v42 = vsub.f32 %v14017_v38, %v6305_v59 }
0x107e   : > { %v14109_v54 = vpop.eup %9978  ;;  %v6358_v61 = vmul.f32 1.442695, %v6333_v42  ;;  %6403 = vadd.xlane.f32.xlu1 %v6402_v19  ;;  %v6362_v42 = vmul.f32 1.442695, %v6335_v37  ;;  %v14129_v19 = vpop.f32.mrf.mxu3 }
0x107f   : > { %v6384_v29 = vsel %vm899_vm2, %v14109_v54, 0.0 }
0x1080   : > { %9980 = vpow2.f32 %v6358_v61  ;;  %6385 = vadd.xlane.f32.xlu2 %v6384_v29  ;;  %v6321_v61 = vsel %vm899_vm2, %v14129_v19, -inf }
0x1083   : > { %v6293_v4 = vpop.xlane.xlu2 %6292 }
0x1084   : > { %v6329_v58 = vsub.f32 %v14021_v47, %v6293_v4  ;;  %v6318_v47 = vsel %vm899_vm2, %v14120_v15, -inf }
0x1086   : > { %v14114_v26 = vpop.eup %9980  ;;  %v6350_v62 = vmul.f32 1.442695, %v6329_v58 }
0x1087   : > { %v6399_v38 = vsel %vm899_vm2, %v14114_v26, 0.0 }
0x1088   : > { %9982 = vpow2.f32 %v6350_v62  ;;  %6400 = vadd.xlane.f32.xlu1 %v6399_v38  ;;  %v15931_v62 = vld [vmem:[#allocation14_spill] sm:$0xff] }
0x1089   : > { %9984 = vpow2.f32 %v6362_v42 }
0x108b   : > { %v6314_v40 = vpop.xlane.xlu2 %6313 }
0x108c   : > { %v6336_v38 = vsub.f32 %v14027_v18, %v6314_v40 }
0x108e   : > { %v14118_v22 = vpop.eup %9982  ;;  %v6364_v37 = vmul.f32 1.442695, %v6336_v38 }
0x108f   : > { %v6387_v53 = vsel %vm899_vm2, %v14118_v22, 0.0  ;;  %v14133_v4 = vpop.eup %9984 }
0x1090   : > { %6388 = vadd.xlane.f32.xlu2 %v6387_v53  ;;  %v6405_v0 = vsel %vm899_vm2, %v14133_v4, 0.0  ;;  %v14142_v53 = vpop.permute.xlu0 %7078 }
0x1093   : > { %v14127_v59 = vpop.xlane.xlu2 %6316 }
0x1094   : > { %6319 = vmax.xlane.f32.xlu0 %v6318_v47 }
0x109c   : > { %6322 = vmax.xlane.f32.xlu0 %v6321_v61 }
0x109d   : > { %v6374_v29 = vpop.xlane.xlu2 %6373 }
0x109e   : > { %9986 = vrcp.f32 %v6374_v29 }
0x109f   : > { %9988 = vpow2.f32 %v6364_v37 }
0x10a4   : > { %v9987_v33 = vpop.eup %9986  ;;  %6406 = vadd.xlane.f32.xlu0 %v6405_v0 }
0x10a5   : > { %v6436_v58 = vmul.f32 %v9987_v33, %v14042_v23  ;;  %v14145_v29 = vpop.eup %9988 }
0x10a6   : > { %v6408_v23 = vsel %vm899_vm2, %v14145_v29, 0.0 }
0x10a7   : > { %9020 = vmatmul.msk.f32.vlgmr.msrb.gmra.mxu0 %vm899_vm2, %v6436_v58 }
0x10a8   : > { %7018 = vrot.lane.b32.xlu2 %v15931_v62, %s10239_s25 }
0x10c9   : > { %v6296_v47 = vpop.xlane.xlu0 %6295 }
0x10ca   : > { %v6330_v42 = vsub.f32 %v14072_v11, %v6296_v47 }
0x10cc   : > { %v6352_v61 = vmul.f32 1.442695, %v6330_v42 }
0x10ce   : > { %9990 = vpow2.f32 %v6352_v61  ;;  %v15932_v61 = vld [vmem:[#allocation48_spill] sm:$0xff] }
0x10d1   : > { %6409 = vadd.xlane.f32.xlu2 %v6408_v23  ;;  %v6299_v0 = vpop.xlane.xlu1 %6298 }
0x10d2   : > { %v6331_v33 = vsub.f32 %v14079_v56, %v6299_v0 }
0x10d4   : > { %v14150_v58 = vpop.eup %9990  ;;  %v6354_v18 = vmul.f32 1.442695, %v6331_v33  ;;  %v6398_v33 = vpop.xlane.xlu2 %6397 }
0x10d5   : > { %v6390_v40 = vsel %vm899_vm2, %v14150_v58, 0.0 }
0x10d6   : > { %9992 = vpow2.f32 %v6354_v18  ;;  %6391 = vadd.xlane.f32.xlu1 %v6390_v40 }
0x10d9   : > { %v6380_v11 = vpop.xlane.xlu1 %6379 }
0x10da   : > { %9994 = vrcp.f32 %v6380_v11 }
0x10dc   : > { %v14154_v62 = vpop.eup %9992 }
0x10dd   : > { %v6393_v38 = vsel %vm899_vm2, %v14154_v62, 0.0 }
0x10de   : > { %6394 = vadd.xlane.f32.xlu0 %v6393_v38 }
0x10e0   : > { %v9995_v37 = vpop.eup %9994 }
0x10e1   : > { %v6438_v47 = vmul.f32 %v9995_v37, %v14083_v7  ;;  %v6383_v56 = vpop.xlane.xlu1 %6382  ;;  %v15933_v7 = vld [vmem:[#allocation22_spill] sm:$0xff] }
0x10e2   : > { %9996 = vrcp.f32 %v6383_v56 }
0x10e3   : > { %9022 = vmatmul.msk.f32.vlgmr.msra.gmra.mxu1 %vm899_vm2, %v6438_v47 }
0x10e8   : > { %v9997_v42 = vpop.eup %9996 }
0x10e9   : > { %6764 = vrot.lane.b32.xlu2 %v15932_v61, %s10235_s22  ;;  %v6377_v23 = vpop.xlane.xlu1 %6376  ;;  %v6439_v0 = vmul.f32 %v9997_v42, %v14088_v25 }
0x10ea   : > { %9998 = vrcp.f32 %v6377_v23  ;;  %v6955_v23 = vpop.permute.xlu0 %6954 }
0x10eb   : > { %9023 = vmatmul.msk.f32.gmra.mxu1 %vm899_vm2, %v6439_v0  ;;  %10000 = vrcp.f32 %v6398_v33 }
0x10ef   : > { %7082 = vrot.lane.b32.xlu1 %v14057_v3, %s10240_s27  ;;  %v15934_v3 = vld [vmem:[#allocation111_spill] sm:$0xff] }
0x10f0   : > { %v9999_v18 = vpop.eup %9998 }
0x10f1   : > { %6956 = vrot.lane.b32.xlu2 %v15933_v7, %s10238_s13  ;;  %v6404_v40 = vpop.xlane.xlu1 %6403  ;;  %v6437_v11 = vmul.f32 %v9999_v18, %v14097_v63  ;;  %v10001_v25 = vpop.eup %10000  ;;  %v6337_v18 = vsub.f32 %v14033_v30, %v14127_v59 }
0x10f2   : > { %10002 = vrcp.f32 %v6404_v40  ;;  %v6444_v47 = vmul.f32 %v10001_v25, %v14051_v12 }
0x10f3   : > { %v6386_v38 = vpop.xlane.xlu2 %6385  ;;  %9021 = vmatmul.msk.f32.gmra.mxu0 %vm899_vm2, %v6437_v11 }
0x10f4   : > { %10004 = vrcp.f32 %v6386_v38 }
0x10f8   : > { %v10003_v37 = vpop.eup %10002 }
0x10f9   : > { %v6446_v56 = vmul.f32 %v10003_v37, %v14104_v9  ;;  %6894 = vrot.lane.b32.xlu2 %v15934_v3, %s10236_s16 }
0x10fa   : > { %v10005_v42 = vpop.eup %10004 }
0x10fb   : > { %v6440_v61 = vmul.f32 %v10005_v42, %v14109_v54  ;;  %9028 = vmatmul.msk.f32.vlgmr.msra.gmra.mxu0 %vm899_vm2, %v6444_v47  ;;  %v6401_v63 = vpop.xlane.xlu1 %6400  ;;  %9030 = vmatmul.msk.f32.vlgmr.msrb.gmra.mxu1 %vm899_vm2, %v6446_v56  ;;  %v15935_v54 = vld [vmem:[#allocation35_spill] sm:$0xff] }
0x10fc   : > { %10006 = vrcp.f32 %v6401_v63  ;;  %v7187_v33 = vsel %vm608_vm1, %v15935_v54, %v14049_v14  ;;  %v6366_v14 = vmul.f32 1.442695, %v6337_v18  ;;  %v15937_v63 = vld [vmem:[#allocation98_spill] sm:$0xff] }
0x10fd   : > { %9024 = vmatmul.msk.f32.vlgmr.msra.gmra.mxu2 %vm899_vm2, %v6440_v61 }
0x1101   : > { %7086 = vrot.lane.b32.xlu2 %v13934_v48, %s10240_s27  ;;  %v7204_v48 = vsel %vm7196_vm3, %v7187_v33, %v14023_v35  ;;  %v15941_v33 = vld [vmem:[#allocation18_spill] sm:$0xff] }
0x1102   : > { %v10007_v12 = vpop.eup %10006  ;;  %v7221_v38 = vsel %vm7213_vm4, %v7204_v48, %v14069_v57 }
0x1103   : > { %v6389_v9 = vpop.xlane.xlu2 %6388  ;;  %v6445_v0 = vmul.f32 %v10007_v12, %v14114_v26  ;;  %v15936_v26 = vld [vmem:[#allocation51_spill] sm:$0xff]  ;;  %v7237_v30 = vsel %vm899_vm2, %v7221_v38, %v6955_v23  ;;  %v15938_v23 = vld [vmem:[#allocation28_spill] sm:$0xff]  ;;  %v15939_v12 = vld [vmem:[#allocation102_spill] sm:$0xff] }
0x1104   : > { %10008 = vrcp.f32 %v6389_v9  ;;  %v15940_v9 = vld [vmem:[#allocation50_spill] sm:$0xff] }
0x1105   : > { %9029 = vmatmul.msk.f32.gmra.mxu0 %vm899_vm2, %v6445_v0 }
0x1107   : > { %v6320_v7 = vpop.xlane.xlu0 %6319 }
0x1108   : > { %v6338_v40 = vsub.f32 %v14120_v15, %v6320_v7 }
0x1109   : > { %6832 = vrot.lane.b32.xlu2 %v15936_v26, %s10237_s21 }
0x110a   : > { %v10009_v11 = vpop.eup %10008  ;;  %v6368_v25 = vmul.f32 1.442695, %v6338_v40 }
0x110b   : > { %v7019_v59 = vpop.permute.xlu2 %7018  ;;  %v6441_v37 = vmul.f32 %v10009_v11, %v14118_v22  ;;  %v15942_v11 = vld [vmem:[#allocation94_spill] sm:$0xff] }
0x110c   : > { %10010 = vpow2.f32 %v6368_v25  ;;  %v7254_v15 = vsel %vm7246_vm5, %v7237_v30, %v7019_v59  ;;  %v15943_v59 = vld [vmem:[#allocation88_spill] sm:$0xff] }
0x110d   : > { %9025 = vmatmul.msk.f32.gmra.mxu2 %vm899_vm2, %v6441_v37  ;;  %10012 = vpow2.f32 %v6366_v14 }
0x110f   : > { %v6323_v35 = vpop.xlane.xlu0 %6322 }
0x1112   : > { %v14198_v47 = vpop.eup %10010 }
0x1113   : > { %v6414_v57 = vsel %vm899_vm2, %v14198_v47, 0.0  ;;  %v14202_v56 = vpop.eup %10012 }
0x1114   : > { %6415 = vadd.xlane.f32.xlu0 %v6414_v57  ;;  %v6411_v22 = vsel %vm899_vm2, %v14202_v56, 0.0  ;;  %v15945_v57 = vld [vmem:[#allocation26_spill] sm:$0xff] }
0x1117   : > { %v6407_v3 = vpop.xlane.xlu0 %6406 }
0x1118   : > { %10014 = vrcp.f32 %v6407_v3  ;;  %v15946_v3 = vld [vmem:[#allocation44_spill] sm:$0xff] }
0x1119   : > { %6412 = vadd.xlane.f32.xlu1 %v6411_v22  ;;  %v15948_v22 = vld [vmem:[#allocation71_spill] sm:$0xff] }
0x111e   : > { %v10015_v42 = vpop.eup %10014 }
0x111f   : > { %v6447_v61 = vmul.f32 %v10015_v42, %v14133_v4  ;;  %v6339_v4 = vsub.f32 %v14129_v19, %v6323_v35 }
0x1121   : > { %9031 = vmatmul.msk.f32.gmra.mxu1 %vm899_vm2, %v6447_v61  ;;  %v15949_v61 = vld [vmem:[#allocation68_spill] sm:$0xff] }
0x1124   : > { %v6481_v37 = vpop.f32.mrf.mxu0 }
0x1128   : > { %6892 = vrot.lane.b32.xlu0 %v15937_v63, %s10236_s16  ;;  %v15950_v63 = vld [vmem:[#allocation97_spill] sm:$0xff] }
0x1130   : > { %7084 = vrot.lane.b32.xlu0 %v13924_v50, %s10240_s27  ;;  %v6370_v50 = vmul.f32 1.442695, %v6339_v4 }
0x1132   : > { %6828 = vrot.lane.b32.xlu1 %v15938_v23, %s10237_s21 }
0x113a   : > { %7020 = vrot.lane.b32.xlu1 %v15939_v12, %s10239_s25  ;;  %v15951_v12 = vld [vmem:[#allocation31_spill] sm:$0xff] }
0x1142   : > { %6766 = vrot.lane.b32.xlu1 %v15940_v9, %s10235_s22 }
0x1144   : > { %v6410_v0 = vpop.xlane.xlu2 %6409 }
0x1145   : > { %10016 = vrcp.f32 %v6410_v0 }
0x1149   : > { %v6392_v54 = vpop.xlane.xlu1 %6391 }
0x114a   : > { %10018 = vrcp.f32 %v6392_v54  ;;  %6958 = vrot.lane.b32.xlu1 %v15941_v33, %s10238_s13 }
0x114b   : > { %v10017_v18 = vpop.eup %10016  ;;  %10020 = vpow2.f32 %v6370_v50 }
0x114c   : > { %v6448_v7 = vmul.f32 %v10017_v18, %v14145_v29  ;;  %v6765_v4 = vpop.permute.xlu2 %6764 }
0x114e   : > { %9032 = vmatmul.msk.f32.vlgmr.msrb.gmra.mxu2 %vm899_vm2, %v6448_v7 }
0x1150   : > { %v10019_v40 = vpop.eup %10018 }
0x1151   : > { %v6442_v48 = vmul.f32 %v10019_v40, %v14150_v58  ;;  %v6395_v26 = vpop.xlane.xlu0 %6394  ;;  %v14227_v19 = vpop.eup %10020 }
0x1152   : > { %10022 = vrcp.f32 %v6395_v26  ;;  %6896 = vrot.lane.b32.xlu1 %v15942_v11, %s10236_s16  ;;  %v6417_v25 = vsel %vm899_vm2, %v14227_v19, 0.0  ;;  %v15952_v11 = vld [vmem:[#allocation67_spill] sm:$0xff] }
0x1153   : > { %9026 = vmatmul.msk.f32.vlgmr.msrb.gmra.mxu3 %vm899_vm2, %v6442_v48 }
0x1154   : > { %v6957_v48 = vpop.permute.xlu2 %6956 }
0x1158   : > { %v10023_v38 = vpop.eup %10022 }
0x1159   : > { %v6443_v29 = vmul.f32 %v10023_v38, %v14154_v62  ;;  %v7300_v38 = vld [vmem:[%s15330_s3 + $0x18] sm:$0xff] }
0x115a   : > { %7088 = vrot.lane.b32.xlu1 %v13928_v1, %s10240_s27  ;;  %6418 = vadd.xlane.f32.xlu0 %v6417_v25  ;;  %v15944_v1 = vld [vmem:[#allocation92_spill] sm:$0xff] }
0x115b   : > { %9027 = vmatmul.msk.f32.gmra.mxu3 %vm899_vm2, %v6443_v29  ;;  %7365 = vmatpush.msrb.mxu0 %v7300_v38  ;;  %v7298_v29 = vld [vmem:[%s15330_s3 + $0x8] sm:$0xff]  ;;  %v15963_v38 = vld [vmem:[#allocation52_spill] sm:$0xff] }
0x115c   : > { %v14273_v25 = vpop.permute.xlu2 %6894 }
0x1160   : > { %v6516_v58 = vpop.f32.mrf.mxu1 }
0x1161   : > { %7136 = vrot.lane.b32.xlu2 %v6516_v58, %s10241_s14  ;;  %v7083_v14 = vpop.permute.xlu1 %7082 }
0x1162   : > { %v14237_v30 = vsel %vm7263_vm6, %v7254_v15, %v7083_v14  ;;  %6834 = vrot.lane.b32.xlu1 %v15943_v59, %s10237_s21  ;;  %v15947_v15 = vld [vmem:[#allocation121_spill] sm:$0xff]  ;;  %v15953_v14 = vld [vmem:[#allocation38_spill] sm:$0xff] }
0x1163   : > { %v7188_v59 = vsel %vm608_vm1, %v15953_v14, %v6765_v4  ;;  %v15957_v4 = vld [vmem:[#allocation127_spill] sm:$0xff] }
0x1168   : > { %v6519_v62 = vpop.f32.mrf.mxu1 }
0x1169   : > { %7132 = vrot.lane.b32.xlu2 %v6481_v37, %s10241_s14 }
0x116a   : > { %7138 = vrot.lane.b32.xlu1 %v6519_v62, %s10241_s14  ;;  %v7297_v62 = vld [vmem:[%s15330_s3] sm:$0xff] }
0x116e   : > { %6830 = vrot.lane.b32.xlu0 %v15944_v1, %s10237_s21 }
0x1170   : > { %v6484_v35 = vpop.f32.mrf.mxu0 }
0x1171   : > { %7024 = vrot.lane.b32.xlu2 %v15945_v57, %s10239_s25  ;;  %v15954_v57 = vld [vmem:[#allocation64_spill] sm:$0xff] }
0x1172   : > { %7026 = vrot.lane.b32.xlu1 %v15946_v3, %s10239_s25  ;;  %v14292_v3 = vpop.permute.xlu2 %7086 }
0x1176   : > { %7022 = vrot.lane.b32.xlu0 %v15947_v15, %s10239_s25 }
0x1178   : > { %v6621_v42 = vpop.f32.mrf.mxu0  ;;  %v6656_v26 = vpop.f32.mrf.mxu1 }
0x1179   : > { %6770 = vrot.lane.b32.xlu2 %v15948_v22, %s10235_s22 }
0x117e   : > { %6768 = vrot.lane.b32.xlu0 %v15949_v61, %s10235_s22 }
0x1180   : > { %v6551_v0 = vpop.f32.mrf.mxu2 }
0x1181   : > { %6962 = vrot.lane.b32.xlu2 %v15950_v63, %s10238_s13 }
0x1182   : > { %v6624_v23 = vpop.f32.mrf.mxu0 }
0x1183   : > { %7150 = vrot.lane.b32.xlu1 %v6624_v23, %s10241_s14  ;;  %v6833_v23 = vpop.permute.xlu2 %6832 }
0x1186   : > { %6960 = vrot.lane.b32.xlu0 %v15951_v12, %s10238_s13 }
0x1187   : > { %v6416_v9 = vpop.xlane.xlu0 %6415 }
0x1188   : > { %10024 = vrcp.f32 %v6416_v9  ;;  %v15955_v9 = vld [vmem:[#allocation90_spill] sm:$0xff] }
0x1189   : > { %7148 = vrot.lane.b32.xlu2 %v6621_v42, %s10241_s14 }
0x118c   : > { %v6413_v54 = vpop.xlane.xlu1 %6412 }
0x118d   : > { %10026 = vrcp.f32 %v6413_v54  ;;  %v15958_v54 = vld [vmem:[#allocation27_spill] sm:$0xff] }
0x118e   : > { %v10025_v33 = vpop.eup %10024  ;;  %7134 = vrot.lane.b32.xlu0 %v6484_v35, %s10241_s14 }
0x118f   : > { %v6450_v18 = vmul.f32 %v10025_v33, %v14198_v47  ;;  %v7180_v33 = vsel %vm608_vm1, %v15958_v54, %v15957_v4 }
0x1190   : > { %v6554_v50 = vpop.f32.mrf.mxu2 }
0x1191   : > { %9034 = vmatmul.msk.f32.vlgmr.msra.gmra.mxu3 %vm899_vm2, %v6450_v18  ;;  %7142 = vrot.lane.b32.xlu2 %v6554_v50, %s10241_s14  ;;  %v15959_v18 = vld [vmem:[#allocation115_spill] sm:$0xff] }
0x1193   : > { %v10027_v7 = vpop.eup %10026 }
0x1194   : > { %v6449_v40 = vmul.f32 %v10027_v7, %v14202_v56  ;;  %v7299_v56 = vld [vmem:[%s15330_s3 + $0x10] sm:$0xff] }
0x1195   : > { %7366 = vmatpush.msrb.mxu0 %v7299_v56 }
0x1196   : > { %6898 = vrot.lane.b32.xlu0 %v15952_v11, %s10236_s16  ;;  %9033 = vmatmul.msk.f32.gmra.mxu2 %vm899_vm2, %v6449_v40  ;;  %v15960_v40 = vld [vmem:[#allocation117_spill] sm:$0xff]  ;;  %v15962_v11 = vld [vmem:[#allocation55_spill] sm:$0xff] }
0x1197   : > { %7367 = vmatpush.msrb.mxu0 %v7298_v29 }
0x1199   : > { %7368 = vmatpush.msrb.mxu0 %v7297_v62 }
0x119a   : > { %v6893_v58 = vpop.permute.xlu0 %6892 }
0x119e   : > { %7152 = vrot.lane.b32.xlu0 %v6656_v26, %s10241_s14  ;;  %v6659_v47 = vpop.f32.mrf.mxu1 }
0x119f   : > { %7154 = vrot.lane.b32.xlu2 %v6659_v47, %s10241_s14 }
0x11a2   : > { %v7085_v42 = vpop.permute.xlu0 %7084 }
0x11a4   : > { %v6829_v37 = vpop.permute.xlu1 %6828 }
0x11a5   : > { %v7205_v1 = vsel %vm7196_vm3, %v7188_v59, %v6829_v37  ;;  %v15964_v59 = vld [vmem:[#allocation79_spill] sm:$0xff] }
0x11a6   : > { %v7222_v35 = vsel %vm7213_vm4, %v7205_v1, %v6893_v58  ;;  %7140 = vrot.lane.b32.xlu0 %v6551_v0, %s10241_s14  ;;  %v15956_v0 = vld [vmem:[#allocation89_spill] sm:$0xff] }
0x11a7   : > { %6900 = vrot.lane.b32.xlu2 %v15954_v57, %s10236_s16  ;;  %v7238_v15 = vsel %vm899_vm2, %v7222_v35, %v6957_v48  ;;  %v15961_v48 = vld [vmem:[#allocation132_spill] sm:$0xff]  ;;  %v15965_v35 = vld [vmem:[#allocation103_spill] sm:$0xff] }
0x11ac   : > { %v7021_v22 = vpop.permute.xlu1 %7020 }
0x11ad   : > { %v7255_v61 = vsel %vm7246_vm5, %v7238_v15, %v7021_v22 }
0x11ae   : > { %7090 = vrot.lane.b32.xlu0 %v13938_v41, %s10240_s27  ;;  %v7272_v63 = vsel %vm7263_vm6, %v7255_v61, %v7085_v42  ;;  %v7197_v41 = vsel %vm7196_vm3, %v7180_v33, %v15959_v18  ;;  %v15967_v33 = vld [vmem:[#allocation72_spill] sm:$0xff]  ;;  %v15968_v18 = vld [vmem:[#allocation37_spill] sm:$0xff] }
0x11af   : > { %7092 = vrot.lane.b32.xlu2 %v14003_v32, %s10240_s27  ;;  %v7214_v32 = vsel %vm7213_vm4, %v7197_v41, %v15960_v40 }
0x11b0   : > { %v7230_v26 = vsel %vm899_vm2, %v7214_v32, %v15961_v48 }
0x11b1   : > { %v7247_v47 = vsel %vm7246_vm5, %v7230_v26, %v15963_v38  ;;  %v15969_v38 = vld [vmem:[#allocation119_spill] sm:$0xff] }
0x11b2   : > { %v7264_v56 = vsel %vm7263_vm6, %v7247_v47, %v14065_v27  ;;  %v15966_v27 = vld [vmem:[#allocation25_spill] sm:$0xff] }
0x11b3   : > { %v15970_v47 = vld [vmem:[#allocation109_spill] sm:$0xff] }
0x11b4   : > { %v6767_v12 = vpop.permute.xlu1 %6766 }
0x11b5   : > { %v7189_v41 = vsel %vm608_vm1, %v15968_v18, %v6767_v12  ;;  %v15979_v18 = vld [vmem:[#allocation74_spill] sm:$0xff] }
0x11b6   : > { %6836 = vrot.lane.b32.xlu0 %v15955_v9, %s10237_s21 }
0x11b7   : > { %6838 = vrot.lane.b32.xlu2 %v15956_v0, %s10237_s21 }
0x11bb   : > { %v14310_v50 = vpop.permute.xlu2 %7136 }
0x11bc   : > { %v6959_v7 = vpop.permute.xlu1 %6958 }
0x11bf   : > { %7030 = vrot.lane.b32.xlu2 %v15962_v11, %s10239_s25 }
0x11c3   : > { %v7133_v29 = vpop.permute.xlu2 %7132 }
0x11c4   : > { %v7281_v58 = vsel %vm7280_vm7, %v7264_v56, %v7133_v29  ;;  %v6897_v14 = vpop.permute.xlu1 %6896  ;;  %v15971_v29 = vld [vmem:[#allocation76_spill] sm:$0xff] }
0x11c5   : > { %9036 = vmatmul.msk.f32.vlgmr.msrb.gmra.mxu0 %vm488_vm0, %v7281_v58  ;;  %v15973_v58 = vld [vmem:[#allocation40_spill] sm:$0xff] }
0x11c7   : > { %6776 = vrot.lane.b32.xlu2 %v15964_v59, %s10235_s22 }
0x11cb   : > { %v7025_v37 = vpop.permute.xlu2 %7024 }
0x11cc   : > { %v7089_v62 = vpop.permute.xlu1 %7088 }
0x11cd   : > { %v6419_v1 = vpop.xlane.xlu0 %6418 }
0x11ce   : > { %10028 = vrcp.f32 %v6419_v1 }
0x11cf   : > { %6968 = vrot.lane.b32.xlu2 %v15965_v35, %s10238_s13  ;;  %v15974_v35 = vld [vmem:[#allocation84_spill] sm:$0xff] }
0x11d3   : > { %v6771_v57 = vpop.permute.xlu2 %6770 }
0x11d4   : > { %v10029_v15 = vpop.eup %10028  ;;  %v7191_v22 = vsel %vm608_vm1, %v15966_v27, %v6771_v57  ;;  %v6835_v42 = vpop.permute.xlu1 %6834  ;;  %v15975_v57 = vld [vmem:[#allocation86_spill] sm:$0xff]  ;;  %v15976_v27 = vld [vmem:[#allocation104_spill] sm:$0xff] }
0x11d5   : > { %v7208_v61 = vsel %vm7196_vm3, %v7191_v22, %v6835_v42  ;;  %v6451_v9 = vmul.f32 %v10029_v15, %v14227_v19  ;;  %v7181_v15 = vsel %vm608_vm1, %v15975_v57, %v15974_v35  ;;  %v15977_v22 = vld [vmem:[#allocation124_spill] sm:$0xff]  ;;  %v15990_v57 = vld [vmem:[#allocation82_spill] sm:$0xff] }
0x11d6   : > { %v6586_v0 = vpop.f32.mrf.mxu3  ;;  %v7198_v42 = vsel %vm7196_vm3, %v7181_v15, %v15977_v22 }
0x11d7   : > { %9035 = vmatmul.msk.f32.gmra.mxu3 %vm899_vm2, %v6451_v9  ;;  %7144 = vrot.lane.b32.xlu1 %v6586_v0, %s10241_s14  ;;  %v15978_v0 = vld [vmem:[#allocation113_spill] sm:$0xff] }
0x11db   : > { %v6963_v4 = vpop.permute.xlu2 %6962 }
0x11de   : > { %v6589_v54 = vpop.f32.mrf.mxu3 }
0x11df   : > { %6772 = vrot.lane.b32.xlu1 %v15967_v33, %s10235_s22  ;;  %7146 = vrot.lane.b32.xlu0 %v6589_v54, %s10241_s14  ;;  %v7215_v54 = vsel %vm7213_vm4, %v7198_v42, %v15978_v0 }
0x11e0   : > { %v6831_v40 = vpop.permute.xlu0 %6830 }
0x11e1   : > { %v7206_v32 = vsel %vm7196_vm3, %v7189_v41, %v6831_v40  ;;  %v7231_v41 = vsel %vm899_vm2, %v7215_v54, %v15979_v18  ;;  %v15981_v40 = vld [vmem:[#allocation23_spill] sm:$0xff] }
0x11e2   : > { %v7223_v19 = vsel %vm7213_vm4, %v7206_v32, %v14273_v25  ;;  %v15972_v25 = vld [vmem:[#allocation78_spill] sm:$0xff] }
0x11e3   : > { %v7149_v48 = vpop.permute.xlu2 %7148  ;;  %v7239_v26 = vsel %vm899_vm2, %v7223_v19, %v6959_v7  ;;  %v15982_v19 = vld [vmem:[#allocation49_spill] sm:$0xff] }
0x11e4   : > { %v14344_v11 = vsel %vm7280_vm7, %v7272_v63, %v7149_v48  ;;  %v7248_v48 = vsel %vm7246_vm5, %v7231_v41, %v15982_v19  ;;  %v15994_v41 = vld [vmem:[#allocation33_spill] sm:$0xff] }
0x11e7   : > { %6964 = vrot.lane.b32.xlu1 %v15969_v38, %s10238_s13  ;;  %7028 = vrot.lane.b32.xlu0 %v15970_v47, %s10239_s25  ;;  %v15984_v38 = vld [vmem:[#allocation131_spill] sm:$0xff]  ;;  %v15985_v47 = vld [vmem:[#allocation70_spill] sm:$0xff] }
0x11e8   : > { %v7023_v56 = vpop.permute.xlu0 %7022 }
0x11e9   : > { %v14351_v12 = vsel %vm7246_vm5, %v7239_v26, %v7023_v56  ;;  %v15983_v26 = vld [vmem:[#allocation118_spill] sm:$0xff] }
0x11ef   : > { %6902 = vrot.lane.b32.xlu1 %v15971_v29, %s10236_s16  ;;  %6774 = vrot.lane.b32.xlu0 %v15972_v25, %s10235_s22  ;;  %v15986_v25 = vld [vmem:[#allocation16_spill] sm:$0xff] }
0x11f0   : > { %v6769_v7 = vpop.permute.xlu0 %6768 }
0x11f1   : > { %v7190_v63 = vsel %vm608_vm1, %v15973_v58, %v6769_v7  ;;  %v15987_v58 = vld [vmem:[#allocation114_spill] sm:$0xff] }
0x11f2   : > { %v7207_v59 = vsel %vm7196_vm3, %v7190_v63, %v6833_v23  ;;  %v15988_v63 = vld [vmem:[#allocation43_spill] sm:$0xff] }
0x11f3   : > { %v7224_v1 = vsel %vm7213_vm4, %v7207_v59, %v6897_v14  ;;  %v7183_v59 = vsel %vm608_vm1, %v15988_v63, %v15987_v58 }
0x11f7   : > { %7094 = vrot.lane.b32.xlu1 %v14007_v34, %s10240_s27  ;;  %6966 = vrot.lane.b32.xlu0 %v15976_v27, %s10238_s13  ;;  %v15980_v34 = vld [vmem:[#allocation15_spill] sm:$0xff]  ;;  %v15992_v27 = vld [vmem:[#allocation17_spill] sm:$0xff] }
0x11f8   : > { %v6961_v9 = vpop.permute.xlu0 %6960  ;;  %v7182_v32 = vsel %vm608_vm1, %v15981_v40, %v15980_v34  ;;  %v7200_v22 = vsel %vm7196_vm3, %v7183_v59, %v15992_v27  ;;  %v6691_v34 = vpop.f32.mrf.mxu2 }
0x11f9   : > { %v7240_v23 = vsel %vm899_vm2, %v7224_v1, %v6961_v9  ;;  %v15989_v1 = vld [vmem:[#allocation107_spill] sm:$0xff]  ;;  %v7139_v40 = vpop.permute.xlu1 %7138 }
0x11fa   : > { %v7257_v14 = vsel %vm7246_vm5, %v7240_v23, %v7025_v37  ;;  %v7199_v37 = vsel %vm7196_vm3, %v7182_v32, %v15985_v47 }
0x11fb   : > { %v7274_v33 = vsel %vm7263_vm6, %v7257_v14, %v7089_v62  ;;  %v7265_v62 = vsel %vm7263_vm6, %v7248_v48, %v14076_v51  ;;  %v7216_v7 = vsel %vm7213_vm4, %v7199_v37, %v15986_v25  ;;  %v15991_v51 = vld [vmem:[#allocation75_spill] sm:$0xff]  ;;  %v15993_v14 = vld [vmem:[#allocation57_spill] sm:$0xff] }
0x11fc   : > { %v7232_v35 = vsel %vm899_vm2, %v7216_v7, %v15989_v1  ;;  %v16001_v7 = vld [vmem:[#allocation36_spill] sm:$0xff] }
0x11fd   : > { %v7249_v15 = vsel %vm7246_vm5, %v7232_v35, %v15990_v57  ;;  %v7186_v58 = vsel %vm608_vm1, %v16001_v7, %v14055_v10  ;;  %v14486_v35 = vld [vmem:[%s15331_s4] ss:$0 sm:$0xff] }
0x11fe   : > { %v7266_v42 = vsel %vm7263_vm6, %v7249_v15, %v14059_v24  ;;  %v7184_v24 = vsel %vm608_vm1, %v15994_v41, %v13936_v39  ;;  %v7203_v63 = vsel %vm7196_vm3, %v7186_v58, %v13963_v49  ;;  %v7273_v41 = vsel %vm7263_vm6, %v14351_v12, %v14292_v3  ;;  %v16002_v12 = vld [vmem:[#allocation45_spill] sm:$0xff] }
0x11ff   : > { %6840 = vrot.lane.b32.xlu1 %v15983_v26, %s10237_s21  ;;  %6904 = vrot.lane.b32.xlu0 %v15984_v38, %s10236_s16  ;;  %v7283_v0 = vsel %vm7280_vm7, %v7266_v42, %v14310_v50  ;;  %v15996_v26 = vld [vmem:[#allocation47_spill] sm:$0xff]  ;;  %v7220_v1 = vsel %vm7213_vm4, %v7203_v63, %v14015_v43 }
0x1200   : > { %v7135_v56 = vpop.permute.xlu0 %7134 }
0x1201   : > { %v7282_v29 = vsel %vm7280_vm7, %v7265_v62, %v7135_v56  ;;  %v7143_v62 = vpop.permute.xlu2 %7142  ;;  %v15998_v56 = vld [vmem:[#allocation42_spill] sm:$0xff] }
0x1202   : > { %9037 = vmatmul.msk.f32.gmra.mxu0 %vm488_vm0, %v7282_v29 }
0x1207   : > { %7032 = vrot.lane.b32.xlu1 %v15991_v51, %s10239_s25  ;;  %7096 = vrot.lane.b32.xlu0 %v14061_v52, %s10240_s27  ;;  %v7217_v52 = vsel %vm7213_vm4, %v7200_v22, %v15993_v14 }
0x1208   : > { %v6899_v9 = vpop.permute.xlu0 %6898  ;;  %v7233_v18 = vsel %vm899_vm2, %v7217_v52, %v13948_v46 }
0x1209   : > { %v7225_v54 = vsel %vm7213_vm4, %v7208_v61, %v6899_v9  ;;  %v7250_v50 = vsel %vm7246_vm5, %v7233_v18, %v13926_v45  ;;  %v7201_v61 = vsel %vm7196_vm3, %v7184_v24, %v13882_v5  ;;  %v15995_v5 = vld [vmem:[#allocation60_spill] sm:$0xff]  ;;  %v7155_v42 = vpop.permute.xlu2 %7154 }
0x120a   : > { %v14413_v23 = vsel %vm899_vm2, %v7225_v54, %v6963_v4  ;;  %9038 = vmatmul.msk.f32.gmra.mxu0 %vm488_vm0, %v7283_v0  ;;  %v7267_v4 = vsel %vm7263_vm6, %v7250_v50, %v14029_v28  ;;  %v7218_v46 = vsel %vm7213_vm4, %v7201_v61, %v14035_v21  ;;  %v7185_v28 = vsel %vm608_vm1, %v15995_v5, %v14005_v16  ;;  %v15997_v16 = vld [vmem:[#allocation133_spill] sm:$0xff] }
0x120b   : > { %v7284_v19 = vsel %vm7280_vm7, %v7267_v4, %v7139_v40  ;;  %v7234_v45 = vsel %vm899_vm2, %v7218_v46, %v13944_v8 }
0x120c   : > { %v7251_v21 = vsel %vm7246_vm5, %v7234_v45, %v13890_v36 }
0x120d   : > { %v7268_v38 = vsel %vm7263_vm6, %v7251_v21, %v14092_v60 }
0x120f   : > { %7156 = vrot.lane.b32.xlu1 %v6691_v34, %s10241_s14 }
0x1210   : > { %v7153_v32 = vpop.permute.xlu0 %7152 }
0x1211   : > { %v14434_v39 = vsel %vm7280_vm7, %v7274_v33, %v7153_v32  ;;  %v7202_v33 = vsel %vm7196_vm3, %v7185_v28, %v14040_v55  ;;  %v6901_v14 = vpop.permute.xlu2 %6900 }
0x1212   : > { %9039 = vmatmul.msk.f32.gmra.mxu0 %vm488_vm0, %v7284_v19  ;;  %v7219_v36 = vsel %vm7213_vm4, %v7202_v33, %v13952_v31  ;;  %v15999_v31 = vld [vmem:[#allocation122_spill] sm:$0xff] }
0x1213   : > { %v7235_v55 = vsel %vm899_vm2, %v7219_v36, %v14009_v13  ;;  %v16000_v13 = vld [vmem:[#allocation66_spill] sm:$0xff] }
0x1214   : > { %v6726_v48 = vpop.f32.mrf.mxu3  ;;  %v7252_v60 = vsel %vm7246_vm5, %v7235_v55, %v14047_v2  ;;  %v7027_v2 = vpop.permute.xlu1 %7026  ;;  %v10097_v55 = vld [vmem:[%s10406_s17 + $0x8] sm:$0xff] }
0x1215   : > { %7160 = vrot.lane.b32.xlu2 %v6726_v48, %s10241_s14  ;;  %v7269_v29 = vsel %vm7263_vm6, %v7252_v60, %v14142_v53 }
0x1216   : > { %v7286_v25 = vsel %vm7280_vm7, %v7269_v29, %v7143_v62 }
0x1217   : > { %6778 = vrot.lane.b32.xlu1 %v15996_v26, %s10235_s22  ;;  %v16003_v26 = vld [vmem:[#allocation41_spill] sm:$0xff]  ;;  %s9093_s22 = sshll.u32 %s10335_s29, 7  ;;  %s8537_s29 = scalar_lea.sflag [#allocation4], %s10400_s30 }
0x1218   : > { %v7141_v8 = vpop.permute.xlu0 %7140 }
0x1219   : > { %v7285_v47 = vsel %vm7280_vm7, %v7268_v38, %v7141_v8  ;;  %v6694_v37 = vpop.f32.mrf.mxu2  ;;  %v7093_v34 = vpop.permute.xlu2 %7092 }
0x121a   : > { %9040 = vmatmul.msk.f32.gmra.mxu0 %vm488_vm0, %v7285_v47  ;;  %7158 = vrot.lane.b32.xlu0 %v6694_v37, %s10241_s14 }
0x121c   : > { %v7151_v59 = vpop.permute.xlu1 %7150 }
0x121d   : > { %6906 = vrot.lane.b32.xlu2 %v15997_v16, %s10236_s16  ;;  %v7290_v24 = vsel %vm7280_vm7, %v7273_v41, %v7151_v59  ;;  %v10098_v59 = vld [vmem:[%s10406_s17 + $0x10] sm:$0xff]  ;;  %v10100_v41 = vld [vmem:[%s10406_s17 + $0x20] sm:$0xff] }
0x121f   : > { %6970 = vrot.lane.b32.xlu1 %v15998_v56, %s10238_s13 }
0x1220   : > { %v7091_v53 = vpop.permute.xlu0 %7090 }
0x1221   : > { %v6839_v61 = vpop.permute.xlu2 %6838 }
0x1222   : > { %9041 = vmatmul.msk.f32.gmra.mxu0 %vm488_vm0, %v7286_v25  ;;  %6842 = vrot.lane.b32.xlu0 %v15999_v31, %s10237_s21 }
0x1225   : > { %7098 = vrot.lane.b32.xlu2 %v14067_v44, %s10240_s27  ;;  %v7236_v44 = vsel %vm899_vm2, %v7220_v1, %v14063_v20  ;;  %v10096_v20 = vld [vmem:[%s10406_s17] sm:$0xff] }
0x1226   : > { %v7253_v57 = vsel %vm7246_vm5, %v7236_v44, %v13978_v6 }
0x1227   : > { %v7270_v15 = vsel %vm7263_vm6, %v7253_v57, %v14099_v17 }
0x1228   : > { %v6837_v49 = vpop.permute.xlu0 %6836 }
0x1229   : > { %v7031_v48 = vpop.permute.xlu2 %7030 }
0x122a   : > { %7034 = vrot.lane.b32.xlu0 %v16000_v13, %s10239_s25  ;;  %v16004_v13 = vld [vmem:[#allocation46_spill] sm:$0xff]  ;;  %s16007_s25 = sld [smem:[#allocation139_spill]] }
0x1230   : > { %s8549_s19 = scalar_lea.hbm %s16007_s25, %s9093_s22 }
0x1231   : > { %v6777_v36 = vpop.permute.xlu2 %6776  ;;  %s8552_s15 = sshll.u32 %s8549_s19, 4  ;;  %s8553_s15 = int_to_ptr.hbm [resolvable:$true] %s8552_s15 }
0x1239   : > { %v6969_v57 = vpop.permute.xlu2 %6968 }
0x1242   : > { %v7370_v10 = vpop.f32.mrf.mxu0 }
0x1243   : > { %v7371_v43 = vadd.f32 %v14486_v35, %v7370_v10 }
0x1245   : > { %v14496_v22 = vadd.f32 %v10096_v20, %v7371_v43 }
0x1247   : > { %v7434_v17 = vsel %vm488_vm0, %v14496_v22, 0.0 }
0x1249   : > { %v7145_v51 = vpop.permute.xlu1 %7144 }
0x124a   : > { %v7287_v27 = vsel %vm7280_vm7, %v7270_v15, %v7145_v51 }
0x124b   : > { %9042 = vmatmul.msk.f32.gmra.mxu0 %vm488_vm0, %v7287_v27 }
0x1251   : > { %v6773_v9 = vpop.permute.xlu1 %6772  ;;  %v7147_v0 = vpop.permute.xlu0 %7146 }
0x1252   : > { %v7288_v6 = vsel %vm7280_vm7, %v14237_v30, %v7147_v0  ;;  %v7192_v19 = vsel %vm608_vm1, %v16002_v12, %v6773_v9  ;;  %v10099_v0 = vld [vmem:[%s10406_s17 + $0x18] sm:$0xff] }
0x1253   : > { %9043 = vmatmul.msk.f32.gmra.mxu0 %vm488_vm0, %v7288_v6  ;;  %v7209_v45 = vsel %vm7196_vm3, %v7192_v19, %v6837_v49 }
0x1254   : > { %7435 = vadd.xlane.f32.xlu0 %v7434_v17  ;;  %v7226_v5 = vsel %vm7213_vm4, %v7209_v45, %v6901_v14 }
0x1259   : > { %v6965_v54 = vpop.permute.xlu1 %6964  ;;  %v7029_v18 = vpop.permute.xlu0 %7028 }
0x125a   : > { %v6729_v52 = vpop.f32.mrf.mxu3 }
0x125b   : > { %9044 = vmatmul.msk.f32.gmra.mxu0 %vm488_vm0, %v14344_v11  ;;  %7162 = vrot.lane.b32.xlu1 %v6729_v52, %s10241_s14  ;;  %v7258_v11 = vsel %vm7246_vm5, %v14413_v23, %v7027_v2  ;;  %v7242_v23 = vsel %vm899_vm2, %v7226_v5, %v6965_v54  ;;  %v7194_v2 = vsel %vm608_vm1, %v16004_v13, %v6777_v36  ;;  %s16008_s14 = smov %s16007_s25 }
0x125c   : > { %v7275_v4 = vsel %vm7263_vm6, %v7258_v11, %v7091_v53  ;;  %v7259_v21 = vsel %vm7246_vm5, %v7242_v23, %v7029_v18  ;;  %s10162_s16 = scalar_lea.hbm %s16008_s14, 256 }
0x125d   : > { %v7292_v3 = vsel %vm7280_vm7, %v7275_v4, %v7155_v42  ;;  %v7276_v47 = vsel %vm7263_vm6, %v7259_v21, %v7093_v34  ;;  %v10242_v4 = vmov 32.0  }
0x125e   : > { %10030 = vrcp.f32 %v10242_v4 }
0x1261   : > { %v6903_v30 = vpop.permute.xlu1 %6902  ;;  %v6775_v40 = vpop.permute.xlu0 %6774 }
0x1262   : > { %v7193_v33 = vsel %vm608_vm1, %v16003_v26, %v6775_v40 }
0x1263   : > { %9045 = vmatmul.msk.f32.gmra.mxu0 %vm488_vm0, %v7290_v24  ;;  %v7210_v16 = vsel %vm7196_vm3, %v7193_v33, %v6839_v61 }
0x1264   : > { %v7227_v25 = vsel %vm7213_vm4, %v7210_v16, %v6903_v30 }
0x1269   : > { %v7095_v50 = vpop.permute.xlu1 %7094  ;;  %v6967_v32 = vpop.permute.xlu0 %6966 }
0x126a   : > { %v7243_v31 = vsel %vm899_vm2, %v7227_v25, %v6967_v32  ;;  %v10031_v32 = vpop.eup %10030 }
0x126b   : > { %9046 = vmatmul.msk.f32.gmra.mxu0 %vm488_vm0, %v14434_v39  ;;  %v7260_v63 = vsel %vm7246_vm5, %v7243_v31, %v7031_v48  ;;  %vm7487_vm8 = vweird.f32 %v10031_v32 }
0x126c   : > { %v7277_v10 = vsel %vm7263_vm6, %v7260_v63, %v7095_v50  ;;  %v10101_v50 = vld [vmem:[%s10406_s17 + $0x28] sm:$0xff] }
0x126f   : > { %v7161_v17 = vpop.permute.xlu2 %7160 }
0x1271   : > { %v6841_v46 = vpop.permute.xlu1 %6840  ;;  %v6905_v28 = vpop.permute.xlu0 %6904 }
0x1272   : > { %v7211_v58 = vsel %vm7196_vm3, %v7194_v2, %v6841_v46 }
0x1273   : > { %9047 = vmatmul.msk.f32.gmra.mxu0 %vm488_vm0, %v7292_v3  ;;  %v7228_v44 = vsel %vm7213_vm4, %v7211_v58, %v6905_v28  ;;  %v7483_v3 = vmul.f32 32.0, %v10031_v32  ;;  %v16005_v28 = vld [vmem:[#allocation87_spill] sm:$0xff] }
0x1274   : > { %v7244_v27 = vsel %vm899_vm2, %v7228_v44, %v6969_v57 }
0x1275   : > { %v7484_v12 = vsub.f32 1.0, %v7483_v3 }
0x1277   : > { %v7485_v45 = vmul.f32 %v10031_v32, %v7484_v12  ;;  %v6907_v5 = vpop.permute.xlu2 %6906 }
0x1279   : > { %v7033_v39 = vpop.permute.xlu1 %7032  ;;  %v7097_v56 = vpop.permute.xlu0 %7096 }
0x127a   : > { %v7261_v43 = vsel %vm7246_vm5, %v7244_v27, %v7033_v39  ;;  %v7486_v39 = vadd.f32 %v10031_v32, %v7485_v45 }
0x127b   : > { %v7278_v9 = vsel %vm7263_vm6, %v7261_v43, %v7097_v56  ;;  %v10102_v56 = vld [vmem:[%s10406_s17 + $0x30] sm:$0xff] }
0x127c   : > { %v7295_v14 = vsel %vm7280_vm7, %v7278_v9, %v7161_v17  ;;  %v14578_v33 = vsel %vm7487_vm8, %v10031_v32, %v7486_v39  ;;  %v10108_v39 = vld [vmem:[%s10406_s17 + $0x60] sm:$0xff] }
0x127f   : > { %v7373_v38 = vpop.f32.mrf.mxu0  ;;  %v7099_v25 = vpop.permute.xlu2 %7098 }
0x1280   : > { %v7374_v8 = vadd.f32 %v14486_v35, %v7373_v38 }
0x1281   : > { %v7157_v37 = vpop.permute.xlu1 %7156 }
0x1282   : > { %v14530_v62 = vadd.f32 %v10097_v55, %v7374_v8  ;;  %v7293_v60 = vsel %vm7280_vm7, %v7276_v47, %v7157_v37 }
0x1283   : > { %9048 = vmatmul.msk.f32.gmra.mxu0 %vm488_vm0, %v7293_v60 }
0x1284   : > { %v7437_v29 = vsel %vm488_vm0, %v14530_v62, 0.0 }
0x1285   : > { %7438 = vadd.xlane.f32.xlu2 %v7437_v29 }
0x1287   : > { %v7376_v7 = vpop.f32.mrf.mxu0 }
0x1288   : > { %v7377_v53 = vadd.f32 %v14486_v35, %v7376_v7 }
0x1289   : > { %v6779_v19 = vpop.permute.xlu1 %6778 }
0x128a   : > { %v14544_v1 = vadd.f32 %v10098_v59, %v7377_v53  ;;  %v7195_v23 = vsel %vm608_vm1, %v16005_v28, %v6779_v19  ;;  %v10103_v59 = vld [vmem:[%s10406_s17 + $0x38] sm:$0xff] }
0x128c   : > { %v7159_v15 = vpop.permute.xlu0 %7158  ;;  %v7440_v49 = vsel %vm488_vm0, %v14544_v1, 0.0 }
0x128d   : > { %v7294_v51 = vsel %vm7280_vm7, %v7277_v10, %v7159_v15  ;;  %7441 = vadd.xlane.f32.xlu1 %v7440_v49  ;;  %v10104_v49 = vld [vmem:[%s10406_s17 + $0x40] sm:$0xff] }
0x128e   : > { %9049 = vmatmul.msk.f32.gmra.mxu0 %vm488_vm0, %v7294_v51 }
0x128f   : > { %v7379_v20 = vpop.f32.mrf.mxu0 }
0x1290   : > { %v7380_v42 = vadd.f32 %v14486_v35, %v7379_v20 }
0x1291   : > { %v6971_v26 = vpop.permute.xlu1 %6970 }
0x1292   : > { %v14557_v6 = vadd.f32 %v10099_v0, %v7380_v42  ;;  %v10105_v42 = vld [vmem:[%s10406_s17 + $0x48] sm:$0xff] }
0x1294   : > { %v7443_v54 = vsel %vm488_vm0, %v14557_v6, 0.0  ;;  %v6843_v46 = vpop.permute.xlu0 %6842 }
0x1295   : > { %7444 = vadd.xlane.f32.xlu2 %v7443_v54  ;;  %v7212_v21 = vsel %vm7196_vm3, %v7195_v23, %v6843_v46 }
0x1296   : > { %9050 = vmatmul.msk.f32.gmra.mxu0 %vm488_vm0, %v7295_v14  ;;  %v7229_v38 = vsel %vm7213_vm4, %v7212_v21, %v6907_v5  ;;  %v10106_v14 = vld [vmem:[%s10406_s17 + $0x50] sm:$0xff] }
0x1297   : > { %v7382_v52 = vpop.f32.mrf.mxu0  ;;  %v7245_v36 = vsel %vm899_vm2, %v7229_v38, %v6971_v26 }
0x1298   : > { %v7383_v18 = vadd.f32 %v14486_v35, %v7382_v52 }
0x129a   : > { %v14565_v30 = vadd.f32 %v10100_v41, %v7383_v18 }
0x129c   : > { %v7446_v24 = vsel %vm488_vm0, %v14565_v30, 0.0  ;;  %v7035_v48 = vpop.permute.xlu0 %7034 }
0x129d   : > { %7447 = vadd.xlane.f32.xlu0 %v7446_v24  ;;  %v7262_v55 = vsel %vm7246_vm5, %v7245_v36, %v7035_v48  ;;  %v10109_v36 = vld [vmem:[%s10406_s17 + $0x68] sm:$0xff] }
0x129e   : > { %v7279_v2 = vsel %vm7263_vm6, %v7262_v55, %v7099_v25 }
0x129f   : > { %v7385_v34 = vpop.f32.mrf.mxu0 }
0x12a0   : > { %v7386_v40 = vadd.f32 %v14486_v35, %v7385_v34  ;;  %v10107_v34 = vld [vmem:[%s10406_s17 + $0x58] sm:$0xff] }
0x12a2   : > { %v14571_v61 = vadd.f32 %v10101_v50, %v7386_v40 }
0x12a4   : > { %v7449_v11 = vsel %vm488_vm0, %v14571_v61, 0.0 }
0x12a5   : > { %7450 = vadd.xlane.f32.xlu1 %v7449_v11 }
0x12c7   : > { %v7436_v8 = vpop.xlane.xlu0 %7435 }
0x12c8   : > { %v7489_v47 = vmul.f32 %v14578_v33, %v7436_v8  ;;  %v7388_v37 = vpop.f32.mrf.mxu0 }
0x12c9   : > { %v7389_v16 = vadd.f32 %v14486_v35, %v7388_v37 }
0x12ca   : > { %v14586_v60 = vsub.f32 %v14496_v22, %v7489_v47 }
0x12cb   : > { %v14589_v29 = vadd.f32 %v10102_v56, %v7389_v16 }
0x12cc   : > { %v7521_v31 = vmul.f32 %v14586_v60, %v14586_v60 }
0x12cd   : > { %v7163_v13 = vpop.permute.xlu1 %7162  ;;  %v7452_v7 = vsel %vm488_vm0, %v14589_v29, 0.0 }
0x12ce   : > { %v7296_v58 = vsel %vm7280_vm7, %v7279_v2, %v7163_v13  ;;  %7453 = vadd.xlane.f32.xlu0 %v7452_v7  ;;  %v7537_v22 = vsel %vm488_vm0, %v7521_v31, 0.0 }
0x12cf   : > { %9051 = vmatmul.msk.f32.gmra.mxu0 %vm488_vm0, %v7296_v58  ;;  %7538 = vadd.xlane.f32.xlu2 %v7537_v22  ;;  %v10110_v58 = vld [vmem:[%s10406_s17 + $0x70] sm:$0xff] }
0x12d0   : > { %v7391_v53 = vpop.f32.mrf.mxu0 }
0x12d1   : > { %v7392_v63 = vadd.f32 %v14486_v35, %v7391_v53 }
0x12d3   : > { %v14601_v44 = vadd.f32 %v10103_v59, %v7392_v63 }
0x12d5   : > { %v7455_v57 = vsel %vm488_vm0, %v14601_v44, 0.0 }
0x12d7   : > { %7456 = vadd.xlane.f32.xlu2 %v7455_v57 }
0x12d8   : > { %v7394_v10 = vpop.f32.mrf.mxu0 }
0x12d9   : > { %v7395_v15 = vadd.f32 %v14486_v35, %v7394_v10 }
0x12db   : > { %v14607_v51 = vadd.f32 %v10104_v49, %v7395_v15  ;;  %v7836_v49 = vld [vmem:[%s15334_s7 + $0x18] sm:$0xff] }
0x12dc   : > { %7901 = vmatpush.msra.mxu1 %v7836_v49  ;;  %9098 = vmatpush.msrb.mxu3 %v7836_v49 }
0x12dd   : > { %v7458_v27 = vsel %vm488_vm0, %v14607_v51, 0.0 }
0x12df   : > { %7459 = vadd.xlane.f32.xlu2 %v7458_v27  ;;  %v7835_v27 = vld [vmem:[%s15334_s7 + $0x10] sm:$0xff] }
0x12e0   : > { %v7397_v43 = vpop.f32.mrf.mxu0  ;;  %7902 = vmatpush.msra.mxu1 %v7835_v27  ;;  %9099 = vmatpush.msrb.mxu3 %v7835_v27 }
0x12e1   : > { %v7398_v20 = vadd.f32 %v14486_v35, %v7397_v43  ;;  %v7833_v43 = vld [vmem:[%s15334_s7] sm:$0xff] }
0x12e3   : > { %v14613_v9 = vadd.f32 %v10105_v42, %v7398_v20 }
0x12e5   : > { %v7461_v0 = vsel %vm488_vm0, %v14613_v9, 0.0 }
0x12e7   : > { %7462 = vadd.xlane.f32.xlu2 %v7461_v0 }
0x12e8   : > { %v7400_v17 = vpop.f32.mrf.mxu0 }
0x12e9   : > { %v7401_v54 = vadd.f32 %v14486_v35, %v7400_v17 }
0x12eb   : > { %v14619_v52 = vadd.f32 %v10106_v14, %v7401_v54 }
0x12ed   : > { %v7464_v18 = vsel %vm488_vm0, %v14619_v52, 0.0 }
0x12ef   : > { %7465 = vadd.xlane.f32.xlu2 %v7464_v18 }
0x12f0   : > { %v7403_v41 = vpop.f32.mrf.mxu0 }
0x12f1   : > { %v7404_v24 = vadd.f32 %v14486_v35, %v7403_v41 }
0x12f3   : > { %v14625_v40 = vadd.f32 %v10107_v34, %v7404_v24 }
0x12f5   : > { %v7467_v50 = vsel %vm488_vm0, %v14625_v40, 0.0 }
0x12f7   : > { %7468 = vadd.xlane.f32.xlu2 %v7467_v50 }
0x12f8   : > { %v7439_v11 = vpop.xlane.xlu2 %7438 }
0x12f9   : > { %v7490_v4 = vmul.f32 %v14578_v33, %v7439_v11 }
0x12fb   : > { %v14631_v32 = vsub.f32 %v14530_v62, %v7490_v4  ;;  %v10111_v4 = vld [vmem:[%s10406_s17 + $0x78] sm:$0xff]  ;;  %s10156_s17 = sshra.s32 %s8553_s15, 4  ;;  %s10157_s17 = int_to_ptr.hbm [resolvable:$true] %s10156_s17 }
0x12fc   : > { %s10158_s23 = scalar_lea.hbm %s10157_s17, 128  ;;  %p10163_p0 = scmp.lt.s32.totalorder %s10157_s17, %s16008_s14 }
0x12fd   : > { %v7522_v46 = vmul.f32 %v14631_v32, %v14631_v32  ;;  %p10159_p6 = scmp.ne.s32.totalorder %s10157_s17, %s10158_s23  ;;  %p10164_p1 = scmp.lt.s32.totalorder %s10162_s16, %s10158_s23 }
0x12ff   : > { %v7540_v3 = vsel %vm488_vm0, %v7522_v46, 0.0  ;;  %p10160_p9 = pnand %p10159_p6, %p10364_p11  ;;  %p10165_p3 = por %p10164_p1, %p10163_p0 }
0x1300   : > { %7541 = vadd.xlane.f32.xlu1 %v7540_v3  ;;  %v7406_v12 = vpop.f32.mrf.mxu0  ;;  %v7442_v19 = vpop.xlane.xlu1 %7441 }
0x1301   : > { %v7407_v45 = vadd.f32 %v14486_v35, %v7406_v12  ;;  %v7491_v48 = vmul.f32 %v14578_v33, %v7442_v19  ;;  %p10161_p13 = pneg %p10160_p9 }
0x1303   : > { %v14639_v5 = vadd.f32 %v10108_v39, %v7407_v45  ;;  %v14642_v28 = vsub.f32 %v14544_v1, %v7491_v48  ;;  %p10166_p4 = pnand %p10165_p3, %p10161_p13 }
0x1305   : > { %v7470_v62 = vsel %vm488_vm0, %v14639_v5, 0.0  ;;  %v7523_v23 = vmul.f32 %v14642_v28, %v14642_v28 }
0x1306   : > { %7471 = vadd.xlane.f32.xlu0 %v7470_v62 }
0x1307   : > { %v7543_v21 = vsel %vm488_vm0, %v7523_v23, 0.0 }
0x1308   : > { %v7445_v26 = vpop.xlane.xlu2 %7444  ;;  %7544 = vadd.xlane.f32.xlu1 %v7543_v21 }
0x1309   : > { %v7492_v38 = vmul.f32 %v14578_v33, %v7445_v26 }
0x130b   : > { %v14651_v8 = vsub.f32 %v14557_v6, %v7492_v38  ;;  %v7409_v47 = vpop.f32.mrf.mxu0  ;;  %v14723_v38 = vld [vmem:[%s15333_s6] ss:$0 sm:$0xff] }
0x130c   : > { %v7410_v1 = vadd.f32 %v14486_v35, %v7409_v47 }
0x130d   : > { %v7524_v37 = vmul.f32 %v14651_v8, %v14651_v8 }
0x130e   : > { %v14657_v16 = vadd.f32 %v10109_v36, %v7410_v1 }
0x130f   : > { %v7546_v55 = vsel %vm488_vm0, %v7524_v37, 0.0 }
0x1310   : > { %7547 = vadd.xlane.f32.xlu1 %v7546_v55  ;;  %v7448_v56 = vpop.xlane.xlu0 %7447  ;;  %v7473_v25 = vsel %vm488_vm0, %v14657_v16, 0.0 }
0x1311   : > { %v7493_v6 = vmul.f32 %v14578_v33, %v7448_v56  ;;  %7474 = vadd.xlane.f32.xlu0 %v7473_v25 }
0x1313   : > { %v14664_v31 = vsub.f32 %v14565_v30, %v7493_v6  ;;  %v7412_v13 = vpop.f32.mrf.mxu0 }
0x1314   : > { %v7413_v2 = vadd.f32 %v14486_v35, %v7412_v13 }
0x1315   : > { %v7525_v7 = vmul.f32 %v14664_v31, %v14664_v31 }
0x1316   : > { %v14670_v22 = vadd.f32 %v10110_v58, %v7413_v2 }
0x1317   : > { %v7549_v53 = vsel %vm488_vm0, %v7525_v7, 0.0 }
0x1318   : > { %v7451_v63 = vpop.xlane.xlu1 %7450  ;;  %7550 = vadd.xlane.f32.xlu1 %v7549_v53  ;;  %v7476_v59 = vsel %vm488_vm0, %v14670_v22, 0.0 }
0x1319   : > { %v7494_v57 = vmul.f32 %v14578_v33, %v7451_v63  ;;  %7477 = vadd.xlane.f32.xlu0 %v7476_v59 }
0x131b   : > { %v14677_v30 = vsub.f32 %v14571_v61, %v7494_v57  ;;  %v7834_v61 = vld [vmem:[%s15334_s7 + $0x8] sm:$0xff] }
0x131c   : > { %7903 = vmatpush.msra.mxu1 %v7834_v61  ;;  %9100 = vmatpush.msrb.mxu3 %v7834_v61 }
0x131d   : > { %v7526_v10 = vmul.f32 %v14677_v30, %v14677_v30 }
0x131e   : > { %7904 = vmatpush.msra.mxu1 %v7833_v43  ;;  %9101 = vmatpush.msrb.mxu3 %v7833_v43 }
0x131f   : > { %v7552_v15 = vsel %vm488_vm0, %v7526_v10, 0.0 }
0x1320   : > { %7553 = vadd.xlane.f32.xlu1 %v7552_v15 }
0x1341   : > { %v7454_v17 = vpop.xlane.xlu0 %7453 }
0x1342   : > { %v7539_v20 = vpop.xlane.xlu2 %7538  ;;  %v7495_v24 = vmul.f32 %v14578_v33, %v7454_v17 }
0x1343   : > { %v7585_v42 = vmul.f32 %v7539_v20, %v14578_v33 }
0x1344   : > { %v14707_v19 = vsub.f32 %v14589_v29, %v7495_v24  ;;  %v14718_v29 = vld [vmem:[%s15332_s5] ss:$0 sm:$0xff] }
0x1345   : > { %v7601_v0 = vadd.f32 1e-05, %v7585_v42 }
0x1346   : > { %v7527_v23 = vmul.f32 %v14707_v19, %v14707_v19 }
0x1347   : > { %10032 = vrsqrt.f32 %v7601_v0  ;;  %vm7623_vm10 = vweird.f32 %v7601_v0 }
0x1348   : > { %v7555_v37 = vsel %vm488_vm0, %v7527_v23, 0.0 }
0x134a   : > { %v7457_v54 = vpop.xlane.xlu2 %7456 }
0x134b   : > { %v7496_v14 = vmul.f32 %v14578_v33, %v7457_v54 }
0x134c   : > { %v7415_v18 = vpop.f32.mrf.mxu0 }
0x134d   : > { %v10033_v41 = vpop.eup %10032  ;;  %v14698_v34 = vsub.f32 %v14601_v44, %v7496_v14  ;;  %v7416_v50 = vadd.f32 %v14486_v35, %v7415_v18 }
0x134e   : > { %v7618_v11 = vmul.f32 %v10033_v41, %v7601_v0  ;;  %vm7624_vm9 = vweird.f32 %v10033_v41 }
0x134f   : > { %v14702_v46 = vadd.f32 %v10111_v4, %v7416_v50  ;;  %v7528_v3 = vmul.f32 %v14698_v34, %v14698_v34  ;;  %vm7625_vm11 = vmor %vm7623_vm10, %vm7624_vm9 }
0x1350   : > { %v7619_v12 = vmul.f32 %v10033_v41, %v7618_v11 }
0x1351   : > { %v7479_v45 = vsel %vm488_vm0, %v14702_v46, 0.0  ;;  %v7558_v48 = vsel %vm488_vm0, %v7528_v3, 0.0 }
0x1352   : > { %v7620_v44 = vmul.f32 0.5, %v7619_v12  ;;  %7480 = vadd.xlane.f32.xlu0 %v7479_v45  ;;  %v7460_v39 = vpop.xlane.xlu2 %7459  ;;  %7559 = vadd.xlane.f32.xlu1 %v7558_v48 }
0x1353   : > { %v7497_v62 = vmul.f32 %v14578_v33, %v7460_v39 }
0x1354   : > { %v7621_v35 = vsub.f32 1.5, %v7620_v44 }
0x1355   : > { %v14727_v1 = vsub.f32 %v14607_v51, %v7497_v62 }
0x1356   : > { %v7622_v21 = vmul.f32 %v10033_v41, %v7621_v35 }
0x1357   : > { %v7529_v56 = vmul.f32 %v14727_v1, %v14727_v1 }
0x1358   : > { %v7626_v26 = vsel %vm7625_vm11, %v10033_v41, %v7622_v21 }
0x1359   : > { %v7777_v47 = vmul.f32 %v7626_v26, %v14586_v60  ;;  %v7561_v25 = vsel %vm488_vm0, %v7529_v56, 0.0 }
0x135a   : > { %7556 = vadd.xlane.f32.xlu0 %v7555_v37  ;;  %v7463_v13 = vpop.xlane.xlu2 %7462 }
0x135b   : > { %v7797_v36 = vmul.f32 %v14718_v29, %v7777_v47  ;;  %v7498_v53 = vmul.f32 %v14578_v33, %v7463_v13 }
0x135d   : > { %v14732_v55 = vadd.f32 %v14723_v38, %v7797_v36  ;;  %v14749_v27 = vsub.f32 %v14613_v9, %v7498_v53 }
0x135f   : > { %9052 = vmatmul.msk.f32.vlgmr.msra.gmra.mxu1 %vm488_vm0, %v14732_v55  ;;  %v7530_v54 = vmul.f32 %v14749_v27, %v14749_v27 }
0x1361   : > { %v7564_v3 = vsel %vm488_vm0, %v7530_v54, 0.0 }
0x1362   : > { %7562 = vadd.xlane.f32.xlu0 %v7561_v25  ;;  %v7466_v43 = vpop.xlane.xlu2 %7465 }
0x1363   : > { %v7499_v41 = vmul.f32 %v14578_v33, %v7466_v43 }
0x1365   : > { %v14764_v44 = vsub.f32 %v14619_v52, %v7499_v41 }
0x136a   : > { %v7469_v35 = vpop.xlane.xlu2 %7468 }
0x136b   : > { %v7500_v52 = vmul.f32 %v14578_v33, %v7469_v35 }
0x1373   : > { %v7542_v60 = vpop.xlane.xlu1 %7541 }
0x1374   : > { %v7586_v51 = vmul.f32 %v7542_v60, %v14578_v33  ;;  %v7531_v60 = vmul.f32 %v14764_v44, %v14764_v44 }
0x1376   : > { %v7602_v6 = vadd.f32 1e-05, %v7586_v51 }
0x1378   : > { %10034 = vrsqrt.f32 %v7602_v6  ;;  %vm7633_vm13 = vweird.f32 %v7602_v6 }
0x1379   : > { %v7472_v2 = vpop.xlane.xlu0 %7471 }
0x137a   : > { %v7501_v7 = vmul.f32 %v14578_v33, %v7472_v2 }
0x137b   : > { %v7545_v58 = vpop.xlane.xlu1 %7544 }
0x137c   : > { %v14743_v63 = vsub.f32 %v14639_v5, %v7501_v7  ;;  %v7587_v59 = vmul.f32 %v7545_v58, %v14578_v33 }
0x137e   : > { %v10035_v57 = vpop.eup %10034  ;;  %v7603_v10 = vadd.f32 1e-05, %v7587_v59  ;;  %v7533_v15 = vmul.f32 %v14743_v63, %v14743_v63  ;;  %v14786_v59 = vsub.f32 %v14625_v40, %v7500_v52  ;;  %v7973_v52 = vld [vmem:[%s15336_s9 + $0x18] sm:$0xff] }
0x137f   : > { %v7628_v49 = vmul.f32 %v10035_v57, %v7602_v6  ;;  %vm7634_vm12 = vweird.f32 %v10035_v57 }
0x1380   : > { %10036 = vrsqrt.f32 %v7603_v10  ;;  %v7573_v61 = vsel %vm488_vm0, %v7533_v15, 0.0  ;;  %vm7635_vm14 = vmor %vm7633_vm13, %vm7634_vm12  ;;  %vm7643_vm1 = vweird.f32 %v7603_v10  ;;  %vm7978_vm12 = vcmask 523264  }
0x1381   : > { %v7629_v20 = vmul.f32 %v10035_v57, %v7628_v49  ;;  %7574 = vadd.xlane.f32.xlu2 %v7573_v61 }
0x1383   : > { %v7630_v42 = vmul.f32 0.5, %v7629_v20  ;;  %v7548_v5 = vpop.xlane.xlu1 %7547 }
0x1384   : > { %v7588_v0 = vmul.f32 %v7548_v5, %v14578_v33  ;;  %v7475_v17 = vpop.xlane.xlu0 %7474 }
0x1385   : > { %v7631_v14 = vsub.f32 1.5, %v7630_v42  ;;  %v7502_v18 = vmul.f32 %v14578_v33, %v7475_v17 }
0x1386   : > { %v10037_v9 = vpop.eup %10036  ;;  %v7604_v24 = vadd.f32 1e-05, %v7588_v0  ;;  %v7532_v0 = vmul.f32 %v14786_v59, %v14786_v59 }
0x1387   : > { %v7632_v50 = vmul.f32 %v10035_v57, %v7631_v14  ;;  %v7638_v11 = vmul.f32 %v10037_v9, %v7603_v10  ;;  %v14758_v4 = vsub.f32 %v14657_v16, %v7502_v18  ;;  %vm7644_vm15 = vweird.f32 %v10037_v9 }
0x1388   : > { %10038 = vrsqrt.f32 %v7604_v24  ;;  %vm7645_vm2 = vmor %vm7643_vm1, %vm7644_vm15  ;;  %vm7653_vm4 = vweird.f32 %v7604_v24 }
0x1389   : > { %v7636_v12 = vsel %vm7635_vm14, %v10035_v57, %v7632_v50  ;;  %v7639_v45 = vmul.f32 %v10037_v9, %v7638_v11  ;;  %7565 = vadd.xlane.f32.xlu2 %v7564_v3  ;;  %v7534_v48 = vmul.f32 %v14758_v4, %v14758_v4 }
0x138a   : > { %v7778_v39 = vmul.f32 %v7636_v12, %v14631_v32 }
0x138b   : > { %v7640_v62 = vmul.f32 0.5, %v7639_v45  ;;  %v7551_v23 = vpop.xlane.xlu1 %7550  ;;  %v7576_v16 = vsel %vm488_vm0, %v7534_v48, 0.0 }
0x138c   : > { %v7589_v21 = vmul.f32 %v7551_v23, %v14578_v33  ;;  %7577 = vadd.xlane.f32.xlu1 %v7576_v16  ;;  %v7478_v26 = vpop.xlane.xlu0 %7477  ;;  %v7798_v47 = vmul.f32 %v14718_v29, %v7778_v39 }
0x138d   : > { %v7641_v37 = vsub.f32 1.5, %v7640_v62  ;;  %v7503_v36 = vmul.f32 %v14578_v33, %v7478_v26 }
0x138e   : > { %v10039_v56 = vpop.eup %10038  ;;  %v7605_v25 = vadd.f32 1e-05, %v7589_v21  ;;  %v14773_v32 = vadd.f32 %v14723_v38, %v7798_v47 }
0x138f   : > { %v7642_v51 = vmul.f32 %v10037_v9, %v7641_v37  ;;  %v7648_v6 = vmul.f32 %v10039_v56, %v7604_v24  ;;  %v14778_v13 = vsub.f32 %v14670_v22, %v7503_v36  ;;  %v7567_v22 = vsel %vm488_vm0, %v7531_v60, 0.0  ;;  %v7977_v37 = vld [vmem:[%s15336_s9 + $0x38] sm:$0xff]  ;;  %v7976_v36 = vld [vmem:[%s15336_s9 + $0x30] sm:$0xff]  ;;  %v7971_v60 = vld [vmem:[%s15336_s9 + $0x8] sm:$0xff] }
0x1390   : > { %10040 = vrsqrt.f32 %v7605_v25  ;;  %9053 = vmatmul.msk.f32.gmra.mxu1 %vm488_vm0, %v14773_v32  ;;  %vm7654_vm3 = vweird.f32 %v10039_v56  ;;  %vm7663_vm7 = vweird.f32 %v7605_v25  ;;  %8035 = vmatpush.msra.mxu2 %v7977_v37 }
0x1391   : > { %v7646_v2 = vsel %vm7645_vm2, %v10037_v9, %v7642_v51  ;;  %v7649_v7 = vmul.f32 %v10039_v56, %v7648_v6  ;;  %v7535_v58 = vmul.f32 %v14778_v13, %v14778_v13  ;;  %vm7655_vm5 = vmor %vm7653_vm4, %vm7654_vm3  ;;  %v7570_v9 = vsel %vm488_vm0, %v7532_v0, 0.0  ;;  %9102 = vmatpush.msra.mxu3 %v7977_v37  ;;  %v7970_v51 = vld [vmem:[%s15336_s9] sm:$0xff] }
0x1392   : > { %v7779_v53 = vmul.f32 %v7646_v2, %v14642_v28  ;;  %8036 = vmatpush.msra.mxu2 %v7976_v36 }
0x1393   : > { %v7650_v57 = vmul.f32 0.5, %v7649_v7  ;;  %v7554_v10 = vpop.xlane.xlu1 %7553  ;;  %v7579_v15 = vsel %vm488_vm0, %v7535_v58, 0.0  ;;  %9103 = vmatpush.msra.mxu3 %v7976_v36 }
0x1394   : > { %v7590_v49 = vmul.f32 %v7554_v10, %v14578_v33  ;;  %7568 = vadd.xlane.f32.xlu1 %v7567_v22  ;;  %7580 = vadd.xlane.f32.xlu0 %v7579_v15  ;;  %v7799_v61 = vmul.f32 %v14718_v29, %v7779_v53 }
0x1395   : > { %v7651_v43 = vsub.f32 1.5, %v7650_v57 }
0x1396   : > { %v10041_v20 = vpop.eup %10040  ;;  %v7606_v42 = vadd.f32 1e-05, %v7590_v49  ;;  %v14793_v28 = vadd.f32 %v14723_v38, %v7799_v61 }
0x1397   : > { %v7652_v40 = vmul.f32 %v10039_v56, %v7651_v43  ;;  %v7658_v5 = vmul.f32 %v10041_v20, %v7605_v25  ;;  %vm7664_vm6 = vweird.f32 %v10041_v20  ;;  %v7972_v25 = vld [vmem:[%s15336_s9 + $0x10] sm:$0xff] }
0x1398   : > { %10042 = vrsqrt.f32 %v7606_v42  ;;  %9054 = vmatmul.msk.f32.gmra.mxu1 %vm488_vm0, %v14793_v28  ;;  %vm7665_vm8 = vmor %vm7663_vm7, %vm7664_vm6  ;;  %vm7673_vm10 = vweird.f32 %v7606_v42 }
0x1399   : > { %v7656_v17 = vsel %vm7655_vm5, %v10039_v56, %v7652_v40  ;;  %v7659_v54 = vmul.f32 %v10041_v20, %v7658_v5  ;;  %v7974_v56 = vld [vmem:[%s15336_s9 + $0x20] sm:$0xff] }
0x139a   : > { %v7780_v14 = vmul.f32 %v7656_v17, %v14651_v8 }
0x139b   : > { %v7660_v18 = vmul.f32 0.5, %v7659_v54 }
0x139c   : > { %7571 = vadd.xlane.f32.xlu0 %v7570_v9  ;;  %v7800_v41 = vmul.f32 %v14718_v29, %v7780_v14  ;;  %v14858_v14 = vld [vmem:[%s15335_s8] ss:$0 sm:$0xff] }
0x139d   : > { %v7661_v24 = vsub.f32 1.5, %v7660_v18 }
0x139e   : > { %v10043_v50 = vpop.eup %10042  ;;  %v14803_v11 = vadd.f32 %v14723_v38, %v7800_v41 }
0x139f   : > { %v7662_v3 = vmul.f32 %v10041_v20, %v7661_v24  ;;  %v7668_v12 = vmul.f32 %v10043_v50, %v7606_v42  ;;  %vm7674_vm9 = vweird.f32 %v10043_v50 }
0x13a0   : > { %9055 = vmatmul.msk.f32.gmra.mxu1 %vm488_vm0, %v14803_v11  ;;  %vm7675_vm11 = vmor %vm7673_vm10, %vm7674_vm9 }
0x13a1   : > { %v7666_v8 = vsel %vm7665_vm8, %v10041_v20, %v7662_v3  ;;  %v7669_v45 = vmul.f32 %v10043_v50, %v7668_v12 }
0x13a2   : > { %v7781_v48 = vmul.f32 %v7666_v8, %v14664_v31 }
0x13a3   : > { %v7670_v39 = vmul.f32 0.5, %v7669_v45 }
0x13a4   : > { %v7801_v35 = vmul.f32 %v14718_v29, %v7781_v48 }
0x13a5   : > { %v7671_v62 = vsub.f32 1.5, %v7670_v39 }
0x13a6   : > { %v14810_v23 = vadd.f32 %v14723_v38, %v7801_v35 }
0x13a7   : > { %v7672_v16 = vmul.f32 %v10043_v50, %v7671_v62 }
0x13a8   : > { %9056 = vmatmul.msk.f32.gmra.mxu1 %vm488_vm0, %v14810_v23 }
0x13a9   : > { %v7676_v21 = vsel %vm7675_vm11, %v10043_v50, %v7672_v16 }
0x13aa   : > { %v7782_v26 = vmul.f32 %v7676_v21, %v14677_v30  ;;  %v7975_v30 = vld [vmem:[%s15336_s9 + $0x28] sm:$0xff] }
0x13ab   : > { %8037 = vmatpush.msra.mxu2 %v7975_v30  ;;  %9104 = vmatpush.msra.mxu3 %v7975_v30 }
0x13ac   : > { %v7802_v47 = vmul.f32 %v14718_v29, %v7782_v26 }
0x13ad   : > { %8038 = vmatpush.msra.mxu2 %v7974_v56  ;;  %9105 = vmatpush.msra.mxu3 %v7974_v56 }
0x13ae   : > { %v14817_v31 = vadd.f32 %v14723_v38, %v7802_v47 }
0x13af   : > { %8039 = vmatpush.msra.mxu2 %v7973_v52  ;;  %9106 = vmatpush.msra.mxu3 %v7973_v52 }
0x13b0   : > { %9057 = vmatmul.msk.f32.gmra.mxu1 %vm488_vm0, %v14817_v31 }
0x13b1   : > { %8040 = vmatpush.msra.mxu2 %v7972_v25  ;;  %9107 = vmatpush.msra.mxu3 %v7972_v25 }
0x13b3   : > { %8041 = vmatpush.msra.mxu2 %v7971_v60  ;;  %9108 = vmatpush.msra.mxu3 %v7971_v60 }
0x13b5   : > { %8042 = vmatpush.msra.mxu2 %v7970_v51  ;;  %9109 = vmatpush.msra.mxu3 %v7970_v51 }
0x13c5   : > { %v7560_v6 = vpop.xlane.xlu1 %7559  ;;  %v7481_v2 = vpop.xlane.xlu0 %7480 }
0x13c6   : > { %v7592_v7 = vmul.f32 %v7560_v6, %v14578_v33  ;;  %v7504_v58 = vmul.f32 %v14578_v33, %v7481_v2 }
0x13c8   : > { %v7608_v53 = vadd.f32 1e-05, %v7592_v7  ;;  %v14848_v57 = vsub.f32 %v14702_v46, %v7504_v58 }
0x13ca   : > { %10044 = vrsqrt.f32 %v7608_v53  ;;  %v7536_v10 = vmul.f32 %v14848_v57, %v14848_v57  ;;  %vm7693_vm2 = vweird.f32 %v7608_v53 }
0x13cc   : > { %v7582_v22 = vsel %vm488_vm0, %v7536_v10, 0.0 }
0x13cd   : > { %7583 = vadd.xlane.f32.xlu2 %v7582_v22  ;;  %v7557_v15 = vpop.xlane.xlu0 %7556 }
0x13ce   : > { %v7591_v49 = vmul.f32 %v7557_v15, %v14578_v33 }
0x13d0   : > { %v10045_v61 = vpop.eup %10044  ;;  %v7607_v43 = vadd.f32 1e-05, %v7591_v49 }
0x13d1   : > { %v7688_v20 = vmul.f32 %v10045_v61, %v7608_v53  ;;  %vm7694_vm14 = vweird.f32 %v10045_v61 }
0x13d2   : > { %10046 = vrsqrt.f32 %v7607_v43  ;;  %vm7683_vm15 = vweird.f32 %v7607_v43  ;;  %vm7695_vm3 = vmor %vm7693_vm2, %vm7694_vm14 }
0x13d3   : > { %v7689_v42 = vmul.f32 %v10045_v61, %v7688_v20 }
0x13d5   : > { %v7563_v40 = vpop.xlane.xlu0 %7562  ;;  %v7690_v17 = vmul.f32 0.5, %v7689_v42 }
0x13d6   : > { %v7593_v5 = vmul.f32 %v7563_v40, %v14578_v33 }
0x13d7   : > { %v7691_v41 = vsub.f32 1.5, %v7690_v17 }
0x13d8   : > { %v10047_v46 = vpop.eup %10046  ;;  %v7609_v0 = vadd.f32 1e-05, %v7593_v5 }
0x13d9   : > { %v7678_v54 = vmul.f32 %v10047_v46, %v7607_v43  ;;  %vm7684_vm13 = vweird.f32 %v10047_v46  ;;  %v7692_v45 = vmul.f32 %v10045_v61, %v7691_v41 }
0x13da   : > { %10048 = vrsqrt.f32 %v7609_v0  ;;  %vm7685_vm1 = vmor %vm7683_vm15, %vm7684_vm13  ;;  %vm7703_vm5 = vweird.f32 %v7609_v0 }
0x13db   : > { %v7679_v18 = vmul.f32 %v10047_v46, %v7678_v54  ;;  %v7696_v21 = vsel %vm7695_vm3, %v10045_v61, %v7692_v45 }
0x13dc   : > { %v7906_v9 = vpop.f32.mrf.mxu1  ;;  %v7784_v36 = vmul.f32 %v7696_v21, %v14698_v34 }
0x13dd   : > { %v7680_v24 = vmul.f32 0.5, %v7679_v18  ;;  %v7907_v50 = vadd.f32 %v14858_v14, %v7906_v9 }
0x13de   : > { %v7804_v52 = vmul.f32 %v14718_v29, %v7784_v36 }
0x13df   : > { %v7681_v3 = vsub.f32 1.5, %v7680_v24  ;;  %v7954_v12 = vmax.f32 %v7907_v50, 0.0 }
0x13e0   : > { %v10049_v8 = vpop.eup %10048  ;;  %v14873_v60 = vadd.f32 %v14723_v38, %v7804_v52 }
0x13e1   : > { %v7682_v48 = vmul.f32 %v10047_v46, %v7681_v3  ;;  %v7698_v39 = vmul.f32 %v10049_v8, %v7609_v0  ;;  %9068 = vmatmul.msk.f32.vlgmr.msra.gmra.mxu2 %vm7978_vm12, %v7954_v12  ;;  %vm7704_vm4 = vweird.f32 %v10049_v8 }
0x13e2   : > { %vm7705_vm6 = vmor %vm7703_vm5, %vm7704_vm4 }
0x13e3   : > { %v7686_v35 = vsel %vm7685_vm1, %v10047_v46, %v7682_v48  ;;  %v7699_v62 = vmul.f32 %v10049_v8, %v7698_v39 }
0x13e4   : > { %v7783_v16 = vmul.f32 %v7686_v35, %v14707_v19 }
0x13e5   : > { %v7700_v26 = vmul.f32 0.5, %v7699_v62 }
0x13e6   : > { %v7803_v47 = vmul.f32 %v14718_v29, %v7783_v16 }
0x13e7   : > { %v7701_v37 = vsub.f32 1.5, %v7700_v26 }
0x13e8   : > { %v14866_v30 = vadd.f32 %v14723_v38, %v7803_v47 }
0x13e9   : > { %v7702_v56 = vmul.f32 %v10049_v8, %v7701_v37 }
0x13ea   : > { %9058 = vmatmul.msk.f32.gmra.mxu1 %vm488_vm0, %v14866_v30 }
0x13eb   : > { %v7706_v19 = vsel %vm7705_vm6, %v10049_v8, %v7702_v56 }
0x13ec   : > { %v7785_v25 = vmul.f32 %v7706_v19, %v14727_v1 }
0x13ee   : > { %v7805_v51 = vmul.f32 %v14718_v29, %v7785_v25 }
0x13f0   : > { %v14880_v7 = vadd.f32 %v14723_v38, %v7805_v51 }
0x13f2   : > { %9059 = vmatmul.msk.f32.gmra.mxu1 %vm488_vm0, %v14873_v60 }
0x13f4   : > { %v7575_v34 = vpop.xlane.xlu2 %7574 }
0x13f5   : > { %v7597_v6 = vmul.f32 %v7575_v34, %v14578_v33 }
0x13f7   : > { %v7613_v2 = vadd.f32 1e-05, %v7597_v6 }
0x13f9   : > { %10050 = vrsqrt.f32 %v7613_v2  ;;  %vm7743_vm8 = vweird.f32 %v7613_v2 }
0x13fa   : > { %9060 = vmatmul.msk.f32.gmra.mxu1 %vm488_vm0, %v14880_v7 }
0x13fc   : > { %v7566_v1 = vpop.xlane.xlu2 %7565 }
0x13fd   : > { %v7594_v58 = vmul.f32 %v7566_v1, %v14578_v33 }
0x13ff   : > { %v10051_v53 = vpop.eup %10050  ;;  %v7610_v10 = vadd.f32 1e-05, %v7594_v58  ;;  %v7578_v22 = vpop.xlane.xlu1 %7577 }
0x1400   : > { %v7738_v15 = vmul.f32 %v10051_v53, %v7613_v2  ;;  %v7598_v49 = vmul.f32 %v7578_v22, %v14578_v33  ;;  %vm7744_vm7 = vweird.f32 %v10051_v53 }
0x1401   : > { %10052 = vrsqrt.f32 %v7610_v10  ;;  %vm7745_vm9 = vmor %vm7743_vm8, %vm7744_vm7  ;;  %vm7713_vm11 = vweird.f32 %v7610_v10 }
0x1402   : > { %v7739_v61 = vmul.f32 %v10051_v53, %v7738_v15  ;;  %v7614_v43 = vadd.f32 1e-05, %v7598_v49 }
0x1404   : > { %v7740_v20 = vmul.f32 0.5, %v7739_v61  ;;  %10054 = vrsqrt.f32 %v7614_v43  ;;  %vm7753_vm15 = vweird.f32 %v7614_v43 }
0x1406   : > { %v7741_v42 = vsub.f32 1.5, %v7740_v20 }
0x1407   : > { %v10053_v40 = vpop.eup %10052  ;;  %v7569_v5 = vpop.xlane.xlu1 %7568 }
0x1408   : > { %v7581_v46 = vpop.xlane.xlu0 %7580  ;;  %v7742_v0 = vmul.f32 %v10051_v53, %v7741_v42  ;;  %v7708_v17 = vmul.f32 %v10053_v40, %v7610_v10  ;;  %v7595_v54 = vmul.f32 %v7569_v5, %v14578_v33  ;;  %vm7714_vm10 = vweird.f32 %v10053_v40 }
0x1409   : > { %v7599_v18 = vmul.f32 %v7581_v46, %v14578_v33  ;;  %vm7715_vm13 = vmor %vm7713_vm11, %vm7714_vm10 }
0x140a   : > { %v10055_v9 = vpop.eup %10054  ;;  %v7746_v41 = vsel %vm7745_vm9, %v10051_v53, %v7742_v0  ;;  %v7709_v24 = vmul.f32 %v10053_v40, %v7708_v17  ;;  %v7611_v50 = vadd.f32 1e-05, %v7595_v54 }
0x140b   : > { %v7789_v3 = vmul.f32 %v7746_v41, %v14743_v63  ;;  %v7748_v12 = vmul.f32 %v10055_v9, %v7614_v43  ;;  %v7615_v8 = vadd.f32 1e-05, %v7599_v18  ;;  %vm7754_vm14 = vweird.f32 %v10055_v9 }
0x140c   : > { %v7710_v45 = vmul.f32 0.5, %v7709_v24  ;;  %10056 = vrsqrt.f32 %v7611_v50  ;;  %vm7755_vm1 = vmor %vm7753_vm15, %vm7754_vm14  ;;  %vm7723_vm4 = vweird.f32 %v7611_v50 }
0x140d   : > { %v7809_v48 = vmul.f32 %v14718_v29, %v7789_v3  ;;  %v7749_v39 = vmul.f32 %v10055_v9, %v7748_v12  ;;  %10058 = vrsqrt.f32 %v7615_v8  ;;  %v7909_v35 = vpop.f32.mrf.mxu1  ;;  %vm7763_vm6 = vweird.f32 %v7615_v8 }
0x140e   : > { %v7711_v62 = vsub.f32 1.5, %v7710_v45  ;;  %v7910_v16 = vadd.f32 %v14858_v14, %v7909_v35 }
0x140f   : > { %v14892_v21 = vadd.f32 %v14723_v38, %v7809_v48  ;;  %v7750_v26 = vmul.f32 0.5, %v7749_v39 }
0x1410   : > { %v7572_v47 = vpop.xlane.xlu0 %7571  ;;  %v7712_v37 = vmul.f32 %v10053_v40, %v7711_v62  ;;  %v7955_v63 = vmax.f32 %v7910_v16, 0.0 }
0x1411   : > { %v7596_v36 = vmul.f32 %v7572_v47, %v14578_v33  ;;  %v7751_v56 = vsub.f32 1.5, %v7750_v26  ;;  %9064 = vmatmul.msk.f32.vlgmr.msrb.gmra.mxu3 %vm488_vm0, %v14892_v21 }
0x1412   : > { %v10057_v52 = vpop.eup %10056  ;;  %v7716_v19 = vsel %vm7715_vm13, %v10053_v40, %v7712_v37  ;;  %9069 = vmatmul.msk.f32.gmra.mxu2 %vm7978_vm12, %v7955_v63 }
0x1413   : > { %v7612_v25 = vadd.f32 1e-05, %v7596_v36  ;;  %v10059_v34 = vpop.eup %10058  ;;  %v7786_v51 = vmul.f32 %v7716_v19, %v14749_v27  ;;  %v7752_v6 = vmul.f32 %v10055_v9, %v7751_v56  ;;  %v7718_v2 = vmul.f32 %v10057_v52, %v7611_v50 }
0x1414   : > { %v7758_v1 = vmul.f32 %v10059_v34, %v7615_v8  ;;  %vm7724_vm2 = vweird.f32 %v10057_v52  ;;  %vm7764_vm3 = vweird.f32 %v10059_v34 }
0x1415   : > { %10060 = vrsqrt.f32 %v7612_v25  ;;  %v7756_v58 = vsel %vm7755_vm1, %v10055_v9, %v7752_v6  ;;  %v7719_v53 = vmul.f32 %v10057_v52, %v7718_v2  ;;  %v7912_v10 = vpop.f32.mrf.mxu1  ;;  %v7806_v22 = vmul.f32 %v14718_v29, %v7786_v51  ;;  %vm7725_vm5 = vmor %vm7723_vm4, %vm7724_vm2 }
0x1416   : > { %v7790_v15 = vmul.f32 %v7756_v58, %v14758_v4  ;;  %v7759_v49 = vmul.f32 %v10059_v34, %v7758_v1  ;;  %v7913_v61 = vadd.f32 %v14858_v14, %v7912_v10  ;;  %vm7765_vm7 = vmor %vm7763_vm6, %vm7764_vm3  ;;  %vm7733_vm9 = vweird.f32 %v7612_v25 }
0x1417   : > { %v7720_v20 = vmul.f32 0.5, %v7719_v53  ;;  %v14903_v42 = vadd.f32 %v14723_v38, %v7806_v22 }
0x1418   : > { %v7760_v27 = vmul.f32 0.5, %v7759_v49  ;;  %v7956_v43 = vmax.f32 %v7913_v61, 0.0  ;;  %v7810_v40 = vmul.f32 %v14718_v29, %v7790_v15 }
0x1419   : > { %v7721_v5 = vsub.f32 1.5, %v7720_v20  ;;  %9061 = vmatmul.msk.f32.gmra.mxu1 %vm488_vm0, %v14903_v42 }
0x141a   : > { %v7761_v0 = vsub.f32 1.5, %v7760_v27  ;;  %9070 = vmatmul.msk.f32.gmra.mxu2 %vm7978_vm12, %v7956_v43  ;;  %v14910_v4 = vadd.f32 %v14723_v38, %v7810_v40  ;;  %v14952_v27 = vld [vmem:[%s15337_s10] ss:$0 sm:$0xff] }
0x141b   : > { %v10061_v46 = vpop.eup %10060  ;;  %v7722_v17 = vmul.f32 %v10057_v52, %v7721_v5 }
0x141c   : > { %v7728_v54 = vmul.f32 %v10061_v46, %v7612_v25  ;;  %v7762_v18 = vmul.f32 %v10059_v34, %v7761_v0  ;;  %9065 = vmatmul.msk.f32.gmra.mxu3 %vm488_vm0, %v14910_v4  ;;  %vm7734_vm8 = vweird.f32 %v10061_v46 }
0x141d   : > { %v7726_v9 = vsel %vm7725_vm5, %v10057_v52, %v7722_v17  ;;  %v7915_v24 = vpop.f32.mrf.mxu1  ;;  %vm7735_vm10 = vmor %vm7733_vm9, %vm7734_vm8 }
0x141e   : > { %v7729_v41 = vmul.f32 %v10061_v46, %v7728_v54  ;;  %v7787_v3 = vmul.f32 %v7726_v9, %v14764_v44  ;;  %v7766_v12 = vsel %vm7765_vm7, %v10059_v34, %v7762_v18  ;;  %v7916_v45 = vadd.f32 %v14858_v14, %v7915_v24 }
0x141f   : > { %v7791_v48 = vmul.f32 %v7766_v12, %v14778_v13 }
0x1420   : > { %v7730_v39 = vmul.f32 0.5, %v7729_v41  ;;  %v7957_v50 = vmax.f32 %v7916_v45, 0.0  ;;  %v7807_v35 = vmul.f32 %v14718_v29, %v7787_v3 }
0x1421   : > { %v7811_v8 = vmul.f32 %v14718_v29, %v7791_v48 }
0x1422   : > { %v7731_v62 = vsub.f32 1.5, %v7730_v39  ;;  %9071 = vmatmul.msk.f32.gmra.mxu2 %vm7978_vm12, %v7957_v50  ;;  %v14921_v16 = vadd.f32 %v14723_v38, %v7807_v35 }
0x1423   : > { %v14924_v44 = vadd.f32 %v14723_v38, %v7811_v8 }
0x1424   : > { %v7732_v26 = vmul.f32 %v10061_v46, %v7731_v62  ;;  %9062 = vmatmul.msk.f32.gmra.mxu1 %vm488_vm0, %v14921_v16 }
0x1425   : > { %9066 = vmatmul.msk.f32.gmra.mxu3 %vm488_vm0, %v14924_v44  ;;  %v7918_v47 = vpop.f32.mrf.mxu1 }
0x1426   : > { %v7736_v13 = vsel %vm7735_vm10, %v10061_v46, %v7732_v26  ;;  %v7919_v63 = vadd.f32 %v14858_v14, %v7918_v47 }
0x1427   : > { %v7788_v37 = vmul.f32 %v7736_v13, %v14786_v59 }
0x1428   : > { %v7958_v36 = vmax.f32 %v7919_v63, 0.0 }
0x1429   : > { %v7808_v56 = vmul.f32 %v14718_v29, %v7788_v37 }
0x142a   : > { %9072 = vmatmul.msk.f32.gmra.mxu2 %vm7978_vm12, %v7958_v36 }
0x142b   : > { %v14935_v52 = vadd.f32 %v14723_v38, %v7808_v56 }
0x142d   : > { %9063 = vmatmul.msk.f32.gmra.mxu1 %vm488_vm0, %v14935_v52  ;;  %v7921_v19 = vpop.f32.mrf.mxu1 }
0x142e   : > { %v7922_v25 = vadd.f32 %v14858_v14, %v7921_v19 }
0x1430   : > { %v7959_v34 = vmax.f32 %v7922_v25, 0.0 }
0x1432   : > { %9073 = vmatmul.msk.f32.gmra.mxu2 %vm7978_vm12, %v7959_v34 }
0x1440   : > { %v7584_v59 = vpop.xlane.xlu2 %7583 }
0x1441   : > { %v7600_v51 = vmul.f32 %v7584_v59, %v14578_v33 }
0x1443   : > { %v7616_v6 = vadd.f32 1e-05, %v7600_v51 }
0x1445   : > { %10062 = vrsqrt.f32 %v7616_v6  ;;  %vm7773_vm13 = vweird.f32 %v7616_v6 }
0x144b   : > { %v10063_v2 = vpop.eup %10062 }
0x144c   : > { %v7768_v1 = vmul.f32 %v10063_v2, %v7616_v6  ;;  %vm7774_vm11 = vweird.f32 %v10063_v2 }
0x144d   : > { %vm7775_vm14 = vmor %vm7773_vm13, %vm7774_vm11 }
0x144e   : > { %v7769_v58 = vmul.f32 %v10063_v2, %v7768_v1 }
0x1450   : > { %v7770_v53 = vmul.f32 0.5, %v7769_v58 }
0x1452   : > { %v7771_v10 = vsub.f32 1.5, %v7770_v53 }
0x1454   : > { %v7772_v22 = vmul.f32 %v10063_v2, %v7771_v10 }
0x1456   : > { %v7776_v15 = vsel %vm7775_vm14, %v10063_v2, %v7772_v22 }
0x1457   : > { %v7792_v49 = vmul.f32 %v7776_v15, %v14848_v57 }
0x1459   : > { %v7812_v61 = vmul.f32 %v14718_v29, %v7792_v49 }
0x145b   : > { %v14945_v20 = vadd.f32 %v14723_v38, %v7812_v61 }
0x145d   : > { %9067 = vmatmul.msk.f32.gmra.mxu3 %vm488_vm0, %v14945_v20 }
0x1464   : > { %v8044_v43 = vpop.f32.mrf.mxu2 }
0x1465   : > { %v8092_v40 = vadd.f32 %v8044_v43, %v14732_v55 }
0x1467   : > { %v14956_v5 = vadd.f32 %v14952_v27, %v8092_v40  ;;  %v7924_v57 = vpop.f32.mrf.mxu1 }
0x1468   : > { %v7925_v29 = vadd.f32 %v14858_v14, %v7924_v57 }
0x1469   : > { %v8128_v38 = vsel %vm488_vm0, %v14956_v5, 0.0 }
0x146a   : > { %v7960_v46 = vmax.f32 %v7925_v29, 0.0  ;;  %8129 = vadd.xlane.f32.xlu1 %v8128_v38 }
0x146c   : > { %9074 = vmatmul.msk.f32.gmra.mxu2 %vm7978_vm12, %v7960_v46 }
0x146f   : > { %v7927_v0 = vpop.f32.mrf.mxu1 }
0x1470   : > { %v7928_v17 = vadd.f32 %v14858_v14, %v7927_v0 }
0x1472   : > { %v7961_v54 = vmax.f32 %v7928_v17, 0.0 }
0x1474   : > { %9075 = vmatmul.msk.f32.gmra.mxu2 %vm7978_vm12, %v7961_v54 }
0x1477   : > { %v7930_v55 = vpop.f32.mrf.mxu1 }
0x1478   : > { %v7931_v18 = vadd.f32 %v14858_v14, %v7930_v55 }
0x147a   : > { %v7962_v9 = vmax.f32 %v7931_v18, 0.0 }
0x147c   : > { %9076 = vmatmul.msk.f32.gmra.mxu2 %vm7978_vm12, %v7962_v9 }
0x1494   : > { %v7942_v41 = vpop.f32.mrf.mxu3 }
0x1495   : > { %v7943_v24 = vadd.f32 %v14858_v14, %v7942_v41  ;;  %v8047_v3 = vpop.f32.mrf.mxu2 }
0x1496   : > { %v8093_v12 = vadd.f32 %v8047_v3, %v14773_v32  ;;  %v7933_v45 = vpop.f32.mrf.mxu1 }
0x1497   : > { %v7966_v48 = vmax.f32 %v7943_v24, 0.0  ;;  %v7934_v39 = vadd.f32 %v14858_v14, %v7933_v45 }
0x1498   : > { %v14970_v50 = vadd.f32 %v14952_v27, %v8093_v12 }
0x1499   : > { %v7963_v35 = vmax.f32 %v7934_v39, 0.0  ;;  %9080 = vmatmul.msk.f32.vlgmr.msra.gmra.mxu3 %vm7978_vm12, %v7966_v48 }
0x149a   : > { %v8131_v62 = vsel %vm488_vm0, %v14970_v50, 0.0 }
0x149b   : > { %8132 = vadd.xlane.f32.xlu2 %v8131_v62  ;;  %9077 = vmatmul.msk.f32.gmra.mxu2 %vm7978_vm12, %v7963_v35 }
0x149d   : > { %v8050_v8 = vpop.f32.mrf.mxu2 }
0x149e   : > { %v8094_v26 = vadd.f32 %v8050_v8, %v14793_v28 }
0x149f   : > { %v7945_v32 = vpop.f32.mrf.mxu3 }
0x14a0   : > { %v14978_v13 = vadd.f32 %v14952_v27, %v8094_v26  ;;  %v7946_v47 = vadd.f32 %v14858_v14, %v7945_v32 }
0x14a1   : > { %v7936_v37 = vpop.f32.mrf.mxu1 }
0x14a2   : > { %v7967_v63 = vmax.f32 %v7946_v47, 0.0  ;;  %v7937_v36 = vadd.f32 %v14858_v14, %v7936_v37  ;;  %v8134_v56 = vsel %vm488_vm0, %v14978_v13, 0.0 }
0x14a3   : > { %8135 = vadd.xlane.f32.xlu0 %v8134_v56 }
0x14a4   : > { %v7964_v19 = vmax.f32 %v7937_v36, 0.0  ;;  %9081 = vmatmul.msk.f32.gmra.mxu3 %vm7978_vm12, %v7967_v63 }
0x14a5   : > { %v8053_v25 = vpop.f32.mrf.mxu2 }
0x14a6   : > { %v8095_v28 = vadd.f32 %v8053_v25, %v14803_v11  ;;  %9078 = vmatmul.msk.f32.gmra.mxu2 %vm7978_vm12, %v7964_v19 }
0x14a8   : > { %v14988_v34 = vadd.f32 %v14952_v27, %v8095_v28  ;;  %v7948_v59 = vpop.f32.mrf.mxu3 }
0x14a9   : > { %v7949_v51 = vadd.f32 %v14858_v14, %v7948_v59 }
0x14aa   : > { %v7939_v6 = vpop.f32.mrf.mxu1  ;;  %v8137_v1 = vsel %vm488_vm0, %v14988_v34, 0.0 }
0x14ab   : > { %v7940_v2 = vadd.f32 %v14858_v14, %v7939_v6  ;;  %v7968_v58 = vmax.f32 %v7949_v51, 0.0  ;;  %8138 = vadd.xlane.f32.xlu1 %v8137_v1 }
0x14ad   : > { %v7965_v53 = vmax.f32 %v7940_v2, 0.0  ;;  %9082 = vmatmul.msk.f32.gmra.mxu3 %vm7978_vm12, %v7968_v58  ;;  %v8056_v11 = vpop.f32.mrf.mxu2 }
0x14ae   : > { %v8096_v10 = vadd.f32 %v8056_v11, %v14810_v23 }
0x14af   : > { %9079 = vmatmul.msk.f32.gmra.mxu2 %vm7978_vm12, %v7965_v53 }
0x14b0   : > { %v14998_v22 = vadd.f32 %v14952_v27, %v8096_v10 }
0x14b2   : > { %v8140_v15 = vsel %vm488_vm0, %v14998_v22, 0.0 }
0x14b3   : > { %8141 = vadd.xlane.f32.xlu2 %v8140_v15 }
0x14b5   : > { %v8059_v49 = vpop.f32.mrf.mxu2 }
0x14b6   : > { %v8097_v61 = vadd.f32 %v8059_v49, %v14817_v31 }
0x14b8   : > { %v15004_v43 = vadd.f32 %v14952_v27, %v8097_v61 }
0x14ba   : > { %v8143_v40 = vsel %vm488_vm0, %v15004_v43, 0.0 }
0x14bb   : > { %8144 = vadd.xlane.f32.xlu0 %v8143_v40 }
0x14dd   : > { %v8130_v32 = vpop.xlane.xlu1 %8129 }
0x14de   : > { %v8176_v37 = vmul.f32 %v8130_v32, %v14578_v33 }
0x14e0   : > { %v7951_v23 = vpop.f32.mrf.mxu3  ;;  %v15056_v19 = vsub.f32 %v14956_v5, %v8176_v37 }
0x14e1   : > { %v7952_v57 = vadd.f32 %v14858_v14, %v7951_v23 }
0x14e3   : > { %v7969_v29 = vmax.f32 %v7952_v57, 0.0 }
0x14e5   : > { %9083 = vmatmul.msk.f32.gmra.mxu3 %vm7978_vm12, %v7969_v29 }
0x14ef   : > { %v8062_v38 = vpop.f32.mrf.mxu2 }
0x14f0   : > { %v8098_v46 = vadd.f32 %v8062_v38, %v14866_v30 }
0x14f2   : > { %v15012_v0 = vadd.f32 %v14952_v27, %v8098_v46 }
0x14f4   : > { %v8146_v31 = vsel %vm488_vm0, %v15012_v0, 0.0 }
0x14f5   : > { %8147 = vadd.xlane.f32.xlu1 %v8146_v31 }
0x14f7   : > { %v8065_v17 = vpop.f32.mrf.mxu2 }
0x14f8   : > { %v8099_v54 = vadd.f32 %v8065_v17, %v14873_v60 }
0x14fa   : > { %v15018_v55 = vadd.f32 %v14952_v27, %v8099_v54 }
0x14fc   : > { %v8149_v14 = vsel %vm488_vm0, %v15018_v55, 0.0 }
0x14fd   : > { %8150 = vadd.xlane.f32.xlu2 %v8149_v14 }
0x14ff   : > { %v8068_v18 = vpop.f32.mrf.mxu2 }
0x1500   : > { %v8100_v30 = vadd.f32 %v8068_v18, %v14880_v7 }
0x1502   : > { %v15024_v9 = vadd.f32 %v14952_v27, %v8100_v30 }
0x1504   : > { %v8152_v41 = vsel %vm488_vm0, %v15024_v9, 0.0 }
0x1505   : > { %8153 = vadd.xlane.f32.xlu0 %v8152_v41 }
0x150e   : > { %v8133_v59 = vpop.xlane.xlu2 %8132 }
0x1516   : > { %v8136_v57 = vpop.xlane.xlu0 %8135 }
0x1517   : > { %v8178_v46 = vmul.f32 %v8136_v57, %v14578_v33 }
0x1519   : > { %v15102_v14 = vsub.f32 %v14978_v13, %v8178_v46 }
0x151b   : > { %v8210_v13 = vmul.f32 %v15102_v14, %v15102_v14 }
0x151c   : > { %v8080_v3 = vpop.f32.mrf.mxu3 }
0x151d   : > { %v8104_v45 = vadd.f32 %v8080_v3, %v14892_v21 }
0x151e   : > { %v8071_v24 = vpop.f32.mrf.mxu2  ;;  %v8139_v51 = vpop.xlane.xlu1 %8138 }
0x151f   : > { %v8101_v60 = vadd.f32 %v8071_v24, %v14903_v42  ;;  %v15036_v7 = vadd.f32 %v14952_v27, %v8104_v45  ;;  %v8179_v6 = vmul.f32 %v8139_v51, %v14578_v33  ;;  %v8230_v45 = vsel %vm488_vm0, %v8210_v13, 0.0 }
0x1521   : > { %v15030_v12 = vadd.f32 %v14952_v27, %v8101_v60  ;;  %v8164_v42 = vsel %vm488_vm0, %v15036_v7, 0.0  ;;  %v15074_v1 = vsub.f32 %v14988_v34, %v8179_v6 }
0x1523   : > { %v8155_v48 = vsel %vm488_vm0, %v15030_v12, 0.0  ;;  %v8211_v15 = vmul.f32 %v15074_v1, %v15074_v1 }
0x1524   : > { %8156 = vadd.xlane.f32.xlu1 %v8155_v48 }
0x1525   : > { %v8233_v34 = vsel %vm488_vm0, %v8211_v15, 0.0 }
0x1526   : > { %v8142_v11 = vpop.xlane.xlu2 %8141 }
0x1527   : > { %v8083_v39 = vpop.f32.mrf.mxu3  ;;  %v8180_v10 = vmul.f32 %v8142_v11, %v14578_v33 }
0x1528   : > { %v8105_v21 = vadd.f32 %v8083_v39, %v14910_v4 }
0x1529   : > { %v8074_v35 = vpop.f32.mrf.mxu2  ;;  %v15085_v49 = vsub.f32 %v14998_v22, %v8180_v10 }
0x152a   : > { %v8102_v62 = vadd.f32 %v8074_v35, %v14921_v16  ;;  %v15049_v63 = vadd.f32 %v14952_v27, %v8105_v21 }
0x152b   : > { %v8212_v40 = vmul.f32 %v15085_v49, %v15085_v49 }
0x152c   : > { %v15042_v8 = vadd.f32 %v14952_v27, %v8102_v62  ;;  %8165 = vadd.xlane.f32.xlu1 %v8164_v42  ;;  %v8167_v25 = vsel %vm488_vm0, %v15049_v63, 0.0 }
0x152d   : > { %v8236_v23 = vsel %vm488_vm0, %v8212_v40, 0.0 }
0x152e   : > { %v8158_v26 = vsel %vm488_vm0, %v15042_v8, 0.0  ;;  %v8145_v41 = vpop.xlane.xlu0 %8144 }
0x152f   : > { %8159 = vadd.xlane.f32.xlu2 %v8158_v26 }
0x1530   : > { %v8086_v36 = vpop.f32.mrf.mxu3 }
0x1531   : > { %v8106_v4 = vadd.f32 %v8086_v36, %v14924_v44  ;;  %v8208_v44 = vmul.f32 %v15056_v19, %v15056_v19 }
0x1532   : > { %v8077_v47 = vpop.f32.mrf.mxu2 }
0x1533   : > { %v8103_v16 = vadd.f32 %v8077_v47, %v14935_v52  ;;  %v8177_v52 = vmul.f32 %v8133_v59, %v14578_v33  ;;  %v15066_v2 = vadd.f32 %v14952_v27, %v8106_v4  ;;  %v8224_v58 = vsel %vm488_vm0, %v8208_v44, 0.0 }
0x1535   : > { %v15053_v56 = vadd.f32 %v14952_v27, %v8103_v16  ;;  %v15071_v5 = vsub.f32 %v14970_v50, %v8177_v52  ;;  %v8170_v53 = vsel %vm488_vm0, %v15066_v2, 0.0 }
0x1537   : > { %v8161_v28 = vsel %vm488_vm0, %v15053_v56, 0.0  ;;  %8168 = vadd.xlane.f32.xlu2 %v8167_v25  ;;  %v8209_v50 = vmul.f32 %v15071_v5, %v15071_v5 }
0x1538   : > { %8162 = vadd.xlane.f32.xlu0 %v8161_v28 }
0x1539   : > { %v8227_v61 = vsel %vm488_vm0, %v8209_v50, 0.0 }
0x153f   : > { %8225 = vadd.xlane.f32.xlu2 %v8224_v58 }
0x1540   : > { %8171 = vadd.xlane.f32.xlu0 %v8170_v53 }
0x1547   : > { %8234 = vadd.xlane.f32.xlu2 %v8233_v34 }
0x1548   : > { %8228 = vadd.xlane.f32.xlu0 %v8227_v61 }
0x1550   : > { %8237 = vadd.xlane.f32.xlu0 %v8236_v23 }
0x1568   : > { %v8148_v29 = vpop.xlane.xlu1 %8147  ;;  %v8089_v38 = vpop.f32.mrf.mxu3 }
0x1569   : > { %v8182_v22 = vmul.f32 %v8148_v29, %v14578_v33  ;;  %v8107_v31 = vadd.f32 %v8089_v38, %v14945_v20 }
0x156b   : > { %v15096_v17 = vsub.f32 %v15012_v0, %v8182_v22  ;;  %v15099_v54 = vadd.f32 %v14952_v27, %v8107_v31  ;;  %v8181_v0 = vmul.f32 %v8145_v41, %v14578_v33 }
0x156d   : > { %v8173_v18 = vsel %vm488_vm0, %v15099_v54, 0.0  ;;  %v8214_v30 = vmul.f32 %v15096_v17, %v15096_v17  ;;  %v15117_v3 = vsub.f32 %v15004_v43, %v8181_v0 }
0x156e   : > { %8174 = vadd.xlane.f32.xlu1 %v8173_v18 }
0x156f   : > { %v8242_v24 = vsel %vm488_vm0, %v8214_v30, 0.0  ;;  %v8213_v42 = vmul.f32 %v15117_v3, %v15117_v3 }
0x1570   : > { %v8151_v20 = vpop.xlane.xlu2 %8150  ;;  %8243 = vadd.xlane.f32.xlu2 %v8242_v24 }
0x1571   : > { %v8183_v27 = vmul.f32 %v8151_v20, %v14578_v33  ;;  %v8239_v43 = vsel %vm488_vm0, %v8213_v42, 0.0 }
0x1573   : > { %v15114_v60 = vsub.f32 %v15018_v55, %v8183_v27 }
0x1575   : > { %v8215_v48 = vmul.f32 %v15114_v60, %v15114_v60 }
0x1576   : > { %8231 = vadd.xlane.f32.xlu1 %v8230_v45 }
0x1577   : > { %v8245_v39 = vsel %vm488_vm0, %v8215_v48, 0.0 }
0x1578   : > { %8246 = vadd.xlane.f32.xlu0 %v8245_v39  ;;  %v8154_v35 = vpop.xlane.xlu0 %8153 }
0x1579   : > { %v8184_v62 = vmul.f32 %v8154_v35, %v14578_v33 }
0x157b   : > { %v15127_v55 = vsub.f32 %v15024_v9, %v8184_v62 }
0x157d   : > { %v8216_v21 = vmul.f32 %v15127_v55, %v15127_v55 }
0x157e   : > { %8240 = vadd.xlane.f32.xlu1 %v8239_v43 }
0x157f   : > { %v8248_v26 = vsel %vm488_vm0, %v8216_v21, 0.0  ;;  %v15182_v21 = vld [vmem:[%s15338_s11] ss:$0 sm:$0xff] }
0x1586   : > { %8249 = vadd.xlane.f32.xlu1 %v8248_v26 }
0x1597   : > { %v8157_v32 = vpop.xlane.xlu1 %8156 }
0x1598   : > { %v8185_v47 = vmul.f32 %v8157_v32, %v14578_v33 }
0x159a   : > { %v15135_v37 = vsub.f32 %v15030_v12, %v8185_v47 }
0x159c   : > { %v8217_v16 = vmul.f32 %v15135_v37, %v15135_v37 }
0x159e   : > { %v8251_v9 = vsel %vm488_vm0, %v8217_v16, 0.0  ;;  %v15187_v16 = vld [vmem:[%s15339_s12] ss:$0 sm:$0xff] }
0x159f   : > { %v8166_v36 = vpop.xlane.xlu1 %8165  ;;  %8252 = vadd.xlane.f32.xlu2 %v8251_v9 }
0x15a0   : > { %v8188_v4 = vmul.f32 %v8166_v36, %v14578_v33 }
0x15a2   : > { %v15142_v25 = vsub.f32 %v15036_v7, %v8188_v4  ;;  %v8160_v28 = vpop.xlane.xlu2 %8159 }
0x15a3   : > { %v8186_v59 = vmul.f32 %v8160_v28, %v14578_v33 }
0x15a4   : > { %v8220_v51 = vmul.f32 %v15142_v25, %v15142_v25 }
0x15a5   : > { %v15148_v12 = vsub.f32 %v15042_v8, %v8186_v59 }
0x15a6   : > { %v8260_v52 = vsel %vm488_vm0, %v8220_v51, 0.0 }
0x15a7   : > { %8261 = vadd.xlane.f32.xlu2 %v8260_v52  ;;  %v8218_v6 = vmul.f32 %v15148_v12, %v15148_v12 }
0x15a9   : > { %v8254_v44 = vsel %vm488_vm0, %v8218_v6, 0.0 }
0x15aa   : > { %v8169_v58 = vpop.xlane.xlu2 %8168  ;;  %8255 = vadd.xlane.f32.xlu0 %v8254_v44 }
0x15ab   : > { %v8163_v7 = vpop.xlane.xlu0 %8162  ;;  %v8189_v53 = vmul.f32 %v8169_v58, %v14578_v33 }
0x15ac   : > { %v8187_v11 = vmul.f32 %v8163_v7, %v14578_v33 }
0x15ad   : > { %v15157_v10 = vsub.f32 %v15049_v63, %v8189_v53 }
0x15ae   : > { %v15160_v8 = vsub.f32 %v15053_v56, %v8187_v11 }
0x15af   : > { %v8221_v15 = vmul.f32 %v15157_v10, %v15157_v10 }
0x15b0   : > { %v8219_v50 = vmul.f32 %v15160_v8, %v15160_v8 }
0x15b1   : > { %v8263_v34 = vsel %vm488_vm0, %v8221_v15, 0.0 }
0x15b2   : > { %v8257_v61 = vsel %vm488_vm0, %v8219_v50, 0.0  ;;  %v8226_v40 = vpop.xlane.xlu2 %8225  ;;  %8264 = vadd.xlane.f32.xlu0 %v8263_v34 }
0x15b3   : > { %8258 = vadd.xlane.f32.xlu1 %v8257_v61  ;;  %v8172_v23 = vpop.xlane.xlu0 %8171  ;;  %v8272_v63 = vmul.f32 %v8226_v40, %v14578_v33 }
0x15b4   : > { %v8190_v57 = vmul.f32 %v8172_v23, %v14578_v33 }
0x15b5   : > { %v8288_v56 = vadd.f32 1e-05, %v8272_v63 }
0x15b6   : > { %v15171_v29 = vsub.f32 %v15066_v2, %v8190_v57 }
0x15b7   : > { %10064 = vrsqrt.f32 %v8288_v56  ;;  %vm8310_vm15 = vweird.f32 %v8288_v56 }
0x15b8   : > { %v8222_v38 = vmul.f32 %v15171_v29, %v15171_v29 }
0x15ba   : > { %v8266_v46 = vsel %vm488_vm0, %v8222_v38, 0.0  ;;  %v8235_v22 = vpop.xlane.xlu2 %8234 }
0x15bb   : > { %8267 = vadd.xlane.f32.xlu1 %v8266_v46  ;;  %v8229_v31 = vpop.xlane.xlu0 %8228  ;;  %v8275_v18 = vmul.f32 %v8235_v22, %v14578_v33 }
0x15bc   : > { %v8273_v30 = vmul.f32 %v8229_v31, %v14578_v33 }
0x15bd   : > { %v10065_v41 = vpop.eup %10064  ;;  %v8291_v24 = vadd.f32 1e-05, %v8275_v18 }
0x15be   : > { %v8289_v20 = vadd.f32 1e-05, %v8273_v30  ;;  %v8305_v0 = vmul.f32 %v10065_v41, %v8288_v56  ;;  %vm8311_vm12 = vweird.f32 %v10065_v41 }
0x15bf   : > { %10066 = vrsqrt.f32 %v8291_v24  ;;  %vm8312_vm1 = vmor %vm8310_vm15, %vm8311_vm12  ;;  %vm8340_vm4 = vweird.f32 %v8291_v24 }
0x15c0   : > { %v8306_v2 = vmul.f32 %v10065_v41, %v8305_v0  ;;  %10068 = vrsqrt.f32 %v8289_v20  ;;  %vm8320_vm6 = vweird.f32 %v8289_v20 }
0x15c2   : > { %v8307_v27 = vmul.f32 0.5, %v8306_v2 }
0x15c3   : > { %v8238_v13 = vpop.xlane.xlu0 %8237 }
0x15c4   : > { %v8276_v45 = vmul.f32 %v8238_v13, %v14578_v33  ;;  %v8308_v48 = vsub.f32 1.5, %v8307_v27 }
0x15c5   : > { %v10067_v39 = vpop.eup %10066 }
0x15c6   : > { %v8292_v35 = vadd.f32 1e-05, %v8276_v45  ;;  %v10069_v62 = vpop.eup %10068  ;;  %v8309_v42 = vmul.f32 %v10065_v41, %v8308_v48  ;;  %v8335_v43 = vmul.f32 %v10067_v39, %v8291_v24  ;;  %vm8341_vm2 = vweird.f32 %v10067_v39 }
0x15c7   : > { %v8315_v26 = vmul.f32 %v10069_v62, %v8289_v20  ;;  %vm8321_vm3 = vweird.f32 %v10069_v62  ;;  %vm8342_vm5 = vmor %vm8340_vm4, %vm8341_vm2 }
0x15c8   : > { %10070 = vrsqrt.f32 %v8292_v35  ;;  %v8313_v32 = vsel %vm8312_vm1, %v10065_v41, %v8309_v42  ;;  %v8336_v47 = vmul.f32 %v10067_v39, %v8335_v43  ;;  %vm8322_vm7 = vmor %vm8320_vm6, %vm8321_vm3  ;;  %vm8350_vm9 = vweird.f32 %v8292_v35 }
0x15c9   : > { %v8464_v9 = vmul.f32 %v8313_v32, %v15056_v19  ;;  %v8316_v36 = vmul.f32 %v10069_v62, %v8315_v26 }
0x15ca   : > { %v8337_v4 = vmul.f32 0.5, %v8336_v47 }
0x15cb   : > { %v8484_v28 = vmul.f32 %v15182_v21, %v8464_v9  ;;  %v8317_v59 = vmul.f32 0.5, %v8316_v36 }
0x15cc   : > { %v8338_v51 = vsub.f32 1.5, %v8337_v4 }
0x15cd   : > { %v8504_v6 = vadd.f32 %v15187_v16, %v8484_v28  ;;  %v8318_v44 = vsub.f32 1.5, %v8317_v59 }
0x15ce   : > { %v10071_v52 = vpop.eup %10070  ;;  %v8339_v58 = vmul.f32 %v10067_v39, %v8338_v51 }
0x15cf   : > { %v8345_v7 = vmul.f32 %v10071_v52, %v8292_v35  ;;  %8520 = vst.msk [vmem:[%s15194_s20] sm:$0xff] %vm488_vm0, %v8504_v6  ;;  %v8319_v19 = vmul.f32 %v10069_v62, %v8318_v44  ;;  %vm8351_vm8 = vweird.f32 %v10071_v52 }
0x15d0   : > { %v8343_v53 = vsel %vm8342_vm5, %v10067_v39, %v8339_v58  ;;  %vm8352_vm10 = vmor %vm8350_vm9, %vm8351_vm8 }
0x15d1   : > { %v8346_v11 = vmul.f32 %v10071_v52, %v8345_v7  ;;  %v8467_v15 = vmul.f32 %v8343_v53, %v15074_v1  ;;  %v8323_v50 = vsel %vm8322_vm7, %v10069_v62, %v8319_v19 }
0x15d2   : > { %v8465_v34 = vmul.f32 %v8323_v50, %v15071_v5 }
0x15d3   : > { %v8347_v61 = vmul.f32 0.5, %v8346_v11  ;;  %v8487_v40 = vmul.f32 %v15182_v21, %v8467_v15 }
0x15d4   : > { %v8485_v23 = vmul.f32 %v15182_v21, %v8465_v34 }
0x15d5   : > { %v8348_v63 = vsub.f32 1.5, %v8347_v61  ;;  %v8507_v57 = vadd.f32 %v15187_v16, %v8487_v40 }
0x15d6   : > { %v8505_v56 = vadd.f32 %v15187_v16, %v8485_v23 }
0x15d7   : > { %v8349_v38 = vmul.f32 %v10071_v52, %v8348_v63  ;;  %8523 = vst.msk [vmem:[%s15194_s20 + $0x18] sm:$0xff] %vm488_vm0, %v8507_v57 }
0x15d8   : > { %8521 = vst.msk [vmem:[%s15194_s20 + $0x8] sm:$0xff] %vm488_vm0, %v8505_v56 }
0x15d9   : > { %v8353_v5 = vsel %vm8352_vm10, %v10071_v52, %v8349_v38 }
0x15da   : > { %v8468_v1 = vmul.f32 %v8353_v5, %v15085_v49 }
0x15dc   : > { %v8488_v46 = vmul.f32 %v15182_v21, %v8468_v1 }
0x15de   : > { %v8508_v22 = vadd.f32 %v15187_v16, %v8488_v46 }
0x15e0   : > { %8524 = vst.msk [vmem:[%s15194_s20 + $0x20] sm:$0xff] %vm488_vm0, %v8508_v22 }
0x15e1   : > { %v8175_v31 = vpop.xlane.xlu1 %8174 }
0x15e2   : > { %v8191_v18 = vmul.f32 %v8175_v31, %v14578_v33 }
0x15e3   : > { %v8244_v30 = vpop.xlane.xlu2 %8243 }
0x15e4   : > { %v15215_v41 = vsub.f32 %v15099_v54, %v8191_v18  ;;  %v8278_v24 = vmul.f32 %v8244_v30, %v14578_v33 }
0x15e6   : > { %v8294_v20 = vadd.f32 1e-05, %v8278_v24  ;;  %v8223_v0 = vmul.f32 %v15215_v41, %v15215_v41 }
0x15e8   : > { %10072 = vrsqrt.f32 %v8294_v20  ;;  %v8269_v49 = vsel %vm488_vm0, %v8223_v0, 0.0  ;;  %vm8370_vm13 = vweird.f32 %v8294_v20 }
0x15e9   : > { %8270 = vadd.xlane.f32.xlu2 %v8269_v49  ;;  %v8232_v2 = vpop.xlane.xlu1 %8231 }
0x15ea   : > { %v8274_v27 = vmul.f32 %v8232_v2, %v14578_v33 }
0x15eb   : > { %v8247_v13 = vpop.xlane.xlu0 %8246 }
0x15ec   : > { %v8290_v45 = vadd.f32 1e-05, %v8274_v27  ;;  %v8279_v48 = vmul.f32 %v8247_v13, %v14578_v33 }
0x15ee   : > { %v10073_v39 = vpop.eup %10072  ;;  %10074 = vrsqrt.f32 %v8290_v45  ;;  %v8295_v54 = vadd.f32 1e-05, %v8279_v48  ;;  %vm8330_vm15 = vweird.f32 %v8290_v45 }
0x15ef   : > { %v8365_v35 = vmul.f32 %v10073_v39, %v8294_v20  ;;  %vm8371_vm11 = vweird.f32 %v10073_v39 }
0x15f0   : > { %10076 = vrsqrt.f32 %v8295_v54  ;;  %vm8372_vm14 = vmor %vm8370_vm13, %vm8371_vm11  ;;  %vm8380_vm3 = vweird.f32 %v8295_v54 }
0x15f1   : > { %v8366_v62 = vmul.f32 %v10073_v39, %v8365_v35  ;;  %v8241_v42 = vpop.xlane.xlu1 %8240 }
0x15f2   : > { %v8277_v43 = vmul.f32 %v8241_v42, %v14578_v33 }
0x15f3   : > { %v8367_v26 = vmul.f32 0.5, %v8366_v62 }
0x15f4   : > { %v10075_v32 = vpop.eup %10074  ;;  %v8293_v47 = vadd.f32 1e-05, %v8277_v43 }
0x15f5   : > { %v8368_v9 = vsub.f32 1.5, %v8367_v26  ;;  %v8325_v36 = vmul.f32 %v10075_v32, %v8290_v45  ;;  %vm8331_vm12 = vweird.f32 %v10075_v32 }
0x15f6   : > { %v10077_v4 = vpop.eup %10076  ;;  %10078 = vrsqrt.f32 %v8293_v47  ;;  %vm8332_vm2 = vmor %vm8330_vm15, %vm8331_vm12  ;;  %vm8360_vm6 = vweird.f32 %v8293_v47 }
0x15f7   : > { %v8369_v28 = vmul.f32 %v10073_v39, %v8368_v9  ;;  %v8326_v59 = vmul.f32 %v10075_v32, %v8325_v36  ;;  %v8375_v51 = vmul.f32 %v10077_v4, %v8295_v54  ;;  %vm8381_vm1 = vweird.f32 %v10077_v4 }
0x15f8   : > { %vm8382_vm4 = vmor %vm8380_vm3, %vm8381_vm1 }
0x15f9   : > { %v8373_v52 = vsel %vm8372_vm14, %v10073_v39, %v8369_v28  ;;  %v8327_v6 = vmul.f32 0.5, %v8326_v59  ;;  %v8376_v44 = vmul.f32 %v10077_v4, %v8375_v51  ;;  %v8250_v58 = vpop.xlane.xlu1 %8249 }
0x15fa   : > { %v8470_v7 = vmul.f32 %v8373_v52, %v15096_v17  ;;  %v8280_v19 = vmul.f32 %v8250_v58, %v14578_v33 }
0x15fb   : > { %v8328_v53 = vsub.f32 1.5, %v8327_v6  ;;  %v8377_v11 = vmul.f32 0.5, %v8376_v44 }
0x15fc   : > { %v10079_v15 = vpop.eup %10078  ;;  %v8490_v50 = vmul.f32 %v15182_v21, %v8470_v7  ;;  %v8296_v34 = vadd.f32 1e-05, %v8280_v19 }
0x15fd   : > { %v8329_v61 = vmul.f32 %v10075_v32, %v8328_v53  ;;  %v8378_v40 = vsub.f32 1.5, %v8377_v11  ;;  %v8355_v23 = vmul.f32 %v10079_v15, %v8293_v47  ;;  %vm8361_vm5 = vweird.f32 %v10079_v15 }
0x15fe   : > { %v8510_v63 = vadd.f32 %v15187_v16, %v8490_v50  ;;  %10080 = vrsqrt.f32 %v8296_v34  ;;  %vm8362_vm7 = vmor %vm8360_vm6, %vm8361_vm5  ;;  %vm8390_vm9 = vweird.f32 %v8296_v34 }
0x15ff   : > { %v8333_v17 = vsel %vm8332_vm2, %v10075_v32, %v8329_v61  ;;  %v8379_v57 = vmul.f32 %v10077_v4, %v8378_v40  ;;  %v8356_v56 = vmul.f32 %v10079_v15, %v8355_v23 }
0x1600   : > { %8526 = vst.msk [vmem:[%s15194_s20 + $0x30] sm:$0xff] %vm488_vm0, %v8510_v63  ;;  %v8466_v38 = vmul.f32 %v8333_v17, %v15102_v14 }
0x1601   : > { %v8383_v5 = vsel %vm8382_vm4, %v10077_v4, %v8379_v57  ;;  %v8357_v1 = vmul.f32 0.5, %v8356_v56 }
0x1602   : > { %v8486_v46 = vmul.f32 %v15182_v21, %v8466_v38  ;;  %v8471_v22 = vmul.f32 %v8383_v5, %v15114_v60 }
0x1603   : > { %v8358_v31 = vsub.f32 1.5, %v8357_v1 }
0x1604   : > { %v10081_v18 = vpop.eup %10080  ;;  %v8506_v30 = vadd.f32 %v15187_v16, %v8486_v46  ;;  %v8491_v24 = vmul.f32 %v15182_v21, %v8471_v22 }
0x1605   : > { %v8359_v20 = vmul.f32 %v10079_v15, %v8358_v31  ;;  %v8385_v0 = vmul.f32 %v10081_v18, %v8296_v34  ;;  %vm8391_vm8 = vweird.f32 %v10081_v18 }
0x1606   : > { %8522 = vst.msk [vmem:[%s15194_s20 + $0x10] sm:$0xff] %vm488_vm0, %v8506_v30  ;;  %v8511_v14 = vadd.f32 %v15187_v16, %v8491_v24  ;;  %vm8392_vm10 = vmor %vm8390_vm9, %vm8391_vm8 }
0x1607   : > { %v8363_v49 = vsel %vm8362_vm7, %v10079_v15, %v8359_v20  ;;  %v8386_v2 = vmul.f32 %v10081_v18, %v8385_v0 }
0x1608   : > { %8527 = vst.msk [vmem:[%s15194_s20 + $0x38] sm:$0xff] %vm488_vm0, %v8511_v14  ;;  %v8469_v60 = vmul.f32 %v8363_v49, %v15117_v3 }
0x1609   : > { %v8387_v27 = vmul.f32 0.5, %v8386_v2 }
0x160a   : > { %v8489_v13 = vmul.f32 %v15182_v21, %v8469_v60 }
0x160b   : > { %v8388_v45 = vsub.f32 1.5, %v8387_v27 }
0x160c   : > { %v8509_v48 = vadd.f32 %v15187_v16, %v8489_v13 }
0x160d   : > { %v8389_v39 = vmul.f32 %v10081_v18, %v8388_v45 }
0x160e   : > { %8525 = vst.msk [vmem:[%s15194_s20 + $0x28] sm:$0xff] %vm488_vm0, %v8509_v48 }
0x160f   : > { %v8393_v54 = vsel %vm8392_vm10, %v10081_v18, %v8389_v39 }
0x1610   : > { %v8472_v35 = vmul.f32 %v8393_v54, %v15127_v55 }
0x1612   : > { %v8492_v62 = vmul.f32 %v15182_v21, %v8472_v35  ;;  %v8253_v42 = vpop.xlane.xlu2 %8252 }
0x1613   : > { %v8281_v3 = vmul.f32 %v8253_v42, %v14578_v33 }
0x1614   : > { %v8512_v43 = vadd.f32 %v15187_v16, %v8492_v62 }
0x1615   : > { %v8297_v26 = vadd.f32 1e-05, %v8281_v3 }
0x1616   : > { %8528 = vst.msk [vmem:[%s15194_s20 + $0x40] sm:$0xff] %vm488_vm0, %v8512_v43 }
0x1617   : > { %10082 = vrsqrt.f32 %v8297_v26  ;;  %vm8400_vm13 = vweird.f32 %v8297_v26 }
0x161a   : > { %v8262_v32 = vpop.xlane.xlu2 %8261 }
0x161b   : > { %v8284_v47 = vmul.f32 %v8262_v32, %v14578_v33 }
0x161d   : > { %v10083_v9 = vpop.eup %10082  ;;  %v8300_v36 = vadd.f32 1e-05, %v8284_v47  ;;  %v8256_v4 = vpop.xlane.xlu0 %8255 }
0x161e   : > { %v8395_v28 = vmul.f32 %v10083_v9, %v8297_v26  ;;  %v8282_v55 = vmul.f32 %v8256_v4, %v14578_v33  ;;  %vm8401_vm11 = vweird.f32 %v10083_v9 }
0x161f   : > { %10084 = vrsqrt.f32 %v8300_v36  ;;  %vm8402_vm14 = vmor %vm8400_vm13, %vm8401_vm11  ;;  %vm8430_vm15 = vweird.f32 %v8300_v36 }
0x1620   : > { %v8396_v59 = vmul.f32 %v10083_v9, %v8395_v28  ;;  %v8298_v51 = vadd.f32 1e-05, %v8282_v55 }
0x1622   : > { %v8397_v52 = vmul.f32 0.5, %v8396_v59  ;;  %10086 = vrsqrt.f32 %v8298_v51  ;;  %vm8410_vm3 = vweird.f32 %v8298_v51 }
0x1624   : > { %v8398_v6 = vsub.f32 1.5, %v8397_v52 }
0x1625   : > { %v10085_v44 = vpop.eup %10084  ;;  %v8265_v7 = vpop.xlane.xlu0 %8264 }
0x1626   : > { %v8259_v58 = vpop.xlane.xlu1 %8258  ;;  %v8399_v19 = vmul.f32 %v10083_v9, %v8398_v6  ;;  %v8425_v53 = vmul.f32 %v10085_v44, %v8300_v36  ;;  %v8285_v15 = vmul.f32 %v8265_v7, %v14578_v33  ;;  %vm8431_vm12 = vweird.f32 %v10085_v44 }
0x1627   : > { %v8283_v11 = vmul.f32 %v8259_v58, %v14578_v33  ;;  %vm8432_vm1 = vmor %vm8430_vm15, %vm8431_vm12 }
0x1628   : > { %v10087_v50 = vpop.eup %10086  ;;  %v8403_v34 = vsel %vm8402_vm14, %v10083_v9, %v8399_v19  ;;  %v8426_v61 = vmul.f32 %v10085_v44, %v8425_v53  ;;  %v8301_v17 = vadd.f32 1e-05, %v8285_v15 }
0x1629   : > { %v8299_v40 = vadd.f32 1e-05, %v8283_v11  ;;  %v8473_v23 = vmul.f32 %v8403_v34, %v15135_v37  ;;  %v8405_v63 = vmul.f32 %v10087_v50, %v8298_v51  ;;  %vm8411_vm2 = vweird.f32 %v10087_v50 }
0x162a   : > { %v8427_v57 = vmul.f32 0.5, %v8426_v61  ;;  %vm8412_vm4 = vmor %vm8410_vm3, %vm8411_vm2  ;;  %vm8440_vm9 = vweird.f32 %v8301_v17 }
0x162b   : > { %10088 = vrsqrt.f32 %v8299_v40  ;;  %v8493_v56 = vmul.f32 %v15182_v21, %v8473_v23  ;;  %v8406_v38 = vmul.f32 %v10087_v50, %v8405_v63  ;;  %vm8420_vm7 = vweird.f32 %v8299_v40 }
0x162c   : > { %10090 = vrsqrt.f32 %v8301_v17  ;;  %v8428_v5 = vsub.f32 1.5, %v8427_v57 }
0x162d   : > { %v8513_v1 = vadd.f32 %v15187_v16, %v8493_v56  ;;  %v8407_v46 = vmul.f32 0.5, %v8406_v38 }
0x162e   : > { %v8268_v22 = vpop.xlane.xlu1 %8267  ;;  %v8429_v31 = vmul.f32 %v10085_v44, %v8428_v5 }
0x162f   : > { %v8286_v18 = vmul.f32 %v8268_v22, %v14578_v33  ;;  %8529 = vst.msk [vmem:[%s15194_s20 + $0x48] sm:$0xff] %vm488_vm0, %v8513_v1  ;;  %v8408_v37 = vsub.f32 1.5, %v8407_v46 }
0x1630   : > { %v8433_v24 = vsel %vm8432_vm1, %v10085_v44, %v8429_v31 }
0x1631   : > { %v10089_v30 = vpop.eup %10088  ;;  %v8302_v20 = vadd.f32 1e-05, %v8286_v18  ;;  %v8476_v14 = vmul.f32 %v8433_v24, %v15142_v25  ;;  %v8409_v49 = vmul.f32 %v10087_v50, %v8408_v37 }
0x1632   : > { %v10091_v0 = vpop.eup %10090  ;;  %v8415_v2 = vmul.f32 %v10089_v30, %v8299_v40  ;;  %vm8421_vm5 = vweird.f32 %v10089_v30 }
0x1633   : > { %v8435_v60 = vmul.f32 %v10091_v0, %v8301_v17  ;;  %10092 = vrsqrt.f32 %v8302_v20  ;;  %v8496_v27 = vmul.f32 %v15182_v21, %v8476_v14  ;;  %v8413_v13 = vsel %vm8412_vm4, %v10087_v50, %v8409_v49  ;;  %vm8422_vm8 = vmor %vm8420_vm7, %vm8421_vm5 }
0x1634   : > { %v8416_v45 = vmul.f32 %v10089_v30, %v8415_v2  ;;  %v8474_v48 = vmul.f32 %v8413_v13, %v15148_v12  ;;  %vm8441_vm6 = vweird.f32 %v10091_v0  ;;  %vm8450_vm13 = vweird.f32 %v8302_v20 }
0x1635   : > { %v8436_v39 = vmul.f32 %v10091_v0, %v8435_v60  ;;  %v8516_v54 = vadd.f32 %v15187_v16, %v8496_v27  ;;  %vm8442_vm10 = vmor %vm8440_vm9, %vm8441_vm6 }
0x1636   : > { %v8417_v35 = vmul.f32 0.5, %v8416_v45  ;;  %v8494_v25 = vmul.f32 %v15182_v21, %v8474_v48 }
0x1637   : > { %v8437_v62 = vmul.f32 0.5, %v8436_v39  ;;  %8532 = vst.msk [vmem:[%s15194_s20 + $0x60] sm:$0xff] %vm488_vm0, %v8516_v54 }
0x1638   : > { %v8418_v42 = vsub.f32 1.5, %v8417_v35  ;;  %v8514_v43 = vadd.f32 %v15187_v16, %v8494_v25 }
0x1639   : > { %v10093_v3 = vpop.eup %10092  ;;  %v8438_v26 = vsub.f32 1.5, %v8437_v62 }
0x163a   : > { %v8419_v32 = vmul.f32 %v10089_v30, %v8418_v42  ;;  %v8445_v12 = vmul.f32 %v10093_v3, %v8302_v20  ;;  %8530 = vst.msk [vmem:[%s15194_s20 + $0x50] sm:$0xff] %vm488_vm0, %v8514_v43  ;;  %vm8451_vm11 = vweird.f32 %v10093_v3 }
0x163b   : > { %v8439_v47 = vmul.f32 %v10091_v0, %v8438_v26  ;;  %vm8452_vm14 = vmor %vm8450_vm13, %vm8451_vm11 }
0x163c   : > { %v8423_v9 = vsel %vm8422_vm8, %v10089_v30, %v8419_v32  ;;  %v8446_v36 = vmul.f32 %v10093_v3, %v8445_v12 }
0x163d   : > { %v8475_v4 = vmul.f32 %v8423_v9, %v15160_v8  ;;  %v8443_v28 = vsel %vm8442_vm10, %v10091_v0, %v8439_v47 }
0x163e   : > { %v8477_v55 = vmul.f32 %v8443_v28, %v15157_v10  ;;  %v8447_v59 = vmul.f32 0.5, %v8446_v36 }
0x163f   : > { %v8495_v51 = vmul.f32 %v15182_v21, %v8475_v4 }
0x1640   : > { %v8497_v52 = vmul.f32 %v15182_v21, %v8477_v55  ;;  %v8448_v6 = vsub.f32 1.5, %v8447_v59 }
0x1641   : > { %v8515_v44 = vadd.f32 %v15187_v16, %v8495_v51 }
0x1642   : > { %v8517_v58 = vadd.f32 %v15187_v16, %v8497_v52  ;;  %v8449_v7 = vmul.f32 %v10093_v3, %v8448_v6 }
0x1643   : > { %8531 = vst.msk [vmem:[%s15194_s20 + $0x58] sm:$0xff] %vm488_vm0, %v8515_v44 }
0x1644   : > { %8533 = vst.msk [vmem:[%s15194_s20 + $0x68] sm:$0xff] %vm488_vm0, %v8517_v58  ;;  %v8453_v10 = vsel %vm8452_vm14, %v10093_v3, %v8449_v7 }
0x1645   : > { %v8478_v8 = vmul.f32 %v8453_v10, %v15171_v29 }
0x1647   : > { %v8498_v19 = vmul.f32 %v15182_v21, %v8478_v8 }
0x1649   : > { %v8518_v53 = vadd.f32 %v15187_v16, %v8498_v19 }
0x164b   : > { %8534 = vst.msk [vmem:[%s15194_s20 + $0x70] sm:$0xff] %vm488_vm0, %v8518_v53 }
0x165c   : > { %v8271_v11 = vpop.xlane.xlu2 %8270 }
0x165d   : > { %v8287_v15 = vmul.f32 %v8271_v11, %v14578_v33 }
0x165f   : > { %v8303_v50 = vadd.f32 1e-05, %v8287_v15 }
0x1661   : > { %10094 = vrsqrt.f32 %v8303_v50  ;;  %vm8460_vm15 = vweird.f32 %v8303_v50 }
0x1667   : > { %v10095_v34 = vpop.eup %10094 }
0x1668   : > { %v8455_v61 = vmul.f32 %v10095_v34, %v8303_v50  ;;  %vm8461_vm12 = vweird.f32 %v10095_v34 }
0x1669   : > { %vm8462_vm1 = vmor %vm8460_vm15, %vm8461_vm12 }
0x166a   : > { %v8456_v40 = vmul.f32 %v10095_v34, %v8455_v61 }
0x166c   : > { %v8457_v23 = vmul.f32 0.5, %v8456_v40 }
0x166e   : > { %v8458_v63 = vsub.f32 1.5, %v8457_v23 }
0x1670   : > { %v8459_v29 = vmul.f32 %v10095_v34, %v8458_v63 }
0x1672   : > { %v8463_v33 = vsel %vm8462_vm1, %v10095_v34, %v8459_v29 }
0x1673   : > { %v8479_v17 = vmul.f32 %v8463_v33, %v15215_v41 }
0x1675   : > { %v8499_v57 = vmul.f32 %v15182_v21, %v8479_v17 }
0x1677   : > { %v8519_v56 = vadd.f32 %v15187_v16, %v8499_v57 }
0x1679   : > { %8535 = vst.msk [vmem:[%s15194_s20 + $0x78] sm:$0xff] %vm488_vm0, %v8519_v56 }
0x167a   : > { %10169 = shalt.err (!%p10166_p4)
}
0x167b   : > { %s10243_s30 = smov 128  }
0x167c   : > { %9112 = dma.vmem_to_hbm [thread:$0]  (%p10364_p11), %s8551_s24, 2048, %s8553_s15, %s8537_s29, %s10243_s30, %s10243_s30, %s10237_s21  }
0x167d PF: > { %s16010_s20 = sld [smem:[#allocation8_spill]]  ;;  %p16012_p7 = scmp.ge.s32.totalorder %s10208_s28, 2 }
0x167f   : > { %p9119_p5 = pnand %p16012_p7, %p10368_p12 }
0x1681   : > { %p9120_p8 = pneg %p9119_p5 }
0x1683   : > { %s8567_s0 = sand.u32 1, %s16010_s20  }
0x1684   : > { %s8568_s18 = scalar_lea.sflag [#allocation4], %s8567_s0 }
0x1685   : > { %10191 = dma.done.wait (%p9120_p8), %s8568_s18, 2048  }
0x1686   : > { %10193 = vsyncadd (%p9120_p8), %s8568_s18, 4294965248  ;;  %s16013_s28 = sld [smem:[#allocation10_spill]]  ;;  %s16016_s25 = smov %s10200_s26 }
0x1687   : > { %s16014_s17 = sld [smem:[#allocation9_spill]] }
0x1688   : > { %s16015_s27 = sld [smem:[#allocation11_spill]] }
0x168c   : > { %p26_p10 = scmp.ge.s32.totalorder %s16013_s28, 4  }
0x168d   : > { %s16017_s26 = smov %s16014_s17 }
0x168e   :  { %28 = sbr.rel (!%p26_p10) target bundleno = 8 (0x8), region = 117 }
0x1693   :  { %8574 = vsyncpa [#allocation3], 1 }
0x1694   :  { %8576 = vsyncpa [#allocation3 + $0x1], 1 }
0x1695   :  { %8577 = vsyncpa [#allocation4], 1 }
0x1696   :  { %8579 = vsyncpa [#allocation4 + $0x1], 1 }

</bundles_post_ra>
